<compile_context>
chip_gen: v7x
topology: tpu7x:2x2x1
jax: 0.10.0
libtpu: 0.0.40
codegen_flags: <defaults>
</compile_context>

<pallas_src>
import functools

import numpy as np
import jax
import jax.numpy as jnp
from jax.experimental import pallas as pl
from jax.experimental.pallas import tpu as pltpu


# ----------------------------------------------------------------------------
# block sizing / VMEM budgeting helpers
# ----------------------------------------------------------------------------
def _round_up(x, m):
    return ((x + m - 1) // m) * m


def _pick_block(n, cap, align=1):
    """Largest divisor of n <= cap that is a multiple of `align` (or n itself).
    Prefers tiles that leave >= 2 grid steps so v7x can shard the axis over both
    TensorCores."""
    cap = max(1, min(cap, n))
    divs = [d for d in range(1, cap + 1) if n % d == 0]
    aligned = [d for d in divs if d % align == 0]
    multi = [d for d in aligned if d < n]
    if multi:
        return max(multi)
    if aligned:
        return max(aligned)
    return n            # full block (always legal: equals the full array dim)


def _vmem_limit(block_bytes):
    # explicit scoped-VMEM request: above the 16/32 MiB defaults, below v7x's 64 MiB.
    return int(min(max(2 * block_bytes + (8 << 20), 32 << 20), 64 << 20))


# ----------------------------------------------------------------------------
# Pallas kernels
# ----------------------------------------------------------------------------
def _circ_conv3_kernel(x_ref, w_ref, b_ref, o_ref, xp_ref, acc_ref, *,
                       D, H, W, Cin, Cout):
    """Circular 3x3x3 conv for one batch volume.  The circular halo is built in a VMEM
    scratch (no HBM wrap pad) and the 27 taps accumulate into a VMEM scratch ref."""
    # interior
    xp_ref[1:D + 1, 1:H + 1, 1:W + 1, :] = x_ref[0]
    # depth wrap
    xp_ref[0, 1:H + 1, 1:W + 1, :] = x_ref[0, D - 1]
    xp_ref[D + 1, 1:H + 1, 1:W + 1, :] = x_ref[0, 0]
    # height wrap (reads the already-filled D range, so corners are correct)
    xp_ref[:, 0, 1:W + 1, :] = xp_ref[:, H, 1:W + 1, :]
    xp_ref[:, H + 1, 1:W + 1, :] = xp_ref[:, 1, 1:W + 1, :]
    # width wrap (covers all rows including the fresh D/H halo rows)
    xp_ref[:, :, 0, :] = xp_ref[:, :, W, :]
    xp_ref[:, :, W + 1, :] = xp_ref[:, :, 1, :]

    acc_ref[...] = jnp.zeros_like(acc_ref)
    t = 0
    for kd in range(3):
        for kh in range(3):
            for kw in range(3):
                win = xp_ref[kd:kd + D, kh:kh + H, kw:kw + W, :]
                acc_ref[...] += jnp.dot(win.reshape(D * H * W, Cin), w_ref[t],
                                        preferred_element_type=jnp.float32)
                t += 1
    o_ref[0] = (acc_ref[...] + b_ref[...]).astype(o_ref.dtype)


def _mm_chain2_kernel(x_ref, w1_ref, b1_ref, w2_ref, b2_ref, o_ref):
    # o = (x @ W1 + b1) @ W2 + b2   (local_processor conv1x1 -> modulation conv1x1)
    t = jnp.dot(x_ref[0], w1_ref[...], preferred_element_type=jnp.float32) + b1_ref[...]
    o_ref[0] = (jnp.dot(t, w2_ref[...], preferred_element_type=jnp.float32)
                + b2_ref[...]).astype(o_ref.dtype)


def _gate_qkv_kernel(g_ref, x_ref, wm_ref, bm_ref, wq_ref, bq_ref, o_ref):
    # gate = sigmoid(g @ Wm + bm);  o = (x * gate) @ Wqkv + bqkv  (scale pre-folded)
    z = jnp.dot(g_ref[0], wm_ref[...], preferred_element_type=jnp.float32) + bm_ref[...]
    gate = pl.reciprocal(1.0 + jnp.exp(-z), approx=True)     # EUP slot, ~free
    xm = x_ref[0] * gate
    o_ref[0] = (jnp.dot(xm, wq_ref[...], preferred_element_type=jnp.float32)
                + bq_ref[...]).astype(o_ref.dtype)


def _axial_attn_kernel(qkv_ref, o_ref, *, nh):
    """qkv_ref: (3, nh, tr, L, hd).  One batched einsum over all heads x rows; no
    per-head lane slicing, no concat (heads/qkv were split in the wrapper)."""
    _, _, tr, L, hd = qkv_ref.shape
    qkv = qkv_ref[...].reshape(3, nh * tr, L, hd)            # leading-dims merge only
    q, k, v = qkv[0], qkv[1], qkv[2]
    s = jnp.einsum('bqd,bkd->bqk', q, k, preferred_element_type=jnp.float32)
    s = s - jnp.max(s, axis=-1, keepdims=True)
    e = jnp.exp(s)
    p = e * pl.reciprocal(jnp.sum(e, axis=-1, keepdims=True), approx=True)
    o = jnp.einsum('bqk,bkd->bqd', p, v, preferred_element_type=jnp.float32)
    o_ref[...] = o.reshape(nh, tr, L, hd).astype(o_ref.dtype)


def _proj_headacc_kernel(a_ref, b_ref, c_ref, w_ref, bias_ref, o_ref, acc_ref):
    # o = sum_h (out_d + out_h + out_w)[h] @ Wproj[h] + b   (head axis = grid axis 1)
    h = pl.program_id(1)

    @pl.when(h == 0)
    def _():
        acc_ref[...] = jnp.zeros_like(acc_ref)

    s = a_ref[0] + b_ref[0] + c_ref[0]                                   # (bn, hd)
    acc_ref[...] += jnp.dot(s, w_ref[0], preferred_element_type=jnp.float32)

    @pl.when(h == pl.num_programs(1) - 1)
    def _():
        o_ref[...] = (acc_ref[...] + bias_ref[...]).astype(o_ref.dtype)


# ----------------------------------------------------------------------------
# pallas_call wrappers
# ----------------------------------------------------------------------------
def circ_conv3d_3x3x3(x_cl, w27, b):
    # x_cl: (B, D, H, W, Cin); w27: (27, Cin, Cout) tap-major (pre-permuted once).
    B, D, H, W, Cin = x_cl.shape
    Cout = w27.shape[-1]
    DHW = D * H * W
    kernel = functools.partial(_circ_conv3_kernel, D=D, H=H, W=W, Cin=Cin, Cout=Cout)
    blk_bytes = (4 * (D + 2) * (H + 2) * _round_up(W + 2, 8) * _round_up(Cin, 128)
                 + 2 * 4 * D * H * _round_up(W, 8) * _round_up(Cin, 128)
                 + 3 * 4 * _round_up(DHW, 8) * _round_up(Cout, 128))
    # TODO(synk): for large volumes, tile over D with a 1-voxel halo so one padded
    # batch volume stays inside v7x's 64 MiB VMEM; unnecessary at these sizes.
    return pl.pallas_call(
        kernel,
        out_shape=jax.ShapeDtypeStruct((B, DHW, Cout), jnp.float32),
        grid_spec=pltpu.PrefetchScalarGridSpec(
            num_scalar_prefetch=0,
            grid=(B,),
            in_specs=[pl.BlockSpec((1, D, H, W, Cin), lambda i: (i, 0, 0, 0, 0)),
                      pl.BlockSpec((27, Cin, Cout), lambda i: (0, 0, 0)),
                      pl.BlockSpec((1, Cout), lambda i: (0, 0))],
            out_specs=pl.BlockSpec((1, DHW, Cout), lambda i: (i, 0, 0)),
            scratch_shapes=[pltpu.VMEM((D + 2, H + 2, W + 2, Cin), jnp.float32),
                            pltpu.VMEM((DHW, Cout), jnp.float32)],
        ),
        compiler_params=pltpu.CompilerParams(
            dimension_semantics=("parallel",),
            vmem_limit_bytes=_vmem_limit(blk_bytes)),
    )(x_cl, w27, b.reshape(1, Cout))


def _rows_matmul_call(kernel, row_arrays, weight_arrays, out_cols, *, cap=2048):
    """Row-tiled fused 1x1-conv kernels on (B, DHW, C) tensors; weights broadcast."""
    Bb, R, _ = row_arrays[0].shape
    bn = _pick_block(R, cap, align=8)
    in_specs = [pl.BlockSpec((1, bn, a.shape[-1]), lambda b, i: (b, i, 0))
                for a in row_arrays]
    in_specs += [pl.BlockSpec(w.shape, lambda b, i: (0, 0)) for w in weight_arrays]
    # TODO(synk): with C=24 (<128 lanes) every store is a masked vst; packing outputs
    # into a >=128-wide slab trades extra HBM bytes for store efficiency — not done.
    return pl.pallas_call(
        kernel,
        out_shape=jax.ShapeDtypeStruct((Bb, R, out_cols), jnp.float32),
        grid_spec=pltpu.PrefetchScalarGridSpec(
            num_scalar_prefetch=0,
            grid=(Bb, R // bn),
            in_specs=in_specs,
            out_specs=pl.BlockSpec((1, bn, out_cols), lambda b, i: (b, i, 0)),
        ),
        compiler_params=pltpu.CompilerParams(
            dimension_semantics=("parallel", "parallel"),
            vmem_limit_bytes=_vmem_limit(0)),
    )(*row_arrays, *weight_arrays)


def mm_chain2(x, w1, b1, w2, b2):
    return _rows_matmul_call(_mm_chain2_kernel, [x],
                             [w1, b1.reshape(1, -1), w2, b2.reshape(1, -1)],
                             out_cols=w2.shape[1])


def gate_qkv(g, x, wm, bm, wq, bq):
    return _rows_matmul_call(_gate_qkv_kernel, [g, x],
                             [wm, bm.reshape(1, -1), wq, bq.reshape(1, -1)],
                             out_cols=wq.shape[1])


def axial_attention(qkv_ax, *, vmem_budget=16 << 20):
    # qkv_ax: (3, nh, rows, L, hd) -> (nh, rows, L, hd)
    _, nh, rows, L, hd = qkv_ax.shape
    hd_pad = _round_up(hd, 128)
    l_sub = _round_up(L, 8)
    per_row = 4 * (2 * 3 * nh * l_sub * hd_pad          # qkv block, double-buffered
                   + 2 * nh * l_sub * hd_pad            # output block, double-buffered
                   + nh * l_sub * _round_up(L, 128))    # score scratch
    tr = _pick_block(rows, max(1, vmem_budget // per_row), align=1)
    kernel = functools.partial(_axial_attn_kernel, nh=nh)
    return pl.pallas_call(
        kernel,
        out_shape=jax.ShapeDtypeStruct((nh, rows, L, hd), jnp.float32),
        grid_spec=pltpu.PrefetchScalarGridSpec(
            num_scalar_prefetch=0,
            grid=(rows // tr,),
            in_specs=[pl.BlockSpec((3, nh, tr, L, hd), lambda i: (0, 0, i, 0, 0))],
            out_specs=pl.BlockSpec((nh, tr, L, hd), lambda i: (0, i, 0, 0)),
        ),
        compiler_params=pltpu.CompilerParams(
            dimension_semantics=("parallel",),
            vmem_limit_bytes=_vmem_limit(per_row * tr)),
    )(qkv_ax)


def proj_head_sum(a3, b3, c3, w3, bias, *, cap=4096):
    # a3/b3/c3: (nh, N, hd) axial outputs; w3: (nh, hd, C); returns (N, C).
    nh, n, hd = a3.shape
    C = w3.shape[-1]
    bn = _pick_block(n, cap, align=8)

    def row_spec():
        return pl.BlockSpec((1, bn, hd), lambda i, h: (h, i, 0))

    return pl.pallas_call(
        _proj_headacc_kernel,
        out_shape=jax.ShapeDtypeStruct((n, C), jnp.float32),
        grid_spec=pltpu.PrefetchScalarGridSpec(
            num_scalar_prefetch=0,
            grid=(n // bn, nh),                         # head axis last: accumulation
            in_specs=[row_spec(), row_spec(), row_spec(),
                      pl.BlockSpec((1, hd, C), lambda i, h: (h, 0, 0)),
                      pl.BlockSpec((1, C), lambda i, h: (0, 0))],
            out_specs=pl.BlockSpec((bn, C), lambda i, h: (i, 0)),
            scratch_shapes=[pltpu.VMEM((bn, C), jnp.float32)],
        ),
        compiler_params=pltpu.CompilerParams(
            dimension_semantics=("parallel", "arbitrary"),
            vmem_limit_bytes=_vmem_limit(0)),
    )(a3, b3, c3, w3, bias.reshape(1, C))


# ----------------------------------------------------------------------------
# JAX glue (InstanceNorm stats + GELU, rotation folding)
# ----------------------------------------------------------------------------
def _instance_norm_gelu(x, eps=1e-5):
    # InstanceNorm3d(affine=False) over the spatial axis of (B, DHW, C) + exact GELU.
    # TODO(synk): fold the per-(b,c) scale/shift + GELU into the consuming Pallas
    # matmul once erf lowering inside Mosaic kernels is verified; kept in XLA here.
    mean = jnp.mean(x, axis=1, keepdims=True)
    var = jnp.var(x, axis=1, keepdims=True)
    return jax.nn.gelu((x - mean) * jax.lax.rsqrt(var + eps), approximate=False)


def _per_head_rotation(R, nh, hd):
    # M[h] = blockdiag(R[h]^T, ...)[:hd, :hd]  (exact fold of apply_rotation_adaptive_r9
    # with zero-pad / truncate).  Only needed when hd % 3 != 0.
    nv = -(-hd // 3)
    RT = jnp.swapaxes(R, -1, -2)                                   # (nh, 3, 3)
    eye_v = jnp.eye(nv, dtype=R.dtype)
    blk = (eye_v[None, :, None, :, None] * RT[:, None, :, None, :]).reshape(
        nh, nv * 3, nv * 3)
    return blk[:, :hd, :hd]


def _maybe_rotate(qkv_ax, R, nh, hd):
    # q and k get the SAME orthogonal rotation and v is never rotated, so for
    # hd % 3 == 0 the rotation cancels exactly in q @ k^T.
    if hd % 3 == 0:
        return qkv_ax
    M = _per_head_rotation(R, nh, hd)
    q = jnp.einsum('nrld,nde->nrle', qkv_ax[0], M)
    k = jnp.einsum('nrld,nde->nrle', qkv_ax[1], M)
    return jnp.stack([q, k, qkv_ax[2]], axis=0)


# ----------------------------------------------------------------------------
# Forward pass
# ----------------------------------------------------------------------------
def self_attention_forward(x, pos_emb, params, *, num_heads):
    B, C, D, H, W = x.shape
    assert C % num_heads == 0
    nh = num_heads
    hd = C // nh
    DHW = D * H * W
    N = B * DHW

    x_cl = jnp.transpose(x, (0, 2, 3, 4, 1)).reshape(B, DHW, C)
    pe_cl = jnp.transpose(pos_emb, (0, 2, 3, 4, 1))                        # (B,D,H,W,C)

    # ---- positional processing (identical for all 3 axial calls -> computed once) --
    lp1 = circ_conv3d_3x3x3(pe_cl, params['lp1_w'], params['lp1_b'])       # (B,DHW,C)
    h1 = _instance_norm_gelu(lp1)
    m1 = mm_chain2(h1, params['lp2_w'], params['lp2_b'],
                   params['mod1_w'], params['mod1_b'])                     # (B,DHW,C)
    g = _instance_norm_gelu(m1)
    # NOTE: the reference's pos_attention bias is constant along the key axis, so the
    # softmax is invariant to it; that branch (and the dead t_*/pos_bias_layer) is
    # dropped entirely.

    # ---- modulation gate + QKV in one fused kernel (scale folded into q columns) ---
    scale = float(hd) ** -0.5
    col_scale = jnp.concatenate([jnp.full((C,), scale, jnp.float32),
                                 jnp.ones((2 * C,), jnp.float32)])
    qkv = gate_qkv(g, x_cl, params['mod2_w'], params['mod2_b'],
                   params['qkv_w'] * col_scale[None, :],
                   params['qkv_b'] * col_scale)                            # (B,DHW,3C)

    # ---- per-axis head-split layouts: one fused XLA transpose each ------------------
    qkv6 = qkv.reshape(B, D, H, W, 3, nh, hd)
    qkv_w_ax = jnp.transpose(qkv6, (4, 5, 0, 1, 2, 3, 6)).reshape(3, nh, B * D * H, W, hd)
    qkv_h_ax = jnp.transpose(qkv6, (4, 5, 0, 1, 3, 2, 6)).reshape(3, nh, B * D * W, H, hd)
    qkv_d_ax = jnp.transpose(qkv6, (4, 5, 0, 2, 3, 1, 6)).reshape(3, nh, B * H * W, D, hd)

    qkv_w_ax = _maybe_rotate(qkv_w_ax, params['R_w'], nh, hd)
    qkv_h_ax = _maybe_rotate(qkv_h_ax, params['R_h'], nh, hd)
    qkv_d_ax = _maybe_rotate(qkv_d_ax, params['R_d'], nh, hd)

    ow = axial_attention(qkv_w_ax)                       # (nh, B*D*H, W, hd)
    oh = axial_attention(qkv_h_ax)                       # (nh, B*D*W, H, hd)
    od = axial_attention(qkv_d_ax)                       # (nh, B*H*W, D, hd)

    ow = ow.reshape(nh, N, hd)
    oh = jnp.transpose(oh.reshape(nh, B, D, W, H, hd),
                       (0, 1, 2, 4, 3, 5)).reshape(nh, N, hd)
    od = jnp.transpose(od.reshape(nh, B, H, W, D, hd),
                       (0, 1, 4, 2, 3, 5)).reshape(nh, N, hd)

    # ---- proj conv1x1: 3-way axial sum + per-head accumulation fused ---------------
    out = proj_head_sum(od, oh, ow, params['proj_w'].reshape(nh, hd, C),
                        params['proj_b'])                                  # (N, C)
    return jnp.transpose(out.reshape(B, D, H, W, C), (0, 4, 1, 2, 3))


# ----------------------------------------------------------------------------
# Deterministic parameter setup
# ----------------------------------------------------------------------------
def _np_project_to_rotation(M):
    # SVD projection onto SO(3) (random_valid_r9 / r9_to_matrix_v2) — host precompute.
    U, _, Vt = np.linalg.svd(M)
    R0 = U @ Vt
    det = np.linalg.det(R0)
    diag = np.stack([np.ones_like(det), np.ones_like(det), np.sign(det)], axis=-1)
    return (U @ (diag[..., :, None] * Vt)).astype(np.float32)


def init_params(key, C, nh):
    ks = jax.random.split(key, 16)

    def normal(k, shape, std=0.1):
        return (std * jax.random.normal(k, shape)).astype(jnp.float32)

    # Conv3d weight generated in torch layout (Cout, Cin, 3, 3, 3), pre-permuted ONCE
    # to tap-major (27, Cin, Cout).
    lp1_w_t = normal(ks[2], (C, C, 3, 3, 3))
    lp1_w = jnp.transpose(lp1_w_t, (2, 3, 4, 1, 0)).reshape(27, C, C)

    p = {
        'qkv_w': normal(ks[0], (C, 3 * C)),
        'qkv_b': normal(ks[1], (3 * C,), 0.01),
        'lp1_w': lp1_w,
        'lp1_b': normal(ks[3], (C,), 0.01),
        'lp2_w': normal(ks[4], (C, C)),
        'lp2_b': normal(ks[5], (C,), 0.01),
        'mod1_w': normal(ks[6], (C, C)),
        'mod1_b': normal(ks[7], (C,), 0.01),
        'mod2_w': normal(ks[8], (C, C)),
        'mod2_b': normal(ks[9], (C,), 0.01),
        'proj_w': normal(ks[10], (C, C)),
        'proj_b': normal(ks[11], (C,), 0.01),
    }
    # R9 params + the forward-time r9_to_matrix_v2 projection are pure functions of
    # fixed parameters -> precomputed with NumPy.  Only used when head_dim % 3 != 0.
    for name, k in zip(('R_d', 'R_h', 'R_w'), (ks[12], ks[13], ks[14])):
        M = np.asarray(jax.random.normal(k, (1, nh, 3, 3)), dtype=np.float32)
        r9 = _np_project_to_rotation(M).reshape(1, nh, 9)
        R = _np_project_to_rotation(r9.reshape(1, nh, 3, 3))[0]
        p[name] = jnp.asarray(R, dtype=jnp.float32)
    return p


# ----------------------------------------------------------------------------
if __name__ == "__main__":
    B, C, nh = 2, 24, 4
    D = H = W = 4
    key = jax.random.PRNGKey(0)
    k_x, k_pe, k_par = jax.random.split(key, 3)
    x = jax.random.normal(k_x, (B, C, D, H, W), dtype=jnp.float32)
    pos_emb = jax.random.normal(k_pe, (B, C, D, H, W), dtype=jnp.float32)
    params = init_params(k_par, C, nh)

    fwd = jax.jit(functools.partial(self_attention_forward, num_heads=nh))
    out = jax.block_until_ready(fwd(x, pos_emb, params))
    assert out.shape == (B, C, D, H, W)
    assert bool(jnp.all(jnp.isfinite(out)))
    print("KERNEL_OK")
</pallas_src>

<mosaic_0001>
module attributes {stable_mosaic.version = 11 : i64} {
  func.func @_circ_conv3_kernel(%arg0: i32, %arg1: memref<1x4x4x4x24xf32, #tpu.memory_space<vmem>>, %arg2: memref<27x24x24xf32, #tpu.memory_space<vmem>>, %arg3: memref<1x24xf32, #tpu.memory_space<vmem>>, %arg4: memref<1x64x24xf32, #tpu.memory_space<vmem>>, %arg5: memref<6x6x6x24xf32, #tpu.memory_space<vmem>>, %arg6: memref<64x24xf32, #tpu.memory_space<vmem>>) attributes {dimension_semantics = [#tpu.dimension_semantics<parallel>], iteration_bounds = array<i64: 2>, scalar_prefetch = 0 : i64, scratch_operands = 2 : i64, tpu.core_type = #tpu.core_type<tc>, window_params = [{transform_indices = @transform_0, window_bounds = array<i64: 1, 4, 4, 4, 24>}, {pipeline_mode = #tpu.pipeline_mode<synchronous>, transform_indices = @transform_1, window_bounds = array<i64: 27, 24, 24>}, {pipeline_mode = #tpu.pipeline_mode<synchronous>, transform_indices = @transform_2, window_bounds = array<i64: 1, 24>}, {transform_indices = @transform_3, window_bounds = array<i64: 1, 64, 24>}]} {
    %c0 = arith.constant 0 : index
    %c0_0 = arith.constant 0 : index
    %c0_1 = arith.constant 0 : index
    %c0_2 = arith.constant 0 : index
    %c0_3 = arith.constant 0 : index
    %0 = vector.load %arg1[%c0, %c0_0, %c0_1, %c0_2, %c0_3] : memref<1x4x4x4x24xf32, #tpu.memory_space<vmem>>, vector<1x4x4x4x24xf32>
    %1 = vector.shape_cast %0 : vector<1x4x4x4x24xf32> to vector<4x4x4x24xf32>
    %c1 = arith.constant 1 : index
    %c1_4 = arith.constant 1 : index
    %c1_5 = arith.constant 1 : index
    %c0_6 = arith.constant 0 : index
    %2 = vector.load %arg5[%c1, %c1_4, %c1_5, %c0_6] : memref<6x6x6x24xf32, #tpu.memory_space<vmem>>, vector<4x4x4x24xf32>
    tpu.vector_store %arg5[%c1, %c1_4, %c1_5, %c0_6], %1 {strides = array<i32>} : memref<6x6x6x24xf32, #tpu.memory_space<vmem>>, vector<4x4x4x24xf32>,
    %c0_7 = arith.constant 0 : index
    %c3 = arith.constant 3 : index
    %c0_8 = arith.constant 0 : index
    %c0_9 = arith.constant 0 : index
    %c0_10 = arith.constant 0 : index
    %3 = vector.load %arg1[%c0_7, %c3, %c0_8, %c0_9, %c0_10] : memref<1x4x4x4x24xf32, #tpu.memory_space<vmem>>, vector<1x1x4x4x24xf32>
    %4 = vector.shape_cast %3 : vector<1x1x4x4x24xf32> to vector<4x4x24xf32>
    %c0_11 = arith.constant 0 : index
    %c1_12 = arith.constant 1 : index
    %c1_13 = arith.constant 1 : index
    %c0_14 = arith.constant 0 : index
    %5 = vector.load %arg5[%c0_11, %c1_12, %c1_13, %c0_14] : memref<6x6x6x24xf32, #tpu.memory_space<vmem>>, vector<1x4x4x24xf32>
    %6 = vector.shape_cast %5 : vector<1x4x4x24xf32> to vector<4x4x24xf32>
    %7 = vector.shape_cast %4 : vector<4x4x24xf32> to vector<1x4x4x24xf32>
    tpu.vector_store %arg5[%c0_11, %c1_12, %c1_13, %c0_14], %7 {strides = array<i32>} : memref<6x6x6x24xf32, #tpu.memory_space<vmem>>, vector<1x4x4x24xf32>,
    %c0_15 = arith.constant 0 : index
    %c0_16 = arith.constant 0 : index
    %c0_17 = arith.constant 0 : index
    %c0_18 = arith.constant 0 : index
    %c0_19 = arith.constant 0 : index
    %8 = vector.load %arg1[%c0_15, %c0_16, %c0_17, %c0_18, %c0_19] : memref<1x4x4x4x24xf32, #tpu.memory_space<vmem>>, vector<1x1x4x4x24xf32>
    %9 = vector.shape_cast %8 : vector<1x1x4x4x24xf32> to vector<4x4x24xf32>
    %c5 = arith.constant 5 : index
    %c1_20 = arith.constant 1 : index
    %c1_21 = arith.constant 1 : index
    %c0_22 = arith.constant 0 : index
    %10 = vector.load %arg5[%c5, %c1_20, %c1_21, %c0_22] : memref<6x6x6x24xf32, #tpu.memory_space<vmem>>, vector<1x4x4x24xf32>
    %11 = vector.shape_cast %10 : vector<1x4x4x24xf32> to vector<4x4x24xf32>
    %12 = vector.shape_cast %9 : vector<4x4x24xf32> to vector<1x4x4x24xf32>
    tpu.vector_store %arg5[%c5, %c1_20, %c1_21, %c0_22], %12 {strides = array<i32>} : memref<6x6x6x24xf32, #tpu.memory_space<vmem>>, vector<1x4x4x24xf32>,
    %c0_23 = arith.constant 0 : index
    %c4 = arith.constant 4 : index
    %c1_24 = arith.constant 1 : index
    %c0_25 = arith.constant 0 : index
    %13 = vector.load %arg5[%c0_23, %c4, %c1_24, %c0_25] : memref<6x6x6x24xf32, #tpu.memory_space<vmem>>, vector<6x1x4x24xf32>
    %14 = vector.shape_cast %13 : vector<6x1x4x24xf32> to vector<6x4x24xf32>
    %c0_26 = arith.constant 0 : index
    %c0_27 = arith.constant 0 : index
    %c1_28 = arith.constant 1 : index
    %c0_29 = arith.constant 0 : index
    %15 = vector.load %arg5[%c0_26, %c0_27, %c1_28, %c0_29] : memref<6x6x6x24xf32, #tpu.memory_space<vmem>>, vector<6x1x4x24xf32>
    %16 = vector.shape_cast %15 : vector<6x1x4x24xf32> to vector<6x4x24xf32>
    %17 = vector.shape_cast %14 : vector<6x4x24xf32> to vector<6x1x4x24xf32>
    tpu.vector_store %arg5[%c0_26, %c0_27, %c1_28, %c0_29], %17 {strides = array<i32>} : memref<6x6x6x24xf32, #tpu.memory_space<vmem>>, vector<6x1x4x24xf32>,
    %c0_30 = arith.constant 0 : index
    %c1_31 = arith.constant 1 : index
    %c1_32 = arith.constant 1 : index
    %c0_33 = arith.constant 0 : index
    %18 = vector.load %arg5[%c0_30, %c1_31, %c1_32, %c0_33] : memref<6x6x6x24xf32, #tpu.memory_space<vmem>>, vector<6x1x4x24xf32>
    %19 = vector.shape_cast %18 : vector<6x1x4x24xf32> to vector<6x4x24xf32>
    %c0_34 = arith.constant 0 : index
    %c5_35 = arith.constant 5 : index
    %c1_36 = arith.constant 1 : index
    %c0_37 = arith.constant 0 : index
    %20 = vector.load %arg5[%c0_34, %c5_35, %c1_36, %c0_37] : memref<6x6x6x24xf32, #tpu.memory_space<vmem>>, vector<6x1x4x24xf32>
    %21 = vector.shape_cast %20 : vector<6x1x4x24xf32> to vector<6x4x24xf32>
    %22 = vector.shape_cast %19 : vector<6x4x24xf32> to vector<6x1x4x24xf32>
    tpu.vector_store %arg5[%c0_34, %c5_35, %c1_36, %c0_37], %22 {strides = array<i32>} : memref<6x6x6x24xf32, #tpu.memory_space<vmem>>, vector<6x1x4x24xf32>,
    %c0_38 = arith.constant 0 : index
    %c0_39 = arith.constant 0 : index
    %c4_40 = arith.constant 4 : index
    %c0_41 = arith.constant 0 : index
    %23 = vector.load %arg5[%c0_38, %c0_39, %c4_40, %c0_41] : memref<6x6x6x24xf32, #tpu.memory_space<vmem>>, vector<6x6x1x24xf32>
    %24 = vector.shape_cast %23 : vector<6x6x1x24xf32> to vector<6x6x24xf32>
    %c0_42 = arith.constant 0 : index
    %c0_43 = arith.constant 0 : index
    %c0_44 = arith.constant 0 : index
    %c0_45 = arith.constant 0 : index
    %25 = vector.load %arg5[%c0_42, %c0_43, %c0_44, %c0_45] : memref<6x6x6x24xf32, #tpu.memory_space<vmem>>, vector<6x6x1x24xf32>
    %26 = vector.shape_cast %25 : vector<6x6x1x24xf32> to vector<6x6x24xf32>
    %27 = vector.shape_cast %24 : vector<6x6x24xf32> to vector<6x6x1x24xf32>
    tpu.vector_store %arg5[%c0_42, %c0_43, %c0_44, %c0_45], %27 {strides = array<i32>} : memref<6x6x6x24xf32, #tpu.memory_space<vmem>>, vector<6x6x1x24xf32>,
    %c0_46 = arith.constant 0 : index
    %c0_47 = arith.constant 0 : index
    %c1_48 = arith.constant 1 : index
    %c0_49 = arith.constant 0 : index
    %28 = vector.load %arg5[%c0_46, %c0_47, %c1_48, %c0_49] : memref<6x6x6x24xf32, #tpu.memory_space<vmem>>, vector<6x6x1x24xf32>
    %29 = vector.shape_cast %28 : vector<6x6x1x24xf32> to vector<6x6x24xf32>
    %c0_50 = arith.constant 0 : index
    %c0_51 = arith.constant 0 : index
    %c5_52 = arith.constant 5 : index
    %c0_53 = arith.constant 0 : index
    %30 = vector.load %arg5[%c0_50, %c0_51, %c5_52, %c0_53] : memref<6x6x6x24xf32, #tpu.memory_space<vmem>>, vector<6x6x1x24xf32>
    %31 = vector.shape_cast %30 : vector<6x6x1x24xf32> to vector<6x6x24xf32>
    %32 = vector.shape_cast %29 : vector<6x6x24xf32> to vector<6x6x1x24xf32>
    tpu.vector_store %arg5[%c0_50, %c0_51, %c5_52, %c0_53], %32 {strides = array<i32>} : memref<6x6x6x24xf32, #tpu.memory_space<vmem>>, vector<6x6x1x24xf32>,
    %cst = arith.constant 0.000000e+00 : f32
    %33 = vector.broadcast %cst : f32 to vector<64x24xf32>
    %c0_54 = arith.constant 0 : index
    %c0_55 = arith.constant 0 : index
    %34 = vector.load %arg6[%c0_54, %c0_55] : memref<64x24xf32, #tpu.memory_space<vmem>>, vector<64x24xf32>
    tpu.vector_store %arg6[%c0_54, %c0_55], %33 {strides = array<i32>} : memref<64x24xf32, #tpu.memory_space<vmem>>, vector<64x24xf32>,
    %c0_56 = arith.constant 0 : index
    %c0_57 = arith.constant 0 : index
    %c0_58 = arith.constant 0 : index
    %c0_59 = arith.constant 0 : index
    %35 = vector.load %arg5[%c0_56, %c0_57, %c0_58, %c0_59] : memref<6x6x6x24xf32, #tpu.memory_space<vmem>>, vector<4x4x4x24xf32>
    %c0_60 = arith.constant 0 : index
    %c0_61 = arith.constant 0 : index
    %36 = vector.load %arg6[%c0_60, %c0_61] : memref<64x24xf32, #tpu.memory_space<vmem>>, vector<64x24xf32>
    %37 = vector.shape_cast %35 : vector<4x4x4x24xf32> to vector<64x24xf32>
    %c0_62 = arith.constant 0 : index
    %c0_63 = arith.constant 0 : index
    %c0_64 = arith.constant 0 : index
    %38 = vector.load %arg2[%c0_62, %c0_63, %c0_64] : memref<27x24x24xf32, #tpu.memory_space<vmem>>, vector<1x24x24xf32>
    %39 = vector.shape_cast %38 : vector<1x24x24xf32> to vector<24x24xf32>
    %cst_65 = arith.constant dense<0.000000e+00> : vector<64x24xf32>
    %40 = tpu.matmul %37, %39, %cst_65 {dimension_numbers = #tpu.dot_dimension_numbers<[1], [0], [0], [1], [0, 0, 1, 1], [], []>} : vector<64x24xf32>, vector<24x24xf32>, vector<64x24xf32> -> vector<64x24xf32>
    %41 = arith.addf %36, %40 : vector<64x24xf32>
    %c0_66 = arith.constant 0 : index
    %c0_67 = arith.constant 0 : index
    %42 = vector.load %arg6[%c0_66, %c0_67] : memref<64x24xf32, #tpu.memory_space<vmem>>, vector<64x24xf32>
    tpu.vector_store %arg6[%c0_66, %c0_67], %41 {strides = array<i32>} : memref<64x24xf32, #tpu.memory_space<vmem>>, vector<64x24xf32>,
    %c0_68 = arith.constant 0 : index
    %c0_69 = arith.constant 0 : index
    %c1_70 = arith.constant 1 : index
    %c0_71 = arith.constant 0 : index
    %43 = vector.load %arg5[%c0_68, %c0_69, %c1_70, %c0_71] : memref<6x6x6x24xf32, #tpu.memory_space<vmem>>, vector<4x4x4x24xf32>
    %c0_72 = arith.constant 0 : index
    %c0_73 = arith.constant 0 : index
    %44 = vector.load %arg6[%c0_72, %c0_73] : memref<64x24xf32, #tpu.memory_space<vmem>>, vector<64x24xf32>
    %45 = vector.shape_cast %43 : vector<4x4x4x24xf32> to vector<64x24xf32>
    %c1_74 = arith.constant 1 : index
    %c0_75 = arith.constant 0 : index
    %c0_76 = arith.constant 0 : index
    %46 = vector.load %arg2[%c1_74, %c0_75, %c0_76] : memref<27x24x24xf32, #tpu.memory_space<vmem>>, vector<1x24x24xf32>
    %47 = vector.shape_cast %46 : vector<1x24x24xf32> to vector<24x24xf32>
    %cst_77 = arith.constant dense<0.000000e+00> : vector<64x24xf32>
    %48 = tpu.matmul %45, %47, %cst_77 {dimension_numbers = #tpu.dot_dimension_numbers<[1], [0], [0], [1], [0, 0, 1, 1], [], []>} : vector<64x24xf32>, vector<24x24xf32>, vector<64x24xf32> -> vector<64x24xf32>
    %49 = arith.addf %44, %48 : vector<64x24xf32>
    %c0_78 = arith.constant 0 : index
    %c0_79 = arith.constant 0 : index
    %50 = vector.load %arg6[%c0_78, %c0_79] : memref<64x24xf32, #tpu.memory_space<vmem>>, vector<64x24xf32>
    tpu.vector_store %arg6[%c0_78, %c0_79], %49 {strides = array<i32>} : memref<64x24xf32, #tpu.memory_space<vmem>>, vector<64x24xf32>,
    %c0_80 = arith.constant 0 : index
    %c0_81 = arith.constant 0 : index
    %c2 = arith.constant 2 : index
    %c0_82 = arith.constant 0 : index
    %51 = vector.load %arg5[%c0_80, %c0_81, %c2, %c0_82] : memref<6x6x6x24xf32, #tpu.memory_space<vmem>>, vector<4x4x4x24xf32>
    %c0_83 = arith.constant 0 : index
    %c0_84 = arith.constant 0 : index
    %52 = vector.load %arg6[%c0_83, %c0_84] : memref<64x24xf32, #tpu.memory_space<vmem>>, vector<64x24xf32>
    %53 = vector.shape_cast %51 : vector<4x4x4x24xf32> to vector<64x24xf32>
    %c2_85 = arith.constant 2 : index
    %c0_86 = arith.constant 0 : index
    %c0_87 = arith.constant 0 : index
    %54 = vector.load %arg2[%c2_85, %c0_86, %c0_87] : memref<27x24x24xf32, #tpu.memory_space<vmem>>, vector<1x24x24xf32>
    %55 = vector.shape_cast %54 : vector<1x24x24xf32> to vector<24x24xf32>
    %cst_88 = arith.constant dense<0.000000e+00> : vector<64x24xf32>
    %56 = tpu.matmul %53, %55, %cst_88 {dimension_numbers = #tpu.dot_dimension_numbers<[1], [0], [0], [1], [0, 0, 1, 1], [], []>} : vector<64x24xf32>, vector<24x24xf32>, vector<64x24xf32> -> vector<64x24xf32>
    %57 = arith.addf %52, %56 : vector<64x24xf32>
    %c0_89 = arith.constant 0 : index
    %c0_90 = arith.constant 0 : index
    %58 = vector.load %arg6[%c0_89, %c0_90] : memref<64x24xf32, #tpu.memory_space<vmem>>, vector<64x24xf32>
    tpu.vector_store %arg6[%c0_89, %c0_90], %57 {strides = array<i32>} : memref<64x24xf32, #tpu.memory_space<vmem>>, vector<64x24xf32>,
    %c0_91 = arith.constant 0 : index
    %c1_92 = arith.constant 1 : index
    %c0_93 = arith.constant 0 : index
    %c0_94 = arith.constant 0 : index
    %59 = vector.load %arg5[%c0_91, %c1_92, %c0_93, %c0_94] : memref<6x6x6x24xf32, #tpu.memory_space<vmem>>, vector<4x4x4x24xf32>
    %c0_95 = arith.constant 0 : index
    %c0_96 = arith.constant 0 : index
    %60 = vector.load %arg6[%c0_95, %c0_96] : memref<64x24xf32, #tpu.memory_space<vmem>>, vector<64x24xf32>
    %61 = vector.shape_cast %59 : vector<4x4x4x24xf32> to vector<64x24xf32>
    %c3_97 = arith.constant 3 : index
    %c0_98 = arith.constant 0 : index
    %c0_99 = arith.constant 0 : index
    %62 = vector.load %arg2[%c3_97, %c0_98, %c0_99] : memref<27x24x24xf32, #tpu.memory_space<vmem>>, vector<1x24x24xf32>
    %63 = vector.shape_cast %62 : vector<1x24x24xf32> to vector<24x24xf32>
    %cst_100 = arith.constant dense<0.000000e+00> : vector<64x24xf32>
    %64 = tpu.matmul %61, %63, %cst_100 {dimension_numbers = #tpu.dot_dimension_numbers<[1], [0], [0], [1], [0, 0, 1, 1], [], []>} : vector<64x24xf32>, vector<24x24xf32>, vector<64x24xf32> -> vector<64x24xf32>
    %65 = arith.addf %60, %64 : vector<64x24xf32>
    %c0_101 = arith.constant 0 : index
    %c0_102 = arith.constant 0 : index
    %66 = vector.load %arg6[%c0_101, %c0_102] : memref<64x24xf32, #tpu.memory_space<vmem>>, vector<64x24xf32>
    tpu.vector_store %arg6[%c0_101, %c0_102], %65 {strides = array<i32>} : memref<64x24xf32, #tpu.memory_space<vmem>>, vector<64x24xf32>,
    %c0_103 = arith.constant 0 : index
    %c1_104 = arith.constant 1 : index
    %c1_105 = arith.constant 1 : index
    %c0_106 = arith.constant 0 : index
    %67 = vector.load %arg5[%c0_103, %c1_104, %c1_105, %c0_106] : memref<6x6x6x24xf32, #tpu.memory_space<vmem>>, vector<4x4x4x24xf32>
    %c0_107 = arith.constant 0 : index
    %c0_108 = arith.constant 0 : index
    %68 = vector.load %arg6[%c0_107, %c0_108] : memref<64x24xf32, #tpu.memory_space<vmem>>, vector<64x24xf32>
    %69 = vector.shape_cast %67 : vector<4x4x4x24xf32> to vector<64x24xf32>
    %c4_109 = arith.constant 4 : index
    %c0_110 = arith.constant 0 : index
    %c0_111 = arith.constant 0 : index
    %70 = vector.load %arg2[%c4_109, %c0_110, %c0_111] : memref<27x24x24xf32, #tpu.memory_space<vmem>>, vector<1x24x24xf32>
    %71 = vector.shape_cast %70 : vector<1x24x24xf32> to vector<24x24xf32>
    %cst_112 = arith.constant dense<0.000000e+00> : vector<64x24xf32>
    %72 = tpu.matmul %69, %71, %cst_112 {dimension_numbers = #tpu.dot_dimension_numbers<[1], [0], [0], [1], [0, 0, 1, 1], [], []>} : vector<64x24xf32>, vector<24x24xf32>, vector<64x24xf32> -> vector<64x24xf32>
    %73 = arith.addf %68, %72 : vector<64x24xf32>
    %c0_113 = arith.constant 0 : index
    %c0_114 = arith.constant 0 : index
    %74 = vector.load %arg6[%c0_113, %c0_114] : memref<64x24xf32, #tpu.memory_space<vmem>>, vector<64x24xf32>
    tpu.vector_store %arg6[%c0_113, %c0_114], %73 {strides = array<i32>} : memref<64x24xf32, #tpu.memory_space<vmem>>, vector<64x24xf32>,
    %c0_115 = arith.constant 0 : index
    %c1_116 = arith.constant 1 : index
    %c2_117 = arith.constant 2 : index
    %c0_118 = arith.constant 0 : index
    %75 = vector.load %arg5[%c0_115, %c1_116, %c2_117, %c0_118] : memref<6x6x6x24xf32, #tpu.memory_space<vmem>>, vector<4x4x4x24xf32>
    %c0_119 = arith.constant 0 : index
    %c0_120 = arith.constant 0 : index
    %76 = vector.load %arg6[%c0_119, %c0_120] : memref<64x24xf32, #tpu.memory_space<vmem>>, vector<64x24xf32>
    %77 = vector.shape_cast %75 : vector<4x4x4x24xf32> to vector<64x24xf32>
    %c5_121 = arith.constant 5 : index
    %c0_122 = arith.constant 0 : index
    %c0_123 = arith.constant 0 : index
    %78 = vector.load %arg2[%c5_121, %c0_122, %c0_123] : memref<27x24x24xf32, #tpu.memory_space<vmem>>, vector<1x24x24xf32>
    %79 = vector.shape_cast %78 : vector<1x24x24xf32> to vector<24x24xf32>
    %cst_124 = arith.constant dense<0.000000e+00> : vector<64x24xf32>
    %80 = tpu.matmul %77, %79, %cst_124 {dimension_numbers = #tpu.dot_dimension_numbers<[1], [0], [0], [1], [0, 0, 1, 1], [], []>} : vector<64x24xf32>, vector<24x24xf32>, vector<64x24xf32> -> vector<64x24xf32>
    %81 = arith.addf %76, %80 : vector<64x24xf32>
    %c0_125 = arith.constant 0 : index
    %c0_126 = arith.constant 0 : index
    %82 = vector.load %arg6[%c0_125, %c0_126] : memref<64x24xf32, #tpu.memory_space<vmem>>, vector<64x24xf32>
    tpu.vector_store %arg6[%c0_125, %c0_126], %81 {strides = array<i32>} : memref<64x24xf32, #tpu.memory_space<vmem>>, vector<64x24xf32>,
    %c0_127 = arith.constant 0 : index
    %c2_128 = arith.constant 2 : index
    %c0_129 = arith.constant 0 : index
    %c0_130 = arith.constant 0 : index
    %83 = vector.load %arg5[%c0_127, %c2_128, %c0_129, %c0_130] : memref<6x6x6x24xf32, #tpu.memory_space<vmem>>, vector<4x4x4x24xf32>
    %c0_131 = arith.constant 0 : index
    %c0_132 = arith.constant 0 : index
    %84 = vector.load %arg6[%c0_131, %c0_132] : memref<64x24xf32, #tpu.memory_space<vmem>>, vector<64x24xf32>
    %85 = vector.shape_cast %83 : vector<4x4x4x24xf32> to vector<64x24xf32>
    %c6 = arith.constant 6 : index
    %c0_133 = arith.constant 0 : index
    %c0_134 = arith.constant 0 : index
    %86 = vector.load %arg2[%c6, %c0_133, %c0_134] : memref<27x24x24xf32, #tpu.memory_space<vmem>>, vector<1x24x24xf32>
    %87 = vector.shape_cast %86 : vector<1x24x24xf32> to vector<24x24xf32>
    %cst_135 = arith.constant dense<0.000000e+00> : vector<64x24xf32>
    %88 = tpu.matmul %85, %87, %cst_135 {dimension_numbers = #tpu.dot_dimension_numbers<[1], [0], [0], [1], [0, 0, 1, 1], [], []>} : vector<64x24xf32>, vector<24x24xf32>, vector<64x24xf32> -> vector<64x24xf32>
    %89 = arith.addf %84, %88 : vector<64x24xf32>
    %c0_136 = arith.constant 0 : index
    %c0_137 = arith.constant 0 : index
    %90 = vector.load %arg6[%c0_136, %c0_137] : memref<64x24xf32, #tpu.memory_space<vmem>>, vector<64x24xf32>
    tpu.vector_store %arg6[%c0_136, %c0_137], %89 {strides = array<i32>} : memref<64x24xf32, #tpu.memory_space<vmem>>, vector<64x24xf32>,
    %c0_138 = arith.constant 0 : index
    %c2_139 = arith.constant 2 : index
    %c1_140 = arith.constant 1 : index
    %c0_141 = arith.constant 0 : index
    %91 = vector.load %arg5[%c0_138, %c2_139, %c1_140, %c0_141] : memref<6x6x6x24xf32, #tpu.memory_space<vmem>>, vector<4x4x4x24xf32>
    %c0_142 = arith.constant 0 : index
    %c0_143 = arith.constant 0 : index
    %92 = vector.load %arg6[%c0_142, %c0_143] : memref<64x24xf32, #tpu.memory_space<vmem>>, vector<64x24xf32>
    %93 = vector.shape_cast %91 : vector<4x4x4x24xf32> to vector<64x24xf32>
    %c7 = arith.constant 7 : index
    %c0_144 = arith.constant 0 : index
    %c0_145 = arith.constant 0 : index
    %94 = vector.load %arg2[%c7, %c0_144, %c0_145] : memref<27x24x24xf32, #tpu.memory_space<vmem>>, vector<1x24x24xf32>
    %95 = vector.shape_cast %94 : vector<1x24x24xf32> to vector<24x24xf32>
    %cst_146 = arith.constant dense<0.000000e+00> : vector<64x24xf32>
    %96 = tpu.matmul %93, %95, %cst_146 {dimension_numbers = #tpu.dot_dimension_numbers<[1], [0], [0], [1], [0, 0, 1, 1], [], []>} : vector<64x24xf32>, vector<24x24xf32>, vector<64x24xf32> -> vector<64x24xf32>
    %97 = arith.addf %92, %96 : vector<64x24xf32>
    %c0_147 = arith.constant 0 : index
    %c0_148 = arith.constant 0 : index
    %98 = vector.load %arg6[%c0_147, %c0_148] : memref<64x24xf32, #tpu.memory_space<vmem>>, vector<64x24xf32>
    tpu.vector_store %arg6[%c0_147, %c0_148], %97 {strides = array<i32>} : memref<64x24xf32, #tpu.memory_space<vmem>>, vector<64x24xf32>,
    %c0_149 = arith.constant 0 : index
    %c2_150 = arith.constant 2 : index
    %c2_151 = arith.constant 2 : index
    %c0_152 = arith.constant 0 : index
    %99 = vector.load %arg5[%c0_149, %c2_150, %c2_151, %c0_152] : memref<6x6x6x24xf32, #tpu.memory_space<vmem>>, vector<4x4x4x24xf32>
    %c0_153 = arith.constant 0 : index
    %c0_154 = arith.constant 0 : index
    %100 = vector.load %arg6[%c0_153, %c0_154] : memref<64x24xf32, #tpu.memory_space<vmem>>, vector<64x24xf32>
    %101 = vector.shape_cast %99 : vector<4x4x4x24xf32> to vector<64x24xf32>
    %c8 = arith.constant 8 : index
    %c0_155 = arith.constant 0 : index
    %c0_156 = arith.constant 0 : index
    %102 = vector.load %arg2[%c8, %c0_155, %c0_156] : memref<27x24x24xf32, #tpu.memory_space<vmem>>, vector<1x24x24xf32>
    %103 = vector.shape_cast %102 : vector<1x24x24xf32> to vector<24x24xf32>
    %cst_157 = arith.constant dense<0.000000e+00> : vector<64x24xf32>
    %104 = tpu.matmul %101, %103, %cst_157 {dimension_numbers = #tpu.dot_dimension_numbers<[1], [0], [0], [1], [0, 0, 1, 1], [], []>} : vector<64x24xf32>, vector<24x24xf32>, vector<64x24xf32> -> vector<64x24xf32>
    %105 = arith.addf %100, %104 : vector<64x24xf32>
    %c0_158 = arith.constant 0 : index
    %c0_159 = arith.constant 0 : index
    %106 = vector.load %arg6[%c0_158, %c0_159] : memref<64x24xf32, #tpu.memory_space<vmem>>, vector<64x24xf32>
    tpu.vector_store %arg6[%c0_158, %c0_159], %105 {strides = array<i32>} : memref<64x24xf32, #tpu.memory_space<vmem>>, vector<64x24xf32>,
    %c1_160 = arith.constant 1 : index
    %c0_161 = arith.constant 0 : index
    %c0_162 = arith.constant 0 : index
    %c0_163 = arith.constant 0 : index
    %107 = vector.load %arg5[%c1_160, %c0_161, %c0_162, %c0_163] : memref<6x6x6x24xf32, #tpu.memory_space<vmem>>, vector<4x4x4x24xf32>
    %c0_164 = arith.constant 0 : index
    %c0_165 = arith.constant 0 : index
    %108 = vector.load %arg6[%c0_164, %c0_165] : memref<64x24xf32, #tpu.memory_space<vmem>>, vector<64x24xf32>
    %109 = vector.shape_cast %107 : vector<4x4x4x24xf32> to vector<64x24xf32>
    %c9 = arith.constant 9 : index
    %c0_166 = arith.constant 0 : index
    %c0_167 = arith.constant 0 : index
    %110 = vector.load %arg2[%c9, %c0_166, %c0_167] : memref<27x24x24xf32, #tpu.memory_space<vmem>>, vector<1x24x24xf32>
    %111 = vector.shape_cast %110 : vector<1x24x24xf32> to vector<24x24xf32>
    %cst_168 = arith.constant dense<0.000000e+00> : vector<64x24xf32>
    %112 = tpu.matmul %109, %111, %cst_168 {dimension_numbers = #tpu.dot_dimension_numbers<[1], [0], [0], [1], [0, 0, 1, 1], [], []>} : vector<64x24xf32>, vector<24x24xf32>, vector<64x24xf32> -> vector<64x24xf32>
    %113 = arith.addf %108, %112 : vector<64x24xf32>
    %c0_169 = arith.constant 0 : index
    %c0_170 = arith.constant 0 : index
    %114 = vector.load %arg6[%c0_169, %c0_170] : memref<64x24xf32, #tpu.memory_space<vmem>>, vector<64x24xf32>
    tpu.vector_store %arg6[%c0_169, %c0_170], %113 {strides = array<i32>} : memref<64x24xf32, #tpu.memory_space<vmem>>, vector<64x24xf32>,
    %c1_171 = arith.constant 1 : index
    %c0_172 = arith.constant 0 : index
    %c1_173 = arith.constant 1 : index
    %c0_174 = arith.constant 0 : index
    %115 = vector.load %arg5[%c1_171, %c0_172, %c1_173, %c0_174] : memref<6x6x6x24xf32, #tpu.memory_space<vmem>>, vector<4x4x4x24xf32>
    %c0_175 = arith.constant 0 : index
    %c0_176 = arith.constant 0 : index
    %116 = vector.load %arg6[%c0_175, %c0_176] : memref<64x24xf32, #tpu.memory_space<vmem>>, vector<64x24xf32>
    %117 = vector.shape_cast %115 : vector<4x4x4x24xf32> to vector<64x24xf32>
    %c10 = arith.constant 10 : index
    %c0_177 = arith.constant 0 : index
    %c0_178 = arith.constant 0 : index
    %118 = vector.load %arg2[%c10, %c0_177, %c0_178] : memref<27x24x24xf32, #tpu.memory_space<vmem>>, vector<1x24x24xf32>
    %119 = vector.shape_cast %118 : vector<1x24x24xf32> to vector<24x24xf32>
    %cst_179 = arith.constant dense<0.000000e+00> : vector<64x24xf32>
    %120 = tpu.matmul %117, %119, %cst_179 {dimension_numbers = #tpu.dot_dimension_numbers<[1], [0], [0], [1], [0, 0, 1, 1], [], []>} : vector<64x24xf32>, vector<24x24xf32>, vector<64x24xf32> -> vector<64x24xf32>
    %121 = arith.addf %116, %120 : vector<64x24xf32>
    %c0_180 = arith.constant 0 : index
    %c0_181 = arith.constant 0 : index
    %122 = vector.load %arg6[%c0_180, %c0_181] : memref<64x24xf32, #tpu.memory_space<vmem>>, vector<64x24xf32>
    tpu.vector_store %arg6[%c0_180, %c0_181], %121 {strides = array<i32>} : memref<64x24xf32, #tpu.memory_space<vmem>>, vector<64x24xf32>,
    %c1_182 = arith.constant 1 : index
    %c0_183 = arith.constant 0 : index
    %c2_184 = arith.constant 2 : index
    %c0_185 = arith.constant 0 : index
    %123 = vector.load %arg5[%c1_182, %c0_183, %c2_184, %c0_185] : memref<6x6x6x24xf32, #tpu.memory_space<vmem>>, vector<4x4x4x24xf32>
    %c0_186 = arith.constant 0 : index
    %c0_187 = arith.constant 0 : index
    %124 = vector.load %arg6[%c0_186, %c0_187] : memref<64x24xf32, #tpu.memory_space<vmem>>, vector<64x24xf32>
    %125 = vector.shape_cast %123 : vector<4x4x4x24xf32> to vector<64x24xf32>
    %c11 = arith.constant 11 : index
    %c0_188 = arith.constant 0 : index
    %c0_189 = arith.constant 0 : index
    %126 = vector.load %arg2[%c11, %c0_188, %c0_189] : memref<27x24x24xf32, #tpu.memory_space<vmem>>, vector<1x24x24xf32>
    %127 = vector.shape_cast %126 : vector<1x24x24xf32> to vector<24x24xf32>
    %cst_190 = arith.constant dense<0.000000e+00> : vector<64x24xf32>
    %128 = tpu.matmul %125, %127, %cst_190 {dimension_numbers = #tpu.dot_dimension_numbers<[1], [0], [0], [1], [0, 0, 1, 1], [], []>} : vector<64x24xf32>, vector<24x24xf32>, vector<64x24xf32> -> vector<64x24xf32>
    %129 = arith.addf %124, %128 : vector<64x24xf32>
    %c0_191 = arith.constant 0 : index
    %c0_192 = arith.constant 0 : index
    %130 = vector.load %arg6[%c0_191, %c0_192] : memref<64x24xf32, #tpu.memory_space<vmem>>, vector<64x24xf32>
    tpu.vector_store %arg6[%c0_191, %c0_192], %129 {strides = array<i32>} : memref<64x24xf32, #tpu.memory_space<vmem>>, vector<64x24xf32>,
    %c1_193 = arith.constant 1 : index
    %c1_194 = arith.constant 1 : index
    %c0_195 = arith.constant 0 : index
    %c0_196 = arith.constant 0 : index
    %131 = vector.load %arg5[%c1_193, %c1_194, %c0_195, %c0_196] : memref<6x6x6x24xf32, #tpu.memory_space<vmem>>, vector<4x4x4x24xf32>
    %c0_197 = arith.constant 0 : index
    %c0_198 = arith.constant 0 : index
    %132 = vector.load %arg6[%c0_197, %c0_198] : memref<64x24xf32, #tpu.memory_space<vmem>>, vector<64x24xf32>
    %133 = vector.shape_cast %131 : vector<4x4x4x24xf32> to vector<64x24xf32>
    %c12 = arith.constant 12 : index
    %c0_199 = arith.constant 0 : index
    %c0_200 = arith.constant 0 : index
    %134 = vector.load %arg2[%c12, %c0_199, %c0_200] : memref<27x24x24xf32, #tpu.memory_space<vmem>>, vector<1x24x24xf32>
    %135 = vector.shape_cast %134 : vector<1x24x24xf32> to vector<24x24xf32>
    %cst_201 = arith.constant dense<0.000000e+00> : vector<64x24xf32>
    %136 = tpu.matmul %133, %135, %cst_201 {dimension_numbers = #tpu.dot_dimension_numbers<[1], [0], [0], [1], [0, 0, 1, 1], [], []>} : vector<64x24xf32>, vector<24x24xf32>, vector<64x24xf32> -> vector<64x24xf32>
    %137 = arith.addf %132, %136 : vector<64x24xf32>
    %c0_202 = arith.constant 0 : index
    %c0_203 = arith.constant 0 : index
    %138 = vector.load %arg6[%c0_202, %c0_203] : memref<64x24xf32, #tpu.memory_space<vmem>>, vector<64x24xf32>
    tpu.vector_store %arg6[%c0_202, %c0_203], %137 {strides = array<i32>} : memref<64x24xf32, #tpu.memory_space<vmem>>, vector<64x24xf32>,
    %c1_204 = arith.constant 1 : index
    %c1_205 = arith.constant 1 : index
    %c1_206 = arith.constant 1 : index
    %c0_207 = arith.constant 0 : index
    %139 = vector.load %arg5[%c1_204, %c1_205, %c1_206, %c0_207] : memref<6x6x6x24xf32, #tpu.memory_space<vmem>>, vector<4x4x4x24xf32>
    %c0_208 = arith.constant 0 : index
    %c0_209 = arith.constant 0 : index
    %140 = vector.load %arg6[%c0_208, %c0_209] : memref<64x24xf32, #tpu.memory_space<vmem>>, vector<64x24xf32>
    %141 = vector.shape_cast %139 : vector<4x4x4x24xf32> to vector<64x24xf32>
    %c13 = arith.constant 13 : index
    %c0_210 = arith.constant 0 : index
    %c0_211 = arith.constant 0 : index
    %142 = vector.load %arg2[%c13, %c0_210, %c0_211] : memref<27x24x24xf32, #tpu.memory_space<vmem>>, vector<1x24x24xf32>
    %143 = vector.shape_cast %142 : vector<1x24x24xf32> to vector<24x24xf32>
    %cst_212 = arith.constant dense<0.000000e+00> : vector<64x24xf32>
    %144 = tpu.matmul %141, %143, %cst_212 {dimension_numbers = #tpu.dot_dimension_numbers<[1], [0], [0], [1], [0, 0, 1, 1], [], []>} : vector<64x24xf32>, vector<24x24xf32>, vector<64x24xf32> -> vector<64x24xf32>
    %145 = arith.addf %140, %144 : vector<64x24xf32>
    %c0_213 = arith.constant 0 : index
    %c0_214 = arith.constant 0 : index
    %146 = vector.load %arg6[%c0_213, %c0_214] : memref<64x24xf32, #tpu.memory_space<vmem>>, vector<64x24xf32>
    tpu.vector_store %arg6[%c0_213, %c0_214], %145 {strides = array<i32>} : memref<64x24xf32, #tpu.memory_space<vmem>>, vector<64x24xf32>,
    %c1_215 = arith.constant 1 : index
    %c1_216 = arith.constant 1 : index
    %c2_217 = arith.constant 2 : index
    %c0_218 = arith.constant 0 : index
    %147 = vector.load %arg5[%c1_215, %c1_216, %c2_217, %c0_218] : memref<6x6x6x24xf32, #tpu.memory_space<vmem>>, vector<4x4x4x24xf32>
    %c0_219 = arith.constant 0 : index
    %c0_220 = arith.constant 0 : index
    %148 = vector.load %arg6[%c0_219, %c0_220] : memref<64x24xf32, #tpu.memory_space<vmem>>, vector<64x24xf32>
    %149 = vector.shape_cast %147 : vector<4x4x4x24xf32> to vector<64x24xf32>
    %c14 = arith.constant 14 : index
    %c0_221 = arith.constant 0 : index
    %c0_222 = arith.constant 0 : index
    %150 = vector.load %arg2[%c14, %c0_221, %c0_222] : memref<27x24x24xf32, #tpu.memory_space<vmem>>, vector<1x24x24xf32>
    %151 = vector.shape_cast %150 : vector<1x24x24xf32> to vector<24x24xf32>
    %cst_223 = arith.constant dense<0.000000e+00> : vector<64x24xf32>
    %152 = tpu.matmul %149, %151, %cst_223 {dimension_numbers = #tpu.dot_dimension_numbers<[1], [0], [0], [1], [0, 0, 1, 1], [], []>} : vector<64x24xf32>, vector<24x24xf32>, vector<64x24xf32> -> vector<64x24xf32>
    %153 = arith.addf %148, %152 : vector<64x24xf32>
    %c0_224 = arith.constant 0 : index
    %c0_225 = arith.constant 0 : index
    %154 = vector.load %arg6[%c0_224, %c0_225] : memref<64x24xf32, #tpu.memory_space<vmem>>, vector<64x24xf32>
    tpu.vector_store %arg6[%c0_224, %c0_225], %153 {strides = array<i32>} : memref<64x24xf32, #tpu.memory_space<vmem>>, vector<64x24xf32>,
    %c1_226 = arith.constant 1 : index
    %c2_227 = arith.constant 2 : index
    %c0_228 = arith.constant 0 : index
    %c0_229 = arith.constant 0 : index
    %155 = vector.load %arg5[%c1_226, %c2_227, %c0_228, %c0_229] : memref<6x6x6x24xf32, #tpu.memory_space<vmem>>, vector<4x4x4x24xf32>
    %c0_230 = arith.constant 0 : index
    %c0_231 = arith.constant 0 : index
    %156 = vector.load %arg6[%c0_230, %c0_231] : memref<64x24xf32, #tpu.memory_space<vmem>>, vector<64x24xf32>
    %157 = vector.shape_cast %155 : vector<4x4x4x24xf32> to vector<64x24xf32>
    %c15 = arith.constant 15 : index
    %c0_232 = arith.constant 0 : index
    %c0_233 = arith.constant 0 : index
    %158 = vector.load %arg2[%c15, %c0_232, %c0_233] : memref<27x24x24xf32, #tpu.memory_space<vmem>>, vector<1x24x24xf32>
    %159 = vector.shape_cast %158 : vector<1x24x24xf32> to vector<24x24xf32>
    %cst_234 = arith.constant dense<0.000000e+00> : vector<64x24xf32>
    %160 = tpu.matmul %157, %159, %cst_234 {dimension_numbers = #tpu.dot_dimension_numbers<[1], [0], [0], [1], [0, 0, 1, 1], [], []>} : vector<64x24xf32>, vector<24x24xf32>, vector<64x24xf32> -> vector<64x24xf32>
    %161 = arith.addf %156, %160 : vector<64x24xf32>
    %c0_235 = arith.constant 0 : index
    %c0_236 = arith.constant 0 : index
    %162 = vector.load %arg6[%c0_235, %c0_236] : memref<64x24xf32, #tpu.memory_space<vmem>>, vector<64x24xf32>
    tpu.vector_store %arg6[%c0_235, %c0_236], %161 {strides = array<i32>} : memref<64x24xf32, #tpu.memory_space<vmem>>, vector<64x24xf32>,
    %c1_237 = arith.constant 1 : index
    %c2_238 = arith.constant 2 : index
    %c1_239 = arith.constant 1 : index
    %c0_240 = arith.constant 0 : index
    %163 = vector.load %arg5[%c1_237, %c2_238, %c1_239, %c0_240] : memref<6x6x6x24xf32, #tpu.memory_space<vmem>>, vector<4x4x4x24xf32>
    %c0_241 = arith.constant 0 : index
    %c0_242 = arith.constant 0 : index
    %164 = vector.load %arg6[%c0_241, %c0_242] : memref<64x24xf32, #tpu.memory_space<vmem>>, vector<64x24xf32>
    %165 = vector.shape_cast %163 : vector<4x4x4x24xf32> to vector<64x24xf32>
    %c16 = arith.constant 16 : index
    %c0_243 = arith.constant 0 : index
    %c0_244 = arith.constant 0 : index
    %166 = vector.load %arg2[%c16, %c0_243, %c0_244] : memref<27x24x24xf32, #tpu.memory_space<vmem>>, vector<1x24x24xf32>
    %167 = vector.shape_cast %166 : vector<1x24x24xf32> to vector<24x24xf32>
    %cst_245 = arith.constant dense<0.000000e+00> : vector<64x24xf32>
    %168 = tpu.matmul %165, %167, %cst_245 {dimension_numbers = #tpu.dot_dimension_numbers<[1], [0], [0], [1], [0, 0, 1, 1], [], []>} : vector<64x24xf32>, vector<24x24xf32>, vector<64x24xf32> -> vector<64x24xf32>
    %169 = arith.addf %164, %168 : vector<64x24xf32>
    %c0_246 = arith.constant 0 : index
    %c0_247 = arith.constant 0 : index
    %170 = vector.load %arg6[%c0_246, %c0_247] : memref<64x24xf32, #tpu.memory_space<vmem>>, vector<64x24xf32>
    tpu.vector_store %arg6[%c0_246, %c0_247], %169 {strides = array<i32>} : memref<64x24xf32, #tpu.memory_space<vmem>>, vector<64x24xf32>,
    %c1_248 = arith.constant 1 : index
    %c2_249 = arith.constant 2 : index
    %c2_250 = arith.constant 2 : index
    %c0_251 = arith.constant 0 : index
    %171 = vector.load %arg5[%c1_248, %c2_249, %c2_250, %c0_251] : memref<6x6x6x24xf32, #tpu.memory_space<vmem>>, vector<4x4x4x24xf32>
    %c0_252 = arith.constant 0 : index
    %c0_253 = arith.constant 0 : index
    %172 = vector.load %arg6[%c0_252, %c0_253] : memref<64x24xf32, #tpu.memory_space<vmem>>, vector<64x24xf32>
    %173 = vector.shape_cast %171 : vector<4x4x4x24xf32> to vector<64x24xf32>
    %c17 = arith.constant 17 : index
    %c0_254 = arith.constant 0 : index
    %c0_255 = arith.constant 0 : index
    %174 = vector.load %arg2[%c17, %c0_254, %c0_255] : memref<27x24x24xf32, #tpu.memory_space<vmem>>, vector<1x24x24xf32>
    %175 = vector.shape_cast %174 : vector<1x24x24xf32> to vector<24x24xf32>
    %cst_256 = arith.constant dense<0.000000e+00> : vector<64x24xf32>
    %176 = tpu.matmul %173, %175, %cst_256 {dimension_numbers = #tpu.dot_dimension_numbers<[1], [0], [0], [1], [0, 0, 1, 1], [], []>} : vector<64x24xf32>, vector<24x24xf32>, vector<64x24xf32> -> vector<64x24xf32>
    %177 = arith.addf %172, %176 : vector<64x24xf32>
    %c0_257 = arith.constant 0 : index
    %c0_258 = arith.constant 0 : index
    %178 = vector.load %arg6[%c0_257, %c0_258] : memref<64x24xf32, #tpu.memory_space<vmem>>, vector<64x24xf32>
    tpu.vector_store %arg6[%c0_257, %c0_258], %177 {strides = array<i32>} : memref<64x24xf32, #tpu.memory_space<vmem>>, vector<64x24xf32>,
    %c2_259 = arith.constant 2 : index
    %c0_260 = arith.constant 0 : index
    %c0_261 = arith.constant 0 : index
    %c0_262 = arith.constant 0 : index
    %179 = vector.load %arg5[%c2_259, %c0_260, %c0_261, %c0_262] : memref<6x6x6x24xf32, #tpu.memory_space<vmem>>, vector<4x4x4x24xf32>
    %c0_263 = arith.constant 0 : index
    %c0_264 = arith.constant 0 : index
    %180 = vector.load %arg6[%c0_263, %c0_264] : memref<64x24xf32, #tpu.memory_space<vmem>>, vector<64x24xf32>
    %181 = vector.shape_cast %179 : vector<4x4x4x24xf32> to vector<64x24xf32>
    %c18 = arith.constant 18 : index
    %c0_265 = arith.constant 0 : index
    %c0_266 = arith.constant 0 : index
    %182 = vector.load %arg2[%c18, %c0_265, %c0_266] : memref<27x24x24xf32, #tpu.memory_space<vmem>>, vector<1x24x24xf32>
    %183 = vector.shape_cast %182 : vector<1x24x24xf32> to vector<24x24xf32>
    %cst_267 = arith.constant dense<0.000000e+00> : vector<64x24xf32>
    %184 = tpu.matmul %181, %183, %cst_267 {dimension_numbers = #tpu.dot_dimension_numbers<[1], [0], [0], [1], [0, 0, 1, 1], [], []>} : vector<64x24xf32>, vector<24x24xf32>, vector<64x24xf32> -> vector<64x24xf32>
    %185 = arith.addf %180, %184 : vector<64x24xf32>
    %c0_268 = arith.constant 0 : index
    %c0_269 = arith.constant 0 : index
    %186 = vector.load %arg6[%c0_268, %c0_269] : memref<64x24xf32, #tpu.memory_space<vmem>>, vector<64x24xf32>
    tpu.vector_store %arg6[%c0_268, %c0_269], %185 {strides = array<i32>} : memref<64x24xf32, #tpu.memory_space<vmem>>, vector<64x24xf32>,
    %c2_270 = arith.constant 2 : index
    %c0_271 = arith.constant 0 : index
    %c1_272 = arith.constant 1 : index
    %c0_273 = arith.constant 0 : index
    %187 = vector.load %arg5[%c2_270, %c0_271, %c1_272, %c0_273] : memref<6x6x6x24xf32, #tpu.memory_space<vmem>>, vector<4x4x4x24xf32>
    %c0_274 = arith.constant 0 : index
    %c0_275 = arith.constant 0 : index
    %188 = vector.load %arg6[%c0_274, %c0_275] : memref<64x24xf32, #tpu.memory_space<vmem>>, vector<64x24xf32>
    %189 = vector.shape_cast %187 : vector<4x4x4x24xf32> to vector<64x24xf32>
    %c19 = arith.constant 19 : index
    %c0_276 = arith.constant 0 : index
    %c0_277 = arith.constant 0 : index
    %190 = vector.load %arg2[%c19, %c0_276, %c0_277] : memref<27x24x24xf32, #tpu.memory_space<vmem>>, vector<1x24x24xf32>
    %191 = vector.shape_cast %190 : vector<1x24x24xf32> to vector<24x24xf32>
    %cst_278 = arith.constant dense<0.000000e+00> : vector<64x24xf32>
    %192 = tpu.matmul %189, %191, %cst_278 {dimension_numbers = #tpu.dot_dimension_numbers<[1], [0], [0], [1], [0, 0, 1, 1], [], []>} : vector<64x24xf32>, vector<24x24xf32>, vector<64x24xf32> -> vector<64x24xf32>
    %193 = arith.addf %188, %192 : vector<64x24xf32>
    %c0_279 = arith.constant 0 : index
    %c0_280 = arith.constant 0 : index
    %194 = vector.load %arg6[%c0_279, %c0_280] : memref<64x24xf32, #tpu.memory_space<vmem>>, vector<64x24xf32>
    tpu.vector_store %arg6[%c0_279, %c0_280], %193 {strides = array<i32>} : memref<64x24xf32, #tpu.memory_space<vmem>>, vector<64x24xf32>,
    %c2_281 = arith.constant 2 : index
    %c0_282 = arith.constant 0 : index
    %c2_283 = arith.constant 2 : index
    %c0_284 = arith.constant 0 : index
    %195 = vector.load %arg5[%c2_281, %c0_282, %c2_283, %c0_284] : memref<6x6x6x24xf32, #tpu.memory_space<vmem>>, vector<4x4x4x24xf32>
    %c0_285 = arith.constant 0 : index
    %c0_286 = arith.constant 0 : index
    %196 = vector.load %arg6[%c0_285, %c0_286] : memref<64x24xf32, #tpu.memory_space<vmem>>, vector<64x24xf32>
    %197 = vector.shape_cast %195 : vector<4x4x4x24xf32> to vector<64x24xf32>
    %c20 = arith.constant 20 : index
    %c0_287 = arith.constant 0 : index
    %c0_288 = arith.constant 0 : index
    %198 = vector.load %arg2[%c20, %c0_287, %c0_288] : memref<27x24x24xf32, #tpu.memory_space<vmem>>, vector<1x24x24xf32>
    %199 = vector.shape_cast %198 : vector<1x24x24xf32> to vector<24x24xf32>
    %cst_289 = arith.constant dense<0.000000e+00> : vector<64x24xf32>
    %200 = tpu.matmul %197, %199, %cst_289 {dimension_numbers = #tpu.dot_dimension_numbers<[1], [0], [0], [1], [0, 0, 1, 1], [], []>} : vector<64x24xf32>, vector<24x24xf32>, vector<64x24xf32> -> vector<64x24xf32>
    %201 = arith.addf %196, %200 : vector<64x24xf32>
    %c0_290 = arith.constant 0 : index
    %c0_291 = arith.constant 0 : index
    %202 = vector.load %arg6[%c0_290, %c0_291] : memref<64x24xf32, #tpu.memory_space<vmem>>, vector<64x24xf32>
    tpu.vector_store %arg6[%c0_290, %c0_291], %201 {strides = array<i32>} : memref<64x24xf32, #tpu.memory_space<vmem>>, vector<64x24xf32>,
    %c2_292 = arith.constant 2 : index
    %c1_293 = arith.constant 1 : index
    %c0_294 = arith.constant 0 : index
    %c0_295 = arith.constant 0 : index
    %203 = vector.load %arg5[%c2_292, %c1_293, %c0_294, %c0_295] : memref<6x6x6x24xf32, #tpu.memory_space<vmem>>, vector<4x4x4x24xf32>
    %c0_296 = arith.constant 0 : index
    %c0_297 = arith.constant 0 : index
    %204 = vector.load %arg6[%c0_296, %c0_297] : memref<64x24xf32, #tpu.memory_space<vmem>>, vector<64x24xf32>
    %205 = vector.shape_cast %203 : vector<4x4x4x24xf32> to vector<64x24xf32>
    %c21 = arith.constant 21 : index
    %c0_298 = arith.constant 0 : index
    %c0_299 = arith.constant 0 : index
    %206 = vector.load %arg2[%c21, %c0_298, %c0_299] : memref<27x24x24xf32, #tpu.memory_space<vmem>>, vector<1x24x24xf32>
    %207 = vector.shape_cast %206 : vector<1x24x24xf32> to vector<24x24xf32>
    %cst_300 = arith.constant dense<0.000000e+00> : vector<64x24xf32>
    %208 = tpu.matmul %205, %207, %cst_300 {dimension_numbers = #tpu.dot_dimension_numbers<[1], [0], [0], [1], [0, 0, 1, 1], [], []>} : vector<64x24xf32>, vector<24x24xf32>, vector<64x24xf32> -> vector<64x24xf32>
    %209 = arith.addf %204, %208 : vector<64x24xf32>
    %c0_301 = arith.constant 0 : index
    %c0_302 = arith.constant 0 : index
    %210 = vector.load %arg6[%c0_301, %c0_302] : memref<64x24xf32, #tpu.memory_space<vmem>>, vector<64x24xf32>
    tpu.vector_store %arg6[%c0_301, %c0_302], %209 {strides = array<i32>} : memref<64x24xf32, #tpu.memory_space<vmem>>, vector<64x24xf32>,
    %c2_303 = arith.constant 2 : index
    %c1_304 = arith.constant 1 : index
    %c1_305 = arith.constant 1 : index
    %c0_306 = arith.constant 0 : index
    %211 = vector.load %arg5[%c2_303, %c1_304, %c1_305, %c0_306] : memref<6x6x6x24xf32, #tpu.memory_space<vmem>>, vector<4x4x4x24xf32>
    %c0_307 = arith.constant 0 : index
    %c0_308 = arith.constant 0 : index
    %212 = vector.load %arg6[%c0_307, %c0_308] : memref<64x24xf32, #tpu.memory_space<vmem>>, vector<64x24xf32>
    %213 = vector.shape_cast %211 : vector<4x4x4x24xf32> to vector<64x24xf32>
    %c22 = arith.constant 22 : index
    %c0_309 = arith.constant 0 : index
    %c0_310 = arith.constant 0 : index
    %214 = vector.load %arg2[%c22, %c0_309, %c0_310] : memref<27x24x24xf32, #tpu.memory_space<vmem>>, vector<1x24x24xf32>
    %215 = vector.shape_cast %214 : vector<1x24x24xf32> to vector<24x24xf32>
    %cst_311 = arith.constant dense<0.000000e+00> : vector<64x24xf32>
    %216 = tpu.matmul %213, %215, %cst_311 {dimension_numbers = #tpu.dot_dimension_numbers<[1], [0], [0], [1], [0, 0, 1, 1], [], []>} : vector<64x24xf32>, vector<24x24xf32>, vector<64x24xf32> -> vector<64x24xf32>
    %217 = arith.addf %212, %216 : vector<64x24xf32>
    %c0_312 = arith.constant 0 : index
    %c0_313 = arith.constant 0 : index
    %218 = vector.load %arg6[%c0_312, %c0_313] : memref<64x24xf32, #tpu.memory_space<vmem>>, vector<64x24xf32>
    tpu.vector_store %arg6[%c0_312, %c0_313], %217 {strides = array<i32>} : memref<64x24xf32, #tpu.memory_space<vmem>>, vector<64x24xf32>,
    %c2_314 = arith.constant 2 : index
    %c1_315 = arith.constant 1 : index
    %c2_316 = arith.constant 2 : index
    %c0_317 = arith.constant 0 : index
    %219 = vector.load %arg5[%c2_314, %c1_315, %c2_316, %c0_317] : memref<6x6x6x24xf32, #tpu.memory_space<vmem>>, vector<4x4x4x24xf32>
    %c0_318 = arith.constant 0 : index
    %c0_319 = arith.constant 0 : index
    %220 = vector.load %arg6[%c0_318, %c0_319] : memref<64x24xf32, #tpu.memory_space<vmem>>, vector<64x24xf32>
    %221 = vector.shape_cast %219 : vector<4x4x4x24xf32> to vector<64x24xf32>
    %c23 = arith.constant 23 : index
    %c0_320 = arith.constant 0 : index
    %c0_321 = arith.constant 0 : index
    %222 = vector.load %arg2[%c23, %c0_320, %c0_321] : memref<27x24x24xf32, #tpu.memory_space<vmem>>, vector<1x24x24xf32>
    %223 = vector.shape_cast %222 : vector<1x24x24xf32> to vector<24x24xf32>
    %cst_322 = arith.constant dense<0.000000e+00> : vector<64x24xf32>
    %224 = tpu.matmul %221, %223, %cst_322 {dimension_numbers = #tpu.dot_dimension_numbers<[1], [0], [0], [1], [0, 0, 1, 1], [], []>} : vector<64x24xf32>, vector<24x24xf32>, vector<64x24xf32> -> vector<64x24xf32>
    %225 = arith.addf %220, %224 : vector<64x24xf32>
    %c0_323 = arith.constant 0 : index
    %c0_324 = arith.constant 0 : index
    %226 = vector.load %arg6[%c0_323, %c0_324] : memref<64x24xf32, #tpu.memory_space<vmem>>, vector<64x24xf32>
    tpu.vector_store %arg6[%c0_323, %c0_324], %225 {strides = array<i32>} : memref<64x24xf32, #tpu.memory_space<vmem>>, vector<64x24xf32>,
    %c2_325 = arith.constant 2 : index
    %c2_326 = arith.constant 2 : index
    %c0_327 = arith.constant 0 : index
    %c0_328 = arith.constant 0 : index
    %227 = vector.load %arg5[%c2_325, %c2_326, %c0_327, %c0_328] : memref<6x6x6x24xf32, #tpu.memory_space<vmem>>, vector<4x4x4x24xf32>
    %c0_329 = arith.constant 0 : index
    %c0_330 = arith.constant 0 : index
    %228 = vector.load %arg6[%c0_329, %c0_330] : memref<64x24xf32, #tpu.memory_space<vmem>>, vector<64x24xf32>
    %229 = vector.shape_cast %227 : vector<4x4x4x24xf32> to vector<64x24xf32>
    %c24 = arith.constant 24 : index
    %c0_331 = arith.constant 0 : index
    %c0_332 = arith.constant 0 : index
    %230 = vector.load %arg2[%c24, %c0_331, %c0_332] : memref<27x24x24xf32, #tpu.memory_space<vmem>>, vector<1x24x24xf32>
    %231 = vector.shape_cast %230 : vector<1x24x24xf32> to vector<24x24xf32>
    %cst_333 = arith.constant dense<0.000000e+00> : vector<64x24xf32>
    %232 = tpu.matmul %229, %231, %cst_333 {dimension_numbers = #tpu.dot_dimension_numbers<[1], [0], [0], [1], [0, 0, 1, 1], [], []>} : vector<64x24xf32>, vector<24x24xf32>, vector<64x24xf32> -> vector<64x24xf32>
    %233 = arith.addf %228, %232 : vector<64x24xf32>
    %c0_334 = arith.constant 0 : index
    %c0_335 = arith.constant 0 : index
    %234 = vector.load %arg6[%c0_334, %c0_335] : memref<64x24xf32, #tpu.memory_space<vmem>>, vector<64x24xf32>
    tpu.vector_store %arg6[%c0_334, %c0_335], %233 {strides = array<i32>} : memref<64x24xf32, #tpu.memory_space<vmem>>, vector<64x24xf32>,
    %c2_336 = arith.constant 2 : index
    %c2_337 = arith.constant 2 : index
    %c1_338 = arith.constant 1 : index
    %c0_339 = arith.constant 0 : index
    %235 = vector.load %arg5[%c2_336, %c2_337, %c1_338, %c0_339] : memref<6x6x6x24xf32, #tpu.memory_space<vmem>>, vector<4x4x4x24xf32>
    %c0_340 = arith.constant 0 : index
    %c0_341 = arith.constant 0 : index
    %236 = vector.load %arg6[%c0_340, %c0_341] : memref<64x24xf32, #tpu.memory_space<vmem>>, vector<64x24xf32>
    %237 = vector.shape_cast %235 : vector<4x4x4x24xf32> to vector<64x24xf32>
    %c25 = arith.constant 25 : index
    %c0_342 = arith.constant 0 : index
    %c0_343 = arith.constant 0 : index
    %238 = vector.load %arg2[%c25, %c0_342, %c0_343] : memref<27x24x24xf32, #tpu.memory_space<vmem>>, vector<1x24x24xf32>
    %239 = vector.shape_cast %238 : vector<1x24x24xf32> to vector<24x24xf32>
    %cst_344 = arith.constant dense<0.000000e+00> : vector<64x24xf32>
    %240 = tpu.matmul %237, %239, %cst_344 {dimension_numbers = #tpu.dot_dimension_numbers<[1], [0], [0], [1], [0, 0, 1, 1], [], []>} : vector<64x24xf32>, vector<24x24xf32>, vector<64x24xf32> -> vector<64x24xf32>
    %241 = arith.addf %236, %240 : vector<64x24xf32>
    %c0_345 = arith.constant 0 : index
    %c0_346 = arith.constant 0 : index
    %242 = vector.load %arg6[%c0_345, %c0_346] : memref<64x24xf32, #tpu.memory_space<vmem>>, vector<64x24xf32>
    tpu.vector_store %arg6[%c0_345, %c0_346], %241 {strides = array<i32>} : memref<64x24xf32, #tpu.memory_space<vmem>>, vector<64x24xf32>,
    %c2_347 = arith.constant 2 : index
    %c2_348 = arith.constant 2 : index
    %c2_349 = arith.constant 2 : index
    %c0_350 = arith.constant 0 : index
    %243 = vector.load %arg5[%c2_347, %c2_348, %c2_349, %c0_350] : memref<6x6x6x24xf32, #tpu.memory_space<vmem>>, vector<4x4x4x24xf32>
    %c0_351 = arith.constant 0 : index
    %c0_352 = arith.constant 0 : index
    %244 = vector.load %arg6[%c0_351, %c0_352] : memref<64x24xf32, #tpu.memory_space<vmem>>, vector<64x24xf32>
    %245 = vector.shape_cast %243 : vector<4x4x4x24xf32> to vector<64x24xf32>
    %c26 = arith.constant 26 : index
    %c0_353 = arith.constant 0 : index
    %c0_354 = arith.constant 0 : index
    %246 = vector.load %arg2[%c26, %c0_353, %c0_354] : memref<27x24x24xf32, #tpu.memory_space<vmem>>, vector<1x24x24xf32>
    %247 = vector.shape_cast %246 : vector<1x24x24xf32> to vector<24x24xf32>
    %cst_355 = arith.constant dense<0.000000e+00> : vector<64x24xf32>
    %248 = tpu.matmul %245, %247, %cst_355 {dimension_numbers = #tpu.dot_dimension_numbers<[1], [0], [0], [1], [0, 0, 1, 1], [], []>} : vector<64x24xf32>, vector<24x24xf32>, vector<64x24xf32> -> vector<64x24xf32>
    %249 = arith.addf %244, %248 : vector<64x24xf32>
    %c0_356 = arith.constant 0 : index
    %c0_357 = arith.constant 0 : index
    %250 = vector.load %arg6[%c0_356, %c0_357] : memref<64x24xf32, #tpu.memory_space<vmem>>, vector<64x24xf32>
    tpu.vector_store %arg6[%c0_356, %c0_357], %249 {strides = array<i32>} : memref<64x24xf32, #tpu.memory_space<vmem>>, vector<64x24xf32>,
    %c0_358 = arith.constant 0 : index
    %c0_359 = arith.constant 0 : index
    %251 = vector.load %arg6[%c0_358, %c0_359] : memref<64x24xf32, #tpu.memory_space<vmem>>, vector<64x24xf32>
    %c0_360 = arith.constant 0 : index
    %c0_361 = arith.constant 0 : index
    %252 = vector.load %arg3[%c0_360, %c0_361] : memref<1x24xf32, #tpu.memory_space<vmem>>, vector<1x24xf32>
    %253 = vector.broadcast %252 : vector<1x24xf32> to vector<64x24xf32>
    %254 = arith.addf %251, %253 : vector<64x24xf32>
    %c0_362 = arith.constant 0 : index
    %c0_363 = arith.constant 0 : index
    %c0_364 = arith.constant 0 : index
    %255 = vector.load %arg4[%c0_362, %c0_363, %c0_364] : memref<1x64x24xf32, #tpu.memory_space<vmem>>, vector<1x64x24xf32>
    %256 = vector.shape_cast %255 : vector<1x64x24xf32> to vector<64x24xf32>
    %257 = vector.shape_cast %254 : vector<64x24xf32> to vector<1x64x24xf32>
    tpu.vector_store %arg4[%c0_362, %c0_363, %c0_364], %257 {strides = array<i32>} : memref<1x64x24xf32, #tpu.memory_space<vmem>>, vector<1x64x24xf32>,
    return
  }
  func.func @transform_0(%arg0: i32) -> (i32, i32, i32, i32, i32) {
    %c0_i32 = arith.constant 0 : i32
    %c0_i32_0 = arith.constant 0 : i32
    %c0_i32_1 = arith.constant 0 : i32
    %c0_i32_2 = arith.constant 0 : i32
    %c0_i32_3 = arith.constant 0 : i32
    return %arg0, %c0_i32, %c0_i32_0, %c0_i32_1, %c0_i32_2 : i32, i32, i32, i32, i32
  }
  func.func @transform_1(%arg0: i32) -> (i32, i32, i32) {
    %c0_i32 = arith.constant 0 : i32
    %c0_i32_0 = arith.constant 0 : i32
    %c0_i32_1 = arith.constant 0 : i32
    %c0_i32_2 = arith.constant 0 : i32
    return %c0_i32, %c0_i32_0, %c0_i32_1 : i32, i32, i32
  }
  func.func @transform_2(%arg0: i32) -> (i32, i32) {
    %c0_i32 = arith.constant 0 : i32
    %c0_i32_0 = arith.constant 0 : i32
    %c0_i32_1 = arith.constant 0 : i32
    return %c0_i32, %c0_i32_0 : i32, i32
  }
  func.func @transform_3(%arg0: i32) -> (i32, i32, i32) {
    %c0_i32 = arith.constant 0 : i32
    %c0_i32_0 = arith.constant 0 : i32
    %c0_i32_1 = arith.constant 0 : i32
    return %arg0, %c0_i32, %c0_i32_0 : i32, i32, i32
  }
}

module attributes {stable_mosaic.version = 11 : i64} {
  func.func @_mm_chain2_kernel(%arg0: i32, %arg1: i32, %arg2: memref<1x32x24xf32, #tpu.memory_space<vmem>>, %arg3: memref<24x24xf32, #tpu.memory_space<vmem>>, %arg4: memref<1x24xf32, #tpu.memory_space<vmem>>, %arg5: memref<24x24xf32, #tpu.memory_space<vmem>>, %arg6: memref<1x24xf32, #tpu.memory_space<vmem>>, %arg7: memref<1x32x24xf32, #tpu.memory_space<vmem>>) attributes {dimension_semantics = [#tpu.dimension_semantics<parallel>, #tpu.dimension_semantics<parallel>], iteration_bounds = array<i64: 2, 2>, scalar_prefetch = 0 : i64, scratch_operands = 0 : i64, tpu.core_type = #tpu.core_type<tc>, window_params = [{transform_indices = @transform_0, window_bounds = array<i64: 1, 32, 24>}, {pipeline_mode = #tpu.pipeline_mode<synchronous>, transform_indices = @transform_1, window_bounds = array<i64: 24, 24>}, {pipeline_mode = #tpu.pipeline_mode<synchronous>, transform_indices = @transform_2, window_bounds = array<i64: 1, 24>}, {pipeline_mode = #tpu.pipeline_mode<synchronous>, transform_indices = @transform_3, window_bounds = array<i64: 24, 24>}, {pipeline_mode = #tpu.pipeline_mode<synchronous>, transform_indices = @transform_4, window_bounds = array<i64: 1, 24>}, {transform_indices = @transform_5, window_bounds = array<i64: 1, 32, 24>}]} {
    %c0 = arith.constant 0 : index
    %c0_0 = arith.constant 0 : index
    %c0_1 = arith.constant 0 : index
    %0 = vector.load %arg2[%c0, %c0_0, %c0_1] : memref<1x32x24xf32, #tpu.memory_space<vmem>>, vector<1x32x24xf32>
    %1 = vector.shape_cast %0 : vector<1x32x24xf32> to vector<32x24xf32>
    %c0_2 = arith.constant 0 : index
    %c0_3 = arith.constant 0 : index
    %2 = vector.load %arg3[%c0_2, %c0_3] : memref<24x24xf32, #tpu.memory_space<vmem>>, vector<24x24xf32>
    %cst = arith.constant dense<0.000000e+00> : vector<32x24xf32>
    %3 = tpu.matmul %1, %2, %cst {dimension_numbers = #tpu.dot_dimension_numbers<[1], [0], [0], [1], [0, 0, 1, 1], [], []>} : vector<32x24xf32>, vector<24x24xf32>, vector<32x24xf32> -> vector<32x24xf32>
    %c0_4 = arith.constant 0 : index
    %c0_5 = arith.constant 0 : index
    %4 = vector.load %arg4[%c0_4, %c0_5] : memref<1x24xf32, #tpu.memory_space<vmem>>, vector<1x24xf32>
    %5 = vector.broadcast %4 : vector<1x24xf32> to vector<32x24xf32>
    %6 = arith.addf %3, %5 : vector<32x24xf32>
    %c0_6 = arith.constant 0 : index
    %c0_7 = arith.constant 0 : index
    %7 = vector.load %arg5[%c0_6, %c0_7] : memref<24x24xf32, #tpu.memory_space<vmem>>, vector<24x24xf32>
    %cst_8 = arith.constant dense<0.000000e+00> : vector<32x24xf32>
    %8 = tpu.matmul %6, %7, %cst_8 {dimension_numbers = #tpu.dot_dimension_numbers<[1], [0], [0], [1], [0, 0, 1, 1], [], []>} : vector<32x24xf32>, vector<24x24xf32>, vector<32x24xf32> -> vector<32x24xf32>
    %c0_9 = arith.constant 0 : index
    %c0_10 = arith.constant 0 : index
    %9 = vector.load %arg6[%c0_9, %c0_10] : memref<1x24xf32, #tpu.memory_space<vmem>>, vector<1x24xf32>
    %10 = vector.broadcast %9 : vector<1x24xf32> to vector<32x24xf32>
    %11 = arith.addf %8, %10 : vector<32x24xf32>
    %c0_11 = arith.constant 0 : index
    %c0_12 = arith.constant 0 : index
    %c0_13 = arith.constant 0 : index
    %12 = vector.load %arg7[%c0_11, %c0_12, %c0_13] : memref<1x32x24xf32, #tpu.memory_space<vmem>>, vector<1x32x24xf32>
    %13 = vector.shape_cast %12 : vector<1x32x24xf32> to vector<32x24xf32>
    %14 = vector.shape_cast %11 : vector<32x24xf32> to vector<1x32x24xf32>
    tpu.vector_store %arg7[%c0_11, %c0_12, %c0_13], %14 {strides = array<i32>} : memref<1x32x24xf32, #tpu.memory_space<vmem>>, vector<1x32x24xf32>,
    return
  }
  func.func @transform_0(%arg0: i32, %arg1: i32) -> (i32, i32, i32) {
    %c0_i32 = arith.constant 0 : i32
    %c0_i32_0 = arith.constant 0 : i32
    return %arg0, %arg1, %c0_i32 : i32, i32, i32
  }
  func.func @transform_1(%arg0: i32, %arg1: i32) -> (i32, i32) {
    %c0_i32 = arith.constant 0 : i32
    %c0_i32_0 = arith.constant 0 : i32
    %c0_i32_1 = arith.constant 0 : i32
    return %c0_i32, %c0_i32_0 : i32, i32
  }
  func.func @transform_2(%arg0: i32, %arg1: i32) -> (i32, i32) {
    %c0_i32 = arith.constant 0 : i32
    %c0_i32_0 = arith.constant 0 : i32
    %c0_i32_1 = arith.constant 0 : i32
    return %c0_i32, %c0_i32_0 : i32, i32
  }
  func.func @transform_3(%arg0: i32, %arg1: i32) -> (i32, i32) {
    %c0_i32 = arith.constant 0 : i32
    %c0_i32_0 = arith.constant 0 : i32
    %c0_i32_1 = arith.constant 0 : i32
    return %c0_i32, %c0_i32_0 : i32, i32
  }
  func.func @transform_4(%arg0: i32, %arg1: i32) -> (i32, i32) {
    %c0_i32 = arith.constant 0 : i32
    %c0_i32_0 = arith.constant 0 : i32
    %c0_i32_1 = arith.constant 0 : i32
    return %c0_i32, %c0_i32_0 : i32, i32
  }
  func.func @transform_5(%arg0: i32, %arg1: i32) -> (i32, i32, i32) {
    %c0_i32 = arith.constant 0 : i32
    %c0_i32_0 = arith.constant 0 : i32
    return %arg0, %arg1, %c0_i32 : i32, i32, i32
  }
}

module attributes {stable_mosaic.version = 11 : i64} {
  func.func @_gate_qkv_kernel(%arg0: i32, %arg1: i32, %arg2: memref<1x32x24xf32, #tpu.memory_space<vmem>>, %arg3: memref<1x32x24xf32, #tpu.memory_space<vmem>>, %arg4: memref<24x24xf32, #tpu.memory_space<vmem>>, %arg5: memref<1x24xf32, #tpu.memory_space<vmem>>, %arg6: memref<24x72xf32, #tpu.memory_space<vmem>>, %arg7: memref<1x72xf32, #tpu.memory_space<vmem>>, %arg8: memref<1x32x72xf32, #tpu.memory_space<vmem>>) attributes {dimension_semantics = [#tpu.dimension_semantics<parallel>, #tpu.dimension_semantics<parallel>], iteration_bounds = array<i64: 2, 2>, scalar_prefetch = 0 : i64, scratch_operands = 0 : i64, tpu.core_type = #tpu.core_type<tc>, window_params = [{transform_indices = @transform_0, window_bounds = array<i64: 1, 32, 24>}, {transform_indices = @transform_1, window_bounds = array<i64: 1, 32, 24>}, {pipeline_mode = #tpu.pipeline_mode<synchronous>, transform_indices = @transform_2, window_bounds = array<i64: 24, 24>}, {pipeline_mode = #tpu.pipeline_mode<synchronous>, transform_indices = @transform_3, window_bounds = array<i64: 1, 24>}, {pipeline_mode = #tpu.pipeline_mode<synchronous>, transform_indices = @transform_4, window_bounds = array<i64: 24, 72>}, {pipeline_mode = #tpu.pipeline_mode<synchronous>, transform_indices = @transform_5, window_bounds = array<i64: 1, 72>}, {transform_indices = @transform_6, window_bounds = array<i64: 1, 32, 72>}]} {
    %c0 = arith.constant 0 : index
    %c0_0 = arith.constant 0 : index
    %c0_1 = arith.constant 0 : index
    %0 = vector.load %arg2[%c0, %c0_0, %c0_1] : memref<1x32x24xf32, #tpu.memory_space<vmem>>, vector<1x32x24xf32>
    %1 = vector.shape_cast %0 : vector<1x32x24xf32> to vector<32x24xf32>
    %c0_2 = arith.constant 0 : index
    %c0_3 = arith.constant 0 : index
    %2 = vector.load %arg4[%c0_2, %c0_3] : memref<24x24xf32, #tpu.memory_space<vmem>>, vector<24x24xf32>
    %cst = arith.constant dense<0.000000e+00> : vector<32x24xf32>
    %3 = tpu.matmul %1, %2, %cst {dimension_numbers = #tpu.dot_dimension_numbers<[1], [0], [0], [1], [0, 0, 1, 1], [], []>} : vector<32x24xf32>, vector<24x24xf32>, vector<32x24xf32> -> vector<32x24xf32>
    %c0_4 = arith.constant 0 : index
    %c0_5 = arith.constant 0 : index
    %4 = vector.load %arg5[%c0_4, %c0_5] : memref<1x24xf32, #tpu.memory_space<vmem>>, vector<1x24xf32>
    %5 = vector.broadcast %4 : vector<1x24xf32> to vector<32x24xf32>
    %6 = arith.addf %3, %5 : vector<32x24xf32>
    %cst_6 = arith.constant 0.000000e+00 : f32
    %7 = vector.broadcast %cst_6 : f32 to vector<32x24xf32>
    %8 = arith.subf %7, %6 : vector<32x24xf32>
    %9 = math.exp %8 : vector<32x24xf32>
    %cst_7 = arith.constant 1.000000e+00 : f32
    %10 = vector.broadcast %cst_7 : f32 to vector<32x24xf32>
    %11 = arith.addf %10, %9 : vector<32x24xf32>
    %12 = tpu.reciprocal %11 {approx = true} : vector<32x24xf32> -> vector<32x24xf32>
    %c0_8 = arith.constant 0 : index
    %c0_9 = arith.constant 0 : index
    %c0_10 = arith.constant 0 : index
    %13 = vector.load %arg3[%c0_8, %c0_9, %c0_10] : memref<1x32x24xf32, #tpu.memory_space<vmem>>, vector<1x32x24xf32>
    %14 = vector.shape_cast %13 : vector<1x32x24xf32> to vector<32x24xf32>
    %15 = arith.mulf %14, %12 : vector<32x24xf32>
    %c0_11 = arith.constant 0 : index
    %c0_12 = arith.constant 0 : index
    %16 = vector.load %arg6[%c0_11, %c0_12] : memref<24x72xf32, #tpu.memory_space<vmem>>, vector<24x72xf32>
    %cst_13 = arith.constant dense<0.000000e+00> : vector<32x72xf32>
    %17 = tpu.matmul %15, %16, %cst_13 {dimension_numbers = #tpu.dot_dimension_numbers<[1], [0], [0], [1], [0, 0, 1, 1], [], []>} : vector<32x24xf32>, vector<24x72xf32>, vector<32x72xf32> -> vector<32x72xf32>
    %c0_14 = arith.constant 0 : index
    %c0_15 = arith.constant 0 : index
    %18 = vector.load %arg7[%c0_14, %c0_15] : memref<1x72xf32, #tpu.memory_space<vmem>>, vector<1x72xf32>
    %19 = vector.broadcast %18 : vector<1x72xf32> to vector<32x72xf32>
    %20 = arith.addf %17, %19 : vector<32x72xf32>
    %c0_16 = arith.constant 0 : index
    %c0_17 = arith.constant 0 : index
    %c0_18 = arith.constant 0 : index
    %21 = vector.load %arg8[%c0_16, %c0_17, %c0_18] : memref<1x32x72xf32, #tpu.memory_space<vmem>>, vector<1x32x72xf32>
    %22 = vector.shape_cast %21 : vector<1x32x72xf32> to vector<32x72xf32>
    %23 = vector.shape_cast %20 : vector<32x72xf32> to vector<1x32x72xf32>
    tpu.vector_store %arg8[%c0_16, %c0_17, %c0_18], %23 {strides = array<i32>} : memref<1x32x72xf32, #tpu.memory_space<vmem>>, vector<1x32x72xf32>,
    return
  }
  func.func @transform_0(%arg0: i32, %arg1: i32) -> (i32, i32, i32) {
    %c0_i32 = arith.constant 0 : i32
    %c0_i32_0 = arith.constant 0 : i32
    return %arg0, %arg1, %c0_i32 : i32, i32, i32
  }
  func.func @transform_1(%arg0: i32, %arg1: i32) -> (i32, i32, i32) {
    %c0_i32 = arith.constant 0 : i32
    %c0_i32_0 = arith.constant 0 : i32
    return %arg0, %arg1, %c0_i32 : i32, i32, i32
  }
  func.func @transform_2(%arg0: i32, %arg1: i32) -> (i32, i32) {
    %c0_i32 = arith.constant 0 : i32
    %c0_i32_0 = arith.constant 0 : i32
    %c0_i32_1 = arith.constant 0 : i32
    return %c0_i32, %c0_i32_0 : i32, i32
  }
  func.func @transform_3(%arg0: i32, %arg1: i32) -> (i32, i32) {
    %c0_i32 = arith.constant 0 : i32
    %c0_i32_0 = arith.constant 0 : i32
    %c0_i32_1 = arith.constant 0 : i32
    return %c0_i32, %c0_i32_0 : i32, i32
  }
  func.func @transform_4(%arg0: i32, %arg1: i32) -> (i32, i32) {
    %c0_i32 = arith.constant 0 : i32
    %c0_i32_0 = arith.constant 0 : i32
    %c0_i32_1 = arith.constant 0 : i32
    return %c0_i32, %c0_i32_0 : i32, i32
  }
  func.func @transform_5(%arg0: i32, %arg1: i32) -> (i32, i32) {
    %c0_i32 = arith.constant 0 : i32
    %c0_i32_0 = arith.constant 0 : i32
    %c0_i32_1 = arith.constant 0 : i32
    return %c0_i32, %c0_i32_0 : i32, i32
  }
  func.func @transform_6(%arg0: i32, %arg1: i32) -> (i32, i32, i32) {
    %c0_i32 = arith.constant 0 : i32
    %c0_i32_0 = arith.constant 0 : i32
    return %arg0, %arg1, %c0_i32 : i32, i32, i32
  }
}

module attributes {stable_mosaic.version = 11 : i64} {
  func.func @_axial_attn_kernel(%arg0: i32, %arg1: memref<3x4x16x4x6xf32, #tpu.memory_space<vmem>>, %arg2: memref<4x16x4x6xf32, #tpu.memory_space<vmem>>) attributes {dimension_semantics = [#tpu.dimension_semantics<parallel>], iteration_bounds = array<i64: 2>, scalar_prefetch = 0 : i64, scratch_operands = 0 : i64, tpu.core_type = #tpu.core_type<tc>, window_params = [{transform_indices = @transform_0, window_bounds = array<i64: 3, 4, 16, 4, 6>}, {transform_indices = @transform_1, window_bounds = array<i64: 4, 16, 4, 6>}]} {
    %c0 = arith.constant 0 : index
    %c0_0 = arith.constant 0 : index
    %c0_1 = arith.constant 0 : index
    %c0_2 = arith.constant 0 : index
    %c0_3 = arith.constant 0 : index
    %0 = vector.load %arg1[%c0, %c0_0, %c0_1, %c0_2, %c0_3] : memref<3x4x16x4x6xf32, #tpu.memory_space<vmem>>, vector<3x4x16x4x6xf32>
    %1 = vector.shape_cast %0 : vector<3x4x16x4x6xf32> to vector<3x64x4x6xf32>
    %2 = vector.extract_strided_slice %1 {offsets = [0, 0, 0, 0], sizes = [1, 64, 4, 6], strides = [1, 1, 1, 1]} : vector<3x64x4x6xf32> to vector<1x64x4x6xf32>
    %3 = vector.shape_cast %2 : vector<1x64x4x6xf32> to vector<64x4x6xf32>
    %4 = vector.extract_strided_slice %1 {offsets = [1, 0, 0, 0], sizes = [1, 64, 4, 6], strides = [1, 1, 1, 1]} : vector<3x64x4x6xf32> to vector<1x64x4x6xf32>
    %5 = vector.shape_cast %4 : vector<1x64x4x6xf32> to vector<64x4x6xf32>
    %6 = vector.extract_strided_slice %1 {offsets = [2, 0, 0, 0], sizes = [1, 64, 4, 6], strides = [1, 1, 1, 1]} : vector<3x64x4x6xf32> to vector<1x64x4x6xf32>
    %7 = vector.shape_cast %6 : vector<1x64x4x6xf32> to vector<64x4x6xf32>
    "tpu.trace_start"() <{level = 10 : i32, message = "bqd,bkd->bqk"}> : () -> ()
    %cst = arith.constant dense<0.000000e+00> : vector<64x4x4xf32>
    %8 = tpu.matmul %3, %5, %cst {dimension_numbers = #tpu.dot_dimension_numbers<[2], [2], [1], [1], [0, 0, 0, 1, 1, 1], [0], [0]>} : vector<64x4x6xf32>, vector<64x4x6xf32>, vector<64x4x4xf32> -> vector<64x4x4xf32>
    "tpu.trace_stop"() : () -> ()
    %cst_4 = arith.constant dense<0xFF800000> : vector<64x4xf32>
    %9 = vector.multi_reduction <maximumf>, %8, %cst_4 [2] : vector<64x4x4xf32> to vector<64x4xf32>
    %10 = vector.shape_cast %9 : vector<64x4xf32> to vector<64x4x1xf32>
    %11 = vector.broadcast %10 : vector<64x4x1xf32> to vector<64x4x4xf32>
    %12 = arith.subf %8, %11 : vector<64x4x4xf32>
    %13 = math.exp %12 : vector<64x4x4xf32>
    %cst_5 = arith.constant dense<0.000000e+00> : vector<64x4xf32>
    %14 = vector.multi_reduction <add>, %13, %cst_5 [2] : vector<64x4x4xf32> to vector<64x4xf32>
    %15 = vector.shape_cast %14 : vector<64x4xf32> to vector<64x4x1xf32>
    %16 = tpu.reciprocal %15 {approx = true} : vector<64x4x1xf32> -> vector<64x4x1xf32>
    %17 = vector.broadcast %16 : vector<64x4x1xf32> to vector<64x4x4xf32>
    %18 = arith.mulf %13, %17 : vector<64x4x4xf32>
    "tpu.trace_start"() <{level = 10 : i32, message = "bqk,bkd->bqd"}> : () -> ()
    %cst_6 = arith.constant dense<0.000000e+00> : vector<64x4x6xf32>
    %19 = tpu.matmul %18, %7, %cst_6 {dimension_numbers = #tpu.dot_dimension_numbers<[2], [1], [1], [2], [0, 0, 0, 1, 1, 2], [0], [0]>} : vector<64x4x4xf32>, vector<64x4x6xf32>, vector<64x4x6xf32> -> vector<64x4x6xf32>
    "tpu.trace_stop"() : () -> ()
    %20 = vector.shape_cast %19 : vector<64x4x6xf32> to vector<4x16x4x6xf32>
    %c0_7 = arith.constant 0 : index
    %c0_8 = arith.constant 0 : index
    %c0_9 = arith.constant 0 : index
    %c0_10 = arith.constant 0 : index
    %21 = vector.load %arg2[%c0_7, %c0_8, %c0_9, %c0_10] : memref<4x16x4x6xf32, #tpu.memory_space<vmem>>, vector<4x16x4x6xf32>
    tpu.vector_store %arg2[%c0_7, %c0_8, %c0_9, %c0_10], %20 {strides = array<i32>} : memref<4x16x4x6xf32, #tpu.memory_space<vmem>>, vector<4x16x4x6xf32>,
    return
  }
  func.func @transform_0(%arg0: i32) -> (i32, i32, i32, i32, i32) {
    %c0_i32 = arith.constant 0 : i32
    %c0_i32_0 = arith.constant 0 : i32
    %c0_i32_1 = arith.constant 0 : i32
    %c0_i32_2 = arith.constant 0 : i32
    %c0_i32_3 = arith.constant 0 : i32
    return %c0_i32, %c0_i32_0, %arg0, %c0_i32_1, %c0_i32_2 : i32, i32, i32, i32, i32
  }
  func.func @transform_1(%arg0: i32) -> (i32, i32, i32, i32) {
    %c0_i32 = arith.constant 0 : i32
    %c0_i32_0 = arith.constant 0 : i32
    %c0_i32_1 = arith.constant 0 : i32
    %c0_i32_2 = arith.constant 0 : i32
    return %c0_i32, %arg0, %c0_i32_0, %c0_i32_1 : i32, i32, i32, i32
  }
}

module attributes {stable_mosaic.version = 11 : i64} {
  func.func @_proj_headacc_kernel(%arg0: i32, %arg1: i32, %arg2: memref<1x64x6xf32, #tpu.memory_space<vmem>>, %arg3: memref<1x64x6xf32, #tpu.memory_space<vmem>>, %arg4: memref<1x64x6xf32, #tpu.memory_space<vmem>>, %arg5: memref<1x6x24xf32, #tpu.memory_space<vmem>>, %arg6: memref<1x24xf32, #tpu.memory_space<vmem>>, %arg7: memref<64x24xf32, #tpu.memory_space<vmem>>, %arg8: memref<64x24xf32, #tpu.memory_space<vmem>>) attributes {dimension_semantics = [#tpu.dimension_semantics<parallel>, #tpu.dimension_semantics<arbitrary>], iteration_bounds = array<i64: 2, 4>, scalar_prefetch = 0 : i64, scratch_operands = 1 : i64, tpu.core_type = #tpu.core_type<tc>, window_params = [{transform_indices = @transform_0, window_bounds = array<i64: 1, 64, 6>}, {transform_indices = @transform_1, window_bounds = array<i64: 1, 64, 6>}, {transform_indices = @transform_2, window_bounds = array<i64: 1, 64, 6>}, {transform_indices = @transform_3, window_bounds = array<i64: 1, 6, 24>}, {pipeline_mode = #tpu.pipeline_mode<synchronous>, transform_indices = @transform_4, window_bounds = array<i64: 1, 24>}, {transform_indices = @transform_5, window_bounds = array<i64: 64, 24>}]} {
    %c0_i32 = arith.constant 0 : i32
    %0 = arith.cmpi eq, %arg1, %c0_i32 : i32
    %1 = arith.extui %0 : i1 to i32
    %c0_i32_0 = arith.constant 0 : i32
    %2 = arith.cmpi ne, %1, %c0_i32_0 : i32
    scf.if %2 {
      %cst_17 = arith.constant 0.000000e+00 : f32
      %20 = vector.broadcast %cst_17 : f32 to vector<64x24xf32>
      %c0_18 = arith.constant 0 : index
      %c0_19 = arith.constant 0 : index
      %21 = vector.load %arg8[%c0_18, %c0_19] : memref<64x24xf32, #tpu.memory_space<vmem>>, vector<64x24xf32>
      tpu.vector_store %arg8[%c0_18, %c0_19], %20 {strides = array<i32>} : memref<64x24xf32, #tpu.memory_space<vmem>>, vector<64x24xf32>,
    } else {
    }
    %c0 = arith.constant 0 : index
    %c0_1 = arith.constant 0 : index
    %c0_2 = arith.constant 0 : index
    %3 = vector.load %arg2[%c0, %c0_1, %c0_2] : memref<1x64x6xf32, #tpu.memory_space<vmem>>, vector<1x64x6xf32>
    %4 = vector.shape_cast %3 : vector<1x64x6xf32> to vector<64x6xf32>
    %c0_3 = arith.constant 0 : index
    %c0_4 = arith.constant 0 : index
    %c0_5 = arith.constant 0 : index
    %5 = vector.load %arg3[%c0_3, %c0_4, %c0_5] : memref<1x64x6xf32, #tpu.memory_space<vmem>>, vector<1x64x6xf32>
    %6 = vector.shape_cast %5 : vector<1x64x6xf32> to vector<64x6xf32>
    %7 = arith.addf %4, %6 : vector<64x6xf32>
    %c0_6 = arith.constant 0 : index
    %c0_7 = arith.constant 0 : index
    %c0_8 = arith.constant 0 : index
    %8 = vector.load %arg4[%c0_6, %c0_7, %c0_8] : memref<1x64x6xf32, #tpu.memory_space<vmem>>, vector<1x64x6xf32>
    %9 = vector.shape_cast %8 : vector<1x64x6xf32> to vector<64x6xf32>
    %10 = arith.addf %7, %9 : vector<64x6xf32>
    %c0_9 = arith.constant 0 : index
    %c0_10 = arith.constant 0 : index
    %11 = vector.load %arg8[%c0_9, %c0_10] : memref<64x24xf32, #tpu.memory_space<vmem>>, vector<64x24xf32>
    %c0_11 = arith.constant 0 : index
    %c0_12 = arith.constant 0 : index
    %c0_13 = arith.constant 0 : index
    %12 = vector.load %arg5[%c0_11, %c0_12, %c0_13] : memref<1x6x24xf32, #tpu.memory_space<vmem>>, vector<1x6x24xf32>
    %13 = vector.shape_cast %12 : vector<1x6x24xf32> to vector<6x24xf32>
    %cst = arith.constant dense<0.000000e+00> : vector<64x24xf32>
    %14 = tpu.matmul %10, %13, %cst {dimension_numbers = #tpu.dot_dimension_numbers<[1], [0], [0], [1], [0, 0, 1, 1], [], []>} : vector<64x6xf32>, vector<6x24xf32>, vector<64x24xf32> -> vector<64x24xf32>
    %15 = arith.addf %11, %14 : vector<64x24xf32>
    %c0_14 = arith.constant 0 : index
    %c0_15 = arith.constant 0 : index
    %16 = vector.load %arg8[%c0_14, %c0_15] : memref<64x24xf32, #tpu.memory_space<vmem>>, vector<64x24xf32>
    tpu.vector_store %arg8[%c0_14, %c0_15], %15 {strides = array<i32>} : memref<64x24xf32, #tpu.memory_space<vmem>>, vector<64x24xf32>,
    %c3_i32 = arith.constant 3 : i32
    %17 = arith.cmpi eq, %arg1, %c3_i32 : i32
    %18 = arith.extui %17 : i1 to i32
    %c0_i32_16 = arith.constant 0 : i32
    %19 = arith.cmpi ne, %18, %c0_i32_16 : i32
    scf.if %19 {
      %c0_17 = arith.constant 0 : index
      %c0_18 = arith.constant 0 : index
      %20 = vector.load %arg8[%c0_17, %c0_18] : memref<64x24xf32, #tpu.memory_space<vmem>>, vector<64x24xf32>
      %c0_19 = arith.constant 0 : index
      %c0_20 = arith.constant 0 : index
      %21 = vector.load %arg6[%c0_19, %c0_20] : memref<1x24xf32, #tpu.memory_space<vmem>>, vector<1x24xf32>
      %22 = vector.broadcast %21 : vector<1x24xf32> to vector<64x24xf32>
      %23 = arith.addf %20, %22 : vector<64x24xf32>
      %c0_21 = arith.constant 0 : index
      %c0_22 = arith.constant 0 : index
      %24 = vector.load %arg7[%c0_21, %c0_22] : memref<64x24xf32, #tpu.memory_space<vmem>>, vector<64x24xf32>
      tpu.vector_store %arg7[%c0_21, %c0_22], %23 {strides = array<i32>} : memref<64x24xf32, #tpu.memory_space<vmem>>, vector<64x24xf32>,
    } else {
    }
    return
  }
  func.func @transform_0(%arg0: i32, %arg1: i32) -> (i32, i32, i32) {
    %c0_i32 = arith.constant 0 : i32
    %c0_i32_0 = arith.constant 0 : i32
    return %arg1, %arg0, %c0_i32 : i32, i32, i32
  }
  func.func @transform_1(%arg0: i32, %arg1: i32) -> (i32, i32, i32) {
    %c0_i32 = arith.constant 0 : i32
    %c0_i32_0 = arith.constant 0 : i32
    return %arg1, %arg0, %c0_i32 : i32, i32, i32
  }
  func.func @transform_2(%arg0: i32, %arg1: i32) -> (i32, i32, i32) {
    %c0_i32 = arith.constant 0 : i32
    %c0_i32_0 = arith.constant 0 : i32
    return %arg1, %arg0, %c0_i32 : i32, i32, i32
  }
  func.func @transform_3(%arg0: i32, %arg1: i32) -> (i32, i32, i32) {
    %c0_i32 = arith.constant 0 : i32
    %c0_i32_0 = arith.constant 0 : i32
    %c0_i32_1 = arith.constant 0 : i32
    return %arg1, %c0_i32, %c0_i32_0 : i32, i32, i32
  }
  func.func @transform_4(%arg0: i32, %arg1: i32) -> (i32, i32) {
    %c0_i32 = arith.constant 0 : i32
    %c0_i32_0 = arith.constant 0 : i32
    %c0_i32_1 = arith.constant 0 : i32
    return %c0_i32, %c0_i32_0 : i32, i32
  }
  func.func @transform_5(%arg0: i32, %arg1: i32) -> (i32, i32) {
    %c0_i32 = arith.constant 0 : i32
    %c0_i32_0 = arith.constant 0 : i32
    return %arg0, %c0_i32 : i32, i32
  }
}

</mosaic_0001>

<bundles_post_ra>
// kernel: self_attention_forward.8
= control target key start
LH: loop header
LB: loop body
LE: loop exit
PB: predicated region body
PF: predicated region fallthrough
CT: control target
= control target key end

     0   :  { %s756_s18 = smov 0   ;;  %s758_s19 = smov 0   ;;  %s850_s0 = inlined_call_operand.vmem [shape: f32[2,64,24], index: 0, kind: input, shape index: {}]   ;;  %s851_s1 = inlined_call_operand.vmem [shape: f32[24,24], index: 1, kind: input, shape index: {}]   ;;  %s852_s2 = inlined_call_operand.vmem [shape: f32[1,24], index: 2, kind: input, shape index: {}]   ;;  %s853_s3 = inlined_call_operand.vmem [shape: f32[24,24], index: 3, kind: input, shape index: {}]   ;;  %s854_s4 = inlined_call_operand.vmem [shape: f32[1,24], index: 4, kind: input, shape index: {}]   ;;  %s855_s5 = inlined_call_operand.vmem [shape: f32[2,64,24], index: 5, kind: output, shape index: {}]  }
   0x1   :  { %s760_s20 = smov 0   ;;  %s762_s21 = smov 0  }
   0x2   :  { %s764_s22 = smov 0  }
   0x3 LB: > { %s24_s23 = sadd.s32 1, %s716_s20  ;;  %s27_s24 = sadd.s32 1, %s720_s21  ;;  %s724_s22 = sphi %s764_s22, %s15_s22   ;;  %s720_s21 = sphi %s762_s21, %s859_s21   ;;  %s716_s20 = sphi %s760_s20, %s858_s20   ;;  %s712_s19 = sphi %s758_s19, %s857_s19   ;;  %s708_s18 = sphi %s756_s18, %s856_s18  }
   0x4   : > { %p25_p0 = scmp.ge.s32.totalorder %s24_s23, 2  ;;  %p581_p1 = scmp.ge.s32.totalorder %s724_s22, 1 }
   0x5   : > { %p208_p2 = scmp.lt.s32.totalorder %s724_s22, 5 }
   0x6   : > { %s861_s23 = smov (%p25_p0, %s24_s23), 0  ;;  %s863_s24 = smov (!%p25_p0, %s27_s24), %s720_s21 }
   0x7   : > { %p209_p3 = pnand %p581_p1, %p208_p2  ;;  %p29_p4 = scmp.ge.s32.totalorder %s863_s24, 2 }
   0x8   : > { %v268_v0 = vld [vmem:[%s851_s1] sm:$0xff] (!%p209_p3)  ;;  %v269_v1 = vld [vmem:[%s851_s1 + $0x8] sm:$0xff] (!%p209_p3)  ;;  %s582_s29 = sshll.u32 (!%p209_p3), %s708_s18, 2  ;;  %p245_p5 = scmp.lt.s32.totalorder (!%p209_p3), %s712_s19, 1  ;;  %v270_v5 = vld [vmem:[%s851_s1 + $0x10] sm:$0xff] (!%p209_p3)  ;;  %vm278_vm0 = vcmask (!%p209_p3), 195584  }
   0x9   : > { %s865_s24 = smov (%p29_p4, %s863_s24), 0  ;;  %212 = sbr.rel (%p209_p3) target bundleno = 459 (0x1cb), region = 40 }
   0xa   : > { %v638_v2 = vpack.c.bf16 (!%p209_p3), %v269_v1, %v268_v0  ;;  %p247_p6 = scmp.lt.s32.totalorder (!%p209_p3), %s582_s29, 7  ;;  %v376_v3 = vld [vmem:[%s853_s3] sm:$0xff] (!%p209_p3)  ;;  %v377_v4 = vld [vmem:[%s853_s3 + $0x8] sm:$0xff] (!%p209_p3)  ;;  %v378_v11 = vld [vmem:[%s853_s3 + $0x10] sm:$0xff] (!%p209_p3) }
   0xb   : > { %v642_v6 = vpack.c.bf16 (!%p209_p3), %v377_v4, %v376_v3  ;;  %v588_v12 = vld [vmem:[%s852_s2] ss:$0 sm:$0xff] (!%p209_p3) }
   0xc   : > { %639 = vmatprep.subr.bf16.mxu0 (!%p209_p3), %v638_v2  ;;  %v593_v21 = vld [vmem:[%s854_s4] ss:$0 sm:$0xff] (!%p209_p3) }
   0xd   : > { %641 = vmatpush3.bf16.msra.mxu0 (!%p209_p3), %v638_v2  ;;  %643 = vmatprep.subr.bf16.mxu1 (!%p209_p3), %v642_v6 }
   0xe   : > { %618 = vmatprep.subr.mxu0 (!%p209_p3), %v270_v5  ;;  %645 = vmatpush3.bf16.msra.mxu1 (!%p209_p3), %v642_v6 }
   0xf   : > { %630 = vmatprep.subr.mxu1 (!%p209_p3), %v378_v11 }
  0x10   : > { %s867_s19 = smov (!%p245_p5, %s712_s19), 1  ;;  %s869_s29 = smov (!%p247_p6, %s582_s29), 7 }
  0x11   : > { %s583_s11 = sshll.u32 %s867_s19, 3  ;;  %619 = vmatpush3.msra.mxu0 %v270_v5 }
  0x12   : > { %s801_s12 = sadd.s32 %s583_s11, %s869_s29  ;;  %631 = vmatpush3.msra.mxu1 %v378_v11 }
  0x13   : > { %s584_s13 = sshll.u32 %s801_s12, 3 }
  0x14   : > { %s252_s16 = scalar_lea.vmem %s850_s0, %s584_s13  ;;  %s262_s30 = scalar_lea.vmem %s855_s5, %s584_s13 }
  0x15   : > { %v264_v7 = vld [vmem:[%s252_s16] sm:$0xff]  ;;  %v265_v8 = vld [vmem:[%s252_s16 + $0x8] sm:$0xff]  ;;  %v266_v9 = vld [vmem:[%s252_s16 + $0x10] sm:$0xff] }
  0x16   : > { %620 = vmatprep.mubr.msk.f32.mxu0 %vm278_vm0, %v264_v7  ;;  %v267_v10 = vld [vmem:[%s252_s16 + $0x18] sm:$0xff] }
  0x17   : > { %621 = vmatmul.mubr.msk.f32.vlgmr.msra.gmra.mrb[0].mxu0 %vm278_vm0, %v265_v8 }
  0x18   : > { %623 = vmatprep.mubr.msk.f32.mxu0 %vm278_vm0, %v266_v9 }
  0x1b   : > { %624 = vmatmul.mubr.msk.f32.gmra.mrb[2].mxu0 %vm278_vm0, %v267_v10 }
  0xea   : > { %v622_v13 = vpop.f32.mrb[0].mxu0 }
  0xeb   : > { %v357_v14 = vpop.f32.mrb[1].mxu0  ;;  %v363_v16 = vadd.f32 %v622_v13, %v588_v12 }
  0xec   : > { %v358_v15 = vadd.f32 %v588_v12, %v357_v14 }
  0xee   : > { %v625_v17 = vpop.f32.mrb[2].mxu0  ;;  %632 = vmatprep.mubr.msk.f32.mxu1 %vm278_vm0, %v358_v15 }
  0xef   : > { %v367_v18 = vpop.f32.mrb[3].mxu0  ;;  %633 = vmatmul.mubr.msk.f32.vlgmr.msra.gmra.mrb[0].mxu1 %vm278_vm0, %v363_v16  ;;  %v373_v20 = vadd.f32 %v625_v17, %v588_v12 }
  0xf0   : > { %v368_v19 = vadd.f32 %v588_v12, %v367_v18 }
  0xf2   : > { %635 = vmatprep.mubr.msk.f32.mxu1 %vm278_vm0, %v368_v19 }
  0xf3   : > { %636 = vmatmul.mubr.msk.f32.gmra.mrb[2].mxu1 %vm278_vm0, %v373_v20 }
 0x1c2   : > { %v634_v22 = vpop.f32.mrb[0].mxu1 }
 0x1c3   : > { %v470_v23 = vadd.f32 %v634_v22, %v593_v21  ;;  %v464_v24 = vpop.f32.mrb[1].mxu1 }
 0x1c4   : > { %v465_v25 = vadd.f32 %v593_v21, %v464_v24 }
 0x1c5   : > { %484 = vst.msk [vmem:[%s262_s30 + $0x8] sm:$0xff] %vm278_vm0, %v470_v23 }
 0x1c6   : > { %483 = vst.msk [vmem:[%s262_s30] sm:$0xff] %vm278_vm0, %v465_v25  ;;  %v637_v26 = vpop.f32.mrb[2].mxu1 }
 0x1c7   : > { %v480_v27 = vadd.f32 %v637_v26, %v593_v21  ;;  %v474_v28 = vpop.f32.mrb[3].mxu1 }
 0x1c8   : > { %v475_v29 = vadd.f32 %v593_v21, %v474_v28 }
 0x1c9   : > { %486 = vst.msk [vmem:[%s262_s30 + $0x18] sm:$0xff] %vm278_vm0, %v480_v27 }
 0x1ca   : > { %485 = vst.msk [vmem:[%s262_s30 + $0x10] sm:$0xff] %vm278_vm0, %v475_v29 }
 0x1cb PF: > { %s15_s22 = sadd.s32 1, %s724_s22   ;;  %s856_s18 = smov %s716_s20 }
 0x1cc   : > { %p12_p7 = scmp.ge.s32.totalorder %s15_s22, 6   ;;  %s857_s19 = smov %s720_s21 }
 0x1cd   : > { %s858_s20 = smov %s861_s23  ;;  %s859_s21 = smov %s865_s24 }
 0x1ce   :  { %14 = sbr.rel (!%p12_p7) target bundleno = 3 (0x3), region = 70 }

// kernel: self_attention_forward.9
= control target key start
LH: loop header
LB: loop body
LE: loop exit
PB: predicated region body
PF: predicated region fallthrough
CT: control target
= control target key end

     0   :  { %s890_s21 = smov 0   ;;  %s892_s22 = smov 0   ;;  %s981_s0 = inlined_call_operand.vmem [shape: f32[2,64,24], index: 0, kind: input, shape index: {}]   ;;  %s982_s1 = inlined_call_operand.vmem [shape: f32[2,64,24], index: 1, kind: input, shape index: {}]   ;;  %s983_s2 = inlined_call_operand.vmem [shape: f32[24,24], index: 2, kind: input, shape index: {}]   ;;  %s984_s3 = inlined_call_operand.vmem [shape: f32[1,24], index: 3, kind: input, shape index: {}]   ;;  %s985_s4 = inlined_call_operand.vmem [shape: f32[24,72], index: 4, kind: input, shape index: {}]   ;;  %s986_s5 = inlined_call_operand.vmem [shape: f32[1,72], index: 5, kind: input, shape index: {}]   ;;  %s987_s6 = inlined_call_operand.vmem [shape: f32[2,64,72], index: 6, kind: output, shape index: {}]  }
   0x1   :  { %s894_s23 = smov 0   ;;  %s896_s24 = smov 0  }
   0x2   :  { %s898_s25 = smov 0  }
   0x3 LB: > { %s25_s26 = sadd.s32 1, %s845_s23  ;;  %s28_s27 = sadd.s32 1, %s849_s24  ;;  %s853_s25 = sphi %s898_s25, %s16_s25   ;;  %s849_s24 = sphi %s896_s24, %s991_s24   ;;  %s845_s23 = sphi %s894_s23, %s990_s23   ;;  %s841_s22 = sphi %s892_s22, %s989_s22   ;;  %s837_s21 = sphi %s890_s21, %s988_s21  }
   0x4   : > { %p26_p0 = scmp.ge.s32.totalorder %s25_s26, 2  ;;  %p691_p1 = scmp.ge.s32.totalorder %s853_s25, 1 }
   0x5   : > { %p250_p2 = scmp.lt.s32.totalorder %s853_s25, 5 }
   0x6   : > { %s993_s26 = smov (%p26_p0, %s25_s26), 0  ;;  %s995_s27 = smov (!%p26_p0, %s28_s27), %s849_s24 }
   0x7   : > { %p251_p3 = pnand %p691_p1, %p250_p2  ;;  %p30_p4 = scmp.ge.s32.totalorder %s995_s27, 2 }
   0x8   : > { %v331_v0 = vld [vmem:[%s983_s2] sm:$0xff] (!%p251_p3)  ;;  %v332_v1 = vld [vmem:[%s983_s2 + $0x8] sm:$0xff] (!%p251_p3)  ;;  %s692_s8 = sshll.u32 (!%p251_p3), %s837_s21, 2  ;;  %p298_p5 = scmp.lt.s32.totalorder (!%p251_p3), %s841_s22, 1  ;;  %v333_v3 = vld [vmem:[%s983_s2 + $0x10] sm:$0xff] (!%p251_p3)  ;;  %vm341_vm0 = vcmask (!%p251_p3), 195584  }
   0x9   : > { %s997_s27 = smov (%p30_p4, %s995_s27), 0  ;;  %254 = sbr.rel (%p251_p3) target bundleno = 489 (0x1e9), region = 44 }
   0xa   : > { %v751_v2 = vpack.c.bf16 (!%p251_p3), %v332_v1, %v331_v0  ;;  %p300_p6 = scmp.lt.s32.totalorder (!%p251_p3), %s692_s8, 7  ;;  %v467_v8 = vld [vmem:[%s985_s4] sm:$0xff] (!%p251_p3)  ;;  %v468_v9 = vld [vmem:[%s985_s4 + $0x8] sm:$0xff] (!%p251_p3)  ;;  %v469_v11 = vld [vmem:[%s985_s4 + $0x10] sm:$0xff] (!%p251_p3)  ;;  %vm574_vm1 = vcmask (!%p251_p3), 588800  }
   0xb   : > { %v755_v10 = vpack.c.bf16 (!%p251_p3), %v468_v9, %v467_v8  ;;  %v701_v12 = vld [vmem:[%s984_s3] ss:$0 sm:$0xff] (!%p251_p3) }
   0xc   : > { %752 = vmatprep.subr.bf16.mxu0 (!%p251_p3), %v751_v2  ;;  %v706_v49 = vld [vmem:[%s986_s5] ss:$0 sm:$0xff] (!%p251_p3) }
   0xd   : > { %754 = vmatpush3.bf16.msra.mxu0 (!%p251_p3), %v751_v2  ;;  %756 = vmatprep.subr.bf16.mxu1 (!%p251_p3), %v755_v10 }
   0xe   : > { %731 = vmatprep.subr.mxu0 (!%p251_p3), %v333_v3  ;;  %758 = vmatpush3.bf16.msra.mxu1 (!%p251_p3), %v755_v10 }
   0xf   : > { %743 = vmatprep.subr.mxu1 (!%p251_p3), %v469_v11 }
  0x10   : > { %s999_s22 = smov (!%p298_p5, %s841_s22), 1  ;;  %s1001_s8 = smov (!%p300_p6, %s692_s8), 7 }
  0x11   : > { %s693_s11 = sshll.u32 %s999_s22, 3  ;;  %732 = vmatpush3.msra.mxu0 %v333_v3 }
  0x12   : > { %s303_s12 = sadd.s32 %s693_s11, %s1001_s8  ;;  %744 = vmatpush3.msra.mxu1 %v469_v11 }
  0x13   : > { %s929_s13 = sshll.u32 %s303_s12, 3 }
  0x14   : > { %s305_s16 = scalar_lea.vmem %s981_s0, %s929_s13  ;;  %s315_s8 = scalar_lea.vmem %s982_s1, %s929_s13 }
  0x15   : > { %v327_v4 = vld [vmem:[%s305_s16] sm:$0xff]  ;;  %v328_v5 = vld [vmem:[%s305_s16 + $0x8] sm:$0xff]  ;;  %v329_v6 = vld [vmem:[%s305_s16 + $0x10] sm:$0xff]  ;;  %s325_s14 = scalar_lea.vmem %s987_s6, %s929_s13 }
  0x16   : > { %733 = vmatprep.mubr.msk.f32.mxu0 %vm341_vm0, %v327_v4  ;;  %v330_v7 = vld [vmem:[%s305_s16 + $0x18] sm:$0xff]  ;;  %v459_v37 = vld [vmem:[%s315_s8] sm:$0xff]  ;;  %v460_v39 = vld [vmem:[%s315_s8 + $0x8] sm:$0xff] }
  0x17   : > { %734 = vmatmul.mubr.msk.f32.vlgmr.msra.gmra.mrb[0].mxu0 %vm341_vm0, %v328_v5  ;;  %v461_v43 = vld [vmem:[%s315_s8 + $0x10] sm:$0xff]  ;;  %v462_v45 = vld [vmem:[%s315_s8 + $0x18] sm:$0xff] }
  0x18   : > { %736 = vmatprep.mubr.msk.f32.mxu0 %vm341_vm0, %v329_v6 }
  0x1b   : > { %737 = vmatmul.mubr.msk.f32.gmra.mrb[2].mxu0 %vm341_vm0, %v330_v7 }
  0xea   : > { %v735_v13 = vpop.f32.mrb[0].mxu0 }
  0xeb   : > { %v426_v14 = vadd.f32 %v735_v13, %v701_v12  ;;  %v420_v15 = vpop.f32.mrb[1].mxu0 }
  0xec   : > { %v421_v16 = vadd.f32 %v701_v12, %v420_v15 }
  0xed   : > { %v440_v17 = vsub.f32 0.0, %v426_v14 }
  0xee   : > { %v439_v18 = vsub.f32 0.0, %v421_v16  ;;  %v738_v19 = vpop.f32.mrb[2].mxu0 }
  0xef   : > { %v445_v20 = vmul.f32 1.442695, %v440_v17  ;;  %v436_v21 = vadd.f32 %v738_v19, %v701_v12  ;;  %v430_v22 = vpop.f32.mrb[3].mxu0 }
  0xf0   : > { %v443_v23 = vmul.f32 1.442695, %v439_v18  ;;  %v431_v24 = vadd.f32 %v701_v12, %v430_v22 }
  0xf1   : > { %799 = vpow2.f32 %v445_v20  ;;  %v442_v25 = vsub.f32 0.0, %v436_v21 }
  0xf2   : > { %801 = vpow2.f32 %v443_v23  ;;  %v441_v26 = vsub.f32 0.0, %v431_v24 }
  0xf3   : > { %v449_v27 = vmul.f32 1.442695, %v442_v25 }
  0xf4   : > { %v447_v28 = vmul.f32 1.442695, %v441_v26 }
  0xf5   : > { %803 = vpow2.f32 %v449_v27 }
  0xf6   : > { %805 = vpow2.f32 %v447_v28 }
  0xfb   : > { %v800_v29 = vpop.eup %799 }
  0xfc   : > { %v802_v30 = vpop.eup %801  ;;  %v452_v31 = vadd.f32 1.0, %v800_v29 }
  0xfd   : > { %v451_v32 = vadd.f32 1.0, %v802_v30 }
  0xfe   : > { %807 = vrcp.f32 %v452_v31 }
  0xff   : > { %v804_v33 = vpop.eup %803  ;;  %809 = vrcp.f32 %v451_v32 }
 0x100   : > { %v806_v34 = vpop.eup %805  ;;  %v454_v35 = vadd.f32 1.0, %v804_v33 }
 0x101   : > { %v453_v36 = vadd.f32 1.0, %v806_v34 }
 0x102   : > { %811 = vrcp.f32 %v454_v35 }
 0x103   : > { %813 = vrcp.f32 %v453_v36 }
 0x108   : > { %v808_v38 = vpop.eup %807 }
 0x109   : > { %v810_v40 = vpop.eup %809  ;;  %v464_v42 = vmul.f32 %v808_v38, %v460_v39 }
 0x10a   : > { %v463_v41 = vmul.f32 %v810_v40, %v459_v37 }
 0x10c   : > { %v812_v44 = vpop.eup %811  ;;  %745 = vmatprep.mubr.msk.f32.mxu1 %vm341_vm0, %v463_v41 }
 0x10d   : > { %v814_v46 = vpop.eup %813  ;;  %746 = vmatmul.mubr.msk.f32.vlgmr.msra.gmra.mrb[0].mxu1 %vm341_vm0, %v464_v42  ;;  %v466_v48 = vmul.f32 %v812_v44, %v462_v45 }
 0x10e   : > { %v465_v47 = vmul.f32 %v814_v46, %v461_v43 }
 0x110   : > { %748 = vmatprep.mubr.msk.f32.mxu1 %vm341_vm0, %v465_v47 }
 0x111   : > { %749 = vmatmul.mubr.msk.f32.gmra.mrb[2].mxu1 %vm341_vm0, %v466_v48 }
 0x1e0   : > { %v747_v50 = vpop.f32.mrb[0].mxu1 }
 0x1e1   : > { %v561_v51 = vadd.f32 %v747_v50, %v706_v49  ;;  %v555_v52 = vpop.f32.mrb[1].mxu1 }
 0x1e2   : > { %v556_v53 = vadd.f32 %v706_v49, %v555_v52 }
 0x1e3   : > { %576 = vst.msk [vmem:[%s325_s14 + $0x8] sm:$0xff] %vm574_vm1, %v561_v51 }
 0x1e4   : > { %575 = vst.msk [vmem:[%s325_s14] sm:$0xff] %vm574_vm1, %v556_v53  ;;  %v750_v54 = vpop.f32.mrb[2].mxu1 }
 0x1e5   : > { %v571_v55 = vadd.f32 %v750_v54, %v706_v49  ;;  %v565_v56 = vpop.f32.mrb[3].mxu1 }
 0x1e6   : > { %v566_v57 = vadd.f32 %v706_v49, %v565_v56 }
 0x1e7   : > { %578 = vst.msk [vmem:[%s325_s14 + $0x18] sm:$0xff] %vm574_vm1, %v571_v55 }
 0x1e8   : > { %577 = vst.msk [vmem:[%s325_s14 + $0x10] sm:$0xff] %vm574_vm1, %v566_v57 }
 0x1e9 PF: > { %s16_s25 = sadd.s32 1, %s853_s25   ;;  %s988_s21 = smov %s845_s23 }
 0x1ea   : > { %p13_p7 = scmp.ge.s32.totalorder %s16_s25, 6   ;;  %s989_s22 = smov %s849_s24 }
 0x1eb   : > { %s990_s23 = smov %s993_s26  ;;  %s991_s24 = smov %s997_s27 }
 0x1ec   :  { %15 = sbr.rel (!%p13_p7) target bundleno = 3 (0x3), region = 77 }

// kernel: self_attention_forward.7
= control target key start
LH: loop header
LB: loop body
LE: loop exit
PB: predicated region body
PF: predicated region fallthrough
CT: control target
= control target key end

     0   :  { %s7059_s12 = smov 0   ;;  %s7945_s0 = inlined_call_operand.vmem [shape: f32[2,4,4,4,24], index: 0, kind: input, shape index: {}]   ;;  %s7946_s1 = inlined_call_operand.vmem [shape: f32[27,24,24], index: 1, kind: input, shape index: {}]   ;;  %s7947_s2 = inlined_call_operand.vmem [shape: f32[1,24], index: 2, kind: input, shape index: {}]   ;;  %s7948_s3 = inlined_call_operand.vmem [shape: f32[2,64,24], index: 3, kind: output, shape index: {}]  }
   0x1 LB: > { %s5598_s13 = sadd.s32 4294967295, %s7036_s12   ;;  %p5602_p0 = scmp.ge.s32.totalorder %s7036_s12, 1  ;;  %s7036_s12 = sphi %s7059_s12, %s13_s12  }
   0x2   : > { %p137_p1 = scmp.lt.s32.totalorder %s7036_s12, 3 }
   0x4   : > { %p138_p2 = pnand %p5602_p0, %p137_p1 }
   0x5   : > { %v428_v0 = vld [vmem:[%s7946_s1] sm:$0xff] (!%p138_p2)  ;;  %v429_v1 = vld [vmem:[%s7946_s1 + $0x8] sm:$0xff] (!%p138_p2)  ;;  %p161_p3 = scmp.lt.s32.totalorder (!%p138_p2), %s5598_s13, 1  ;;  %v430_v3 = vld [vmem:[%s7946_s1 + $0x10] sm:$0xff] (!%p138_p2)  ;;  %vm188_vm0 = vcmask (!%p138_p2), 191488   ;;  %vm286_vm1 = vcmask (!%p138_p2), 188416  }
   0x6   : > { %141 = sbr.rel (%p138_p2) target bundleno = 544 (0x220), region = 32  ;;  %v6693_v2 = vpack.c.bf16 (!%p138_p2), %v429_v1, %v428_v0  ;;  %v5619_v4 = vld [vmem:[%s7946_s1 + $0x18] sm:$0xff] (!%p138_p2)  ;;  %v5620_v5 = vld [vmem:[%s7946_s1 + $0x20] sm:$0xff] (!%p138_p2)  ;;  %v5630_v6 = vld [vmem:[%s7946_s1 + $0x30] sm:$0xff] (!%p138_p2)  ;;  %vm395_vm2 = vcmask (!%p138_p2), 195584  }
   0x7   : > { %v5631_v7 = vld [vmem:[%s7946_s1 + $0x38] sm:$0xff] (!%p138_p2)  ;;  %v7098_v8 = vpack.c.bf16 (!%p138_p2), %v5620_v5, %v5619_v4  ;;  %v5621_v50 = vld [vmem:[%s7946_s1 + $0x28] sm:$0xff] (!%p138_p2)  ;;  %v5642_v53 = vld [vmem:[%s7946_s1 + $0x50] sm:$0xff] (!%p138_p2) }
   0x8   : > { %6801 = vmatprep.subr.bf16.mxu1 (!%p138_p2), %v6693_v2  ;;  %6694 = vmatprep.subr.bf16.mxu0 (!%p138_p2), %v6693_v2  ;;  %v7100_v9 = vpack.c.bf16 (!%p138_p2), %v5631_v7, %v5630_v6  ;;  %v5641_v52 = vld [vmem:[%s7946_s1 + $0x48] sm:$0xff] (!%p138_p2)  ;;  %v5652_v54 = vld [vmem:[%s7946_s1 + $0x60] sm:$0xff] (!%p138_p2) }
   0x9   : > { %6803 = vmatpush3.bf16.msra.mxu1 (!%p138_p2), %v6693_v2  ;;  %6696 = vmatpush3.bf16.msra.mxu0 (!%p138_p2), %v6693_v2  ;;  %v5653_v55 = vld [vmem:[%s7946_s1 + $0x68] sm:$0xff] (!%p138_p2)  ;;  %v5632_v57 = vld [vmem:[%s7946_s1 + $0x40] sm:$0xff] (!%p138_p2)  ;;  %v6705_v2 = vpack.c.bf16 (!%p138_p2), %v5642_v53, %v5641_v52 }
   0xa   : > { %6802 = vmatprep.subr.mxu1 (!%p138_p2), %v430_v3  ;;  %6211 = vmatprep.subr.mxu0 (!%p138_p2), %v430_v3  ;;  %v5676_v53 = vld [vmem:[%s7946_s1 + $0xa0] sm:$0xff] (!%p138_p2) }
   0xd   : > { %s7950_s13 = smov (!%p161_p3, %s5598_s13), 1  ;;  %6804 = vmatpush3.msra.mxu1 %v430_v3  ;;  %6212 = vmatpush3.msra.mxu0 %v430_v3  ;;  %v6709_v3 = vpack.c.bf16 %v5653_v55, %v5652_v54  ;;  %v5696_v54 = vld [vmem:[%s7946_s1 + $0xc0] sm:$0xff]  ;;  %v5697_v55 = vld [vmem:[%s7946_s1 + $0xc8] sm:$0xff] }
   0xe   : > { %s5908_s28 = sshll.u32 %s7950_s13, 6  ;;  %6698 = vmatprep.subr.bf16.mxu1 %v7098_v8  ;;  %6702 = vmatprep.subr.bf16.mxu0 %v7100_v9 }
   0xf   : > { %s7096_s4 = scalar_lea.vmem %s7945_s0, %s5908_s28  ;;  %s7919_s19 = scalar_lea.vmem %s7948_s3, %s5908_s28 }
  0x10   : > { %v5607_v10 = vld [vmem:[%s7096_s4 + $0x30] sm:$0xf]  ;;  %v5610_v11 = vld [vmem:[%s7096_s4 + $0x3c] sm:$0xf]  ;;  %v5608_v14 = vld [vmem:[%s7096_s4 + $0x34] sm:$0xf] }
  0x11   : > { %v175_v12 = vld [vmem:[%s7096_s4 + $0x10] sm:$0xf]  ;;  %211 = vst.msk [vmem:[#allocation2 + $0x9] sm:$0xf] %vm188_vm0, %v5607_v10  ;;  %214 = vst.msk [vmem:[#allocation2 + $0x21] sm:$0xf] %vm188_vm0, %v5610_v11 }
  0x12   : > { %v178_v13 = vld [vmem:[%s7096_s4 + $0x1c] sm:$0xf]  ;;  %193 = vst.msk [vmem:[#allocation2 + $0x69] sm:$0xf] %vm188_vm0, %v175_v12  ;;  %v5609_v15 = vld [vmem:[%s7096_s4 + $0x38] sm:$0xf] }
  0x13   : > { %196 = vst.msk [vmem:[#allocation2 + $0x81] sm:$0xf] %vm188_vm0, %v178_v13  ;;  %212 = vst.msk [vmem:[#allocation2 + $0x11] sm:$0xf] %vm188_vm0, %v5608_v14  ;;  %v176_v16 = vld [vmem:[%s7096_s4 + $0x14] sm:$0xf] }
  0x14   : > { %213 = vst.msk [vmem:[#allocation2 + $0x19] sm:$0xf] %vm188_vm0, %v5609_v15  ;;  %v177_v17 = vld [vmem:[%s7096_s4 + $0x18] sm:$0xf]  ;;  %v171_v18 = vld [vmem:[%s7096_s4] sm:$0xf] }
  0x15   : > { %194 = vst.msk [vmem:[#allocation2 + $0x71] sm:$0xf] %vm188_vm0, %v176_v16  ;;  %195 = vst.msk [vmem:[#allocation2 + $0x79] sm:$0xf] %vm188_vm0, %v177_v17  ;;  %v174_v19 = vld [vmem:[%s7096_s4 + $0xc] sm:$0xf] }
  0x16   : > { %189 = vst.msk [vmem:[#allocation2 + $0x39] sm:$0xf] %vm188_vm0, %v171_v18  ;;  %v179_v20 = vld [vmem:[%s7096_s4 + $0x20] sm:$0xf]  ;;  %v182_v21 = vld [vmem:[%s7096_s4 + $0x2c] sm:$0xf] }
  0x17   : > { %192 = vst.msk [vmem:[#allocation2 + $0x51] sm:$0xf] %vm188_vm0, %v174_v19  ;;  %197 = vst.msk [vmem:[#allocation2 + $0x99] sm:$0xf] %vm188_vm0, %v179_v20  ;;  %v172_v22 = vld [vmem:[%s7096_s4 + $0x4] sm:$0xf] }
  0x18   : > { %200 = vst.msk [vmem:[#allocation2 + $0xb1] sm:$0xf] %vm188_vm0, %v182_v21  ;;  %v173_v23 = vld [vmem:[%s7096_s4 + $0x8] sm:$0xf]  ;;  %v180_v24 = vld [vmem:[%s7096_s4 + $0x24] sm:$0xf] }
  0x19   : > { %190 = vst.msk [vmem:[#allocation2 + $0x41] sm:$0xf] %vm188_vm0, %v172_v22  ;;  %191 = vst.msk [vmem:[#allocation2 + $0x49] sm:$0xf] %vm188_vm0, %v173_v23  ;;  %v181_v25 = vld [vmem:[%s7096_s4 + $0x28] sm:$0xf] }
  0x1a   : > { %198 = vst.msk [vmem:[#allocation2 + $0xa1] sm:$0xf] %vm188_vm0, %v180_v24  ;;  %199 = vst.msk [vmem:[#allocation2 + $0xa9] sm:$0xf] %vm188_vm0, %v181_v25  ;;  %v225_v26 = vld [vmem:[#allocation2 + $0x21] sm:$0xf] }
  0x1b   : > { %v251_v27 = vld [vmem:[#allocation2 + $0xc] sm:$0x1]  ;;  %231 = vst.msk [vmem:[#allocation2 + $0x1] sm:$0xf] %vm188_vm0, %v225_v26  ;;  %v227_v29 = vld [vmem:[#allocation2 + $0x81] sm:$0xf] }
  0x1c   : > { %v263_v28 = vld [vmem:[#allocation2 + $0x6c] sm:$0x1]  ;;  %288 = vst.msk [vmem:[#allocation2 + $0x8] sm:$0x1] %vm286_vm1, %v251_v27  ;;  %v252_v30 = vld [vmem:[#allocation2 + $0x14] sm:$0x1] }
  0x1d   : > { %300 = vst.msk [vmem:[#allocation2 + $0x68] sm:$0x1] %vm286_vm1, %v263_v28  ;;  %v253_v31 = vld [vmem:[#allocation2 + $0x1c] sm:$0x1]  ;;  %289 = vst.msk [vmem:[#allocation2 + $0x10] sm:$0x1] %vm286_vm1, %v252_v30 }
  0x1e   : > { %233 = vst.msk [vmem:[#allocation2 + $0x61] sm:$0xf] %vm188_vm0, %v227_v29  ;;  %v264_v32 = vld [vmem:[#allocation2 + $0x74] sm:$0x1]  ;;  %v265_v33 = vld [vmem:[#allocation2 + $0x7c] sm:$0x1] }
  0x1f   : > { %290 = vst.msk [vmem:[#allocation2 + $0x18] sm:$0x1] %vm286_vm1, %v253_v31  ;;  %v257_v34 = vld [vmem:[#allocation2 + $0x3c] sm:$0x1]  ;;  %301 = vst.msk [vmem:[#allocation2 + $0x70] sm:$0x1] %vm286_vm1, %v264_v32 }
  0x20   : > { %302 = vst.msk [vmem:[#allocation2 + $0x78] sm:$0x1] %vm286_vm1, %v265_v33  ;;  %v226_v35 = vld [vmem:[#allocation2 + $0x51] sm:$0xf]  ;;  %294 = vst.msk [vmem:[#allocation2 + $0x38] sm:$0x1] %vm286_vm1, %v257_v34 }
  0x21   : > { %v228_v36 = vld [vmem:[#allocation2 + $0xb1] sm:$0xf]  ;;  %v269_v37 = vld [vmem:[#allocation2 + $0x9c] sm:$0x1]  ;;  %232 = vst.msk [vmem:[#allocation2 + $0x31] sm:$0xf] %vm188_vm0, %v226_v35 }
  0x22   : > { %234 = vst.msk [vmem:[#allocation2 + $0x91] sm:$0xf] %vm188_vm0, %v228_v36  ;;  %v258_v38 = vld [vmem:[#allocation2 + $0x44] sm:$0x1]  ;;  %v259_v39 = vld [vmem:[#allocation2 + $0x4c] sm:$0x1] }
  0x23   : > { %306 = vst.msk [vmem:[#allocation2 + $0x98] sm:$0x1] %vm286_vm1, %v269_v37  ;;  %v270_v40 = vld [vmem:[#allocation2 + $0xa4] sm:$0x1]  ;;  %295 = vst.msk [vmem:[#allocation2 + $0x40] sm:$0x1] %vm286_vm1, %v258_v38 }
  0x24   : > { %296 = vst.msk [vmem:[#allocation2 + $0x48] sm:$0x1] %vm286_vm1, %v259_v39  ;;  %v271_v41 = vld [vmem:[#allocation2 + $0xac] sm:$0x1]  ;;  %307 = vst.msk [vmem:[#allocation2 + $0xa0] sm:$0x1] %vm286_vm1, %v270_v40 }
  0x25   : > { %308 = vst.msk [vmem:[#allocation2 + $0xa8] sm:$0x1] %vm286_vm1, %v271_v41  ;;  %v250_v42 = vld [vmem:[#allocation2 + $0x4] sm:$0x1]  ;;  %v323_v61 = vld [vmem:[#allocation2 + $0x1] sm:$0x1] }
  0x26   : > { %287 = vst.msk [vmem:[#allocation2] sm:$0x1] %vm286_vm1, %v250_v42  ;;  %v262_v43 = vld [vmem:[#allocation2 + $0x64] sm:$0x1]  ;;  %v6816_v46 = vld [vmem:[#allocation2 + $0x10] ss:$8 sps:$4 sm:$0xff]  }
  0x27   : > { %299 = vst.msk [vmem:[#allocation2 + $0x60] sm:$0x1] %vm286_vm1, %v262_v43  ;;  %v6817_v47 = vld [vmem:[#allocation2 + $0x70] ss:$8 sps:$4 sm:$0xff]   ;;  %v6822_v59 = vld [vmem:[#allocation2 + $0x1] ss:$8 sps:$4 sm:$0xff]  }
  0x28   : > { %v256_v44 = vld [vmem:[#allocation2 + $0x34] sm:$0x1]  ;;  %v324_v62 = vld [vmem:[#allocation2 + $0x9] sm:$0x1]  ;;  %359 = vst.msk [vmem:[#allocation2 + $0x5] sm:$0x1] %vm286_vm1, %v323_v61 }
  0x29   : > { %293 = vst.msk [vmem:[#allocation2 + $0x30] sm:$0x1] %vm286_vm1, %v256_v44  ;;  %v268_v45 = vld [vmem:[#allocation2 + $0x94] sm:$0x1]  ;;  %v325_v63 = vld [vmem:[#allocation2 + $0x11] sm:$0x1] }
  0x2a   : > { %305 = vst.msk [vmem:[#allocation2 + $0x90] sm:$0x1] %vm286_vm1, %v268_v45  ;;  %v326_v0 = vld [vmem:[#allocation2 + $0x19] sm:$0x1]  ;;  %360 = vst.msk [vmem:[#allocation2 + $0xd] sm:$0x1] %vm286_vm1, %v324_v62 }
  0x2b   : > { %v6820_v51 = vld [vmem:[#allocation2 + $0x40] ss:$8 sps:$4 sm:$0xff]   ;;  %v6823_v1 = vld [vmem:[#allocation2 + $0x11] ss:$8 sps:$4 sm:$0xff]   ;;  %361 = vst.msk [vmem:[#allocation2 + $0x15] sm:$0x1] %vm286_vm1, %v325_v63 }
  0x2c   : > { %v6821_v56 = vld [vmem:[#allocation2 + $0xa0] ss:$8 sps:$4 sm:$0xff]   ;;  %362 = vst.msk [vmem:[#allocation2 + $0x1d] sm:$0x1] %vm286_vm1, %v326_v0  ;;  %v6824_v4 = vld [vmem:[#allocation2 + $0x31] ss:$8 sps:$4 sm:$0xff]   ;;  %v7264_v0 = vpack.c.bf16 %v5697_v55, %v5696_v54 }
  0x2d   : > { %v6814_v48 = vld [vmem:[#allocation2] ss:$8 sps:$4 sm:$0xff]   ;;  %v329_v5 = vld [vmem:[#allocation2 + $0x31] sm:$0x1]  ;;  %v330_v6 = vld [vmem:[#allocation2 + $0x39] sm:$0x1] }
  0x2e   : > { %v6815_v49 = vld [vmem:[#allocation2 + $0x60] ss:$8 sps:$4 sm:$0xff]   ;;  %6213 = vmatprep.mubr.msk.f32.mxu0 %vm395_vm2, %v6814_v48  ;;  %365 = vst.msk [vmem:[#allocation2 + $0x35] sm:$0x1] %vm286_vm1, %v329_v5  ;;  %366 = vst.msk [vmem:[#allocation2 + $0x3d] sm:$0x1] %vm286_vm1, %v330_v6 }
  0x2f   : > { %6219 = vmatprep.mubr.msk.f32.mxu1 %vm395_vm2, %v6815_v49  ;;  %6214 = vmatmul.mubr.msk.f32.vlgmr.msra.gmra.mrb[0].mxu0 %vm395_vm2, %v6816_v46  ;;  %v331_v7 = vld [vmem:[#allocation2 + $0x41] sm:$0x1]  ;;  %v336_v11 = vld [vmem:[#allocation2 + $0x69] sm:$0x1]  ;;  %v337_v13 = vld [vmem:[#allocation2 + $0x71] sm:$0x1] }
  0x30   : > { %v6818_v58 = vld [vmem:[#allocation2 + $0x30] ss:$8 sps:$4 sm:$0xff]   ;;  %6220 = vmatmul.mubr.msk.f32.vlgmr.msra.gmra.mrb[0].mxu1 %vm395_vm2, %v6817_v47  ;;  %6704 = vmatpush3.bf16.msra.mxu0 %v7100_v9  ;;  %v332_v9 = vld [vmem:[#allocation2 + $0x49] sm:$0x1]  ;;  %367 = vst.msk [vmem:[#allocation2 + $0x45] sm:$0x1] %vm286_vm1, %v331_v7 }
  0x31   : > { %v6819_v60 = vld [vmem:[#allocation2 + $0x90] ss:$8 sps:$4 sm:$0xff]   ;;  %6700 = vmatpush3.bf16.msra.mxu1 %v7098_v8  ;;  %6216 = vmatprep.mubr.msk.f32.mxu0 %vm395_vm2, %v6818_v58  ;;  %v335_v10 = vld [vmem:[#allocation2 + $0x61] sm:$0x1]  ;;  %368 = vst.msk [vmem:[#allocation2 + $0x4d] sm:$0x1] %vm286_vm1, %v332_v9 }
  0x32   : > { %6222 = vmatprep.mubr.msk.f32.mxu1 %vm395_vm2, %v6819_v60  ;;  %6229 = vmatprep.subr.mxu1 %v5621_v50  ;;  %v5643_v8 = vld [vmem:[%s7946_s1 + $0x58] sm:$0xff]  ;;  %v6825_v12 = vld [vmem:[#allocation2 + $0x41] ss:$8 sps:$4 sm:$0xff]   ;;  %371 = vst.msk [vmem:[#allocation2 + $0x65] sm:$0x1] %vm286_vm1, %v335_v10  ;;  %v5654_v24 = vld [vmem:[%s7946_s1 + $0x70] sm:$0xff] }
  0x33   : > { %6217 = vmatmul.mubr.msk.f32.gmra.mrb[2].mxu0 %vm395_vm2, %v6820_v51  ;;  %6247 = vmatprep.subr.mxu0 %v5632_v57  ;;  %372 = vst.msk [vmem:[#allocation2 + $0x6d] sm:$0x1] %vm286_vm1, %v336_v11  ;;  %v338_v14 = vld [vmem:[#allocation2 + $0x79] sm:$0x1]  ;;  %v5664_v16 = vld [vmem:[%s7946_s1 + $0x80] sm:$0xff]  ;;  %v5674_v25 = vld [vmem:[%s7946_s1 + $0x90] sm:$0xff] }
  0x34   : > { %6223 = vmatmul.mubr.msk.f32.gmra.mrb[2].mxu1 %vm395_vm2, %v6821_v56  ;;  %6248 = vmatpush3.msra.mxu0 %v5632_v57  ;;  %v5663_v15 = vld [vmem:[%s7946_s1 + $0x78] sm:$0xff]  ;;  %v6826_v17 = vld [vmem:[#allocation2 + $0x61] ss:$8 sps:$4 sm:$0xff]   ;;  %373 = vst.msk [vmem:[#allocation2 + $0x75] sm:$0x1] %vm286_vm1, %v337_v13  ;;  %v5686_v47 = vld [vmem:[%s7946_s1 + $0xb0] sm:$0xff] }
  0x35   : > { %6230 = vmatpush3.msra.mxu1 %v5621_v50  ;;  %6231 = vmatprep.mubr.msk.f32.mxu1 %vm395_vm2, %v6822_v59  ;;  %374 = vst.msk [vmem:[#allocation2 + $0x7d] sm:$0x1] %vm286_vm1, %v338_v14  ;;  %v254_v18 = vld [vmem:[#allocation2 + $0x24] sm:$0x1]  ;;  %v341_v19 = vld [vmem:[#allocation2 + $0x91] sm:$0x1]  ;;  %v6713_v30 = vpack.c.bf16 %v5664_v16, %v5663_v15 }
  0x36   : > { %6706 = vmatprep.subr.bf16.mxu1 %v6705_v2  ;;  %6710 = vmatprep.subr.bf16.mxu0 %v6709_v3  ;;  %291 = vst.msk [vmem:[#allocation2 + $0x20] sm:$0x1] %vm286_vm1, %v254_v18  ;;  %v6828_v20 = vld [vmem:[#allocation2 + $0x2] ss:$8 sps:$4 sm:$0xff]   ;;  %377 = vst.msk [vmem:[#allocation2 + $0x95] sm:$0x1] %vm286_vm1, %v341_v19 }
  0x37   : > { %v6827_v21 = vld [vmem:[#allocation2 + $0x71] ss:$8 sps:$4 sm:$0xff]   ;;  %6249 = vmatprep.mubr.msk.f32.mxu0 %vm395_vm2, %v6828_v20  ;;  %v343_v28 = vld [vmem:[#allocation2 + $0xa1] sm:$0x1]  ;;  %v344_v29 = vld [vmem:[#allocation2 + $0xa9] sm:$0x1] }
  0x38   : > { %6232 = vmatmul.mubr.msk.f32.vlgmr.msra.gmra.mrb[4].mxu1 %vm395_vm2, %v6823_v1  ;;  %v6829_v22 = vld [vmem:[#allocation2 + $0x12] ss:$8 sps:$4 sm:$0xff]   ;;  %v342_v23 = vld [vmem:[#allocation2 + $0x99] sm:$0x1]  ;;  %379 = vst.msk [vmem:[#allocation2 + $0xa5] sm:$0x1] %vm286_vm1, %v343_v28 }
  0x39   : > { %6234 = vmatprep.mubr.msk.f32.mxu1 %vm395_vm2, %v6824_v4  ;;  %6708 = vmatpush3.bf16.msra.mxu1 %v6705_v2  ;;  %v5675_v26 = vld [vmem:[%s7946_s1 + $0x98] sm:$0xff]  ;;  %378 = vst.msk [vmem:[#allocation2 + $0x9d] sm:$0x1] %vm286_vm1, %v342_v23  ;;  %380 = vst.msk [vmem:[#allocation2 + $0xad] sm:$0x1] %vm286_vm1, %v344_v29  ;;  %v5665_v44 = vld [vmem:[%s7946_s1 + $0x88] sm:$0xff] }
  0x3a   : > { %6265 = vmatprep.subr.mxu1 %v5643_v8  ;;  %v6830_v27 = vld [vmem:[#allocation2 + $0x91] ss:$8 sps:$4 sm:$0xff]   ;;  %6250 = vmatmul.mubr.msk.f32.vlgmr.msra.gmra.mrb[4].mxu0 %vm395_vm2, %v6829_v22  ;;  %v6833_v32 = vld [vmem:[#allocation2 + $0x42] ss:$8 sps:$4 sm:$0xff]   ;;  %v6717_v35 = vpack.c.bf16 %v5675_v26, %v5674_v25  ;;  %v327_v63 = vld [vmem:[#allocation2 + $0x21] sm:$0x1] }
  0x3b   : > { %v6832_v31 = vld [vmem:[#allocation2 + $0x32] ss:$8 sps:$4 sm:$0xff]   ;;  %6712 = vmatpush3.bf16.msra.mxu0 %v6709_v3  ;;  %v6834_v33 = vld [vmem:[#allocation2 + $0x62] ss:$8 sps:$4 sm:$0xff]   ;;  %363 = vst.msk [vmem:[#allocation2 + $0x25] sm:$0x1] %vm286_vm1, %v327_v63 }
  0x3c   : > { %6235 = vmatmul.mubr.msk.f32.gmra.mrb[6].mxu1 %vm395_vm2, %v6825_v12  ;;  %6252 = vmatprep.mubr.msk.f32.mxu0 %vm395_vm2, %v6832_v31  ;;  %v6831_v34 = vld [vmem:[#allocation2 + $0xa1] ss:$8 sps:$4 sm:$0xff]   ;;  %v6835_v36 = vld [vmem:[#allocation2 + $0x72] ss:$8 sps:$4 sm:$0xff]   ;;  %v333_v4 = vld [vmem:[#allocation2 + $0x51] sm:$0x1] }
  0x3d   : > { %6237 = vmatprep.mubr.msk.f32.mxu1 %vm395_vm2, %v6826_v17  ;;  %6266 = vmatpush3.msra.mxu1 %v5643_v8  ;;  %v6836_v37 = vld [vmem:[#allocation2 + $0x8] ss:$8 sps:$4 sm:$0xff]   ;;  %v260_v38 = vld [vmem:[#allocation2 + $0x54] sm:$0x1]  ;;  %v6837_v39 = vld [vmem:[#allocation2 + $0x18] ss:$8 sps:$4 sm:$0xff]  }
  0x3e   : > { %6283 = vmatprep.subr.mxu0 %v5654_v24  ;;  %6714 = vmatprep.subr.bf16.mxu1 %v6713_v30  ;;  %297 = vst.msk [vmem:[#allocation2 + $0x50] sm:$0x1] %vm286_vm1, %v260_v38  ;;  %v6840_v41 = vld [vmem:[#allocation2 + $0x38] ss:$8 sps:$4 sm:$0xff]   ;;  %v266_v43 = vld [vmem:[#allocation2 + $0x84] sm:$0x1] }
  0x3f   : > { %6253 = vmatmul.mubr.msk.f32.gmra.mrb[6].mxu0 %vm395_vm2, %v6833_v32  ;;  %303 = vst.msk [vmem:[#allocation2 + $0x80] sm:$0x1] %vm286_vm1, %v266_v43  ;;  %v6844_v45 = vld [vmem:[#allocation2 + $0x9] ss:$8 sps:$4 sm:$0xff]   ;;  %v6845_v49 = vld [vmem:[#allocation2 + $0x19] ss:$8 sps:$4 sm:$0xff]  }
  0x40   : > { %6238 = vmatmul.mubr.msk.f32.gmra.mrb[8].mxu1 %vm395_vm2, %v6827_v21  ;;  %6255 = vmatprep.mubr.msk.f32.mxu0 %vm395_vm2, %v6834_v33  ;;  %v6838_v40 = vld [vmem:[#allocation2 + $0x92] ss:$8 sps:$4 sm:$0xff]   ;;  %v6839_v42 = vld [vmem:[#allocation2 + $0xa2] ss:$8 sps:$4 sm:$0xff]   ;;  %369 = vst.msk [vmem:[#allocation2 + $0x55] sm:$0x1] %vm286_vm1, %v333_v4 }
  0x41   : > { %6240 = vmatprep.mubr.msk.f32.mxu1 %vm395_vm2, %v6830_v27  ;;  %6284 = vmatpush3.msra.mxu0 %v5654_v24  ;;  %v5685_v46 = vld [vmem:[%s7946_s1 + $0xa8] sm:$0xff]  ;;  %v272_v50 = vld [vmem:[#allocation2 + $0xb4] sm:$0x1]  ;;  %v6848_v52 = vld [vmem:[#allocation2 + $0x39] ss:$8 sps:$4 sm:$0xff]  }
  0x42   : > { %6718 = vmatprep.subr.bf16.mxu0 %v6717_v35  ;;  %v6842_v48 = vld [vmem:[#allocation2 + $0x68] ss:$8 sps:$4 sm:$0xff]   ;;  %309 = vst.msk [vmem:[#allocation2 + $0xb0] sm:$0x1] %vm286_vm1, %v272_v50  ;;  %v6846_v56 = vld [vmem:[#allocation2 + $0x98] ss:$8 sps:$4 sm:$0xff]   ;;  %v6721_v58 = vpack.c.bf16 %v5686_v47, %v5685_v46 }
  0x43   : > { %6256 = vmatmul.mubr.msk.f32.gmra.mrb[8].mxu0 %vm395_vm2, %v6835_v36  ;;  %v6849_v57 = vld [vmem:[#allocation2 + $0x49] ss:$8 sps:$4 sm:$0xff]   ;;  %v6851_v61 = vld [vmem:[#allocation2 + $0x79] ss:$8 sps:$4 sm:$0xff]  }
  0x44   : > { %6241 = vmatmul.mubr.msk.f32.gmra.mrb[10].mxu1 %vm395_vm2, %v6831_v34  ;;  %6258 = vmatprep.mubr.msk.f32.mxu0 %vm395_vm2, %v6838_v40  ;;  %v6850_v59 = vld [vmem:[#allocation2 + $0x69] ss:$8 sps:$4 sm:$0xff]   ;;  %v6854_v2 = vld [vmem:[#allocation2 + $0x99] ss:$8 sps:$4 sm:$0xff]  }
  0x45   : > { %6267 = vmatprep.mubr.msk.f32.mxu1 %vm395_vm2, %v6836_v37  ;;  %v6841_v51 = vld [vmem:[#allocation2 + $0x48] ss:$8 sps:$4 sm:$0xff]   ;;  %v6856_v5 = vld [vmem:[#allocation2 + $0x3a] ss:$8 sps:$4 sm:$0xff]   ;;  %v339_v6 = vld [vmem:[#allocation2 + $0x81] sm:$0x1] }
  0x46   : > { %v6843_v60 = vld [vmem:[#allocation2 + $0x78] ss:$8 sps:$4 sm:$0xff]   ;;  %v6852_v62 = vld [vmem:[#allocation2 + $0xa] ss:$8 sps:$4 sm:$0xff]   ;;  %375 = vst.msk [vmem:[#allocation2 + $0x85] sm:$0x1] %vm286_vm1, %v339_v6 }
  0x47   : > { %6259 = vmatmul.mubr.msk.f32.gmra.mrb[10].mxu0 %vm395_vm2, %v6839_v42  ;;  %v6855_v3 = vld [vmem:[#allocation2 + $0xa9] ss:$8 sps:$4 sm:$0xff]   ;;  %v5687_v7 = vld [vmem:[%s7946_s1 + $0xb8] sm:$0xff]  ;;  %v5708_v28 = vld [vmem:[%s7946_s1 + $0xe0] sm:$0xff] }
  0x48   : > { %6268 = vmatmul.mubr.msk.f32.vlgmr.msra.gmra.mrb[12].mxu1 %vm395_vm2, %v6837_v39  ;;  %6285 = vmatprep.mubr.msk.f32.mxu0 %vm395_vm2, %v6844_v45  ;;  %v6853_v8 = vld [vmem:[#allocation2 + $0x1a] ss:$8 sps:$4 sm:$0xff]   ;;  %v237_v10 = vld [vmem:[#allocation2 + $0x9] sm:$0xf]  ;;  %v345_v11 = vld [vmem:[#allocation2 + $0xb1] sm:$0x1] }
  0x49   : > { %6270 = vmatprep.mubr.msk.f32.mxu1 %vm395_vm2, %v6840_v41  ;;  %6716 = vmatpush3.bf16.msra.mxu1 %v6713_v30  ;;  %v6847_v1 = vld [vmem:[#allocation2 + $0xa8] ss:$8 sps:$4 sm:$0xff]   ;;  %244 = vst.msk [vmem:[#allocation2 + $0x29] sm:$0xf] %vm188_vm0, %v237_v10  ;;  %v238_v13 = vld [vmem:[#allocation2 + $0x39] sm:$0xf] }
  0x4a   : > { %6301 = vmatprep.subr.mxu1 %v5665_v44  ;;  %v6860_v9 = vld [vmem:[#allocation2 + $0x10] ss:$8 sps:$4 sm:$0xff]   ;;  %381 = vst.msk [vmem:[#allocation2 + $0xb5] sm:$0x1] %vm286_vm1, %v345_v11  ;;  %v239_v16 = vld [vmem:[#allocation2 + $0x69] sm:$0xf] }
  0x4b   : > { %6286 = vmatmul.mubr.msk.f32.vlgmr.msra.gmra.mrb[12].mxu0 %vm395_vm2, %v6845_v49  ;;  %v6858_v12 = vld [vmem:[#allocation2 + $0x6a] ss:$8 sps:$4 sm:$0xff]   ;;  %245 = vst.msk [vmem:[#allocation2 + $0x59] sm:$0xf] %vm188_vm0, %v238_v13  ;;  %v6862_v17 = vld [vmem:[#allocation2 + $0x9a] ss:$8 sps:$4 sm:$0xff]  }
  0x4c   : > { %6271 = vmatmul.mubr.msk.f32.gmra.mrb[14].mxu1 %vm395_vm2, %v6841_v51  ;;  %6288 = vmatprep.mubr.msk.f32.mxu0 %vm395_vm2, %v6848_v52  ;;  %v6857_v14 = vld [vmem:[#allocation2 + $0x4a] ss:$8 sps:$4 sm:$0xff]   ;;  %246 = vst.msk [vmem:[#allocation2 + $0x89] sm:$0xf] %vm188_vm0, %v239_v16  ;;  %v240_v22 = vld [vmem:[#allocation2 + $0x99] sm:$0xf] }
  0x4d   : > { %6273 = vmatprep.mubr.msk.f32.mxu1 %vm395_vm2, %v6842_v48  ;;  %6302 = vmatpush3.msra.mxu1 %v5665_v44  ;;  %v6859_v15 = vld [vmem:[#allocation2 + $0x7a] ss:$8 sps:$4 sm:$0xff]   ;;  %247 = vst.msk [vmem:[#allocation2 + $0xb9] sm:$0xf] %vm188_vm0, %v240_v22  ;;  %v5698_v27 = vld [vmem:[%s7946_s1 + $0xd0] sm:$0xff]  ;;  %v5709_v42 = vld [vmem:[%s7946_s1 + $0xe8] sm:$0xff] }
  0x4e   : > { %6720 = vmatpush3.bf16.msra.mxu0 %v6717_v35  ;;  %6722 = vmatprep.subr.bf16.mxu1 %v6721_v58  ;;  %v6868_v19 = vld [vmem:[#allocation2 + $0x11] ss:$8 sps:$4 sm:$0xff]   ;;  %v6864_v23 = vld [vmem:[#allocation2 + $0x40] ss:$8 sps:$4 sm:$0xff]  }
  0x4f   : > { %6319 = vmatprep.subr.mxu0 %v5676_v53  ;;  %6289 = vmatmul.mubr.msk.f32.gmra.mrb[14].mxu0 %vm395_vm2, %v6849_v57  ;;  %v5707_v26 = vld [vmem:[%s7946_s1 + $0xd8] sm:$0xff]  ;;  %v6872_v30 = vld [vmem:[#allocation2 + $0x41] ss:$8 sps:$4 sm:$0xff]   ;;  %v5718_v45 = vld [vmem:[%s7946_s1 + $0xf0] sm:$0xff] }
  0x50   : > { %6274 = vmatmul.mubr.msk.f32.gmra.mrb[16].mxu1 %vm395_vm2, %v6843_v60  ;;  %6291 = vmatprep.mubr.msk.f32.mxu0 %vm395_vm2, %v6850_v59  ;;  %v255_v18 = vld [vmem:[#allocation2 + $0x2c] sm:$0x1]  ;;  %v6866_v31 = vld [vmem:[#allocation2 + $0x70] ss:$8 sps:$4 sm:$0xff]   ;;  %v6729_v33 = vpack.c.bf16 %v5708_v28, %v5707_v26  ;;  %v328_v37 = vld [vmem:[#allocation2 + $0x29] sm:$0x1] }
  0x51   : > { %6276 = vmatprep.mubr.msk.f32.mxu1 %vm395_vm2, %v6846_v56  ;;  %292 = vst.msk [vmem:[#allocation2 + $0x28] sm:$0x1] %vm286_vm1, %v255_v18  ;;  %v6863_v20 = vld [vmem:[#allocation2 + $0xaa] ss:$8 sps:$4 sm:$0xff]   ;;  %364 = vst.msk [vmem:[#allocation2 + $0x2d] sm:$0x1] %vm286_vm1, %v328_v37 }
  0x52   : > { %6320 = vmatpush3.msra.mxu0 %v5676_v53  ;;  %v261_v21 = vld [vmem:[#allocation2 + $0x5c] sm:$0x1]  ;;  %v6869_v25 = vld [vmem:[#allocation2 + $0x21] ss:$8 sps:$4 sm:$0xff]   ;;  %v334_v43 = vld [vmem:[#allocation2 + $0x59] sm:$0x1] }
  0x53   : > { %6726 = vmatprep.subr.bf16.mxu0 %v7264_v0  ;;  %6292 = vmatmul.mubr.msk.f32.gmra.mrb[16].mxu0 %vm395_vm2, %v6851_v61  ;;  %298 = vst.msk [vmem:[#allocation2 + $0x58] sm:$0x1] %vm286_vm1, %v261_v21  ;;  %v267_v24 = vld [vmem:[#allocation2 + $0x8c] sm:$0x1]  ;;  %v6873_v32 = vld [vmem:[#allocation2 + $0x51] ss:$8 sps:$4 sm:$0xff]  }
  0x54   : > { %6277 = vmatmul.mubr.msk.f32.gmra.mrb[18].mxu1 %vm395_vm2, %v6847_v1  ;;  %6294 = vmatprep.mubr.msk.f32.mxu0 %vm395_vm2, %v6854_v2  ;;  %304 = vst.msk [vmem:[#allocation2 + $0x88] sm:$0x1] %vm286_vm1, %v267_v24  ;;  %v6874_v34 = vld [vmem:[#allocation2 + $0x71] ss:$8 sps:$4 sm:$0xff]   ;;  %v6870_v38 = vld [vmem:[#allocation2 + $0xa0] ss:$8 sps:$4 sm:$0xff]  }
  0x55   : > { %6303 = vmatprep.mubr.msk.f32.mxu1 %vm395_vm2, %v6852_v62  ;;  %v273_v36 = vld [vmem:[#allocation2 + $0xbc] sm:$0x1]  ;;  %v6875_v39 = vld [vmem:[#allocation2 + $0x81] ss:$8 sps:$4 sm:$0xff]   ;;  %370 = vst.msk [vmem:[#allocation2 + $0x5d] sm:$0x1] %vm286_vm1, %v334_v43 }
  0x56   : > { %310 = vst.msk [vmem:[#allocation2 + $0xb8] sm:$0x1] %vm286_vm1, %v273_v36  ;;  %v6878_v41 = vld [vmem:[#allocation2 + $0xa1] ss:$8 sps:$4 sm:$0xff]   ;;  %v6876_v44 = vld [vmem:[#allocation2 + $0x12] ss:$8 sps:$4 sm:$0xff]  }
  0x57   : > { %6295 = vmatmul.mubr.msk.f32.gmra.mrb[18].mxu0 %vm395_vm2, %v6855_v3  ;;  %v5719_v46 = vld [vmem:[%s7946_s1 + $0xf8] sm:$0xff]  ;;  %v340_v50 = vld [vmem:[#allocation2 + $0x89] sm:$0x1]  ;;  %v6880_v54 = vld [vmem:[#allocation2 + $0x42] ss:$8 sps:$4 sm:$0xff]  }
  0x58   : > { %6304 = vmatmul.mubr.msk.f32.vlgmr.msra.gmra.mrb[20].mxu1 %vm395_vm2, %v6853_v8  ;;  %6321 = vmatprep.mubr.msk.f32.mxu0 %vm395_vm2, %v6860_v9  ;;  %v6861_v29 = vld [vmem:[#allocation2 + $0x20] ss:$8 sps:$4 sm:$0xff]   ;;  %v6879_v47 = vld [vmem:[#allocation2 + $0xb1] ss:$8 sps:$4 sm:$0xff]   ;;  %v6733_v48 = vpack.c.bf16 %v5719_v46, %v5718_v45  ;;  %376 = vst.msk [vmem:[#allocation2 + $0x8d] sm:$0x1] %vm286_vm1, %v340_v50 }
  0x59   : > { %6306 = vmatprep.mubr.msk.f32.mxu1 %vm395_vm2, %v6856_v5  ;;  %6724 = vmatpush3.bf16.msra.mxu1 %v6721_v58  ;;  %v6877_v51 = vld [vmem:[#allocation2 + $0x22] ss:$8 sps:$4 sm:$0xff]   ;;  %v6884_v52 = vld [vmem:[#allocation2 + $0x30] ss:$8 sps:$4 sm:$0xff]   ;;  %v184_v8 = vld [vmem:[%s7096_s4 + $0x34] sm:$0xf] }
  0x5a   : > { %6337 = vmatprep.subr.mxu1 %v5687_v7  ;;  %v6865_v35 = vld [vmem:[#allocation2 + $0x50] ss:$8 sps:$4 sm:$0xff]   ;;  %v6885_v53 = vld [vmem:[#allocation2 + $0x40] ss:$8 sps:$4 sm:$0xff]   ;;  %202 = vst.msk [vmem:[#allocation2 + $0xd1] sm:$0xf] %vm188_vm0, %v184_v8 }
  0x5b   : > { %6322 = vmatmul.mubr.msk.f32.vlgmr.msra.gmra.mrb[20].mxu0 %vm395_vm2, %v6861_v29  ;;  %v6867_v40 = vld [vmem:[#allocation2 + $0x80] ss:$8 sps:$4 sm:$0xff]   ;;  %v346_v56 = vld [vmem:[#allocation2 + $0xb9] sm:$0x1]  ;;  %v6882_v59 = vld [vmem:[#allocation2 + $0x72] ss:$8 sps:$4 sm:$0xff]  }
  0x5c   : > { %6307 = vmatmul.mubr.msk.f32.gmra.mrb[22].mxu1 %vm395_vm2, %v6857_v14  ;;  %6324 = vmatprep.mubr.msk.f32.mxu0 %vm395_vm2, %v6864_v23  ;;  %v6881_v55 = vld [vmem:[#allocation2 + $0x52] ss:$8 sps:$4 sm:$0xff]   ;;  %382 = vst.msk [vmem:[#allocation2 + $0xbd] sm:$0x1] %vm286_vm1, %v346_v56  ;;  %v5720_v57 = vld [vmem:[%s7946_s1 + $0x100] sm:$0xff]  ;;  %v5729_v62 = vld [vmem:[%s7946_s1 + $0x108] sm:$0xff] }
  0x5d   : > { %6309 = vmatprep.mubr.msk.f32.mxu1 %vm395_vm2, %v6858_v12  ;;  %6338 = vmatpush3.msra.mxu1 %v5687_v7  ;;  %v6871_v49 = vld [vmem:[#allocation2 + $0xb0] ss:$8 sps:$4 sm:$0xff]   ;;  %v6888_v58 = vld [vmem:[#allocation2 + $0x60] ss:$8 sps:$4 sm:$0xff]   ;;  %v186_v7 = vld [vmem:[%s7096_s4 + $0x3c] sm:$0xf] }
  0x5e   : > { %6728 = vmatpush3.bf16.msra.mxu0 %v7264_v0  ;;  %6730 = vmatprep.subr.bf16.mxu1 %v6729_v33  ;;  %v6889_v61 = vld [vmem:[#allocation2 + $0x70] ss:$8 sps:$4 sm:$0xff]   ;;  %v6891_v2 = vld [vmem:[#allocation2 + $0xa0] ss:$8 sps:$4 sm:$0xff]   ;;  %204 = vst.msk [vmem:[#allocation2 + $0xe1] sm:$0xf] %vm188_vm0, %v186_v7 }
  0x5f   : > { %6355 = vmatprep.subr.mxu0 %v5698_v27  ;;  %6325 = vmatmul.mubr.msk.f32.gmra.mrb[22].mxu0 %vm395_vm2, %v6865_v35  ;;  %v6883_v60 = vld [vmem:[#allocation2 + $0x82] ss:$8 sps:$4 sm:$0xff]   ;;  %v5730_v63 = vld [vmem:[%s7946_s1 + $0x110] sm:$0xff]  ;;  %v185_v9 = vld [vmem:[%s7096_s4 + $0x38] sm:$0xf] }
  0x60   : > { %6310 = vmatmul.mubr.msk.f32.gmra.mrb[24].mxu1 %vm395_vm2, %v6859_v15  ;;  %6327 = vmatprep.mubr.msk.f32.mxu0 %vm395_vm2, %v6866_v31  ;;  %v6737_v0 = vpack.c.bf16 %v5730_v63, %v5729_v62  ;;  %v6890_v1 = vld [vmem:[#allocation2 + $0x90] ss:$8 sps:$4 sm:$0xff]   ;;  %v6886_v3 = vld [vmem:[#allocation2 + $0xa2] ss:$8 sps:$4 sm:$0xff]   ;;  %203 = vst.msk [vmem:[#allocation2 + $0xd9] sm:$0xf] %vm188_vm0, %v185_v9 }
  0x61   : > { %6312 = vmatprep.mubr.msk.f32.mxu1 %vm395_vm2, %v6862_v17  ;;  %v6892_v5 = vld [vmem:[#allocation2 + $0x31] ss:$8 sps:$4 sm:$0xff]   ;;  %v5740_v11 = vld [vmem:[%s7946_s1 + $0x120] sm:$0xff]  ;;  %v5741_v12 = vld [vmem:[%s7946_s1 + $0x128] sm:$0xff]  ;;  %v7038_v15 = vmov 0.0  }
  0x62   : > { %6356 = vmatpush3.msra.mxu0 %v5698_v27  ;;  %v183_v6 = vld [vmem:[%s7096_s4 + $0x30] sm:$0xf]  ;;  %v5731_v10 = vld [vmem:[%s7946_s1 + $0x118] sm:$0xff]  ;;  %v6893_v13 = vld [vmem:[#allocation2 + $0x41] ss:$8 sps:$4 sm:$0xff]   ;;  %v6741_v14 = vpack.c.bf16 %v5741_v12, %v5740_v11  ;;  %397 = vst.msk [vmem:[#allocation3 + $0x8] sm:$0xff] %vm395_vm2, %v7038_v15 }
  0x63   : > { %6328 = vmatmul.mubr.msk.f32.gmra.mrb[24].mxu0 %vm395_vm2, %v6867_v40  ;;  %6734 = vmatprep.subr.bf16.mxu0 %v6733_v48  ;;  %v6887_v4 = vld [vmem:[#allocation2 + $0xb2] ss:$8 sps:$4 sm:$0xff]   ;;  %201 = vst.msk [vmem:[#allocation2 + $0xc9] sm:$0xf] %vm188_vm0, %v183_v6  ;;  %v6896_v16 = vld [vmem:[#allocation2 + $0x61] ss:$8 sps:$4 sm:$0xff]  }
  0x64   : > { %6313 = vmatmul.mubr.msk.f32.gmra.mrb[26].mxu1 %vm395_vm2, %v6863_v20  ;;  %6330 = vmatprep.mubr.msk.f32.mxu0 %vm395_vm2, %v6870_v38  ;;  %396 = vst.msk [vmem:[#allocation3] sm:$0xff] %vm395_vm2, %v7038_v15  ;;  %398 = vst.msk [vmem:[#allocation3 + $0x10] sm:$0xff] %vm395_vm2, %v7038_v15  ;;  %v6897_v17 = vld [vmem:[#allocation2 + $0x71] ss:$8 sps:$4 sm:$0xff]   ;;  %v6899_v24 = vld [vmem:[#allocation2 + $0xa1] ss:$8 sps:$4 sm:$0xff]  }
  0x65   : > { %6339 = vmatprep.mubr.msk.f32.mxu1 %vm395_vm2, %v6868_v19  ;;  %399 = vst.msk [vmem:[#allocation3 + $0x18] sm:$0xff] %vm395_vm2, %v7038_v15  ;;  %400 = vst.msk [vmem:[#allocation3 + $0x20] sm:$0xff] %vm395_vm2, %v7038_v15  ;;  %v229_v19 = vld [vmem:[#allocation2 + $0xe1] sm:$0xf]  ;;  %v276_v20 = vld [vmem:[#allocation2 + $0xd4] sm:$0x1] }
  0x66   : > { %401 = vst.msk [vmem:[#allocation3 + $0x28] sm:$0xff] %vm395_vm2, %v7038_v15  ;;  %402 = vst.msk [vmem:[#allocation3 + $0x30] sm:$0xff] %vm395_vm2, %v7038_v15  ;;  %v6898_v22 = vld [vmem:[#allocation2 + $0x91] ss:$8 sps:$4 sm:$0xff]   ;;  %v5752_v26 = vld [vmem:[%s7946_s1 + $0x140] sm:$0xff] }
  0x67   : > { %6331 = vmatmul.mubr.msk.f32.gmra.mrb[26].mxu0 %vm395_vm2, %v6871_v49  ;;  %403 = vst.msk [vmem:[#allocation3 + $0x38] sm:$0xff] %vm395_vm2, %v7038_v15  ;;  %v277_v21 = vld [vmem:[#allocation2 + $0xdc] sm:$0x1]  ;;  %v5742_v23 = vld [vmem:[%s7946_s1 + $0x130] sm:$0xff]  ;;  %v6908_v31 = vld [vmem:[#allocation2 + $0x38] ss:$8 sps:$4 sm:$0xff]  }
  0x68   : > { %6340 = vmatmul.mubr.msk.f32.vlgmr.msra.gmra.mrb[28].mxu1 %vm395_vm2, %v6869_v25  ;;  %6357 = vmatprep.mubr.msk.f32.mxu0 %vm395_vm2, %v6876_v44  ;;  %235 = vst.msk [vmem:[#allocation2 + $0xc1] sm:$0xf] %vm188_vm0, %v229_v19  ;;  %v5751_v25 = vld [vmem:[%s7946_s1 + $0x138] sm:$0xff]  ;;  %v349_v35 = vld [vmem:[#allocation2 + $0xd1] sm:$0x1]  ;;  %v5773_v56 = vld [vmem:[%s7946_s1 + $0x168] sm:$0xff] }
  0x69   : > { %6342 = vmatprep.mubr.msk.f32.mxu1 %vm395_vm2, %v6872_v30  ;;  %6732 = vmatpush3.bf16.msra.mxu1 %v6729_v33  ;;  %313 = vst.msk [vmem:[#allocation2 + $0xd0] sm:$0x1] %vm286_vm1, %v276_v20  ;;  %314 = vst.msk [vmem:[#allocation2 + $0xd8] sm:$0x1] %vm286_vm1, %v277_v21  ;;  %v6745_v27 = vpack.c.bf16 %v5752_v26, %v5751_v25  ;;  %v6903_v28 = vld [vmem:[#allocation2 + $0xd1] ss:$8 sps:$4 sm:$0xff]  }
  0x6a   : > { %6373 = vmatprep.subr.mxu1 %v5709_v42  ;;  %v275_v18 = vld [vmem:[#allocation2 + $0xcc] sm:$0x1]  ;;  %v350_v37 = vld [vmem:[#allocation2 + $0xd9] sm:$0x1]  ;;  %385 = vst.msk [vmem:[#allocation2 + $0xd5] sm:$0x1] %vm286_vm1, %v349_v35 }
  0x6b   : > { %6358 = vmatmul.mubr.msk.f32.vlgmr.msra.gmra.mrb[28].mxu0 %vm395_vm2, %v6877_v51  ;;  %312 = vst.msk [vmem:[#allocation2 + $0xc8] sm:$0x1] %vm286_vm1, %v275_v18  ;;  %v6900_v38 = vld [vmem:[#allocation2 + $0x32] ss:$8 sps:$4 sm:$0xff]   ;;  %386 = vst.msk [vmem:[#allocation2 + $0xdd] sm:$0x1] %vm286_vm1, %v350_v37 }
  0x6c   : > { %6343 = vmatmul.mubr.msk.f32.gmra.mrb[30].mxu1 %vm395_vm2, %v6873_v32  ;;  %6360 = vmatprep.mubr.msk.f32.mxu0 %vm395_vm2, %v6880_v54  ;;  %v6909_v32 = vld [vmem:[#allocation2 + $0x48] ss:$8 sps:$4 sm:$0xff]   ;;  %v6913_v40 = vld [vmem:[#allocation2 + $0x78] ss:$8 sps:$4 sm:$0xff]  }
  0x6d   : > { %6345 = vmatprep.mubr.msk.f32.mxu1 %vm395_vm2, %v6874_v34  ;;  %6374 = vmatpush3.msra.mxu1 %v5709_v42  ;;  %v348_v34 = vld [vmem:[#allocation2 + $0xc9] sm:$0x1]  ;;  %v5763_v43 = vld [vmem:[%s7946_s1 + $0x158] sm:$0xff]  ;;  %v6901_v46 = vld [vmem:[#allocation2 + $0x42] ss:$8 sps:$4 sm:$0xff]  }
  0x6e   : > { %6736 = vmatpush3.bf16.msra.mxu0 %v6733_v48  ;;  %6738 = vmatprep.subr.bf16.mxu1 %v6737_v0  ;;  %384 = vst.msk [vmem:[#allocation2 + $0xcd] sm:$0x1] %vm286_vm1, %v348_v34  ;;  %v6914_v45 = vld [vmem:[#allocation2 + $0x98] ss:$8 sps:$4 sm:$0xff]   ;;  %v6915_v49 = vld [vmem:[#allocation2 + $0xa8] ss:$8 sps:$4 sm:$0xff]  }
  0x6f   : > { %6391 = vmatprep.subr.mxu0 %v5720_v57  ;;  %6361 = vmatmul.mubr.msk.f32.gmra.mrb[30].mxu0 %vm395_vm2, %v6881_v55  ;;  %v274_v29 = vld [vmem:[#allocation2 + $0xc4] sm:$0x1]  ;;  %v347_v33 = vld [vmem:[#allocation2 + $0xc1] sm:$0x1]  ;;  %v6905_v48 = vld [vmem:[#allocation2 + $0x72] ss:$8 sps:$4 sm:$0xff]  }
  0x70   : > { %6346 = vmatmul.mubr.msk.f32.gmra.mrb[32].mxu1 %vm395_vm2, %v6875_v39  ;;  %6363 = vmatprep.mubr.msk.f32.mxu0 %vm395_vm2, %v6882_v59  ;;  %311 = vst.msk [vmem:[#allocation2 + $0xc0] sm:$0x1] %vm286_vm1, %v274_v29  ;;  %v6902_v30 = vld [vmem:[#allocation2 + $0xc1] ss:$8 sps:$4 sm:$0xff]   ;;  %v6895_v36 = vld [vmem:[#allocation2 + $0xd0] ss:$8 sps:$4 sm:$0xff]  }
  0x71   : > { %6348 = vmatprep.mubr.msk.f32.mxu1 %vm395_vm2, %v6878_v41  ;;  %383 = vst.msk [vmem:[#allocation2 + $0xc5] sm:$0x1] %vm286_vm1, %v347_v33  ;;  %v6912_v39 = vld [vmem:[#allocation2 + $0x68] ss:$8 sps:$4 sm:$0xff]   ;;  %v5764_v54 = vld [vmem:[%s7946_s1 + $0x160] sm:$0xff]  ;;  %v5795_v18 = vld [vmem:[%s7946_s1 + $0x198] sm:$0xff] }
  0x72   : > { %6392 = vmatpush3.msra.mxu0 %v5720_v57  ;;  %v5762_v41 = vld [vmem:[%s7946_s1 + $0x150] sm:$0xff]  ;;  %v5753_v51 = vld [vmem:[%s7946_s1 + $0x148] sm:$0xff]  ;;  %v6924_v62 = vld [vmem:[#allocation2 + $0x3a] ss:$8 sps:$4 sm:$0xff]  }
  0x73   : > { %6364 = vmatmul.mubr.msk.f32.gmra.mrb[32].mxu0 %vm395_vm2, %v6883_v60  ;;  %6742 = vmatprep.subr.bf16.mxu0 %v6741_v14  ;;  %v6749_v44 = vpack.c.bf16 %v5763_v43, %v5762_v41  ;;  %v6906_v50 = vld [vmem:[#allocation2 + $0x92] ss:$8 sps:$4 sm:$0xff]   ;;  %v6907_v55 = vld [vmem:[#allocation2 + $0xa2] ss:$8 sps:$4 sm:$0xff]   ;;  %v351_v15 = vld [vmem:[#allocation2 + $0xe1] sm:$0x1] }
  0x74   : > { %6349 = vmatmul.mubr.msk.f32.gmra.mrb[34].mxu1 %vm395_vm2, %v6879_v47  ;;  %6366 = vmatprep.mubr.msk.f32.mxu0 %vm395_vm2, %v6886_v3  ;;  %v6904_v47 = vld [vmem:[#allocation2 + $0x62] ss:$8 sps:$4 sm:$0xff]   ;;  %v5774_v57 = vld [vmem:[%s7946_s1 + $0x170] sm:$0xff]  ;;  %387 = vst.msk [vmem:[#allocation2 + $0xe5] sm:$0x1] %vm286_vm1, %v351_v15  ;;  %v5807_v33 = vld [vmem:[%s7946_s1 + $0x1b8] sm:$0xff] }
  0x75   : > { %6375 = vmatprep.mubr.msk.f32.mxu1 %vm395_vm2, %v6884_v52  ;;  %v6918_v52 = vld [vmem:[#allocation2 + $0xc8] ss:$8 sps:$4 sm:$0xff]   ;;  %v6753_v59 = vpack.c.bf16 %v5774_v57, %v5773_v56  ;;  %v6921_v6 = vld [vmem:[#allocation2 + $0x79] ss:$8 sps:$4 sm:$0xff]  }
  0x76   : > { %v6911_v60 = vld [vmem:[#allocation2 + $0xd2] ss:$8 sps:$4 sm:$0xff]   ;;  %v5785_v7 = vld [vmem:[%s7946_s1 + $0x188] sm:$0xff]  ;;  %v5796_v19 = vld [vmem:[%s7946_s1 + $0x1a0] sm:$0xff] }
  0x77   : > { %6367 = vmatmul.mubr.msk.f32.gmra.mrb[34].mxu0 %vm395_vm2, %v6887_v4  ;;  %v6894_v42 = vld [vmem:[#allocation2 + $0xc0] ss:$8 sps:$4 sm:$0xff]   ;;  %v5775_v4 = vld [vmem:[%s7946_s1 + $0x178] sm:$0xff]  ;;  %v6761_v20 = vpack.c.bf16 %v5796_v19, %v5795_v18 }
  0x78   : > { %6376 = vmatmul.mubr.msk.f32.vlgmr.msra.gmra.mrb[36].mxu1 %vm395_vm2, %v6885_v53  ;;  %6393 = vmatprep.mubr.msk.f32.mxu0 %vm395_vm2, %v6892_v5  ;;  %v278_v53 = vld [vmem:[#allocation2 + $0xe4] sm:$0x1]  ;;  %v6928_v3 = vld [vmem:[#allocation2 + $0x6a] ss:$8 sps:$4 sm:$0xff]   ;;  %v5819_v56 = vld [vmem:[%s7946_s1 + $0x1d8] sm:$0xff] }
  0x79   : > { %6378 = vmatprep.mubr.msk.f32.mxu1 %vm395_vm2, %v6888_v58  ;;  %6740 = vmatpush3.bf16.msra.mxu1 %v6737_v0  ;;  %315 = vst.msk [vmem:[#allocation2 + $0xe0] sm:$0x1] %vm286_vm1, %v278_v53  ;;  %v6910_v58 = vld [vmem:[#allocation2 + $0xc2] ss:$8 sps:$4 sm:$0xff]   ;;  %v6936_v26 = vld [vmem:[#allocation2 + $0x70] ss:$8 sps:$4 sm:$0xff]  }
  0x7a   : > { %6409 = vmatprep.subr.mxu1 %v5731_v10  ;;  %v6917_v0 = vld [vmem:[#allocation2 + $0x49] ss:$8 sps:$4 sm:$0xff]   ;;  %v5784_v5 = vld [vmem:[%s7946_s1 + $0x180] sm:$0xff] }
  0x7b   : > { %6394 = vmatmul.mubr.msk.f32.vlgmr.msra.gmra.mrb[36].mxu0 %vm395_vm2, %v6893_v13  ;;  %v6929_v8 = vld [vmem:[#allocation2 + $0x7a] ss:$8 sps:$4 sm:$0xff]   ;;  %v6757_v9 = vpack.c.bf16 %v5785_v7, %v5784_v5  ;;  %v6923_v12 = vld [vmem:[#allocation2 + $0xa9] ss:$8 sps:$4 sm:$0xff]  }
  0x7c   : > { %6379 = vmatmul.mubr.msk.f32.gmra.mrb[38].mxu1 %vm395_vm2, %v6889_v61  ;;  %6396 = vmatprep.mubr.msk.f32.mxu0 %vm395_vm2, %v6896_v16  ;;  %v6916_v61 = vld [vmem:[#allocation2 + $0x39] ss:$8 sps:$4 sm:$0xff]   ;;  %v6931_v13 = vld [vmem:[#allocation2 + $0xaa] ss:$8 sps:$4 sm:$0xff]  }
  0x7d   : > { %6381 = vmatprep.mubr.msk.f32.mxu1 %vm395_vm2, %v6890_v1  ;;  %6410 = vmatpush3.msra.mxu1 %v5731_v10  ;;  %v6920_v1 = vld [vmem:[#allocation2 + $0x69] ss:$8 sps:$4 sm:$0xff]   ;;  %v6922_v10 = vld [vmem:[#allocation2 + $0x99] ss:$8 sps:$4 sm:$0xff]  }
  0x7e   : > { %6744 = vmatpush3.bf16.msra.mxu0 %v6741_v14  ;;  %6746 = vmatprep.subr.bf16.mxu1 %v6745_v27  ;;  %v6930_v11 = vld [vmem:[#allocation2 + $0x9a] ss:$8 sps:$4 sm:$0xff]   ;;  %v6934_v14 = vld [vmem:[#allocation2 + $0xca] ss:$8 sps:$4 sm:$0xff]  }
  0x7f   : > { %6427 = vmatprep.subr.mxu0 %v5742_v23  ;;  %6397 = vmatmul.mubr.msk.f32.gmra.mrb[38].mxu0 %vm395_vm2, %v6897_v17  ;;  %v5786_v16 = vld [vmem:[%s7946_s1 + $0x190] sm:$0xff]  ;;  %v6927_v21 = vld [vmem:[#allocation2 + $0xd9] ss:$8 sps:$4 sm:$0xff]  }
  0x80   : > { %6382 = vmatmul.mubr.msk.f32.gmra.mrb[40].mxu1 %vm395_vm2, %v6891_v2  ;;  %6399 = vmatprep.mubr.msk.f32.mxu0 %vm395_vm2, %v6898_v22  ;;  %v6919_v63 = vld [vmem:[#allocation2 + $0xd8] ss:$8 sps:$4 sm:$0xff]   ;;  %v6925_v2 = vld [vmem:[#allocation2 + $0x4a] ss:$8 sps:$4 sm:$0xff]   ;;  %v216_v5 = vld [vmem:[%s7096_s4 + $0x4] sm:$0xf] }
  0x81   : > { %6384 = vmatprep.mubr.msk.f32.mxu1 %vm395_vm2, %v6894_v42  ;;  %v6926_v17 = vld [vmem:[#allocation2 + $0xc9] ss:$8 sps:$4 sm:$0xff]   ;;  %v6935_v25 = vld [vmem:[#allocation2 + $0xda] ss:$8 sps:$4 sm:$0xff]   ;;  %221 = vst.msk [vmem:[#allocation2 + $0x101] sm:$0xf] %vm188_vm0, %v216_v5 }
  0x82   : > { %6428 = vmatpush3.msra.mxu0 %v5742_v23  ;;  %v6932_v22 = vld [vmem:[#allocation2 + $0x40] ss:$8 sps:$4 sm:$0xff]   ;;  %v6933_v23 = vld [vmem:[#allocation2 + $0x50] ss:$8 sps:$4 sm:$0xff]  }
  0x83   : > { %6400 = vmatmul.mubr.msk.f32.gmra.mrb[40].mxu0 %vm395_vm2, %v6899_v24  ;;  %6750 = vmatprep.subr.bf16.mxu0 %v6749_v44  ;;  %v6940_v24 = vld [vmem:[#allocation2 + $0x41] ss:$8 sps:$4 sm:$0xff]   ;;  %v6947_v41 = vld [vmem:[#allocation2 + $0xb1] ss:$8 sps:$4 sm:$0xff]  }
  0x84   : > { %6402 = vmatprep.mubr.msk.f32.mxu0 %vm395_vm2, %v6902_v30  ;;  %6385 = vmatmul.mubr.msk.f32.gmra.mrb[42].mxu1 %vm395_vm2, %v6895_v36  ;;  %v6937_v29 = vld [vmem:[#allocation2 + $0x80] ss:$8 sps:$4 sm:$0xff]   ;;  %v6950_v43 = vld [vmem:[#allocation2 + $0xd1] ss:$8 sps:$4 sm:$0xff]  }
  0x85   : > { %6411 = vmatprep.mubr.msk.f32.mxu1 %vm395_vm2, %v6900_v38  ;;  %v5797_v30 = vld [vmem:[%s7946_s1 + $0x1a8] sm:$0xff]  ;;  %v6939_v38 = vld [vmem:[#allocation2 + $0xb0] ss:$8 sps:$4 sm:$0xff]   ;;  %v5808_v42 = vld [vmem:[%s7946_s1 + $0x1c0] sm:$0xff] }
  0x86   : > { %v6938_v34 = vld [vmem:[#allocation2 + $0xa0] ss:$8 sps:$4 sm:$0xff]   ;;  %v6952_v53 = vld [vmem:[#allocation2 + $0x72] ss:$8 sps:$4 sm:$0xff]  }
  0x87   : > { %6403 = vmatmul.mubr.msk.f32.gmra.mrb[42].mxu0 %vm395_vm2, %v6903_v28  ;;  %v6941_v28 = vld [vmem:[#allocation2 + $0x51] ss:$8 sps:$4 sm:$0xff]   ;;  %v6945_v36 = vld [vmem:[#allocation2 + $0x81] ss:$8 sps:$4 sm:$0xff]  }
  0x88   : > { %6429 = vmatprep.mubr.msk.f32.mxu0 %vm395_vm2, %v6908_v31  ;;  %6412 = vmatmul.mubr.msk.f32.vlgmr.msra.gmra.mrb[44].mxu1 %vm395_vm2, %v6901_v46  ;;  %v6944_v31 = vld [vmem:[#allocation2 + $0x71] ss:$8 sps:$4 sm:$0xff]   ;;  %v6946_v37 = vld [vmem:[#allocation2 + $0xa1] ss:$8 sps:$4 sm:$0xff]  }
  0x89   : > { %6414 = vmatprep.mubr.msk.f32.mxu1 %vm395_vm2, %v6904_v47  ;;  %6748 = vmatpush3.bf16.msra.mxu1 %v6745_v27  ;;  %v241_v27 = vld [vmem:[#allocation2 + $0xc9] sm:$0xf]  ;;  %v6960_v57 = vld [vmem:[#allocation2 + $0x90] ss:$8 sps:$4 sm:$0xff]  }
  0x8a   : > { %6445 = vmatprep.subr.mxu1 %v5753_v51  ;;  %248 = vst.msk [vmem:[#allocation2 + $0xe9] sm:$0xf] %vm188_vm0, %v241_v27  ;;  %v5830_v7 = vld [vmem:[%s7946_s1 + $0x1f0] sm:$0xff]  ;;  %v6969_v19 = vld [vmem:[#allocation2 + $0xa1] ss:$8 sps:$4 sm:$0xff]  }
  0x8b   : > { %6430 = vmatmul.mubr.msk.f32.vlgmr.msra.gmra.mrb[44].mxu0 %vm395_vm2, %v6909_v32  ;;  %v5806_v32 = vld [vmem:[%s7946_s1 + $0x1b0] sm:$0xff] }
  0x8c   : > { %6432 = vmatprep.mubr.msk.f32.mxu0 %vm395_vm2, %v6912_v39  ;;  %6752 = vmatpush3.bf16.msra.mxu0 %v6749_v44  ;;  %v6765_v35 = vpack.c.bf16 %v5807_v33, %v5806_v32  ;;  %v5817_v44 = vld [vmem:[%s7946_s1 + $0x1c8] sm:$0xff]  ;;  %v355_v32 = vld [vmem:[#allocation2 + $0x101] sm:$0x1] }
  0x8d   : > { %6463 = vmatprep.subr.mxu0 %v5764_v54  ;;  %6415 = vmatmul.mubr.msk.f32.gmra.mrb[46].mxu1 %vm395_vm2, %v6905_v48  ;;  %v6948_v48 = vld [vmem:[#allocation2 + $0x42] ss:$8 sps:$4 sm:$0xff]   ;;  %391 = vst.msk [vmem:[#allocation2 + $0x105] sm:$0x1] %vm286_vm1, %v355_v32 }
  0x8e   : > { %6417 = vmatprep.mubr.msk.f32.mxu1 %vm395_vm2, %v6906_v50  ;;  %6446 = vmatpush3.msra.mxu1 %v5753_v51  ;;  %v6949_v50 = vld [vmem:[#allocation2 + $0x52] ss:$8 sps:$4 sm:$0xff]   ;;  %v6956_v51 = vld [vmem:[#allocation2 + $0x60] ss:$8 sps:$4 sm:$0xff]  }
  0x8f   : > { %6433 = vmatmul.mubr.msk.f32.gmra.mrb[46].mxu0 %vm395_vm2, %v6913_v40  ;;  %6754 = vmatprep.subr.bf16.mxu1 %v6753_v59  ;;  %v6942_v40 = vld [vmem:[#allocation2 + $0xd0] ss:$8 sps:$4 sm:$0xff]  }
  0x90   : > { %6435 = vmatprep.mubr.msk.f32.mxu0 %vm395_vm2, %v6914_v45  ;;  %6464 = vmatpush3.msra.mxu0 %v5764_v54  ;;  %v5818_v45 = vld [vmem:[%s7946_s1 + $0x1d0] sm:$0xff] }
  0x91   : > { %6418 = vmatmul.mubr.msk.f32.gmra.mrb[48].mxu1 %vm395_vm2, %v6907_v55  ;;  %6758 = vmatprep.subr.bf16.mxu0 %v6757_v9  ;;  %v279_v39 = vld [vmem:[#allocation2 + $0xec] sm:$0x1]  ;;  %v6769_v47 = vpack.c.bf16 %v5818_v45, %v5817_v44  ;;  %v352_v54 = vld [vmem:[#allocation2 + $0xe9] sm:$0x1]  ;;  %v6976_v45 = vld [vmem:[#allocation2 + $0x92] ss:$8 sps:$4 sm:$0xff]  }
  0x92   : > { %6420 = vmatprep.mubr.msk.f32.mxu1 %vm395_vm2, %v6910_v58  ;;  %316 = vst.msk [vmem:[#allocation2 + $0xe8] sm:$0x1] %vm286_vm1, %v279_v39  ;;  %v6951_v46 = vld [vmem:[#allocation2 + $0xe1] ss:$8 sps:$4 sm:$0xff]   ;;  %388 = vst.msk [vmem:[#allocation2 + $0xed] sm:$0x1] %vm286_vm1, %v352_v54 }
  0x93   : > { %6436 = vmatmul.mubr.msk.f32.gmra.mrb[48].mxu0 %vm395_vm2, %v6915_v49  ;;  %v6953_v55 = vld [vmem:[#allocation2 + $0x82] ss:$8 sps:$4 sm:$0xff]  }
  0x94   : > { %6438 = vmatprep.mubr.msk.f32.mxu0 %vm395_vm2, %v6918_v52  ;;  %v6957_v52 = vld [vmem:[#allocation2 + $0x70] ss:$8 sps:$4 sm:$0xff]   ;;  %v6961_v58 = vld [vmem:[#allocation2 + $0xa0] ss:$8 sps:$4 sm:$0xff]  }
  0x95   : > { %6421 = vmatmul.mubr.msk.f32.gmra.mrb[50].mxu1 %vm395_vm2, %v6911_v60  ;;  %v5829_v60 = vld [vmem:[%s7946_s1 + $0x1e8] sm:$0xff] }
  0x96   : > { %6447 = vmatprep.mubr.msk.f32.mxu1 %vm395_vm2, %v6916_v61  ;;  %v6954_v61 = vld [vmem:[#allocation2 + $0xa2] ss:$8 sps:$4 sm:$0xff]  }
  0x97   : > { %6439 = vmatmul.mubr.msk.f32.gmra.mrb[50].mxu0 %vm395_vm2, %v6919_v63  ;;  %v6962_v63 = vld [vmem:[#allocation2 + $0xc0] ss:$8 sps:$4 sm:$0xff]  }
  0x98   : > { %6465 = vmatprep.mubr.msk.f32.mxu0 %vm395_vm2, %v6924_v62  ;;  %v5861_v39 = vld [vmem:[%s7946_s1 + $0x228] sm:$0xff] }
  0x99   : > { %6448 = vmatmul.mubr.msk.f32.vlgmr.msra.gmra.mrb[52].mxu1 %vm395_vm2, %v6917_v0  ;;  %v6943_v49 = vld [vmem:[#allocation2 + $0xe0] ss:$8 sps:$4 sm:$0xff]   ;;  %v6955_v0 = vld [vmem:[#allocation2 + $0xb2] ss:$8 sps:$4 sm:$0xff]  }
  0x9a   : > { %6450 = vmatprep.mubr.msk.f32.mxu1 %vm395_vm2, %v6920_v1  ;;  %6756 = vmatpush3.bf16.msra.mxu1 %v6753_v59  ;;  %v5828_v59 = vld [vmem:[%s7946_s1 + $0x1e0] sm:$0xff]  ;;  %v6963_v1 = vld [vmem:[#allocation2 + $0xd0] ss:$8 sps:$4 sm:$0xff]  }
  0x9b   : > { %6466 = vmatmul.mubr.msk.f32.vlgmr.msra.gmra.mrb[52].mxu0 %vm395_vm2, %v6925_v2  ;;  %6481 = vmatprep.subr.mxu1 %v5775_v4  ;;  %v6773_v62 = vpack.c.bf16 %v5829_v60, %v5828_v59  ;;  %v6958_v2 = vld [vmem:[#allocation2 + $0xd2] ss:$8 sps:$4 sm:$0xff]   ;;  %v5873_v59 = vld [vmem:[%s7946_s1 + $0x248] sm:$0xff] }
  0x9c   : > { %6468 = vmatprep.mubr.msk.f32.mxu0 %vm395_vm2, %v6928_v3  ;;  %6760 = vmatpush3.bf16.msra.mxu0 %v6757_v9  ;;  %v215_v3 = vld [vmem:[%s7096_s4] sm:$0xf]  ;;  %v6986_v44 = vld [vmem:[#allocation2 + $0xc8] ss:$8 sps:$4 sm:$0xff]  }
  0x9d   : > { %6451 = vmatmul.mubr.msk.f32.gmra.mrb[54].mxu1 %vm395_vm2, %v6921_v6  ;;  %6499 = vmatprep.subr.mxu0 %v5786_v16  ;;  %220 = vst.msk [vmem:[#allocation2 + $0xf9] sm:$0xf] %vm188_vm0, %v215_v3  ;;  %v217_v6 = vld [vmem:[%s7096_s4 + $0x8] sm:$0xf] }
  0x9e   : > { %6453 = vmatprep.mubr.msk.f32.mxu1 %vm395_vm2, %v6922_v10  ;;  %6482 = vmatpush3.msra.mxu1 %v5775_v4  ;;  %v218_v4 = vld [vmem:[%s7096_s4 + $0xc] sm:$0xf]  ;;  %222 = vst.msk [vmem:[#allocation2 + $0x109] sm:$0xf] %vm188_vm0, %v217_v6  ;;  %v5839_v10 = vld [vmem:[%s7946_s1 + $0x1f8] sm:$0xff] }
  0x9f   : > { %6469 = vmatmul.mubr.msk.f32.gmra.mrb[54].mxu0 %vm395_vm2, %v6929_v8  ;;  %6762 = vmatprep.subr.bf16.mxu1 %v6761_v20  ;;  %223 = vst.msk [vmem:[#allocation2 + $0x111] sm:$0xf] %vm188_vm0, %v218_v4  ;;  %v6959_v8 = vld [vmem:[#allocation2 + $0xe2] ss:$8 sps:$4 sm:$0xff]  }
  0xa0   : > { %6471 = vmatprep.mubr.msk.f32.mxu0 %vm395_vm2, %v6930_v11  ;;  %6500 = vmatpush3.msra.mxu0 %v5786_v16  ;;  %v6964_v9 = vld [vmem:[#allocation2 + $0x61] ss:$8 sps:$4 sm:$0xff]  }
  0xa1   : > { %6454 = vmatmul.mubr.msk.f32.gmra.mrb[56].mxu1 %vm395_vm2, %v6923_v12  ;;  %6766 = vmatprep.subr.bf16.mxu0 %v6765_v35  ;;  %v5840_v11 = vld [vmem:[%s7946_s1 + $0x200] sm:$0xff]  ;;  %v6996_v3 = vld [vmem:[#allocation2 + $0x6a] ss:$8 sps:$4 sm:$0xff]  }
  0xa2   : > { %6456 = vmatprep.mubr.msk.f32.mxu1 %vm395_vm2, %v6926_v17  ;;  %v6777_v12 = vpack.c.bf16 %v5840_v11, %v5839_v10  ;;  %v282_v17 = vld [vmem:[#allocation2 + $0x104] sm:$0x1]  ;;  %v7001_v32 = vld [vmem:[#allocation2 + $0xaa] ss:$8 sps:$4 sm:$0xff]  }
  0xa3   : > { %6472 = vmatmul.mubr.msk.f32.gmra.mrb[56].mxu0 %vm395_vm2, %v6931_v13  ;;  %v6965_v13 = vld [vmem:[#allocation2 + $0x71] ss:$8 sps:$4 sm:$0xff]   ;;  %319 = vst.msk [vmem:[#allocation2 + $0x100] sm:$0x1] %vm286_vm1, %v282_v17 }
  0xa4   : > { %6474 = vmatprep.mubr.msk.f32.mxu0 %vm395_vm2, %v6934_v14  ;;  %v6968_v14 = vld [vmem:[#allocation2 + $0x91] ss:$8 sps:$4 sm:$0xff]  }
  0xa5   : > { %6457 = vmatmul.mubr.msk.f32.gmra.mrb[58].mxu1 %vm395_vm2, %v6927_v21  ;;  %v281_v15 = vld [vmem:[#allocation2 + $0xfc] sm:$0x1]  ;;  %v283_v18 = vld [vmem:[#allocation2 + $0x10c] sm:$0x1]  ;;  %v356_v33 = vld [vmem:[#allocation2 + $0x109] sm:$0x1] }
  0xa6   : > { %6483 = vmatprep.mubr.msk.f32.mxu1 %vm395_vm2, %v6932_v22  ;;  %v230_v16 = vld [vmem:[#allocation2 + $0x111] sm:$0xf]  ;;  %318 = vst.msk [vmem:[#allocation2 + $0xf8] sm:$0x1] %vm286_vm1, %v281_v15  ;;  %320 = vst.msk [vmem:[#allocation2 + $0x108] sm:$0x1] %vm286_vm1, %v283_v18 }
  0xa7   : > { %6475 = vmatmul.mubr.msk.f32.gmra.mrb[58].mxu0 %vm395_vm2, %v6935_v25  ;;  %236 = vst.msk [vmem:[#allocation2 + $0xf1] sm:$0xf] %vm188_vm0, %v230_v16  ;;  %v6970_v21 = vld [vmem:[#allocation2 + $0xc1] ss:$8 sps:$4 sm:$0xff]   ;;  %v5850_v22 = vld [vmem:[%s7946_s1 + $0x210] sm:$0xff]  ;;  %v5883_v15 = vld [vmem:[%s7946_s1 + $0x258] sm:$0xff] }
  0xa8   : > { %6501 = vmatprep.mubr.msk.f32.mxu0 %vm395_vm2, %v6940_v24  ;;  %v6971_v24 = vld [vmem:[#allocation2 + $0xd1] ss:$8 sps:$4 sm:$0xff]   ;;  %392 = vst.msk [vmem:[#allocation2 + $0x10d] sm:$0x1] %vm286_vm1, %v356_v33 }
  0xa9   : > { %6484 = vmatmul.mubr.msk.f32.vlgmr.msra.gmra.mrb[60].mxu1 %vm395_vm2, %v6933_v23  ;;  %v5851_v23 = vld [vmem:[%s7946_s1 + $0x218] sm:$0xff]  ;;  %v7002_v33 = vld [vmem:[#allocation2 + $0xca] ss:$8 sps:$4 sm:$0xff]  }
  0xaa   : > { %6486 = vmatprep.mubr.msk.f32.mxu1 %vm395_vm2, %v6936_v26  ;;  %6764 = vmatpush3.bf16.msra.mxu1 %v6761_v20  ;;  %v5841_v20 = vld [vmem:[%s7946_s1 + $0x208] sm:$0xff]  ;;  %v6781_v25 = vpack.c.bf16 %v5851_v23, %v5850_v22  ;;  %v6997_v17 = vld [vmem:[#allocation2 + $0x7a] ss:$8 sps:$4 sm:$0xff]  }
  0xab   : > { %6502 = vmatmul.mubr.msk.f32.vlgmr.msra.gmra.mrb[60].mxu0 %vm395_vm2, %v6941_v28  ;;  %6517 = vmatprep.subr.mxu1 %v5797_v30  ;;  %v6975_v28 = vld [vmem:[#allocation2 + $0x101] ss:$8 sps:$4 sm:$0xff]  }
  0xac   : > { %6504 = vmatprep.mubr.msk.f32.mxu0 %vm395_vm2, %v6944_v31  ;;  %6768 = vmatpush3.bf16.msra.mxu0 %v6765_v35  ;;  %v354_v31 = vld [vmem:[#allocation2 + $0xf9] sm:$0x1] }
  0xad   : > { %6487 = vmatmul.mubr.msk.f32.gmra.mrb[62].mxu1 %vm395_vm2, %v6937_v29  ;;  %6535 = vmatprep.subr.mxu0 %v5808_v42  ;;  %v6980_v29 = vld [vmem:[#allocation2 + $0x68] ss:$8 sps:$4 sm:$0xff]   ;;  %390 = vst.msk [vmem:[#allocation2 + $0xfd] sm:$0x1] %vm286_vm1, %v354_v31  ;;  %v6981_v35 = vld [vmem:[#allocation2 + $0x78] ss:$8 sps:$4 sm:$0xff]  }
  0xae   : > { %6489 = vmatprep.mubr.msk.f32.mxu1 %vm395_vm2, %v6938_v34  ;;  %6518 = vmatpush3.msra.mxu1 %v5797_v30  ;;  %v280_v26 = vld [vmem:[#allocation2 + $0xf4] sm:$0x1]  ;;  %v353_v30 = vld [vmem:[#allocation2 + $0xf1] sm:$0x1]  ;;  %v6967_v34 = vld [vmem:[#allocation2 + $0x100] ss:$8 sps:$4 sm:$0xff]  }
  0xaf   : > { %6505 = vmatmul.mubr.msk.f32.gmra.mrb[62].mxu0 %vm395_vm2, %v6945_v36  ;;  %6770 = vmatprep.subr.bf16.mxu1 %v6769_v47  ;;  %317 = vst.msk [vmem:[#allocation2 + $0xf0] sm:$0x1] %vm286_vm1, %v280_v26  ;;  %v6974_v27 = vld [vmem:[#allocation2 + $0xf1] ss:$8 sps:$4 sm:$0xff]   ;;  %389 = vst.msk [vmem:[#allocation2 + $0xf5] sm:$0x1] %vm286_vm1, %v353_v30 }
  0xb0   : > { %6507 = vmatprep.mubr.msk.f32.mxu0 %vm395_vm2, %v6946_v37  ;;  %6536 = vmatpush3.msra.mxu0 %v5808_v42  ;;  %v6984_v36 = vld [vmem:[#allocation2 + $0x98] ss:$8 sps:$4 sm:$0xff]  }
  0xb1   : > { %6490 = vmatmul.mubr.msk.f32.gmra.mrb[64].mxu1 %vm395_vm2, %v6939_v38  ;;  %6774 = vmatprep.subr.bf16.mxu0 %v6773_v62  ;;  %v6972_v38 = vld [vmem:[#allocation2 + $0x62] ss:$8 sps:$4 sm:$0xff]  }
  0xb2   : > { %6492 = vmatprep.mubr.msk.f32.mxu1 %vm395_vm2, %v6942_v40  ;;  %v5862_v40 = vld [vmem:[%s7946_s1 + $0x230] sm:$0xff]  ;;  %v6983_v60 = vld [vmem:[#allocation2 + $0x102] ss:$8 sps:$4 sm:$0xff]  }
  0xb3   : > { %6508 = vmatmul.mubr.msk.f32.gmra.mrb[64].mxu0 %vm395_vm2, %v6947_v41  ;;  %v6985_v41 = vld [vmem:[#allocation2 + $0xa8] ss:$8 sps:$4 sm:$0xff]   ;;  %v6785_v42 = vpack.c.bf16 %v5862_v40, %v5861_v39  ;;  %v7000_v30 = vld [vmem:[#allocation2 + $0x9a] ss:$8 sps:$4 sm:$0xff]  }
  0xb4   : > { %6510 = vmatprep.mubr.msk.f32.mxu0 %vm395_vm2, %v6950_v43  ;;  %v6973_v43 = vld [vmem:[#allocation2 + $0x72] ss:$8 sps:$4 sm:$0xff]  }
  0xb5   : > { %6493 = vmatmul.mubr.msk.f32.gmra.mrb[66].mxu1 %vm395_vm2, %v6943_v49  ;;  %v6978_v49 = vld [vmem:[#allocation2 + $0xc2] ss:$8 sps:$4 sm:$0xff]  }
  0xb6   : > { %6519 = vmatprep.mubr.msk.f32.mxu1 %vm395_vm2, %v6948_v48  ;;  %v6966_v37 = vld [vmem:[#allocation2 + $0xf0] ss:$8 sps:$4 sm:$0xff]   ;;  %v6977_v48 = vld [vmem:[#allocation2 + $0xa2] ss:$8 sps:$4 sm:$0xff]  }
  0xb7   : > { %6511 = vmatmul.mubr.msk.f32.gmra.mrb[66].mxu0 %vm395_vm2, %v6951_v46  ;;  %v5852_v46 = vld [vmem:[%s7946_s1 + $0x220] sm:$0xff]  ;;  %v6982_v54 = vld [vmem:[#allocation2 + $0xf2] ss:$8 sps:$4 sm:$0xff]  }
  0xb8   : > { %6537 = vmatprep.mubr.msk.f32.mxu0 %vm395_vm2, %v6956_v51  ;;  %v6990_v51 = vld [vmem:[#allocation2 + $0xf8] ss:$8 sps:$4 sm:$0xff]  }
  0xb9   : > { %6520 = vmatmul.mubr.msk.f32.vlgmr.msra.gmra.mrb[68].mxu1 %vm395_vm2, %v6949_v50  ;;  %v6979_v50 = vld [vmem:[#allocation2 + $0xd2] ss:$8 sps:$4 sm:$0xff]  }
  0xba   : > { %6522 = vmatprep.mubr.msk.f32.mxu1 %vm395_vm2, %v6952_v53  ;;  %6772 = vmatpush3.bf16.msra.mxu1 %v6769_v47  ;;  %v6987_v47 = vld [vmem:[#allocation2 + $0xd8] ss:$8 sps:$4 sm:$0xff]  }
  0xbb   : > { %6538 = vmatmul.mubr.msk.f32.vlgmr.msra.gmra.mrb[68].mxu0 %vm395_vm2, %v6957_v52  ;;  %6553 = vmatprep.subr.mxu1 %v5819_v56  ;;  %v284_v52 = vld [vmem:[#allocation2 + $0x114] sm:$0x1]  ;;  %v5863_v53 = vld [vmem:[%s7946_s1 + $0x238] sm:$0xff] }
  0xbc   : > { %6540 = vmatprep.mubr.msk.f32.mxu0 %vm395_vm2, %v6960_v57  ;;  %6776 = vmatpush3.bf16.msra.mxu0 %v6773_v62  ;;  %321 = vst.msk [vmem:[#allocation2 + $0x110] sm:$0x1] %vm286_vm1, %v284_v52  ;;  %v425_v57 = vld [vmem:[#allocation3 + $0x28] sm:$0xff] }
  0xbd   : > { %6523 = vmatmul.mubr.msk.f32.gmra.mrb[70].mxu1 %vm395_vm2, %v6953_v55  ;;  %6571 = vmatprep.subr.mxu0 %v5830_v7  ;;  %v421_v55 = vld [vmem:[#allocation3 + $0x8] sm:$0xff] }
  0xbe   : > { %6525 = vmatprep.mubr.msk.f32.mxu1 %vm395_vm2, %v6954_v61  ;;  %6554 = vmatpush3.msra.mxu1 %v5819_v56  ;;  %v5872_v56 = vld [vmem:[%s7946_s1 + $0x240] sm:$0xff] }
  0xbf   : > { %6541 = vmatmul.mubr.msk.f32.gmra.mrb[70].mxu0 %vm395_vm2, %v6961_v58  ;;  %6778 = vmatprep.subr.bf16.mxu1 %v6777_v12  ;;  %v420_v58 = vld [vmem:[#allocation3] sm:$0xff]  ;;  %v6789_v62 = vpack.c.bf16 %v5873_v59, %v5872_v56 }
  0xc0   : > { %6543 = vmatprep.mubr.msk.f32.mxu0 %vm395_vm2, %v6962_v63  ;;  %6572 = vmatpush3.msra.mxu0 %v5830_v7  ;;  %v424_v61 = vld [vmem:[#allocation3 + $0x20] sm:$0xff]  ;;  %v6988_v63 = vld [vmem:[#allocation2 + $0x69] ss:$8 sps:$4 sm:$0xff]   ;;  %v427_v7 = vld [vmem:[#allocation3 + $0x38] sm:$0xff] }
  0xc1   : > { %6526 = vmatmul.mubr.msk.f32.gmra.mrb[72].mxu1 %vm395_vm2, %v6955_v0  ;;  %6782 = vmatprep.subr.bf16.mxu0 %v6781_v25  ;;  %v7006_v59 = vld [vmem:[#allocation2 + $0xfa] ss:$8 sps:$4 sm:$0xff]  }
  0xc2   : > { %6528 = vmatprep.mubr.msk.f32.mxu1 %vm395_vm2, %v6958_v2  ;;  %v6989_v2 = vld [vmem:[#allocation2 + $0x79] ss:$8 sps:$4 sm:$0xff]  }
  0xc3   : > { %6544 = vmatmul.mubr.msk.f32.gmra.mrb[72].mxu0 %vm395_vm2, %v6963_v1  ;;  %v423_v1 = vld [vmem:[#allocation3 + $0x18] sm:$0xff] }
  0xc4   : > { %6546 = vmatprep.mubr.msk.f32.mxu0 %vm395_vm2, %v6966_v37 }
  0xc5   : > { %6529 = vmatmul.mubr.msk.f32.gmra.mrb[74].mxu1 %vm395_vm2, %v6959_v8  ;;  %v422_v8 = vld [vmem:[#allocation3 + $0x10] sm:$0xff] }
  0xc6   : > { %6555 = vmatprep.mubr.msk.f32.mxu1 %vm395_vm2, %v6964_v9  ;;  %v6991_v9 = vld [vmem:[#allocation2 + $0x108] ss:$8 sps:$4 sm:$0xff]  }
  0xc7   : > { %6547 = vmatmul.mubr.msk.f32.gmra.mrb[74].mxu0 %vm395_vm2, %v6967_v34 }
  0xc8   : > { %6573 = vmatprep.mubr.msk.f32.mxu0 %vm395_vm2, %v6972_v38  ;;  %v6995_v38 = vld [vmem:[#allocation2 + $0xd9] ss:$8 sps:$4 sm:$0xff]  }
  0xc9   : > { %6556 = vmatmul.mubr.msk.f32.vlgmr.msra.gmra.mrb[76].mxu1 %vm395_vm2, %v6965_v13  ;;  %v426_v13 = vld [vmem:[#allocation3 + $0x30] sm:$0xff] }
  0xca   : > { %6558 = vmatprep.mubr.msk.f32.mxu1 %vm395_vm2, %v6968_v14  ;;  %6780 = vmatpush3.bf16.msra.mxu1 %v6777_v12  ;;  %v6992_v14 = vld [vmem:[#allocation2 + $0x99] ss:$8 sps:$4 sm:$0xff]  }
  0xcb   : > { %6589 = vmatprep.subr.mxu1 %v5841_v20  ;;  %6574 = vmatmul.mubr.msk.f32.vlgmr.msra.gmra.mrb[76].mxu0 %vm395_vm2, %v6973_v43  ;;  %v7003_v43 = vld [vmem:[#allocation2 + $0xda] ss:$8 sps:$4 sm:$0xff]  }
  0xcc   : > { %6576 = vmatprep.mubr.msk.f32.mxu0 %vm395_vm2, %v6976_v45  ;;  %6784 = vmatpush3.bf16.msra.mxu0 %v6781_v25  ;;  %v5874_v25 = vld [vmem:[%s7946_s1 + $0x250] sm:$0xff] }
  0xcd   : > { %6559 = vmatmul.mubr.msk.f32.gmra.mrb[78].mxu1 %vm395_vm2, %v6969_v19  ;;  %6607 = vmatprep.subr.mxu0 %v5852_v46  ;;  %v6993_v19 = vld [vmem:[#allocation2 + $0xa9] ss:$8 sps:$4 sm:$0xff]  }
  0xce   : > { %6561 = vmatprep.mubr.msk.f32.mxu1 %vm395_vm2, %v6970_v21  ;;  %6590 = vmatpush3.msra.mxu1 %v5841_v20  ;;  %v5884_v20 = vld [vmem:[%s7946_s1 + $0x260] sm:$0xff] }
  0xcf   : > { %6786 = vmatprep.subr.bf16.mxu1 %v6785_v42  ;;  %6577 = vmatmul.mubr.msk.f32.gmra.mrb[78].mxu0 %vm395_vm2, %v6977_v48  ;;  %v6793_v26 = vpack.c.bf16 %v5884_v20, %v5883_v15 }
  0xd0   : > { %6579 = vmatprep.mubr.msk.f32.mxu0 %vm395_vm2, %v6978_v49  ;;  %6608 = vmatpush3.msra.mxu0 %v5852_v46 }
  0xd1   : > { %6562 = vmatmul.mubr.msk.f32.gmra.mrb[80].mxu1 %vm395_vm2, %v6971_v24  ;;  %6790 = vmatprep.subr.bf16.mxu0 %v6789_v62  ;;  %v6994_v24 = vld [vmem:[#allocation2 + $0xc9] ss:$8 sps:$4 sm:$0xff]  }
  0xd2   : > { %6564 = vmatprep.mubr.msk.f32.mxu1 %vm395_vm2, %v6974_v27 }
  0xd3   : > { %6580 = vmatmul.mubr.msk.f32.gmra.mrb[80].mxu0 %vm395_vm2, %v6979_v50 }
  0xd4   : > { %6582 = vmatprep.mubr.msk.f32.mxu0 %vm395_vm2, %v6982_v54 }
  0xd5   : > { %6565 = vmatmul.mubr.msk.f32.gmra.mrb[82].mxu1 %vm395_vm2, %v6975_v28 }
  0xd6   : > { %6591 = vmatprep.mubr.msk.f32.mxu1 %vm395_vm2, %v6980_v29 }
  0xd7   : > { %6583 = vmatmul.mubr.msk.f32.gmra.mrb[82].mxu0 %vm395_vm2, %v6983_v60  ;;  %v357_v60 = vld [vmem:[#allocation2 + $0x111] sm:$0x1] }
  0xd8   : > { %6609 = vmatprep.mubr.msk.f32.mxu0 %vm395_vm2, %v6988_v63  ;;  %393 = vst.msk [vmem:[#allocation2 + $0x115] sm:$0x1] %vm286_vm1, %v357_v60 }
  0xd9   : > { %6592 = vmatmul.mubr.msk.f32.vlgmr.msra.gmra.mrb[84].mxu1 %vm395_vm2, %v6981_v35  ;;  %v5885_v35 = vld [vmem:[%s7946_s1 + $0x268] sm:$0xff] }
  0xda   : > { %6594 = vmatprep.mubr.msk.f32.mxu1 %vm395_vm2, %v6984_v36  ;;  %6788 = vmatpush3.bf16.msra.mxu1 %v6785_v42 }
  0xdb   : > { %6625 = vmatprep.subr.mxu1 %v5863_v53  ;;  %6610 = vmatmul.mubr.msk.f32.vlgmr.msra.gmra.mrb[84].mxu0 %vm395_vm2, %v6989_v2  ;;  %v7005_v2 = vld [vmem:[#allocation2 + $0x80] ss:$8 sps:$4 sm:$0xff]  }
  0xdc   : > { %6612 = vmatprep.mubr.msk.f32.mxu0 %vm395_vm2, %v6992_v14  ;;  %6792 = vmatpush3.bf16.msra.mxu0 %v6789_v62 }
  0xdd   : > { %6595 = vmatmul.mubr.msk.f32.gmra.mrb[86].mxu1 %vm395_vm2, %v6985_v41  ;;  %6643 = vmatprep.subr.mxu0 %v5874_v25  ;;  %v6998_v41 = vld [vmem:[#allocation2 + $0xf9] ss:$8 sps:$4 sm:$0xff]  }
  0xde   : > { %6597 = vmatprep.mubr.msk.f32.mxu1 %vm395_vm2, %v6986_v44  ;;  %6626 = vmatpush3.msra.mxu1 %v5863_v53  ;;  %v5894_v44 = vld [vmem:[%s7946_s1 + $0x270] sm:$0xff] }
  0xdf   : > { %6794 = vmatprep.subr.bf16.mxu1 %v6793_v26  ;;  %6613 = vmatmul.mubr.msk.f32.gmra.mrb[86].mxu0 %vm395_vm2, %v6993_v19  ;;  %v7010_v19 = vld [vmem:[#allocation2 + $0xd0] ss:$8 sps:$4 sm:$0xff]  }
  0xe0   : > { %6615 = vmatprep.mubr.msk.f32.mxu0 %vm395_vm2, %v6994_v24  ;;  %6644 = vmatpush3.msra.mxu0 %v5874_v25 }
  0xe1   : > { %6598 = vmatmul.mubr.msk.f32.gmra.mrb[88].mxu1 %vm395_vm2, %v6987_v47  ;;  %v6999_v47 = vld [vmem:[#allocation2 + $0x109] ss:$8 sps:$4 sm:$0xff]  }
  0xe2   : > { %6600 = vmatprep.mubr.msk.f32.mxu1 %vm395_vm2, %v6990_v51  ;;  %v5895_v51 = vld [vmem:[%s7946_s1 + $0x278] sm:$0xff] }
  0xe3   : > { %6616 = vmatmul.mubr.msk.f32.gmra.mrb[88].mxu0 %vm395_vm2, %v6995_v38  ;;  %v6797_v56 = vpack.c.bf16 %v5895_v51, %v5894_v44 }
  0xe4   : > { %6618 = vmatprep.mubr.msk.f32.mxu0 %vm395_vm2, %v6998_v41 }
  0xe5   : > { %6601 = vmatmul.mubr.msk.f32.gmra.mrb[90].mxu1 %vm395_vm2, %v6991_v9  ;;  %6798 = vmatprep.subr.bf16.mxu0 %v6797_v56 }
  0xe6   : > { %6627 = vmatprep.mubr.msk.f32.mxu1 %vm395_vm2, %v6996_v3 }
  0xe7   : > { %6619 = vmatmul.mubr.msk.f32.gmra.mrb[90].mxu0 %vm395_vm2, %v6999_v47 }
  0xe9   : > { %6628 = vmatmul.mubr.msk.f32.vlgmr.msra.gmra.mrb[92].mxu1 %vm395_vm2, %v6997_v17 }
  0xea   : > { %6630 = vmatprep.mubr.msk.f32.mxu1 %vm395_vm2, %v7000_v30  ;;  %6796 = vmatpush3.bf16.msra.mxu1 %v6793_v26 }
  0xeb   : > { %6661 = vmatprep.subr.mxu1 %v5885_v35 }
  0xed   : > { %6631 = vmatmul.mubr.msk.f32.gmra.mrb[94].mxu1 %vm395_vm2, %v7001_v32  ;;  %v7013_v32 = vld [vmem:[#allocation2 + $0x81] ss:$8 sps:$4 sm:$0xff]  }
  0xee   : > { %6633 = vmatprep.mubr.msk.f32.mxu1 %vm395_vm2, %v7002_v33  ;;  %6662 = vmatpush3.msra.mxu1 %v5885_v35  ;;  %v7014_v35 = vld [vmem:[#allocation2 + $0x100] ss:$8 sps:$4 sm:$0xff]  }
  0xf1   : > { %6634 = vmatmul.mubr.msk.f32.gmra.mrb[96].mxu1 %vm395_vm2, %v7003_v43 }
  0xf2   : > { %6636 = vmatprep.mubr.msk.f32.mxu1 %vm395_vm2, %v7006_v59  ;;  %v7018_v59 = vld [vmem:[#allocation2 + $0xd1] ss:$8 sps:$4 sm:$0xff]  }
 0x102   : > { %v6215_v0 = vpop.f32.mrb[0].mxu0 }
 0x103   : > { %v577_v4 = vadd.f32 %v6215_v0, %v421_v55  ;;  %v6221_v5 = vpop.f32.mrb[0].mxu1  ;;  %v537_v6 = vpop.f32.mrb[1].mxu0  ;;  %v7004_v55 = vld [vmem:[#allocation2 + $0x70] ss:$8 sps:$4 sm:$0xff]  }
 0x104   : > { %v581_v10 = vadd.f32 %v6221_v5, %v425_v57  ;;  %v576_v11 = vadd.f32 %v537_v6, %v420_v58  ;;  %v557_v12 = vpop.f32.mrb[1].mxu1  ;;  %6645 = vmatprep.mubr.msk.f32.mxu0 %vm395_vm2, %v7004_v55  ;;  %v7008_v5 = vld [vmem:[#allocation2 + $0xa0] ss:$8 sps:$4 sm:$0xff]  }
 0x105   : > { %585 = vst.msk [vmem:[#allocation3 + $0x8] sm:$0xff] %vm395_vm2, %v577_v4  ;;  %v580_v16 = vadd.f32 %v557_v12, %v424_v61  ;;  %v7009_v12 = vld [vmem:[#allocation2 + $0xb0] ss:$8 sps:$4 sm:$0xff]   ;;  %6646 = vmatmul.mubr.msk.f32.vlgmr.msra.gmra.mrb[92].mxu0 %vm395_vm2, %v7005_v2 }
 0x106   : > { %589 = vst.msk [vmem:[#allocation3 + $0x28] sm:$0xff] %vm395_vm2, %v581_v10  ;;  %584 = vst.msk [vmem:[#allocation3] sm:$0xff] %vm395_vm2, %v576_v11  ;;  %v6218_v18 = vpop.f32.mrb[2].mxu0  ;;  %6648 = vmatprep.mubr.msk.f32.mxu0 %vm395_vm2, %v7008_v5  ;;  %6800 = vmatpush3.bf16.msra.mxu0 %v6797_v56 }
 0x107   : > { %588 = vst.msk [vmem:[#allocation3 + $0x20] sm:$0xff] %vm395_vm2, %v580_v16  ;;  %v579_v21 = vadd.f32 %v6218_v18, %v423_v1  ;;  %v6224_v22 = vpop.f32.mrb[2].mxu1  ;;  %v547_v23 = vpop.f32.mrb[3].mxu0 }
 0x108   : > { %v583_v27 = vadd.f32 %v6224_v22, %v427_v7  ;;  %v578_v28 = vadd.f32 %v547_v23, %v422_v8  ;;  %v567_v29 = vpop.f32.mrb[3].mxu1  ;;  %v7011_v22 = vld [vmem:[#allocation2 + $0xe0] ss:$8 sps:$4 sm:$0xff]  }
 0x109   : > { %587 = vst.msk [vmem:[#allocation3 + $0x18] sm:$0xff] %vm395_vm2, %v579_v21  ;;  %v582_v31 = vadd.f32 %v567_v29, %v426_v13  ;;  %v5896_v13 = vld [vmem:[%s7946_s1 + $0x280] sm:$0xff]  ;;  %v7007_v21 = vld [vmem:[#allocation2 + $0x10a] ss:$8 sps:$4 sm:$0xff]   ;;  %6649 = vmatmul.mubr.msk.f32.gmra.mrb[94].mxu0 %vm395_vm2, %v7009_v12 }
 0x10a   : > { %591 = vst.msk [vmem:[#allocation3 + $0x38] sm:$0xff] %vm395_vm2, %v583_v27  ;;  %586 = vst.msk [vmem:[#allocation3 + $0x10] sm:$0xff] %vm395_vm2, %v578_v28  ;;  %6679 = vmatprep.subr.mxu0 %v5896_v13  ;;  %v7012_v27 = vld [vmem:[#allocation2 + $0x71] ss:$8 sps:$4 sm:$0xff]   ;;  %6637 = vmatmul.mubr.msk.f32.gmra.mrb[98].mxu1 %vm395_vm2, %v7007_v21 }
 0x10b   : > { %590 = vst.msk [vmem:[#allocation3 + $0x30] sm:$0xff] %vm395_vm2, %v582_v31  ;;  %v6233_v34 = vpop.f32.mrb[4].mxu1  ;;  %6651 = vmatprep.mubr.msk.f32.mxu0 %vm395_vm2, %v7010_v19  ;;  %6663 = vmatprep.mubr.msk.f32.mxu1 %vm395_vm2, %v7012_v27  ;;  %v7021_v27 = vld [vmem:[#allocation2 + $0x82] ss:$8 sps:$4 sm:$0xff]  }
 0x10c   : > { %v609_v36 = vld [vmem:[#allocation3 + $0x8] sm:$0xff]  ;;  %v726_v37 = vpop.f32.mrb[5].mxu1  ;;  %6680 = vmatpush3.msra.mxu0 %v5896_v13 }
 0x10d   : > { %v766_v39 = vadd.f32 %v6233_v34, %v609_v36  ;;  %v608_v40 = vld [vmem:[#allocation3] sm:$0xff]  ;;  %v6251_v46 = vpop.f32.mrb[4].mxu0  ;;  %v613_v54 = vld [vmem:[#allocation3 + $0x28] sm:$0xff]  ;;  %6652 = vmatmul.mubr.msk.f32.gmra.mrb[96].mxu0 %vm395_vm2, %v7011_v22 }
 0x10e   : > { %v765_v42 = vadd.f32 %v726_v37, %v608_v40  ;;  %v915_v50 = vpop.f32.mrb[5].mxu0  ;;  %v612_v58 = vld [vmem:[#allocation3 + $0x20] sm:$0xff]  ;;  %6664 = vmatmul.mubr.msk.f32.vlgmr.msra.gmra.mrb[100].mxu1 %vm395_vm2, %v7013_v32  ;;  %6654 = vmatprep.mubr.msk.f32.mxu0 %vm395_vm2, %v7014_v35 }
 0x10f   : > { %774 = vst.msk [vmem:[#allocation3 + $0x8] sm:$0xff] %vm395_vm2, %v766_v39  ;;  %v6236_v45 = vpop.f32.mrb[6].mxu1  ;;  %v242_v39 = vld [vmem:[#allocation2 + $0xf9] sm:$0xf] }
 0x110   : > { %773 = vst.msk [vmem:[#allocation3] sm:$0xff] %vm395_vm2, %v765_v42  ;;  %v611_v48 = vld [vmem:[#allocation3 + $0x18] sm:$0xff]  ;;  %v736_v49 = vpop.f32.mrb[7].mxu1 }
 0x111   : > { %v768_v52 = vadd.f32 %v6236_v45, %v611_v48  ;;  %v610_v53 = vld [vmem:[#allocation3 + $0x10] sm:$0xff]  ;;  %v615_v4 = vld [vmem:[#allocation3 + $0x38] sm:$0xff]  ;;  %249 = vst.msk [vmem:[#allocation2 + $0x119] sm:$0xf] %vm188_vm0, %v242_v39 }
 0x112   : > { %v767_v57 = vadd.f32 %v736_v49, %v610_v53  ;;  %v6254_v62 = vpop.f32.mrb[6].mxu0  ;;  %v614_v7 = vld [vmem:[#allocation3 + $0x30] sm:$0xff]  ;;  %v7016_v49 = vld [vmem:[#allocation2 + $0xa1] ss:$8 sps:$4 sm:$0xff]  }
 0x113   : > { %776 = vst.msk [vmem:[#allocation3 + $0x18] sm:$0xff] %vm395_vm2, %v768_v52  ;;  %v6239_v61 = vpop.f32.mrb[8].mxu1  ;;  %v925_v1 = vpop.f32.mrb[7].mxu0  ;;  %v7017_v52 = vld [vmem:[#allocation2 + $0xb1] ss:$8 sps:$4 sm:$0xff]   ;;  %6666 = vmatprep.mubr.msk.f32.mxu1 %vm395_vm2, %v7016_v49 }
 0x114   : > { %775 = vst.msk [vmem:[#allocation3 + $0x10] sm:$0xff] %vm395_vm2, %v767_v57  ;;  %v770_v63 = vadd.f32 %v6239_v61, %v613_v54  ;;  %v746_v0 = vpop.f32.mrb[9].mxu1  ;;  %6667 = vmatmul.mubr.msk.f32.gmra.mrb[102].mxu1 %vm395_vm2, %v7017_v52  ;;  %v7019_v61 = vld [vmem:[#allocation2 + $0xe1] ss:$8 sps:$4 sm:$0xff]  }
 0x115   : > { %v769_v3 = vadd.f32 %v746_v0, %v612_v58  ;;  %6669 = vmatprep.mubr.msk.f32.mxu1 %vm395_vm2, %v7018_v59 }
 0x116   : > { %778 = vst.msk [vmem:[#allocation3 + $0x28] sm:$0xff] %vm395_vm2, %v770_v63  ;;  %v798_v6 = vld [vmem:[#allocation3 + $0x8] sm:$0xff]  ;;  %v6257_v11 = vpop.f32.mrb[8].mxu0 }
 0x117   : > { %777 = vst.msk [vmem:[#allocation3 + $0x20] sm:$0xff] %vm395_vm2, %v769_v3  ;;  %v955_v8 = vadd.f32 %v6251_v46, %v798_v6  ;;  %v797_v9 = vld [vmem:[#allocation3] sm:$0xff]  ;;  %v6242_v10 = vpop.f32.mrb[10].mxu1  ;;  %v935_v17 = vpop.f32.mrb[9].mxu0 }
 0x118   : > { %v954_v14 = vadd.f32 %v915_v50, %v797_v9  ;;  %v772_v15 = vadd.f32 %v6242_v10, %v615_v4  ;;  %v756_v16 = vpop.f32.mrb[11].mxu1  ;;  %v285_v63 = vld [vmem:[#allocation2 + $0x11c] sm:$0x1]  ;;  %6670 = vmatmul.mubr.msk.f32.gmra.mrb[104].mxu1 %vm395_vm2, %v7019_v61 }
 0x119   : > { %963 = vst.msk [vmem:[#allocation3 + $0x8] sm:$0xff] %vm395_vm2, %v955_v8  ;;  %v771_v18 = vadd.f32 %v756_v16, %v614_v7  ;;  %v7023_v22 = vld [vmem:[#allocation2 + $0x111] ss:$8 sps:$4 sm:$0xff]  }
 0x11a   : > { %962 = vst.msk [vmem:[#allocation3] sm:$0xff] %vm395_vm2, %v954_v14  ;;  %780 = vst.msk [vmem:[#allocation3 + $0x38] sm:$0xff] %vm395_vm2, %v772_v15  ;;  %v800_v20 = vld [vmem:[#allocation3 + $0x18] sm:$0xff]  ;;  %v6260_v26 = vpop.f32.mrb[10].mxu0 }
 0x11b   : > { %779 = vst.msk [vmem:[#allocation3 + $0x30] sm:$0xff] %vm395_vm2, %v771_v18  ;;  %v957_v23 = vadd.f32 %v6254_v62, %v800_v20  ;;  %v799_v24 = vld [vmem:[#allocation3 + $0x10] sm:$0xff]  ;;  %v6269_v25 = vpop.f32.mrb[12].mxu1  ;;  %v945_v30 = vpop.f32.mrb[11].mxu0 }
 0x11c   : > { %v956_v28 = vadd.f32 %v925_v1, %v799_v24  ;;  %v1104_v29 = vpop.f32.mrb[13].mxu1  ;;  %322 = vst.msk [vmem:[#allocation2 + $0x118] sm:$0x1] %vm286_vm1, %v285_v63  ;;  %v7020_v15 = vld [vmem:[#allocation2 + $0x72] ss:$8 sps:$4 sm:$0xff]  }
 0x11d   : > { %965 = vst.msk [vmem:[#allocation3 + $0x18] sm:$0xff] %vm395_vm2, %v957_v23  ;;  %v802_v31 = vld [vmem:[#allocation3 + $0x28] sm:$0xff] }
 0x11e   : > { %964 = vst.msk [vmem:[#allocation3 + $0x10] sm:$0xff] %vm395_vm2, %v956_v28  ;;  %v959_v33 = vadd.f32 %v6257_v11, %v802_v31  ;;  %v801_v34 = vld [vmem:[#allocation3 + $0x20] sm:$0xff]  ;;  %v6287_v38 = vpop.f32.mrb[12].mxu0 }
 0x11f   : > { %v958_v36 = vadd.f32 %v935_v17, %v801_v34  ;;  %v6272_v37 = vpop.f32.mrb[14].mxu1  ;;  %v1293_v42 = vpop.f32.mrb[13].mxu0  ;;  %v7022_v17 = vld [vmem:[#allocation2 + $0x101] ss:$8 sps:$4 sm:$0xff]  }
 0x120   : > { %967 = vst.msk [vmem:[#allocation3 + $0x28] sm:$0xff] %vm395_vm2, %v959_v33  ;;  %v987_v40 = vld [vmem:[#allocation3 + $0x8] sm:$0xff]  ;;  %v1114_v41 = vpop.f32.mrb[15].mxu1  ;;  %6672 = vmatprep.mubr.msk.f32.mxu1 %vm395_vm2, %v7022_v17 }
 0x121   : > { %966 = vst.msk [vmem:[#allocation3 + $0x20] sm:$0xff] %vm395_vm2, %v958_v36  ;;  %v1144_v43 = vadd.f32 %v6269_v25, %v987_v40  ;;  %v986_v44 = vld [vmem:[#allocation3] sm:$0xff]  ;;  %v804_v45 = vld [vmem:[#allocation3 + $0x38] sm:$0xff]  ;;  %6673 = vmatmul.mubr.msk.f32.gmra.mrb[106].mxu1 %vm395_vm2, %v7023_v22 }
 0x122   : > { %v1143_v46 = vadd.f32 %v1104_v29, %v986_v44  ;;  %v961_v47 = vadd.f32 %v6260_v26, %v804_v45  ;;  %v803_v48 = vld [vmem:[#allocation3 + $0x30] sm:$0xff]  ;;  %v6290_v53 = vpop.f32.mrb[14].mxu0  ;;  %v7024_v29 = vld [vmem:[#allocation2 + $0xa2] ss:$8 sps:$4 sm:$0xff]  }
 0x123   : > { %1152 = vst.msk [vmem:[#allocation3 + $0x8] sm:$0xff] %vm395_vm2, %v1144_v43  ;;  %v960_v50 = vadd.f32 %v945_v30, %v803_v48  ;;  %v6275_v51 = vpop.f32.mrb[16].mxu1  ;;  %v1303_v56 = vpop.f32.mrb[15].mxu0  ;;  %v7015_v23 = vld [vmem:[#allocation2 + $0x110] ss:$8 sps:$4 sm:$0xff]  }
 0x124   : > { %1151 = vst.msk [vmem:[#allocation3] sm:$0xff] %vm395_vm2, %v1143_v46  ;;  %969 = vst.msk [vmem:[#allocation3 + $0x38] sm:$0xff] %vm395_vm2, %v961_v47  ;;  %v989_v54 = vld [vmem:[#allocation3 + $0x18] sm:$0xff]  ;;  %v1124_v55 = vpop.f32.mrb[17].mxu1  ;;  %6655 = vmatmul.mubr.msk.f32.gmra.mrb[98].mxu0 %vm395_vm2, %v7015_v23 }
 0x125   : > { %968 = vst.msk [vmem:[#allocation3 + $0x30] sm:$0xff] %vm395_vm2, %v960_v50  ;;  %v1146_v57 = vadd.f32 %v6272_v37, %v989_v54  ;;  %v988_v58 = vld [vmem:[#allocation3 + $0x10] sm:$0xff]  ;;  %6681 = vmatprep.mubr.msk.f32.mxu0 %vm395_vm2, %v7020_v15  ;;  %v358_v46 = vld [vmem:[#allocation2 + $0x119] sm:$0x1]  ;;  %v7028_v54 = vld [vmem:[#allocation2 + $0x102] ss:$8 sps:$4 sm:$0xff]  }
 0x126   : > { %v1145_v60 = vadd.f32 %v1114_v41, %v988_v58  ;;  %v6293_v1 = vpop.f32.mrb[16].mxu0  ;;  %v7025_v36 = vld [vmem:[#allocation2 + $0xb2] ss:$8 sps:$4 sm:$0xff]   ;;  %394 = vst.msk [vmem:[#allocation2 + $0x11d] sm:$0x1] %vm286_vm1, %v358_v46 }
 0x127   : > { %1154 = vst.msk [vmem:[#allocation3 + $0x18] sm:$0xff] %vm395_vm2, %v1146_v57  ;;  %v991_v62 = vld [vmem:[#allocation3 + $0x28] sm:$0xff]  ;;  %v6278_v0 = vpop.f32.mrb[18].mxu1  ;;  %v1313_v6 = vpop.f32.mrb[17].mxu0  ;;  %v7026_v44 = vld [vmem:[#allocation2 + $0xd2] ss:$8 sps:$4 sm:$0xff]  }
 0x128   : > { %1153 = vst.msk [vmem:[#allocation3 + $0x10] sm:$0xff] %vm395_vm2, %v1145_v60  ;;  %v1148_v2 = vadd.f32 %v6275_v51, %v991_v62  ;;  %v990_v3 = vld [vmem:[#allocation3 + $0x20] sm:$0xff]  ;;  %v1134_v4 = vpop.f32.mrb[19].mxu1  ;;  %6682 = vmatmul.mubr.msk.f32.vlgmr.msra.gmra.mrb[100].mxu0 %vm395_vm2, %v7021_v27 }
 0x129   : > { %v1147_v5 = vadd.f32 %v1124_v55, %v990_v3  ;;  %6684 = vmatprep.mubr.msk.f32.mxu0 %vm395_vm2, %v7024_v29  ;;  %v7027_v51 = vld [vmem:[#allocation2 + $0xe2] ss:$8 sps:$4 sm:$0xff]  }
 0x12a   : > { %1156 = vst.msk [vmem:[#allocation3 + $0x28] sm:$0xff] %vm395_vm2, %v1148_v2  ;;  %v1176_v7 = vld [vmem:[#allocation3 + $0x8] sm:$0xff]  ;;  %v6296_v11 = vpop.f32.mrb[18].mxu0 }
 0x12b   : > { %1155 = vst.msk [vmem:[#allocation3 + $0x20] sm:$0xff] %vm395_vm2, %v1147_v5  ;;  %v1333_v8 = vadd.f32 %v6287_v38, %v1176_v7  ;;  %v1175_v9 = vld [vmem:[#allocation3] sm:$0xff]  ;;  %v993_v10 = vld [vmem:[#allocation3 + $0x38] sm:$0xff]  ;;  %v6305_v16 = vpop.f32.mrb[20].mxu1  ;;  %v1323_v20 = vpop.f32.mrb[19].mxu0 }
 0x12c   : > { %v1332_v12 = vadd.f32 %v1293_v42, %v1175_v9  ;;  %v1150_v13 = vadd.f32 %v6278_v0, %v993_v10  ;;  %v992_v14 = vld [vmem:[#allocation3 + $0x30] sm:$0xff]  ;;  %v1482_v19 = vpop.f32.mrb[21].mxu1  ;;  %6685 = vmatmul.mubr.msk.f32.gmra.mrb[102].mxu0 %vm395_vm2, %v7025_v36 }
 0x12d   : > { %1341 = vst.msk [vmem:[#allocation3 + $0x8] sm:$0xff] %vm395_vm2, %v1333_v8  ;;  %v1149_v18 = vadd.f32 %v1134_v4, %v992_v14  ;;  %6687 = vmatprep.mubr.msk.f32.mxu0 %vm395_vm2, %v7026_v44  ;;  %v7029_v0 = vld [vmem:[#allocation2 + $0x112] ss:$8 sps:$4 sm:$0xff]  }
 0x12e   : > { %1340 = vst.msk [vmem:[#allocation3] sm:$0xff] %vm395_vm2, %v1332_v12  ;;  %1158 = vst.msk [vmem:[#allocation3 + $0x38] sm:$0xff] %vm395_vm2, %v1150_v13  ;;  %v1178_v21 = vld [vmem:[#allocation3 + $0x18] sm:$0xff]  ;;  %v6323_v60 = vpop.f32.mrb[20].mxu0 }
 0x12f   : > { %1157 = vst.msk [vmem:[#allocation3 + $0x30] sm:$0xff] %vm395_vm2, %v1149_v18  ;;  %v1335_v24 = vadd.f32 %v6290_v53, %v1178_v21  ;;  %v1177_v25 = vld [vmem:[#allocation3 + $0x10] sm:$0xff]  ;;  %v6308_v30 = vpop.f32.mrb[22].mxu1  ;;  %v1672_v63 = vpop.f32.mrb[21].mxu0 }
 0x130   : > { %v1334_v26 = vadd.f32 %v1303_v56, %v1177_v25  ;;  %v1492_v33 = vpop.f32.mrb[23].mxu1  ;;  %6688 = vmatmul.mubr.msk.f32.gmra.mrb[104].mxu0 %vm395_vm2, %v7027_v51 }
 0x131   : > { %1343 = vst.msk [vmem:[#allocation3 + $0x18] sm:$0xff] %vm395_vm2, %v1335_v24  ;;  %v1180_v28 = vld [vmem:[#allocation3 + $0x28] sm:$0xff]  ;;  %6690 = vmatprep.mubr.msk.f32.mxu0 %vm395_vm2, %v7028_v54 }
 0x132   : > { %1342 = vst.msk [vmem:[#allocation3 + $0x10] sm:$0xff] %vm395_vm2, %v1334_v26  ;;  %v1337_v31 = vadd.f32 %v6293_v1, %v1180_v28  ;;  %v1179_v32 = vld [vmem:[#allocation3 + $0x20] sm:$0xff]  ;;  %v6326_v9 = vpop.f32.mrb[22].mxu0 }
 0x133   : > { %v1336_v34 = vadd.f32 %v1313_v6, %v1179_v32  ;;  %v6311_v40 = vpop.f32.mrb[24].mxu1  ;;  %v1682_v12 = vpop.f32.mrb[23].mxu0 }
 0x134   : > { %1345 = vst.msk [vmem:[#allocation3 + $0x28] sm:$0xff] %vm395_vm2, %v1337_v31  ;;  %v1365_v35 = vld [vmem:[#allocation3 + $0x8] sm:$0xff]  ;;  %v1502_v45 = vpop.f32.mrb[25].mxu1  ;;  %6691 = vmatmul.mubr.msk.f32.gmra.mrb[106].mxu0 %vm395_vm2, %v7029_v0 }
 0x135   : > { %1344 = vst.msk [vmem:[#allocation3 + $0x20] sm:$0xff] %vm395_vm2, %v1336_v34  ;;  %v1522_v37 = vadd.f32 %v6305_v16, %v1365_v35  ;;  %v1364_v38 = vld [vmem:[#allocation3] sm:$0xff]  ;;  %v1182_v39 = vld [vmem:[#allocation3 + $0x38] sm:$0xff] }
 0x136   : > { %v1521_v41 = vadd.f32 %v1482_v19, %v1364_v38  ;;  %v1339_v42 = vadd.f32 %v6296_v11, %v1182_v39  ;;  %v1181_v43 = vld [vmem:[#allocation3 + $0x30] sm:$0xff]  ;;  %v6329_v18 = vpop.f32.mrb[24].mxu0 }
 0x137   : > { %1530 = vst.msk [vmem:[#allocation3 + $0x8] sm:$0xff] %vm395_vm2, %v1522_v37  ;;  %v1338_v47 = vadd.f32 %v1323_v20, %v1181_v43  ;;  %v6314_v52 = vpop.f32.mrb[26].mxu1  ;;  %v1692_v22 = vpop.f32.mrb[25].mxu0 }
 0x138   : > { %1529 = vst.msk [vmem:[#allocation3] sm:$0xff] %vm395_vm2, %v1521_v41  ;;  %1347 = vst.msk [vmem:[#allocation3 + $0x38] sm:$0xff] %vm395_vm2, %v1339_v42  ;;  %v1367_v48 = vld [vmem:[#allocation3 + $0x18] sm:$0xff]  ;;  %v1512_v55 = vpop.f32.mrb[27].mxu1 }
 0x139   : > { %1346 = vst.msk [vmem:[#allocation3 + $0x30] sm:$0xff] %vm395_vm2, %v1338_v47  ;;  %v1524_v49 = vadd.f32 %v6308_v30, %v1367_v48  ;;  %v1366_v50 = vld [vmem:[#allocation3 + $0x10] sm:$0xff] }
 0x13a   : > { %v1523_v53 = vadd.f32 %v1492_v33, %v1366_v50  ;;  %v6332_v29 = vpop.f32.mrb[26].mxu0 }
 0x13b   : > { %1532 = vst.msk [vmem:[#allocation3 + $0x18] sm:$0xff] %vm395_vm2, %v1524_v49  ;;  %v1369_v56 = vld [vmem:[#allocation3 + $0x28] sm:$0xff]  ;;  %v6341_v61 = vpop.f32.mrb[28].mxu1  ;;  %v1702_v34 = vpop.f32.mrb[27].mxu0 }
 0x13c   : > { %1531 = vst.msk [vmem:[#allocation3 + $0x10] sm:$0xff] %vm395_vm2, %v1523_v53  ;;  %v1526_v57 = vadd.f32 %v6311_v40, %v1369_v56  ;;  %v1368_v58 = vld [vmem:[#allocation3 + $0x20] sm:$0xff]  ;;  %v1861_v4 = vpop.f32.mrb[29].mxu1 }
 0x13d   : > { %v1525_v59 = vadd.f32 %v1502_v45, %v1368_v58 }
 0x13e   : > { %1534 = vst.msk [vmem:[#allocation3 + $0x28] sm:$0xff] %vm395_vm2, %v1526_v57  ;;  %v1555_v62 = vld [vmem:[#allocation3 + $0x8] sm:$0xff]  ;;  %v6359_v40 = vpop.f32.mrb[28].mxu0 }
 0x13f   : > { %1533 = vst.msk [vmem:[#allocation3 + $0x20] sm:$0xff] %vm395_vm2, %v1525_v59  ;;  %v1712_v1 = vadd.f32 %v6323_v60, %v1555_v62  ;;  %v1554_v2 = vld [vmem:[#allocation3] sm:$0xff]  ;;  %v1371_v3 = vld [vmem:[#allocation3 + $0x38] sm:$0xff]  ;;  %v6344_v10 = vpop.f32.mrb[30].mxu1  ;;  %v2050_v43 = vpop.f32.mrb[29].mxu0 }
 0x140   : > { %v1711_v5 = vadd.f32 %v1672_v63, %v1554_v2  ;;  %v1528_v6 = vadd.f32 %v6314_v52, %v1371_v3  ;;  %v1370_v7 = vld [vmem:[#allocation3 + $0x30] sm:$0xff]  ;;  %v1871_v13 = vpop.f32.mrb[31].mxu1 }
 0x141   : > { %1720 = vst.msk [vmem:[#allocation3 + $0x8] sm:$0xff] %vm395_vm2, %v1712_v1  ;;  %v1527_v8 = vadd.f32 %v1512_v55, %v1370_v7 }
 0x142   : > { %1719 = vst.msk [vmem:[#allocation3] sm:$0xff] %vm395_vm2, %v1711_v5  ;;  %1536 = vst.msk [vmem:[#allocation3 + $0x38] sm:$0xff] %vm395_vm2, %v1528_v6  ;;  %v1557_v11 = vld [vmem:[#allocation3 + $0x18] sm:$0xff]  ;;  %v6362_v49 = vpop.f32.mrb[30].mxu0 }
 0x143   : > { %1535 = vst.msk [vmem:[#allocation3 + $0x30] sm:$0xff] %vm395_vm2, %v1527_v8  ;;  %v1714_v14 = vadd.f32 %v6326_v9, %v1557_v11  ;;  %v1556_v15 = vld [vmem:[#allocation3 + $0x10] sm:$0xff]  ;;  %v6347_v19 = vpop.f32.mrb[32].mxu1  ;;  %v2060_v52 = vpop.f32.mrb[31].mxu0 }
 0x144   : > { %v1713_v16 = vadd.f32 %v1682_v12, %v1556_v15  ;;  %v1881_v23 = vpop.f32.mrb[33].mxu1 }
 0x145   : > { %1722 = vst.msk [vmem:[#allocation3 + $0x18] sm:$0xff] %vm395_vm2, %v1714_v14  ;;  %v1559_v17 = vld [vmem:[#allocation3 + $0x28] sm:$0xff] }
 0x146   : > { %1721 = vst.msk [vmem:[#allocation3 + $0x10] sm:$0xff] %vm395_vm2, %v1713_v16  ;;  %v1716_v20 = vadd.f32 %v6329_v18, %v1559_v17  ;;  %v1558_v21 = vld [vmem:[#allocation3 + $0x20] sm:$0xff] }
 0x147   : > { %v1715_v24 = vadd.f32 %v1692_v22, %v1558_v21  ;;  %v6350_v30 = vpop.f32.mrb[34].mxu1 }
 0x148   : > { %1724 = vst.msk [vmem:[#allocation3 + $0x28] sm:$0xff] %vm395_vm2, %v1716_v20  ;;  %v1744_v25 = vld [vmem:[#allocation3 + $0x8] sm:$0xff]  ;;  %v1891_v35 = vpop.f32.mrb[35].mxu1 }
 0x149   : > { %1723 = vst.msk [vmem:[#allocation3 + $0x20] sm:$0xff] %vm395_vm2, %v1715_v24  ;;  %v1901_v26 = vadd.f32 %v6341_v61, %v1744_v25  ;;  %v1743_v27 = vld [vmem:[#allocation3] sm:$0xff]  ;;  %v1561_v28 = vld [vmem:[#allocation3 + $0x38] sm:$0xff]  ;;  %v6365_v61 = vpop.f32.mrb[32].mxu0 }
 0x14a   : > { %v1900_v31 = vadd.f32 %v1861_v4, %v1743_v27  ;;  %v1718_v32 = vadd.f32 %v6332_v29, %v1561_v28  ;;  %v1560_v33 = vld [vmem:[#allocation3 + $0x30] sm:$0xff]  ;;  %v2070_v0 = vpop.f32.mrb[33].mxu0 }
 0x14b   : > { %1909 = vst.msk [vmem:[#allocation3 + $0x8] sm:$0xff] %vm395_vm2, %v1901_v26  ;;  %v1717_v36 = vadd.f32 %v1702_v34, %v1560_v33  ;;  %v6377_v41 = vpop.f32.mrb[36].mxu1  ;;  %v6368_v6 = vpop.f32.mrb[34].mxu0 }
 0x14c   : > { %1908 = vst.msk [vmem:[#allocation3] sm:$0xff] %vm395_vm2, %v1900_v31  ;;  %1726 = vst.msk [vmem:[#allocation3 + $0x38] sm:$0xff] %vm395_vm2, %v1718_v32  ;;  %v1746_v37 = vld [vmem:[#allocation3 + $0x18] sm:$0xff]  ;;  %v2240_v44 = vpop.f32.mrb[37].mxu1  ;;  %v2080_v9 = vpop.f32.mrb[35].mxu0 }
 0x14d   : > { %1725 = vst.msk [vmem:[#allocation3 + $0x30] sm:$0xff] %vm395_vm2, %v1717_v36  ;;  %v1903_v38 = vadd.f32 %v6344_v10, %v1746_v37  ;;  %v1745_v39 = vld [vmem:[#allocation3 + $0x10] sm:$0xff] }
 0x14e   : > { %v1902_v42 = vadd.f32 %v1871_v13, %v1745_v39  ;;  %v6395_v15 = vpop.f32.mrb[36].mxu0 }
 0x14f   : > { %1911 = vst.msk [vmem:[#allocation3 + $0x18] sm:$0xff] %vm395_vm2, %v1903_v38  ;;  %v1748_v45 = vld [vmem:[#allocation3 + $0x28] sm:$0xff]  ;;  %v6380_v50 = vpop.f32.mrb[38].mxu1 }
 0x150   : > { %1910 = vst.msk [vmem:[#allocation3 + $0x10] sm:$0xff] %vm395_vm2, %v1902_v42  ;;  %v1905_v46 = vadd.f32 %v6347_v19, %v1748_v45  ;;  %v1747_v47 = vld [vmem:[#allocation3 + $0x20] sm:$0xff]  ;;  %v2250_v53 = vpop.f32.mrb[39].mxu1  ;;  %v2429_v19 = vpop.f32.mrb[37].mxu0 }
 0x151   : > { %v1904_v48 = vadd.f32 %v1881_v23, %v1747_v47 }
 0x152   : > { %1913 = vst.msk [vmem:[#allocation3 + $0x28] sm:$0xff] %vm395_vm2, %v1905_v46  ;;  %v1933_v51 = vld [vmem:[#allocation3 + $0x8] sm:$0xff]  ;;  %v6398_v24 = vpop.f32.mrb[38].mxu0 }
 0x153   : > { %1912 = vst.msk [vmem:[#allocation3 + $0x20] sm:$0xff] %vm395_vm2, %v1904_v48  ;;  %v2090_v54 = vadd.f32 %v6359_v40, %v1933_v51  ;;  %v1932_v55 = vld [vmem:[#allocation3] sm:$0xff]  ;;  %v1750_v56 = vld [vmem:[#allocation3 + $0x38] sm:$0xff]  ;;  %v6383_v62 = vpop.f32.mrb[40].mxu1  ;;  %v2439_v26 = vpop.f32.mrb[39].mxu0 }
 0x154   : > { %v2089_v57 = vadd.f32 %v2050_v43, %v1932_v55  ;;  %v1907_v58 = vadd.f32 %v6350_v30, %v1750_v56  ;;  %v1749_v59 = vld [vmem:[#allocation3 + $0x30] sm:$0xff]  ;;  %v2260_v1 = vpop.f32.mrb[41].mxu1 }
 0x155   : > { %2098 = vst.msk [vmem:[#allocation3 + $0x8] sm:$0xff] %vm395_vm2, %v2090_v54  ;;  %v1906_v60 = vadd.f32 %v1891_v35, %v1749_v59 }
 0x156   : > { %2097 = vst.msk [vmem:[#allocation3] sm:$0xff] %vm395_vm2, %v2089_v57  ;;  %1915 = vst.msk [vmem:[#allocation3 + $0x38] sm:$0xff] %vm395_vm2, %v1907_v58  ;;  %v1935_v63 = vld [vmem:[#allocation3 + $0x18] sm:$0xff]  ;;  %v6401_v31 = vpop.f32.mrb[40].mxu0 }
 0x157   : > { %1914 = vst.msk [vmem:[#allocation3 + $0x30] sm:$0xff] %vm395_vm2, %v1906_v60  ;;  %v2092_v2 = vadd.f32 %v6362_v49, %v1935_v63  ;;  %v1934_v3 = vld [vmem:[#allocation3 + $0x10] sm:$0xff]  ;;  %v2449_v33 = vpop.f32.mrb[41].mxu0  ;;  %v6386_v51 = vpop.f32.mrb[42].mxu1 }
 0x158   : > { %v2091_v4 = vadd.f32 %v2060_v52, %v1934_v3 }
 0x159   : > { %2100 = vst.msk [vmem:[#allocation3 + $0x18] sm:$0xff] %vm395_vm2, %v2092_v2  ;;  %v1937_v5 = vld [vmem:[#allocation3 + $0x28] sm:$0xff] }
 0x15a   : > { %2099 = vst.msk [vmem:[#allocation3 + $0x10] sm:$0xff] %vm395_vm2, %v2091_v4  ;;  %v2094_v7 = vadd.f32 %v6365_v61, %v1937_v5  ;;  %v1936_v8 = vld [vmem:[#allocation3 + $0x20] sm:$0xff]  ;;  %v6404_v37 = vpop.f32.mrb[42].mxu0 }
 0x15b   : > { %v2093_v10 = vadd.f32 %v2070_v0, %v1936_v8  ;;  %v2459_v39 = vpop.f32.mrb[43].mxu0 }
 0x15c   : > { %2102 = vst.msk [vmem:[#allocation3 + $0x28] sm:$0xff] %vm395_vm2, %v2094_v7  ;;  %v2123_v11 = vld [vmem:[#allocation3 + $0x8] sm:$0xff] }
 0x15d   : > { %2101 = vst.msk [vmem:[#allocation3 + $0x20] sm:$0xff] %vm395_vm2, %v2093_v10  ;;  %v2280_v12 = vadd.f32 %v6377_v41, %v2123_v11  ;;  %v2122_v13 = vld [vmem:[#allocation3] sm:$0xff]  ;;  %v1939_v14 = vld [vmem:[#allocation3 + $0x38] sm:$0xff] }
 0x15e   : > { %v2279_v16 = vadd.f32 %v2240_v44, %v2122_v13  ;;  %v2096_v17 = vadd.f32 %v6368_v6, %v1939_v14  ;;  %v1938_v18 = vld [vmem:[#allocation3 + $0x30] sm:$0xff]  ;;  %v6431_v44 = vpop.f32.mrb[44].mxu0 }
 0x15f   : > { %2288 = vst.msk [vmem:[#allocation3 + $0x8] sm:$0xff] %vm395_vm2, %v2280_v12  ;;  %v2095_v20 = vadd.f32 %v2080_v9, %v1938_v18  ;;  %v2807_v48 = vpop.f32.mrb[45].mxu0 }
 0x160   : > { %2287 = vst.msk [vmem:[#allocation3] sm:$0xff] %vm395_vm2, %v2279_v16  ;;  %2104 = vst.msk [vmem:[#allocation3 + $0x38] sm:$0xff] %vm395_vm2, %v2096_v17  ;;  %v2125_v21 = vld [vmem:[#allocation3 + $0x18] sm:$0xff] }
 0x161   : > { %2103 = vst.msk [vmem:[#allocation3 + $0x30] sm:$0xff] %vm395_vm2, %v2095_v20  ;;  %v2282_v22 = vadd.f32 %v6380_v50, %v2125_v21  ;;  %v2124_v23 = vld [vmem:[#allocation3 + $0x10] sm:$0xff] }
 0x162   : > { %v2281_v25 = vadd.f32 %v2250_v53, %v2124_v23  ;;  %v2270_v53 = vpop.f32.mrb[43].mxu1  ;;  %v6434_v54 = vpop.f32.mrb[46].mxu0 }
 0x163   : > { %2290 = vst.msk [vmem:[#allocation3 + $0x18] sm:$0xff] %vm395_vm2, %v2282_v22  ;;  %v2127_v27 = vld [vmem:[#allocation3 + $0x28] sm:$0xff]  ;;  %v2817_v57 = vpop.f32.mrb[47].mxu0  ;;  %v6413_v59 = vpop.f32.mrb[44].mxu1 }
 0x164   : > { %2289 = vst.msk [vmem:[#allocation3 + $0x10] sm:$0xff] %vm395_vm2, %v2281_v25  ;;  %v2284_v28 = vadd.f32 %v6383_v62, %v2127_v27  ;;  %v2126_v29 = vld [vmem:[#allocation3 + $0x20] sm:$0xff]  ;;  %v2618_v61 = vpop.f32.mrb[45].mxu1 }
 0x165   : > { %v2283_v30 = vadd.f32 %v2260_v1, %v2126_v29  ;;  %v6416_v3 = vpop.f32.mrb[46].mxu1 }
 0x166   : > { %2292 = vst.msk [vmem:[#allocation3 + $0x28] sm:$0xff] %vm395_vm2, %v2284_v28  ;;  %v2312_v32 = vld [vmem:[#allocation3 + $0x8] sm:$0xff]  ;;  %v6437_v0 = vpop.f32.mrb[48].mxu0  ;;  %v2628_v5 = vpop.f32.mrb[47].mxu1 }
 0x167   : > { %2291 = vst.msk [vmem:[#allocation3 + $0x20] sm:$0xff] %vm395_vm2, %v2283_v30  ;;  %v2469_v34 = vadd.f32 %v6395_v15, %v2312_v32  ;;  %v2311_v35 = vld [vmem:[#allocation3] sm:$0xff]  ;;  %v2129_v45 = vld [vmem:[#allocation3 + $0x38] sm:$0xff]  ;;  %v2827_v2 = vpop.f32.mrb[49].mxu0  ;;  %v6419_v13 = vpop.f32.mrb[48].mxu1 }
 0x168   : > { %v2468_v36 = vadd.f32 %v2429_v19, %v2311_v35  ;;  %v2128_v49 = vld [vmem:[#allocation3 + $0x30] sm:$0xff]  ;;  %v2286_v52 = vadd.f32 %v6386_v51, %v2129_v45  ;;  %v2638_v15 = vpop.f32.mrb[49].mxu1 }
 0x169   : > { %2477 = vst.msk [vmem:[#allocation3 + $0x8] sm:$0xff] %vm395_vm2, %v2469_v34  ;;  %v2285_v55 = vadd.f32 %v2270_v53, %v2128_v49  ;;  %v6422_v22 = vpop.f32.mrb[50].mxu1 }
 0x16a   : > { %2476 = vst.msk [vmem:[#allocation3] sm:$0xff] %vm395_vm2, %v2468_v36  ;;  %v2314_v38 = vld [vmem:[#allocation3 + $0x18] sm:$0xff]  ;;  %2294 = vst.msk [vmem:[#allocation3 + $0x38] sm:$0xff] %vm395_vm2, %v2286_v52  ;;  %v6440_v20 = vpop.f32.mrb[50].mxu0 }
 0x16b   : > { %v2471_v40 = vadd.f32 %v6398_v24, %v2314_v38  ;;  %v2313_v41 = vld [vmem:[#allocation3 + $0x10] sm:$0xff]  ;;  %2293 = vst.msk [vmem:[#allocation3 + $0x30] sm:$0xff] %vm395_vm2, %v2285_v55  ;;  %v2837_v23 = vpop.f32.mrb[51].mxu0  ;;  %v2648_v24 = vpop.f32.mrb[51].mxu1 }
 0x16c   : > { %v2470_v42 = vadd.f32 %v2439_v26, %v2313_v41 }
 0x16d   : > { %2479 = vst.msk [vmem:[#allocation3 + $0x18] sm:$0xff] %vm395_vm2, %v2471_v40  ;;  %v2316_v43 = vld [vmem:[#allocation3 + $0x28] sm:$0xff] }
 0x16e   : > { %2478 = vst.msk [vmem:[#allocation3 + $0x10] sm:$0xff] %vm395_vm2, %v2470_v42  ;;  %v2473_v46 = vadd.f32 %v6401_v31, %v2316_v43  ;;  %v2315_v47 = vld [vmem:[#allocation3 + $0x20] sm:$0xff]  ;;  %v6467_v28 = vpop.f32.mrb[52].mxu0  ;;  %v6449_v31 = vpop.f32.mrb[52].mxu1 }
 0x16f   : > { %v2472_v50 = vadd.f32 %v2449_v33, %v2315_v47  ;;  %v3185_v32 = vpop.f32.mrb[53].mxu0  ;;  %v2996_v35 = vpop.f32.mrb[53].mxu1 }
 0x170   : > { %2481 = vst.msk [vmem:[#allocation3 + $0x28] sm:$0xff] %vm395_vm2, %v2473_v46  ;;  %v2501_v56 = vld [vmem:[#allocation3 + $0x8] sm:$0xff]  ;;  %v6452_v43 = vpop.f32.mrb[54].mxu1 }
 0x171   : > { %2480 = vst.msk [vmem:[#allocation3 + $0x20] sm:$0xff] %vm395_vm2, %v2472_v50  ;;  %v2500_v58 = vld [vmem:[#allocation3] sm:$0xff]  ;;  %v2658_v60 = vadd.f32 %v6413_v59, %v2501_v56  ;;  %v2318_v6 = vld [vmem:[#allocation3 + $0x38] sm:$0xff]  ;;  %v3006_v47 = vpop.f32.mrb[55].mxu1 }
 0x172   : > { %v2657_v62 = vadd.f32 %v2618_v61, %v2500_v58  ;;  %v2475_v9 = vadd.f32 %v6404_v37, %v2318_v6  ;;  %v2317_v10 = vld [vmem:[#allocation3 + $0x30] sm:$0xff]  ;;  %v6470_v40 = vpop.f32.mrb[54].mxu0 }
 0x173   : > { %2666 = vst.msk [vmem:[#allocation3 + $0x8] sm:$0xff] %vm395_vm2, %v2658_v60  ;;  %v2474_v12 = vadd.f32 %v2459_v39, %v2317_v10 }
 0x174   : > { %v2503_v63 = vld [vmem:[#allocation3 + $0x18] sm:$0xff]  ;;  %2665 = vst.msk [vmem:[#allocation3] sm:$0xff] %vm395_vm2, %v2657_v62  ;;  %2483 = vst.msk [vmem:[#allocation3 + $0x38] sm:$0xff] %vm395_vm2, %v2475_v9  ;;  %v6455_v51 = vpop.f32.mrb[56].mxu1 }
 0x175   : > { %v2502_v1 = vld [vmem:[#allocation3 + $0x10] sm:$0xff]  ;;  %v2660_v4 = vadd.f32 %v6416_v3, %v2503_v63  ;;  %2482 = vst.msk [vmem:[#allocation3 + $0x30] sm:$0xff] %vm395_vm2, %v2474_v12  ;;  %v3016_v55 = vpop.f32.mrb[57].mxu1 }
 0x176   : > { %v2659_v7 = vadd.f32 %v2628_v5, %v2502_v1 }
 0x177   : > { %v2505_v8 = vld [vmem:[#allocation3 + $0x28] sm:$0xff]  ;;  %2668 = vst.msk [vmem:[#allocation3 + $0x18] sm:$0xff] %vm395_vm2, %v2660_v4 }
 0x178   : > { %v2504_v11 = vld [vmem:[#allocation3 + $0x20] sm:$0xff]  ;;  %2667 = vst.msk [vmem:[#allocation3 + $0x10] sm:$0xff] %vm395_vm2, %v2659_v7  ;;  %v2662_v14 = vadd.f32 %v6419_v13, %v2505_v8  ;;  %v6458_v62 = vpop.f32.mrb[58].mxu1 }
 0x179   : > { %v2661_v16 = vadd.f32 %v2638_v15, %v2504_v11  ;;  %v3026_v1 = vpop.f32.mrb[59].mxu1 }
 0x17a   : > { %v2690_v17 = vld [vmem:[#allocation3 + $0x8] sm:$0xff]  ;;  %2670 = vst.msk [vmem:[#allocation3 + $0x28] sm:$0xff] %vm395_vm2, %v2662_v14 }
 0x17b   : > { %v2847_v18 = vadd.f32 %v6431_v44, %v2690_v17  ;;  %v2689_v19 = vld [vmem:[#allocation3] sm:$0xff]  ;;  %2669 = vst.msk [vmem:[#allocation3 + $0x20] sm:$0xff] %vm395_vm2, %v2661_v16  ;;  %v2507_v29 = vld [vmem:[#allocation3 + $0x38] sm:$0xff]  ;;  %v3195_v44 = vpop.f32.mrb[55].mxu0 }
 0x17c   : > { %v2846_v21 = vadd.f32 %v2807_v48, %v2689_v19  ;;  %v2664_v33 = vadd.f32 %v6422_v22, %v2507_v29  ;;  %v2506_v34 = vld [vmem:[#allocation3 + $0x30] sm:$0xff]  ;;  %v6473_v49 = vpop.f32.mrb[56].mxu0  ;;  %v6485_v9 = vpop.f32.mrb[60].mxu1 }
 0x17d   : > { %2855 = vst.msk [vmem:[#allocation3 + $0x8] sm:$0xff] %vm395_vm2, %v2847_v18  ;;  %v2663_v36 = vadd.f32 %v2648_v24, %v2506_v34  ;;  %v3205_v52 = vpop.f32.mrb[57].mxu0  ;;  %v3375_v10 = vpop.f32.mrb[61].mxu1 }
 0x17e   : > { %2854 = vst.msk [vmem:[#allocation3] sm:$0xff] %vm395_vm2, %v2846_v21  ;;  %v2692_v25 = vld [vmem:[#allocation3 + $0x18] sm:$0xff]  ;;  %2672 = vst.msk [vmem:[#allocation3 + $0x38] sm:$0xff] %vm395_vm2, %v2664_v33 }
 0x17f   : > { %v2849_v26 = vadd.f32 %v6434_v54, %v2692_v25  ;;  %v2691_v27 = vld [vmem:[#allocation3 + $0x10] sm:$0xff]  ;;  %2671 = vst.msk [vmem:[#allocation3 + $0x30] sm:$0xff] %vm395_vm2, %v2663_v36 }
 0x180   : > { %v2848_v30 = vadd.f32 %v2817_v57, %v2691_v27  ;;  %v6488_v18 = vpop.f32.mrb[62].mxu1 }
 0x181   : > { %2857 = vst.msk [vmem:[#allocation3 + $0x18] sm:$0xff] %vm395_vm2, %v2849_v26  ;;  %v2694_v37 = vld [vmem:[#allocation3 + $0x28] sm:$0xff]  ;;  %v3385_v21 = vpop.f32.mrb[63].mxu1 }
 0x182   : > { %2856 = vst.msk [vmem:[#allocation3 + $0x10] sm:$0xff] %vm395_vm2, %v2848_v30  ;;  %v2851_v38 = vadd.f32 %v6437_v0, %v2694_v37  ;;  %v2693_v39 = vld [vmem:[#allocation3 + $0x20] sm:$0xff] }
 0x183   : > { %v2850_v41 = vadd.f32 %v2827_v2, %v2693_v39  ;;  %v6476_v2 = vpop.f32.mrb[58].mxu0 }
 0x184   : > { %v2879_v42 = vld [vmem:[#allocation3 + $0x8] sm:$0xff]  ;;  %2859 = vst.msk [vmem:[#allocation3 + $0x28] sm:$0xff] %vm395_vm2, %v2851_v38  ;;  %v3215_v5 = vpop.f32.mrb[59].mxu0  ;;  %v6491_v30 = vpop.f32.mrb[64].mxu1 }
 0x185   : > { %v3036_v45 = vadd.f32 %v6449_v31, %v2879_v42  ;;  %v2878_v46 = vld [vmem:[#allocation3] sm:$0xff]  ;;  %2858 = vst.msk [vmem:[#allocation3 + $0x20] sm:$0xff] %vm395_vm2, %v2850_v41  ;;  %v2696_v56 = vld [vmem:[#allocation3 + $0x38] sm:$0xff]  ;;  %v6503_v12 = vpop.f32.mrb[60].mxu0  ;;  %v3395_v33 = vpop.f32.mrb[65].mxu1 }
 0x186   : > { %v3035_v48 = vadd.f32 %v2996_v35, %v2878_v46  ;;  %v2853_v58 = vadd.f32 %v6440_v20, %v2696_v56  ;;  %v2695_v59 = vld [vmem:[#allocation3 + $0x30] sm:$0xff]  ;;  %v3564_v15 = vpop.f32.mrb[61].mxu0 }
 0x187   : > { %3044 = vst.msk [vmem:[#allocation3 + $0x8] sm:$0xff] %vm395_vm2, %v3036_v45  ;;  %v2852_v60 = vadd.f32 %v2837_v23, %v2695_v59  ;;  %v6506_v24 = vpop.f32.mrb[62].mxu0 }
 0x188   : > { %3043 = vst.msk [vmem:[#allocation3] sm:$0xff] %vm395_vm2, %v3035_v48  ;;  %v2881_v50 = vld [vmem:[#allocation3 + $0x18] sm:$0xff]  ;;  %2861 = vst.msk [vmem:[#allocation3 + $0x38] sm:$0xff] %vm395_vm2, %v2853_v58  ;;  %v3574_v27 = vpop.f32.mrb[63].mxu0  ;;  %v6494_v42 = vpop.f32.mrb[66].mxu1 }
 0x189   : > { %v3038_v53 = vadd.f32 %v6452_v43, %v2881_v50  ;;  %v2880_v54 = vld [vmem:[#allocation3 + $0x10] sm:$0xff]  ;;  %2860 = vst.msk [vmem:[#allocation3 + $0x30] sm:$0xff] %vm395_vm2, %v2852_v60  ;;  %v6509_v35 = vpop.f32.mrb[64].mxu0  ;;  %v3405_v46 = vpop.f32.mrb[67].mxu1 }
 0x18a   : > { %v3037_v57 = vadd.f32 %v3006_v47, %v2880_v54  ;;  %v3584_v36 = vpop.f32.mrb[65].mxu0 }
 0x18b   : > { %3046 = vst.msk [vmem:[#allocation3 + $0x18] sm:$0xff] %vm395_vm2, %v3038_v53  ;;  %v2883_v61 = vld [vmem:[#allocation3 + $0x28] sm:$0xff]  ;;  %v7808_v43 = vpop.f32.mrb[66].mxu0 }
 0x18c   : > { %3045 = vst.msk [vmem:[#allocation3 + $0x10] sm:$0xff] %vm395_vm2, %v3037_v57  ;;  %v3040_v63 = vadd.f32 %v6455_v51, %v2883_v61  ;;  %v2882_v0 = vld [vmem:[#allocation3 + $0x20] sm:$0xff]  ;;  %v7811_v47 = vpop.f32.mrb[67].mxu0  ;;  %v6521_v54 = vpop.f32.mrb[68].mxu1 }
 0x18d   : > { %v3039_v3 = vadd.f32 %v3016_v55, %v2882_v0  ;;  %v3753_v58 = vpop.f32.mrb[69].mxu1 }
 0x18e   : > { %v3068_v4 = vld [vmem:[#allocation3 + $0x8] sm:$0xff]  ;;  %3048 = vst.msk [vmem:[#allocation3 + $0x28] sm:$0xff] %vm395_vm2, %v3040_v63  ;;  %v7816_v55 = vpop.f32.mrb[68].mxu0 }
 0x18f   : > { %v3225_v6 = vadd.f32 %v6467_v28, %v3068_v4  ;;  %v3067_v7 = vld [vmem:[#allocation3] sm:$0xff]  ;;  %3047 = vst.msk [vmem:[#allocation3 + $0x20] sm:$0xff] %vm395_vm2, %v3039_v3  ;;  %v2885_v16 = vld [vmem:[#allocation3 + $0x38] sm:$0xff]  ;;  %v7819_v59 = vpop.f32.mrb[69].mxu0 }
 0x190   : > { %v3224_v8 = vadd.f32 %v3185_v32, %v3067_v7  ;;  %v3042_v19 = vadd.f32 %v6458_v62, %v2885_v16  ;;  %v2884_v20 = vld [vmem:[#allocation3 + $0x30] sm:$0xff]  ;;  %v6524_v62 = vpop.f32.mrb[70].mxu1 }
 0x191   : > { %3233 = vst.msk [vmem:[#allocation3 + $0x8] sm:$0xff] %vm395_vm2, %v3225_v6  ;;  %v3041_v22 = vadd.f32 %v3026_v1, %v2884_v20 }
 0x192   : > { %3232 = vst.msk [vmem:[#allocation3] sm:$0xff] %vm395_vm2, %v3224_v8  ;;  %v3070_v11 = vld [vmem:[#allocation3 + $0x18] sm:$0xff]  ;;  %3050 = vst.msk [vmem:[#allocation3 + $0x38] sm:$0xff] %vm395_vm2, %v3042_v19  ;;  %v6542_v63 = vpop.f32.mrb[70].mxu0 }
 0x193   : > { %v3227_v13 = vadd.f32 %v6470_v40, %v3070_v11  ;;  %v3069_v14 = vld [vmem:[#allocation3 + $0x10] sm:$0xff]  ;;  %3049 = vst.msk [vmem:[#allocation3 + $0x30] sm:$0xff] %vm395_vm2, %v3041_v22  ;;  %v3953_v3 = vpop.f32.mrb[71].mxu0 }
 0x194   : > { %v3226_v17 = vadd.f32 %v3195_v44, %v3069_v14 }
 0x195   : > { %3235 = vst.msk [vmem:[#allocation3 + $0x18] sm:$0xff] %vm395_vm2, %v3227_v13  ;;  %v3072_v23 = vld [vmem:[#allocation3 + $0x28] sm:$0xff] }
 0x196   : > { %3234 = vst.msk [vmem:[#allocation3 + $0x10] sm:$0xff] %vm395_vm2, %v3226_v17  ;;  %v3229_v25 = vadd.f32 %v6473_v49, %v3072_v23  ;;  %v3071_v26 = vld [vmem:[#allocation3 + $0x20] sm:$0xff]  ;;  %v6545_v11 = vpop.f32.mrb[72].mxu0 }
 0x197   : > { %v3228_v28 = vadd.f32 %v3205_v52, %v3071_v26 }
 0x198   : > { %v3258_v29 = vld [vmem:[#allocation3 + $0x8] sm:$0xff]  ;;  %3237 = vst.msk [vmem:[#allocation3 + $0x28] sm:$0xff] %vm395_vm2, %v3229_v25 }
 0x199   : > { %v3415_v31 = vadd.f32 %v6485_v9, %v3258_v29  ;;  %v3257_v32 = vld [vmem:[#allocation3] sm:$0xff]  ;;  %3236 = vst.msk [vmem:[#allocation3 + $0x20] sm:$0xff] %vm395_vm2, %v3228_v28  ;;  %v3074_v40 = vld [vmem:[#allocation3 + $0x38] sm:$0xff] }
 0x19a   : > { %v3414_v34 = vadd.f32 %v3375_v10, %v3257_v32  ;;  %v3231_v44 = vadd.f32 %v6476_v2, %v3074_v40  ;;  %v3073_v45 = vld [vmem:[#allocation3 + $0x30] sm:$0xff]  ;;  %v3763_v2 = vpop.f32.mrb[71].mxu1 }
 0x19b   : > { %3423 = vst.msk [vmem:[#allocation3 + $0x8] sm:$0xff] %vm395_vm2, %v3415_v31  ;;  %v3230_v48 = vadd.f32 %v3215_v5, %v3073_v45  ;;  %v6527_v10 = vpop.f32.mrb[72].mxu1 }
 0x19c   : > { %3422 = vst.msk [vmem:[#allocation3] sm:$0xff] %vm395_vm2, %v3414_v34  ;;  %v3260_v37 = vld [vmem:[#allocation3 + $0x18] sm:$0xff]  ;;  %3239 = vst.msk [vmem:[#allocation3 + $0x38] sm:$0xff] %vm395_vm2, %v3231_v44  ;;  %v3773_v14 = vpop.f32.mrb[73].mxu1 }
 0x19d   : > { %v3417_v38 = vadd.f32 %v6488_v18, %v3260_v37  ;;  %v3259_v39 = vld [vmem:[#allocation3 + $0x10] sm:$0xff]  ;;  %3238 = vst.msk [vmem:[#allocation3 + $0x30] sm:$0xff] %vm395_vm2, %v3230_v48 }
 0x19e   : > { %v3416_v41 = vadd.f32 %v3385_v21, %v3259_v39  ;;  %v6530_v21 = vpop.f32.mrb[74].mxu1 }
 0x19f   : > { %3425 = vst.msk [vmem:[#allocation3 + $0x18] sm:$0xff] %vm395_vm2, %v3417_v38  ;;  %v3262_v49 = vld [vmem:[#allocation3 + $0x28] sm:$0xff]  ;;  %v3783_v22 = vpop.f32.mrb[75].mxu1 }
 0x1a0   : > { %3424 = vst.msk [vmem:[#allocation3 + $0x10] sm:$0xff] %vm395_vm2, %v3416_v41  ;;  %v3419_v50 = vadd.f32 %v6491_v30, %v3262_v49  ;;  %v3261_v51 = vld [vmem:[#allocation3 + $0x20] sm:$0xff]  ;;  %v6557_v28 = vpop.f32.mrb[76].mxu1 }
 0x1a1   : > { %v3418_v52 = vadd.f32 %v3395_v33, %v3261_v51  ;;  %v4132_v31 = vpop.f32.mrb[77].mxu1 }
 0x1a2   : > { %v3447_v53 = vld [vmem:[#allocation3 + $0x8] sm:$0xff]  ;;  %3427 = vst.msk [vmem:[#allocation3 + $0x28] sm:$0xff] %vm395_vm2, %v3419_v50  ;;  %v6560_v38 = vpop.f32.mrb[78].mxu1 }
 0x1a3   : > { %v3604_v56 = vadd.f32 %v6503_v12, %v3447_v53  ;;  %v3446_v57 = vld [vmem:[#allocation3] sm:$0xff]  ;;  %3426 = vst.msk [vmem:[#allocation3 + $0x20] sm:$0xff] %vm395_vm2, %v3418_v52  ;;  %v3264_v4 = vld [vmem:[#allocation3 + $0x38] sm:$0xff]  ;;  %v4142_v41 = vpop.f32.mrb[79].mxu1 }
 0x1a4   : > { %v3603_v60 = vadd.f32 %v3564_v15, %v3446_v57  ;;  %v3421_v6 = vadd.f32 %v6494_v42, %v3264_v4  ;;  %v3263_v7 = vld [vmem:[#allocation3 + $0x30] sm:$0xff]  ;;  %v3963_v15 = vpop.f32.mrb[73].mxu0  ;;  %v6563_v44 = vpop.f32.mrb[80].mxu1 }
 0x1a5   : > { %3612 = vst.msk [vmem:[#allocation3 + $0x8] sm:$0xff] %vm395_vm2, %v3604_v56  ;;  %v3420_v8 = vadd.f32 %v3405_v46, %v3263_v7 }
 0x1a6   : > { %3611 = vst.msk [vmem:[#allocation3] sm:$0xff] %vm395_vm2, %v3603_v60  ;;  %v3449_v61 = vld [vmem:[#allocation3 + $0x18] sm:$0xff]  ;;  %3429 = vst.msk [vmem:[#allocation3 + $0x38] sm:$0xff] %vm395_vm2, %v3421_v6 }
 0x1a7   : > { %v3606_v0 = vadd.f32 %v6506_v24, %v3449_v61  ;;  %v3448_v1 = vld [vmem:[#allocation3 + $0x10] sm:$0xff]  ;;  %3428 = vst.msk [vmem:[#allocation3 + $0x30] sm:$0xff] %vm395_vm2, %v3420_v8 }
 0x1a8   : > { %v3605_v5 = vadd.f32 %v3574_v27, %v3448_v1 }
 0x1a9   : > { %3614 = vst.msk [vmem:[#allocation3 + $0x18] sm:$0xff] %vm395_vm2, %v3606_v0  ;;  %v3451_v9 = vld [vmem:[#allocation3 + $0x28] sm:$0xff]  ;;  %v6548_v0 = vpop.f32.mrb[74].mxu0 }
 0x1aa   : > { %3613 = vst.msk [vmem:[#allocation3 + $0x10] sm:$0xff] %vm395_vm2, %v3605_v5  ;;  %v3608_v12 = vadd.f32 %v6509_v35, %v3451_v9  ;;  %v3450_v13 = vld [vmem:[#allocation3 + $0x20] sm:$0xff] }
 0x1ab   : > { %v3607_v16 = vadd.f32 %v3584_v36, %v3450_v13 }
 0x1ac   : > { %v3636_v17 = vld [vmem:[#allocation3 + $0x8] sm:$0xff]  ;;  %3616 = vst.msk [vmem:[#allocation3 + $0x28] sm:$0xff] %vm395_vm2, %v3608_v12 }
 0x1ad   : > { %v3793_v18 = vadd.f32 %v6521_v54, %v3636_v17  ;;  %v3635_v19 = vld [vmem:[#allocation3] sm:$0xff]  ;;  %3615 = vst.msk [vmem:[#allocation3 + $0x20] sm:$0xff] %vm395_vm2, %v3607_v16  ;;  %v3453_v26 = vld [vmem:[#allocation3 + $0x38] sm:$0xff] }
 0x1ae   : > { %v3792_v20 = vadd.f32 %v3753_v58, %v3635_v19  ;;  %v3610_v29 = vadd.f32 %v7808_v43, %v3453_v26  ;;  %v3452_v30 = vld [vmem:[#allocation3 + $0x30] sm:$0xff] }
 0x1af   : > { %3801 = vst.msk [vmem:[#allocation3 + $0x8] sm:$0xff] %vm395_vm2, %v3793_v18  ;;  %v3609_v32 = vadd.f32 %v7811_v47, %v3452_v30  ;;  %v4152_v47 = vpop.f32.mrb[81].mxu1 }
 0x1b0   : > { %3800 = vst.msk [vmem:[#allocation3] sm:$0xff] %vm395_vm2, %v3792_v20  ;;  %v3638_v23 = vld [vmem:[#allocation3 + $0x18] sm:$0xff]  ;;  %3618 = vst.msk [vmem:[#allocation3 + $0x38] sm:$0xff] %vm395_vm2, %v3610_v29  ;;  %v6566_v54 = vpop.f32.mrb[82].mxu1 }
 0x1b1   : > { %v3795_v24 = vadd.f32 %v6524_v62, %v3638_v23  ;;  %v3637_v25 = vld [vmem:[#allocation3 + $0x10] sm:$0xff]  ;;  %3617 = vst.msk [vmem:[#allocation3 + $0x30] sm:$0xff] %vm395_vm2, %v3609_v32  ;;  %v4162_v57 = vpop.f32.mrb[83].mxu1 }
 0x1b2   : > { %v3794_v27 = vadd.f32 %v3763_v2, %v3637_v25  ;;  %v3973_v2 = vpop.f32.mrb[75].mxu0 }
 0x1b3   : > { %3803 = vst.msk [vmem:[#allocation3 + $0x18] sm:$0xff] %vm395_vm2, %v3795_v24  ;;  %v3640_v33 = vld [vmem:[#allocation3 + $0x28] sm:$0xff] }
 0x1b4   : > { %3802 = vst.msk [vmem:[#allocation3 + $0x10] sm:$0xff] %vm395_vm2, %v3794_v27  ;;  %v3797_v34 = vadd.f32 %v6527_v10, %v3640_v33  ;;  %v3639_v35 = vld [vmem:[#allocation3 + $0x20] sm:$0xff] }
 0x1b5   : > { %v3796_v36 = vadd.f32 %v3773_v14, %v3639_v35 }
 0x1b6   : > { %v3826_v37 = vld [vmem:[#allocation3 + $0x8] sm:$0xff]  ;;  %3805 = vst.msk [vmem:[#allocation3 + $0x28] sm:$0xff] %vm395_vm2, %v3797_v34 }
 0x1b7   : > { %v3983_v39 = vadd.f32 %v7816_v55, %v3826_v37  ;;  %v3825_v40 = vld [vmem:[#allocation3] sm:$0xff]  ;;  %3804 = vst.msk [vmem:[#allocation3 + $0x20] sm:$0xff] %vm395_vm2, %v3796_v36  ;;  %v3642_v48 = vld [vmem:[#allocation3 + $0x38] sm:$0xff] }
 0x1b8   : > { %v3982_v42 = vadd.f32 %v7819_v59, %v3825_v40  ;;  %v3799_v50 = vadd.f32 %v6530_v21, %v3642_v48  ;;  %v3641_v51 = vld [vmem:[#allocation3 + $0x30] sm:$0xff] }
 0x1b9   : > { %3991 = vst.msk [vmem:[#allocation3 + $0x8] sm:$0xff] %vm395_vm2, %v3983_v39  ;;  %v3798_v52 = vadd.f32 %v3783_v22, %v3641_v51 }
 0x1ba   : > { %3990 = vst.msk [vmem:[#allocation3] sm:$0xff] %vm395_vm2, %v3982_v42  ;;  %v3828_v43 = vld [vmem:[#allocation3 + $0x18] sm:$0xff]  ;;  %3807 = vst.msk [vmem:[#allocation3 + $0x38] sm:$0xff] %vm395_vm2, %v3799_v50 }
 0x1bb   : > { %v3985_v45 = vadd.f32 %v6542_v63, %v3828_v43  ;;  %v3827_v46 = vld [vmem:[#allocation3 + $0x10] sm:$0xff]  ;;  %3806 = vst.msk [vmem:[#allocation3 + $0x30] sm:$0xff] %vm395_vm2, %v3798_v52  ;;  %v6593_v63 = vpop.f32.mrb[84].mxu1 }
 0x1bc   : > { %v3984_v49 = vadd.f32 %v3953_v3, %v3827_v46  ;;  %v4511_v1 = vpop.f32.mrb[85].mxu1 }
 0x1bd   : > { %3993 = vst.msk [vmem:[#allocation3 + $0x18] sm:$0xff] %vm395_vm2, %v3985_v45  ;;  %v3830_v53 = vld [vmem:[#allocation3 + $0x28] sm:$0xff]  ;;  %v6596_v8 = vpop.f32.mrb[86].mxu1 }
 0x1be   : > { %3992 = vst.msk [vmem:[#allocation3 + $0x10] sm:$0xff] %vm395_vm2, %v3984_v49  ;;  %v3987_v55 = vadd.f32 %v6545_v11, %v3830_v53  ;;  %v3829_v56 = vld [vmem:[#allocation3 + $0x20] sm:$0xff]  ;;  %v6575_v11 = vpop.f32.mrb[76].mxu0  ;;  %v4521_v12 = vpop.f32.mrb[87].mxu1 }
 0x1bf   : > { %v3986_v58 = vadd.f32 %v3963_v15, %v3829_v56  ;;  %v4321_v15 = vpop.f32.mrb[77].mxu0  ;;  %v6599_v20 = vpop.f32.mrb[88].mxu1 }
 0x1c0   : > { %v4015_v59 = vld [vmem:[#allocation3 + $0x8] sm:$0xff]  ;;  %3995 = vst.msk [vmem:[#allocation3 + $0x28] sm:$0xff] %vm395_vm2, %v3987_v55  ;;  %v6578_v23 = vpop.f32.mrb[78].mxu0  ;;  %v4531_v24 = vpop.f32.mrb[89].mxu1 }
 0x1c1   : > { %v4172_v60 = vadd.f32 %v6557_v28, %v4015_v59  ;;  %v4014_v61 = vld [vmem:[#allocation3] sm:$0xff]  ;;  %3994 = vst.msk [vmem:[#allocation3 + $0x20] sm:$0xff] %vm395_vm2, %v3986_v58  ;;  %v3832_v6 = vld [vmem:[#allocation3 + $0x38] sm:$0xff]  ;;  %v4331_v26 = vpop.f32.mrb[79].mxu0 }
 0x1c2   : > { %v4171_v62 = vadd.f32 %v4132_v31, %v4014_v61  ;;  %v3989_v9 = vadd.f32 %v6548_v0, %v3832_v6  ;;  %v3831_v10 = vld [vmem:[#allocation3 + $0x30] sm:$0xff]  ;;  %v6581_v30 = vpop.f32.mrb[80].mxu0 }
 0x1c3   : > { %4180 = vst.msk [vmem:[#allocation3 + $0x8] sm:$0xff] %vm395_vm2, %v4172_v60  ;;  %v3988_v13 = vadd.f32 %v3973_v2, %v3831_v10  ;;  %v4341_v33 = vpop.f32.mrb[81].mxu0 }
 0x1c4   : > { %4179 = vst.msk [vmem:[#allocation3] sm:$0xff] %vm395_vm2, %v4171_v62  ;;  %v4017_v3 = vld [vmem:[#allocation3 + $0x18] sm:$0xff]  ;;  %3997 = vst.msk [vmem:[#allocation3 + $0x38] sm:$0xff] %vm395_vm2, %v3989_v9  ;;  %v6584_v40 = vpop.f32.mrb[82].mxu0 }
 0x1c5   : > { %v4174_v4 = vadd.f32 %v6560_v38, %v4017_v3  ;;  %v4016_v5 = vld [vmem:[#allocation3 + $0x10] sm:$0xff]  ;;  %3996 = vst.msk [vmem:[#allocation3 + $0x30] sm:$0xff] %vm395_vm2, %v3988_v13  ;;  %v4351_v43 = vpop.f32.mrb[83].mxu0 }
 0x1c6   : > { %v4173_v7 = vadd.f32 %v4142_v41, %v4016_v5  ;;  %v6611_v49 = vpop.f32.mrb[84].mxu0 }
 0x1c7   : > { %4182 = vst.msk [vmem:[#allocation3 + $0x18] sm:$0xff] %vm395_vm2, %v4174_v4  ;;  %v4019_v14 = vld [vmem:[#allocation3 + $0x28] sm:$0xff]  ;;  %v4700_v51 = vpop.f32.mrb[85].mxu0 }
 0x1c8   : > { %4181 = vst.msk [vmem:[#allocation3 + $0x10] sm:$0xff] %vm395_vm2, %v4173_v7  ;;  %v4176_v16 = vadd.f32 %v6563_v44, %v4019_v14  ;;  %v4018_v17 = vld [vmem:[#allocation3 + $0x20] sm:$0xff]  ;;  %v6602_v44 = vpop.f32.mrb[90].mxu1  ;;  %v6614_v60 = vpop.f32.mrb[86].mxu0 }
 0x1c9   : > { %v4175_v18 = vadd.f32 %v4152_v47, %v4018_v17  ;;  %v4541_v47 = vpop.f32.mrb[91].mxu1 }
 0x1ca   : > { %v4204_v19 = vld [vmem:[#allocation3 + $0x8] sm:$0xff]  ;;  %4184 = vst.msk [vmem:[#allocation3 + $0x28] sm:$0xff] %vm395_vm2, %v4176_v16 }
 0x1cb   : > { %v4361_v21 = vadd.f32 %v6575_v11, %v4204_v19  ;;  %v4203_v22 = vld [vmem:[#allocation3] sm:$0xff]  ;;  %4183 = vst.msk [vmem:[#allocation3 + $0x20] sm:$0xff] %vm395_vm2, %v4175_v18  ;;  %v4021_v31 = vld [vmem:[#allocation3 + $0x38] sm:$0xff] }
 0x1cc   : > { %v4360_v25 = vadd.f32 %v4321_v15, %v4203_v22  ;;  %v4178_v34 = vadd.f32 %v6566_v54, %v4021_v31  ;;  %v4020_v35 = vld [vmem:[#allocation3 + $0x30] sm:$0xff]  ;;  %v6629_v54 = vpop.f32.mrb[92].mxu1 }
 0x1cd   : > { %4369 = vst.msk [vmem:[#allocation3 + $0x8] sm:$0xff] %vm395_vm2, %v4361_v21  ;;  %v4177_v36 = vadd.f32 %v4162_v57, %v4020_v35  ;;  %v4889_v57 = vpop.f32.mrb[93].mxu1 }
 0x1ce   : > { %4368 = vst.msk [vmem:[#allocation3] sm:$0xff] %vm395_vm2, %v4360_v25  ;;  %v4206_v27 = vld [vmem:[#allocation3 + $0x18] sm:$0xff]  ;;  %4186 = vst.msk [vmem:[#allocation3 + $0x38] sm:$0xff] %vm395_vm2, %v4178_v34  ;;  %v6632_v2 = vpop.f32.mrb[94].mxu1 }
 0x1cf   : > { %v4363_v28 = vadd.f32 %v6578_v23, %v4206_v27  ;;  %v4205_v29 = vld [vmem:[#allocation3 + $0x10] sm:$0xff]  ;;  %4185 = vst.msk [vmem:[#allocation3 + $0x30] sm:$0xff] %vm395_vm2, %v4177_v36  ;;  %v4899_v5 = vpop.f32.mrb[95].mxu1 }
 0x1d0   : > { %v4362_v32 = vadd.f32 %v4331_v26, %v4205_v29  ;;  %v6635_v11 = vpop.f32.mrb[96].mxu1 }
 0x1d1   : > { %4371 = vst.msk [vmem:[#allocation3 + $0x18] sm:$0xff] %vm395_vm2, %v4363_v28  ;;  %v4208_v37 = vld [vmem:[#allocation3 + $0x28] sm:$0xff]  ;;  %v4909_v13 = vpop.f32.mrb[97].mxu1 }
 0x1d2   : > { %4370 = vst.msk [vmem:[#allocation3 + $0x10] sm:$0xff] %vm395_vm2, %v4362_v32  ;;  %v4365_v38 = vadd.f32 %v6581_v30, %v4208_v37  ;;  %v4207_v39 = vld [vmem:[#allocation3 + $0x20] sm:$0xff] }
 0x1d3   : > { %v4364_v41 = vadd.f32 %v4341_v33, %v4207_v39 }
 0x1d4   : > { %v4394_v42 = vld [vmem:[#allocation3 + $0x8] sm:$0xff]  ;;  %4373 = vst.msk [vmem:[#allocation3 + $0x28] sm:$0xff] %vm395_vm2, %v4365_v38 }
 0x1d5   : > { %v4551_v45 = vadd.f32 %v6593_v63, %v4394_v42  ;;  %v4393_v46 = vld [vmem:[#allocation3] sm:$0xff]  ;;  %4372 = vst.msk [vmem:[#allocation3 + $0x20] sm:$0xff] %vm395_vm2, %v4364_v41  ;;  %v4210_v55 = vld [vmem:[#allocation3 + $0x38] sm:$0xff]  ;;  %v4710_v63 = vpop.f32.mrb[87].mxu0 }
 0x1d6   : > { %v4550_v48 = vadd.f32 %v4511_v1, %v4393_v46  ;;  %v4367_v58 = vadd.f32 %v6584_v40, %v4210_v55  ;;  %v4209_v59 = vld [vmem:[#allocation3 + $0x30] sm:$0xff] }
 0x1d7   : > { %4559 = vst.msk [vmem:[#allocation3 + $0x8] sm:$0xff] %vm395_vm2, %v4551_v45  ;;  %v4366_v61 = vadd.f32 %v4351_v43, %v4209_v59 }
 0x1d8   : > { %4558 = vst.msk [vmem:[#allocation3] sm:$0xff] %vm395_vm2, %v4550_v48  ;;  %v4396_v50 = vld [vmem:[#allocation3 + $0x18] sm:$0xff]  ;;  %4375 = vst.msk [vmem:[#allocation3 + $0x38] sm:$0xff] %vm395_vm2, %v4367_v58 }
 0x1d9   : > { %v4553_v52 = vadd.f32 %v6596_v8, %v4396_v50  ;;  %v4395_v53 = vld [vmem:[#allocation3 + $0x10] sm:$0xff]  ;;  %4374 = vst.msk [vmem:[#allocation3 + $0x30] sm:$0xff] %vm395_vm2, %v4366_v61  ;;  %v6617_v8 = vpop.f32.mrb[88].mxu0 }
 0x1da   : > { %v4552_v56 = vadd.f32 %v4521_v12, %v4395_v53  ;;  %v4720_v10 = vpop.f32.mrb[89].mxu0 }
 0x1db   : > { %4561 = vst.msk [vmem:[#allocation3 + $0x18] sm:$0xff] %vm395_vm2, %v4553_v52  ;;  %v4398_v62 = vld [vmem:[#allocation3 + $0x28] sm:$0xff]  ;;  %v6620_v16 = vpop.f32.mrb[90].mxu0 }
 0x1dc   : > { %4560 = vst.msk [vmem:[#allocation3 + $0x10] sm:$0xff] %vm395_vm2, %v4552_v56  ;;  %v4555_v0 = vadd.f32 %v6599_v20, %v4398_v62  ;;  %v4397_v1 = vld [vmem:[#allocation3 + $0x20] sm:$0xff]  ;;  %v4730_v19 = vpop.f32.mrb[91].mxu0 }
 0x1dd   : > { %v4554_v3 = vadd.f32 %v4531_v24, %v4397_v1  ;;  %v6647_v26 = vpop.f32.mrb[92].mxu0  ;;  %v6638_v33 = vpop.f32.mrb[98].mxu1 }
 0x1de   : > { %v4583_v4 = vld [vmem:[#allocation3 + $0x8] sm:$0xff]  ;;  %4563 = vst.msk [vmem:[#allocation3 + $0x28] sm:$0xff] %vm395_vm2, %v4555_v0  ;;  %v5079_v29 = vpop.f32.mrb[93].mxu0  ;;  %v4919_v36 = vpop.f32.mrb[99].mxu1 }
 0x1df   : > { %v4740_v6 = vadd.f32 %v6611_v49, %v4583_v4  ;;  %v4582_v7 = vld [vmem:[#allocation3] sm:$0xff]  ;;  %4562 = vst.msk [vmem:[#allocation3 + $0x20] sm:$0xff] %vm395_vm2, %v4554_v3  ;;  %v4400_v17 = vld [vmem:[#allocation3 + $0x38] sm:$0xff]  ;;  %v6650_v34 = vpop.f32.mrb[94].mxu0 }
 0x1e0   : > { %v4739_v9 = vadd.f32 %v4700_v51, %v4582_v7  ;;  %v4557_v20 = vadd.f32 %v6602_v44, %v4400_v17  ;;  %v4399_v21 = vld [vmem:[#allocation3 + $0x30] sm:$0xff]  ;;  %v5089_v37 = vpop.f32.mrb[95].mxu0 }
 0x1e1   : > { %4748 = vst.msk [vmem:[#allocation3 + $0x8] sm:$0xff] %vm395_vm2, %v4740_v6  ;;  %v4556_v22 = vadd.f32 %v4541_v47, %v4399_v21  ;;  %v6653_v44 = vpop.f32.mrb[96].mxu0  ;;  %v6665_v45 = vpop.f32.mrb[100].mxu1 }
 0x1e2   : > { %4747 = vst.msk [vmem:[#allocation3] sm:$0xff] %vm395_vm2, %v4739_v9  ;;  %v4585_v12 = vld [vmem:[#allocation3 + $0x18] sm:$0xff]  ;;  %4565 = vst.msk [vmem:[#allocation3 + $0x38] sm:$0xff] %vm395_vm2, %v4557_v20  ;;  %v5099_v48 = vpop.f32.mrb[97].mxu0  ;;  %v5268_v49 = vpop.f32.mrb[101].mxu1 }
 0x1e3   : > { %v4742_v14 = vadd.f32 %v6614_v60, %v4585_v12  ;;  %v4584_v15 = vld [vmem:[#allocation3 + $0x10] sm:$0xff]  ;;  %4564 = vst.msk [vmem:[#allocation3 + $0x30] sm:$0xff] %vm395_vm2, %v4556_v22 }
 0x1e4   : > { %v4741_v18 = vadd.f32 %v4710_v63, %v4584_v15 }
 0x1e5   : > { %4750 = vst.msk [vmem:[#allocation3 + $0x18] sm:$0xff] %vm395_vm2, %v4742_v14  ;;  %v4587_v23 = vld [vmem:[#allocation3 + $0x28] sm:$0xff] }
 0x1e6   : > { %4749 = vst.msk [vmem:[#allocation3 + $0x10] sm:$0xff] %vm395_vm2, %v4741_v18  ;;  %v4744_v24 = vadd.f32 %v6617_v8, %v4587_v23  ;;  %v4586_v25 = vld [vmem:[#allocation3 + $0x20] sm:$0xff] }
 0x1e7   : > { %v4743_v27 = vadd.f32 %v4720_v10, %v4586_v25 }
 0x1e8   : > { %v4772_v28 = vld [vmem:[#allocation3 + $0x8] sm:$0xff]  ;;  %4752 = vst.msk [vmem:[#allocation3 + $0x28] sm:$0xff] %vm395_vm2, %v4744_v24 }
 0x1e9   : > { %v4929_v30 = vadd.f32 %v6629_v54, %v4772_v28  ;;  %v4771_v31 = vld [vmem:[#allocation3] sm:$0xff]  ;;  %4751 = vst.msk [vmem:[#allocation3 + $0x20] sm:$0xff] %vm395_vm2, %v4743_v27  ;;  %v4589_v40 = vld [vmem:[#allocation3 + $0x38] sm:$0xff] }
 0x1ea   : > { %v4928_v32 = vadd.f32 %v4889_v57, %v4771_v31  ;;  %v4746_v42 = vadd.f32 %v6620_v16, %v4589_v40  ;;  %v4588_v43 = vld [vmem:[#allocation3 + $0x30] sm:$0xff]  ;;  %v6668_v57 = vpop.f32.mrb[102].mxu1 }
 0x1eb   : > { %4937 = vst.msk [vmem:[#allocation3 + $0x8] sm:$0xff] %vm395_vm2, %v4929_v30  ;;  %v4745_v46 = vadd.f32 %v4730_v19, %v4588_v43  ;;  %v5278_v58 = vpop.f32.mrb[103].mxu1 }
 0x1ec   : > { %4936 = vst.msk [vmem:[#allocation3] sm:$0xff] %vm395_vm2, %v4928_v32  ;;  %v4774_v35 = vld [vmem:[#allocation3 + $0x18] sm:$0xff]  ;;  %4754 = vst.msk [vmem:[#allocation3 + $0x38] sm:$0xff] %vm395_vm2, %v4746_v42  ;;  %v6671_v0 = vpop.f32.mrb[104].mxu1 }
 0x1ed   : > { %v4931_v38 = vadd.f32 %v6632_v2, %v4774_v35  ;;  %v4773_v39 = vld [vmem:[#allocation3 + $0x10] sm:$0xff]  ;;  %4753 = vst.msk [vmem:[#allocation3 + $0x30] sm:$0xff] %vm395_vm2, %v4745_v46  ;;  %v5288_v3 = vpop.f32.mrb[105].mxu1  ;;  %v5905_v46 = vld [vmem:[%s7947_s2] ss:$0 sm:$0xff] }
 0x1ee   : > { %v4930_v41 = vadd.f32 %v4899_v5, %v4773_v39 }
 0x1ef   : > { %4939 = vst.msk [vmem:[#allocation3 + $0x18] sm:$0xff] %vm395_vm2, %v4931_v38  ;;  %v4776_v47 = vld [vmem:[#allocation3 + $0x28] sm:$0xff] }
 0x1f0   : > { %4938 = vst.msk [vmem:[#allocation3 + $0x10] sm:$0xff] %vm395_vm2, %v4930_v41  ;;  %v4933_v50 = vadd.f32 %v6635_v11, %v4776_v47  ;;  %v4775_v51 = vld [vmem:[#allocation3 + $0x20] sm:$0xff] }
 0x1f1   : > { %v4932_v52 = vadd.f32 %v4909_v13, %v4775_v51 }
 0x1f2   : > { %v4962_v53 = vld [vmem:[#allocation3 + $0x8] sm:$0xff]  ;;  %4941 = vst.msk [vmem:[#allocation3 + $0x28] sm:$0xff] %vm395_vm2, %v4933_v50 }
 0x1f3   : > { %v5119_v54 = vadd.f32 %v6647_v26, %v4962_v53  ;;  %v4961_v55 = vld [vmem:[#allocation3] sm:$0xff]  ;;  %4940 = vst.msk [vmem:[#allocation3 + $0x20] sm:$0xff] %vm395_vm2, %v4932_v52  ;;  %v4778_v62 = vld [vmem:[#allocation3 + $0x38] sm:$0xff] }
 0x1f4   : > { %v5118_v56 = vadd.f32 %v5079_v29, %v4961_v55  ;;  %v4935_v1 = vadd.f32 %v6638_v33, %v4778_v62  ;;  %v4777_v2 = vld [vmem:[#allocation3 + $0x30] sm:$0xff]  ;;  %v6674_v13 = vpop.f32.mrb[106].mxu1 }
 0x1f5   : > { %5127 = vst.msk [vmem:[#allocation3 + $0x8] sm:$0xff] %vm395_vm2, %v5119_v54  ;;  %v4934_v4 = vadd.f32 %v4919_v36, %v4777_v2  ;;  %v5298_v16 = vpop.f32.mrb[107].mxu1 }
 0x1f6   : > { %5126 = vst.msk [vmem:[#allocation3] sm:$0xff] %vm395_vm2, %v5118_v56  ;;  %v4964_v59 = vld [vmem:[#allocation3 + $0x18] sm:$0xff]  ;;  %4943 = vst.msk [vmem:[#allocation3 + $0x38] sm:$0xff] %vm395_vm2, %v4935_v1 }
 0x1f7   : > { %v5121_v60 = vadd.f32 %v6650_v34, %v4964_v59  ;;  %v4963_v61 = vld [vmem:[#allocation3 + $0x10] sm:$0xff]  ;;  %4942 = vst.msk [vmem:[#allocation3 + $0x30] sm:$0xff] %vm395_vm2, %v4934_v4  ;;  %v6656_v14 = vpop.f32.mrb[98].mxu0 }
 0x1f8   : > { %v5120_v63 = vadd.f32 %v5089_v37, %v4963_v61  ;;  %v5109_v17 = vpop.f32.mrb[99].mxu0 }
 0x1f9   : > { %5129 = vst.msk [vmem:[#allocation3 + $0x18] sm:$0xff] %vm395_vm2, %v5121_v60  ;;  %v4966_v5 = vld [vmem:[#allocation3 + $0x28] sm:$0xff] }
 0x1fa   : > { %5128 = vst.msk [vmem:[#allocation3 + $0x10] sm:$0xff] %vm395_vm2, %v5120_v63  ;;  %v5123_v6 = vadd.f32 %v6653_v44, %v4966_v5  ;;  %v4965_v7 = vld [vmem:[#allocation3 + $0x20] sm:$0xff] }
 0x1fb   : > { %v5122_v8 = vadd.f32 %v5099_v48, %v4965_v7  ;;  %v6683_v26 = vpop.f32.mrb[100].mxu0 }
 0x1fc   : > { %v5151_v9 = vld [vmem:[#allocation3 + $0x8] sm:$0xff]  ;;  %5131 = vst.msk [vmem:[#allocation3 + $0x28] sm:$0xff] %vm395_vm2, %v5123_v6  ;;  %v5457_v29 = vpop.f32.mrb[101].mxu0 }
 0x1fd   : > { %v5308_v10 = vadd.f32 %v6665_v45, %v5151_v9  ;;  %v5150_v11 = vld [vmem:[#allocation3] sm:$0xff]  ;;  %5130 = vst.msk [vmem:[#allocation3 + $0x20] sm:$0xff] %vm395_vm2, %v5122_v8  ;;  %v4968_v20 = vld [vmem:[#allocation3 + $0x38] sm:$0xff] }
 0x1fe   : > { %v5307_v12 = vadd.f32 %v5268_v49, %v5150_v11  ;;  %v5125_v22 = vadd.f32 %v6656_v14, %v4968_v20  ;;  %v4967_v23 = vld [vmem:[#allocation3 + $0x30] sm:$0xff] }
 0x1ff   : > { %5316 = vst.msk [vmem:[#allocation3 + $0x8] sm:$0xff] %vm395_vm2, %v5308_v10  ;;  %v5124_v24 = vadd.f32 %v5109_v17, %v4967_v23  ;;  %v6686_v35 = vpop.f32.mrb[102].mxu0 }
 0x200   : > { %5315 = vst.msk [vmem:[#allocation3] sm:$0xff] %vm395_vm2, %v5307_v12  ;;  %v5153_v15 = vld [vmem:[#allocation3 + $0x18] sm:$0xff]  ;;  %5133 = vst.msk [vmem:[#allocation3 + $0x38] sm:$0xff] %vm395_vm2, %v5125_v22  ;;  %v5467_v36 = vpop.f32.mrb[103].mxu0 }
 0x201   : > { %v5310_v18 = vadd.f32 %v6668_v57, %v5153_v15  ;;  %v5152_v19 = vld [vmem:[#allocation3 + $0x10] sm:$0xff]  ;;  %5132 = vst.msk [vmem:[#allocation3 + $0x30] sm:$0xff] %vm395_vm2, %v5124_v24 }
 0x202   : > { %v5309_v21 = vadd.f32 %v5278_v58, %v5152_v19 }
 0x203   : > { %5318 = vst.msk [vmem:[#allocation3 + $0x18] sm:$0xff] %vm395_vm2, %v5310_v18  ;;  %v5155_v25 = vld [vmem:[#allocation3 + $0x28] sm:$0xff]  ;;  %v6689_v42 = vpop.f32.mrb[104].mxu0 }
 0x204   : > { %5317 = vst.msk [vmem:[#allocation3 + $0x10] sm:$0xff] %vm395_vm2, %v5309_v21  ;;  %v5312_v27 = vadd.f32 %v6671_v0, %v5155_v25  ;;  %v5154_v28 = vld [vmem:[#allocation3 + $0x20] sm:$0xff]  ;;  %v5477_v45 = vpop.f32.mrb[105].mxu0 }
 0x205   : > { %v5311_v30 = vadd.f32 %v5288_v3, %v5154_v28 }
 0x206   : > { %v5340_v31 = vld [vmem:[#allocation3 + $0x8] sm:$0xff]  ;;  %5320 = vst.msk [vmem:[#allocation3 + $0x28] sm:$0xff] %vm395_vm2, %v5312_v27 }
 0x207   : > { %v5497_v32 = vadd.f32 %v6683_v26, %v5340_v31  ;;  %v5339_v33 = vld [vmem:[#allocation3] sm:$0xff]  ;;  %5319 = vst.msk [vmem:[#allocation3 + $0x20] sm:$0xff] %vm395_vm2, %v5311_v30  ;;  %v5157_v40 = vld [vmem:[#allocation3 + $0x38] sm:$0xff]  ;;  %v6692_v53 = vpop.f32.mrb[106].mxu0 }
 0x208   : > { %v5496_v34 = vadd.f32 %v5457_v29, %v5339_v33  ;;  %v5314_v43 = vadd.f32 %v6674_v13, %v5157_v40  ;;  %v5156_v44 = vld [vmem:[#allocation3 + $0x30] sm:$0xff]  ;;  %v5487_v56 = vpop.f32.mrb[107].mxu0 }
 0x209   : > { %5505 = vst.msk [vmem:[#allocation3 + $0x8] sm:$0xff] %vm395_vm2, %v5497_v32  ;;  %v5313_v47 = vadd.f32 %v5298_v16, %v5156_v44 }
 0x20a   : > { %5504 = vst.msk [vmem:[#allocation3] sm:$0xff] %vm395_vm2, %v5496_v34  ;;  %v5342_v37 = vld [vmem:[#allocation3 + $0x18] sm:$0xff]  ;;  %5322 = vst.msk [vmem:[#allocation3 + $0x38] sm:$0xff] %vm395_vm2, %v5314_v43 }
 0x20b   : > { %v5499_v38 = vadd.f32 %v6686_v35, %v5342_v37  ;;  %v5341_v39 = vld [vmem:[#allocation3 + $0x10] sm:$0xff]  ;;  %5321 = vst.msk [vmem:[#allocation3 + $0x30] sm:$0xff] %vm395_vm2, %v5313_v47 }
 0x20c   : > { %v5498_v41 = vadd.f32 %v5467_v36, %v5341_v39 }
 0x20d   : > { %5507 = vst.msk [vmem:[#allocation3 + $0x18] sm:$0xff] %vm395_vm2, %v5499_v38  ;;  %v5344_v48 = vld [vmem:[#allocation3 + $0x28] sm:$0xff] }
 0x20e   : > { %5506 = vst.msk [vmem:[#allocation3 + $0x10] sm:$0xff] %vm395_vm2, %v5498_v41  ;;  %v5501_v49 = vadd.f32 %v6689_v42, %v5344_v48  ;;  %v5343_v50 = vld [vmem:[#allocation3 + $0x20] sm:$0xff] }
 0x20f   : > { %v5500_v52 = vadd.f32 %v5477_v45, %v5343_v50 }
 0x210   : > { %v5513_v51 = vld [vmem:[#allocation3 + $0x8] sm:$0xff]  ;;  %5509 = vst.msk [vmem:[#allocation3 + $0x28] sm:$0xff] %vm395_vm2, %v5501_v49 }
 0x211   : > { %v5528_v54 = vadd.f32 %v5905_v46, %v5513_v51  ;;  %v5512_v55 = vld [vmem:[#allocation3] sm:$0xff]  ;;  %5508 = vst.msk [vmem:[#allocation3 + $0x20] sm:$0xff] %vm395_vm2, %v5500_v52  ;;  %v5346_v62 = vld [vmem:[#allocation3 + $0x38] sm:$0xff] }
 0x212   : > { %v5527_v57 = vadd.f32 %v5905_v46, %v5512_v55  ;;  %v5503_v63 = vadd.f32 %v6692_v53, %v5346_v62  ;;  %v5345_v0 = vld [vmem:[#allocation3 + $0x30] sm:$0xff] }
 0x213   : > { %5536 = vst.msk [vmem:[%s7919_s19 + $0x8] sm:$0xff] %vm395_vm2, %v5528_v54  ;;  %v5502_v2 = vadd.f32 %v5487_v56, %v5345_v0 }
 0x214   : > { %5535 = vst.msk [vmem:[%s7919_s19] sm:$0xff] %vm395_vm2, %v5527_v57  ;;  %v5515_v58 = vld [vmem:[#allocation3 + $0x18] sm:$0xff]  ;;  %5511 = vst.msk [vmem:[#allocation3 + $0x38] sm:$0xff] %vm395_vm2, %v5503_v63 }
 0x215   : > { %v5530_v59 = vadd.f32 %v5905_v46, %v5515_v58  ;;  %v5514_v60 = vld [vmem:[#allocation3 + $0x10] sm:$0xff]  ;;  %5510 = vst.msk [vmem:[#allocation3 + $0x30] sm:$0xff] %vm395_vm2, %v5502_v2 }
 0x216   : > { %v5529_v61 = vadd.f32 %v5905_v46, %v5514_v60 }
 0x217   : > { %5538 = vst.msk [vmem:[%s7919_s19 + $0x18] sm:$0xff] %vm395_vm2, %v5530_v59  ;;  %v5517_v1 = vld [vmem:[#allocation3 + $0x28] sm:$0xff] }
 0x218   : > { %5537 = vst.msk [vmem:[%s7919_s19 + $0x10] sm:$0xff] %vm395_vm2, %v5529_v61  ;;  %v5532_v3 = vadd.f32 %v5905_v46, %v5517_v1  ;;  %v5516_v4 = vld [vmem:[#allocation3 + $0x20] sm:$0xff] }
 0x219   : > { %v5531_v5 = vadd.f32 %v5905_v46, %v5516_v4 }
 0x21a   : > { %5540 = vst.msk [vmem:[%s7919_s19 + $0x28] sm:$0xff] %vm395_vm2, %v5532_v3 }
 0x21b   : > { %5539 = vst.msk [vmem:[%s7919_s19 + $0x20] sm:$0xff] %vm395_vm2, %v5531_v5  ;;  %v5519_v6 = vld [vmem:[#allocation3 + $0x38] sm:$0xff] }
 0x21c   : > { %v5534_v7 = vadd.f32 %v5905_v46, %v5519_v6  ;;  %v5518_v8 = vld [vmem:[#allocation3 + $0x30] sm:$0xff] }
 0x21d   : > { %v5533_v9 = vadd.f32 %v5905_v46, %v5518_v8 }
 0x21e   : > { %5542 = vst.msk [vmem:[%s7919_s19 + $0x38] sm:$0xff] %vm395_vm2, %v5534_v7 }
 0x21f   : > { %5541 = vst.msk [vmem:[%s7919_s19 + $0x30] sm:$0xff] %vm395_vm2, %v5533_v9 }
 0x220 PF: > { %s13_s12 = sadd.s32 1, %s7036_s12  }
 0x221   : > { %p10_p4 = scmp.ge.s32.totalorder %s13_s12, 4  }
 0x223   :  { %12 = sbr.rel (!%p10_p4) target bundleno = 1 (0x1), region = 100 }

// kernel: self_attention_forward.13
= control target key start
LH: loop header
LB: loop body
LE: loop exit
PB: predicated region body
PF: predicated region fallthrough
CT: control target
= control target key end

     0   :  { %10 = vsyncpa [#allocation4], 0  ;;  %s1212_s0 = inlined_call_operand.vmem [shape: f32[4,128,6], index: 0, kind: input, shape index: {}]   ;;  %s1213_s1 = inlined_call_operand.vmem [shape: f32[4,128,6], index: 1, kind: input, shape index: {}]   ;;  %s1214_s2 = inlined_call_operand.vmem [shape: f32[4,128,6], index: 2, kind: input, shape index: {}]   ;;  %s1215_s3 = inlined_call_operand.vmem [shape: f32[4,6,24], index: 3, kind: input, shape index: {}]   ;;  %s1216_s4 = inlined_call_operand.vmem [shape: f32[1,24], index: 4, kind: input, shape index: {}]   ;;  %s1217_s5 = inlined_call_operand.hbm [shape: f32[128,24], index: 5, kind: output, shape index: {}]  }
   0x1   :  { %12 = vsyncpa [#allocation4 + $0x1], 0  ;;  %s993_s18 = smov 0   ;;  %s995_s19 = smov 0  }
   0x2   :  { %s997_s20 = smov 0   ;;  %s999_s21 = smov 0  }
   0x3   :  { %s1001_s22 = smov 0   ;;  %s1003_s23 = smov 0  }
   0x4   :  { %s1005_s24 = smov 0   ;;  %s1007_s25 = smov 0  }
   0x5 LB: > { %1223 = sst [smem:[#allocation6_spill]] %s937_s20  ;;  %s730_s26 = sadd.s32 4294967295, %s957_s25   ;;  %s957_s25 = sphi %s1007_s25, %s18_s25   ;;  %s953_s24 = sphi %s1005_s24, %s1240_s24   ;;  %s949_s23 = sphi %s1003_s23, %s1236_s23   ;;  %s945_s22 = sphi %s1001_s22, %s1235_s22   ;;  %s941_s21 = sphi %s999_s21, %s1234_s21   ;;  %s937_s20 = sphi %s997_s20, %s1233_s20   ;;  %s933_s19 = sphi %s995_s19, %s1239_s19   ;;  %s929_s18 = sphi %s993_s18, %s1238_s18  }
   0x6   : > { %1224 = sst [smem:[#allocation7_spill]] %s949_s23  ;;  %s731_s27 = sadd.s32 4294967294, %s957_s25  }
   0x7   : > { %1225 = sst [smem:[#allocation8_spill]] %s953_s24  ;;  %s27_s28 = sadd.s32 1, %s949_s23 }
   0x8   : > { %p28_p0 = scmp.ge.s32.totalorder %s27_s28, 4  ;;  %s30_s29 = sadd.s32 1, %s953_s24 }
   0x9   : > { %p178_p1 = scmp.ne.s32.totalorder %s937_s20, %s933_s19  ;;  %p179_p2 = scmp.eq.s32.totalorder %s730_s26, 7 }
   0xa   : > { %s1242_s28 = smov (%p28_p0, %s27_s28), 0  ;;  %s1244_s29 = smov (!%p28_p0, %s30_s29), %s953_s24 }
   0xb   : > { %1226 = sst [smem:[#allocation9_spill]] %s1242_s28  ;;  %p1042_p3 = por %p179_p2, %p178_p1 }
   0xc   : > { %p184_p4 = scmp.ne.s32.totalorder %s933_s19, %s929_s18  ;;  %p32_p5 = scmp.ge.s32.totalorder %s1244_s29, 2 }
   0xd   : > { %p185_p6 = scmp.eq.s32.totalorder %s731_s27, 7  ;;  %p734_p7 = scmp.ge.s32.totalorder %s957_s25, 1 }
   0xe   : > { %p252_p8 = scmp.lt.s32.totalorder %s957_s25, 9  ;;  %s1246_s29 = smov (%p32_p5, %s1244_s29), 0 }
   0xf   : > { %1228 = sst [smem:[#allocation10_spill]] %s1246_s29  ;;  %p1052_p9 = por %p185_p6, %p184_p4 }
  0x10   : > { %p253_p10 = pnand %p734_p7, %p252_p8  ;;  %s165_s7 = ssub.s32 %s953_s24, %s1246_s29 }
  0x11   : > { %s168_s8 = sadd.s32 1, %s937_s20  ;;  %p166_p11 = scmp.eq.s32.totalorder %s165_s7, 0 }
  0x12   : > { %256 = sbr.rel (%p253_p10) target bundleno = 300 (0x12c), region = 40  ;;  %s1221_s10 = sand.u32 (!%p253_p10), 1, %s933_s19  }
  0x13   : > { %s1060_s9 = scalar_select %p166_p11, %s937_s20, %s168_s8  }
  0x14   : > { %s736_s11 = sshll.u32 (!%p253_p10), %s945_s22, 3  ;;  %s735_s12 = sshll.u32 (!%p253_p10), %s1221_s10, 6 }
  0x15   : > { %1230 = sst [smem:[#allocation11_spill]] %s1060_s9  ;;  %p307_p12 = scmp.lt.s32.totalorder (!%p253_p10), %s941_s21, 3 }
  0x16   : > { %p309_p13 = scmp.lt.s32.totalorder (!%p253_p10), %s736_s11, 15  ;;  %p746_p0 = scmp.ne.s32.totalorder (!%p253_p10), %s941_s21, 0 }
  0x19   : > { %s308_s13 = scalar_select %p307_p12, %s941_s21, 3 }
  0x1a   : > { %s1248_s11 = smov (!%p309_p13, %s736_s11), 15  ;;  %344 = sbr.rel (%p746_p0) target bundleno = 33 (0x21), region = 44 }
  0x1b   : > { %s737_s14 = sshll.u32 %s308_s13, 4  ;;  %s745_s15 = sshll.u32 %s308_s13, 3  ;;  %vm345_vm0 = vcmask (!%p746_p0), 195584   ;;  %v959_v0 = vmov (!%p746_p0), 0.0  }
  0x1c   : > { %s312_s16 = sadd.s32 %s737_s14, %s1248_s11  ;;  %s339_s27 = scalar_lea.vmem %s1215_s3, %s745_s15  ;;  %346 = vst.msk [vmem:[#allocation2] sm:$0xff] (!%p746_p0), %vm345_vm0, %v959_v0  ;;  %347 = vst.msk [vmem:[#allocation2 + $0x8] sm:$0xff] (!%p746_p0), %vm345_vm0, %v959_v0 }
  0x1d   : > { %s738_s7 = sshll.u32 %s312_s16, 3  ;;  %s1086_s11 = scalar_lea.vmem [#allocation3], %s735_s12  ;;  %348 = vst.msk [vmem:[#allocation2 + $0x10] sm:$0xff] (!%p746_p0), %vm345_vm0, %v959_v0  ;;  %349 = vst.msk [vmem:[#allocation2 + $0x18] sm:$0xff] (!%p746_p0), %vm345_vm0, %v959_v0 }
  0x1e   : > { %s1074_s28 = scalar_lea.vmem %s1212_s0, %s738_s7  ;;  %s1079_s10 = scalar_lea.vmem %s1213_s1, %s738_s7  ;;  %350 = vst.msk [vmem:[#allocation2 + $0x20] sm:$0xff] (!%p746_p0), %vm345_vm0, %v959_v0  ;;  %351 = vst.msk [vmem:[#allocation2 + $0x28] sm:$0xff] (!%p746_p0), %vm345_vm0, %v959_v0 }
  0x1f   : > { %s1084_s13 = scalar_lea.vmem %s1214_s2, %s738_s7  ;;  %352 = vst.msk [vmem:[#allocation2 + $0x30] sm:$0xff] (!%p746_p0), %vm345_vm0, %v959_v0  ;;  %353 = vst.msk [vmem:[#allocation2 + $0x38] sm:$0xff] (!%p746_p0), %vm345_vm0, %v959_v0 }
  0x21 PF: > { %v402_v1 = vld [vmem:[%s339_s27] sm:$0x3f]  ;;  %vm428_vm1 = vcmask 1045504   ;;  %vm403_vm2 = vcmask 48128   ;;  %v355_v10 = vld [vmem:[%s1074_s28 + $0x8] sm:$0xff]  ;;  %v356_v20 = vld [vmem:[%s1074_s28 + $0x10] sm:$0xff] }
  0x22   : > { %v354_v2 = vld [vmem:[%s1074_s28] sm:$0xff]  ;;  %773 = vmatprep.subr.msk.mxu0 %vm428_vm1, %v402_v1  ;;  %787 = vmatprep.subr.msk.mxu1 %vm428_vm1, %v402_v1  ;;  %v363_v11 = vld [vmem:[%s1079_s10 + $0x8] sm:$0xff]  ;;  %v364_v21 = vld [vmem:[%s1079_s10 + $0x10] sm:$0xff]  ;;  %vm545_vm3 = vcmask 195584   ;;  %p756_p1 = scmp.ne.s32.totalorder %s941_s21, 3 }
  0x23   : > { %v362_v3 = vld [vmem:[%s1079_s10] sm:$0xff]  ;;  %774 = vmatpush3.msk.msra.mxu0 %vm428_vm1, %v402_v1  ;;  %788 = vmatpush3.msk.msra.mxu1 %vm428_vm1, %v402_v1  ;;  %v371_v13 = vadd.f32 %v363_v11, %v355_v10  ;;  %v379_v14 = vld [vmem:[%s1084_s13 + $0x8] sm:$0xff]  ;;  %v372_v23 = vadd.f32 %v364_v21, %v356_v20  ;;  %v380_v24 = vld [vmem:[%s1084_s13 + $0x10] sm:$0xff] }
  0x24   : > { %v370_v4 = vadd.f32 %v362_v3, %v354_v2  ;;  %v378_v5 = vld [vmem:[%s1084_s13] sm:$0xff]  ;;  %v359_v15 = vld [vmem:[%s1074_s28 + $0x28] sm:$0xff]  ;;  %v360_v25 = vld [vmem:[%s1074_s28 + $0x30] sm:$0xff] }
  0x25   : > { %v358_v6 = vld [vmem:[%s1074_s28 + $0x20] sm:$0xff]  ;;  %v367_v16 = vld [vmem:[%s1079_s10 + $0x28] sm:$0xff]  ;;  %v387_v22 = vadd.f32 %v379_v14, %v371_v13  ;;  %v368_v26 = vld [vmem:[%s1079_s10 + $0x30] sm:$0xff]  ;;  %v388_v32 = vadd.f32 %v380_v24, %v372_v23 }
  0x26   : > { %v366_v7 = vld [vmem:[%s1079_s10 + $0x20] sm:$0xff]  ;;  %v386_v12 = vadd.f32 %v378_v5, %v370_v4  ;;  %v375_v18 = vadd.f32 %v367_v16, %v359_v15  ;;  %v383_v19 = vld [vmem:[%s1084_s13 + $0x28] sm:$0xff]  ;;  %v376_v28 = vadd.f32 %v368_v26, %v360_v25  ;;  %v384_v29 = vld [vmem:[%s1084_s13 + $0x30] sm:$0xff] }
  0x27   : > { %v374_v8 = vadd.f32 %v366_v7, %v358_v6  ;;  %v382_v9 = vld [vmem:[%s1084_s13 + $0x20] sm:$0xff]  ;;  %v357_v30 = vld [vmem:[%s1074_s28 + $0x18] sm:$0xff]  ;;  %v395_v42 = vld [vmem:[#allocation2 + $0x8] sm:$0xff] }
  0x28   : > { %775 = vmatprep.mubr.msk.f32.mxu0 %vm403_vm2, %v386_v12  ;;  %v391_v27 = vadd.f32 %v383_v19, %v375_v18  ;;  %v365_v31 = vld [vmem:[%s1079_s10 + $0x18] sm:$0xff]  ;;  %v392_v37 = vadd.f32 %v384_v29, %v376_v28  ;;  %v399_v43 = vld [vmem:[#allocation2 + $0x28] sm:$0xff]  ;;  %v394_v44 = vld [vmem:[#allocation2] sm:$0xff] }
  0x29   : > { %v390_v17 = vadd.f32 %v382_v9, %v374_v8  ;;  %776 = vmatmul.mubr.msk.f32.vlgmr.msra.gmra.mrb[0].mxu0 %vm403_vm2, %v387_v22  ;;  %v373_v33 = vadd.f32 %v365_v31, %v357_v30  ;;  %v381_v34 = vld [vmem:[%s1084_s13 + $0x18] sm:$0xff]  ;;  %v398_v46 = vld [vmem:[#allocation2 + $0x20] sm:$0xff]  ;;  %v396_v56 = vld [vmem:[#allocation2 + $0x10] sm:$0xff] }
  0x2a   : > { %v361_v35 = vld [vmem:[%s1074_s28 + $0x38] sm:$0xff]  ;;  %778 = vmatprep.mubr.msk.f32.mxu0 %vm403_vm2, %v388_v32  ;;  %v400_v58 = vld [vmem:[#allocation2 + $0x30] sm:$0xff]  ;;  %v757_v3 = vld [vmem:[%s1216_s4] ss:$0 sm:$0xff] (!%p756_p1) }
  0x2b   : > { %781 = vmatprep.mubr.msk.f32.mxu1 %vm403_vm2, %v390_v17  ;;  %v369_v36 = vld [vmem:[%s1079_s10 + $0x38] sm:$0xff]  ;;  %v389_v40 = vadd.f32 %v381_v34, %v373_v33 }
  0x2c   : > { %782 = vmatmul.mubr.msk.f32.vlgmr.msra.gmra.mrb[0].mxu1 %vm403_vm2, %v391_v27  ;;  %v377_v38 = vadd.f32 %v369_v36, %v361_v35  ;;  %v385_v39 = vld [vmem:[%s1084_s13 + $0x38] sm:$0xff] }
  0x2d   : > { %784 = vmatprep.mubr.msk.f32.mxu1 %vm403_vm2, %v392_v37  ;;  %779 = vmatmul.mubr.msk.f32.gmra.mrb[2].mxu0 %vm403_vm2, %v389_v40  ;;  %v397_v53 = vld [vmem:[#allocation2 + $0x18] sm:$0xff] }
  0x2e   : > { %v393_v41 = vadd.f32 %v385_v39, %v377_v38  ;;  %v401_v55 = vld [vmem:[#allocation2 + $0x38] sm:$0xff] }
  0x30   : > { %785 = vmatmul.mubr.msk.f32.gmra.mrb[2].mxu1 %vm403_vm2, %v393_v41 }
  0xfc   : > { %v777_v45 = vpop.f32.mrb[0].mxu0 }
  0xfd   : > { %v538_v47 = vadd.f32 %v777_v45, %v395_v42  ;;  %v498_v49 = vpop.f32.mrb[1].mxu0 }
  0xfe   : > { %v537_v51 = vadd.f32 %v498_v49, %v394_v44 }
  0xff   : > { %v783_v48 = vpop.f32.mrb[0].mxu1  ;;  %547 = vst.msk [vmem:[#allocation2 + $0x8] sm:$0xff] %vm545_vm3, %v538_v47 }
 0x100   : > { %v542_v50 = vadd.f32 %v783_v48, %v399_v43  ;;  %v518_v52 = vpop.f32.mrb[1].mxu1  ;;  %546 = vst.msk [vmem:[#allocation2] sm:$0xff] %vm545_vm3, %v537_v51  ;;  %v780_v57 = vpop.f32.mrb[2].mxu0 }
 0x101   : > { %v541_v54 = vadd.f32 %v518_v52, %v398_v46  ;;  %v540_v59 = vadd.f32 %v780_v57, %v397_v53  ;;  %v508_v61 = vpop.f32.mrb[3].mxu0  ;;  %557 = sbr.rel (%p756_p1) target bundleno = 274 (0x112), region = 48 }
 0x102   : > { %551 = vst.msk [vmem:[#allocation2 + $0x28] sm:$0xff] %vm545_vm3, %v542_v50  ;;  %v539_v63 = vadd.f32 %v508_v61, %v396_v56 }
 0x103   : > { %550 = vst.msk [vmem:[#allocation2 + $0x20] sm:$0xff] %vm545_vm3, %v541_v54  ;;  %v786_v60 = vpop.f32.mrb[2].mxu1  ;;  %549 = vst.msk [vmem:[#allocation2 + $0x18] sm:$0xff] %vm545_vm3, %v540_v59 }
 0x104   : > { %v544_v62 = vadd.f32 %v786_v60, %v401_v55  ;;  %v528_v0 = vpop.f32.mrb[3].mxu1  ;;  %548 = vst.msk [vmem:[#allocation2 + $0x10] sm:$0xff] %vm545_vm3, %v539_v63 }
 0x105   : > { %v543_v1 = vadd.f32 %v528_v0, %v400_v58 }
 0x106   : > { %553 = vst.msk [vmem:[#allocation2 + $0x38] sm:$0xff] %vm545_vm3, %v544_v62  ;;  %v559_v4 = vld [vmem:[#allocation2 + $0x8] sm:$0xff] (!%p756_p1) }
 0x107   : > { %552 = vst.msk [vmem:[#allocation2 + $0x30] sm:$0xff] %vm545_vm3, %v543_v1  ;;  %v558_v2 = vld [vmem:[#allocation2] sm:$0xff] (!%p756_p1)  ;;  %v574_v6 = vadd.f32 (!%p756_p1), %v757_v3, %v559_v4 }
 0x108   : > { %v573_v5 = vadd.f32 %v757_v3, %v558_v2 }
 0x109   : > { %v563_v13 = vld [vmem:[#allocation2 + $0x28] sm:$0xff]  ;;  %582 = vst.msk [vmem:[%s1086_s11 + $0x8] sm:$0xff] %vm545_vm3, %v574_v6 }
 0x10a   : > { %v561_v8 = vld [vmem:[#allocation2 + $0x18] sm:$0xff]  ;;  %v562_v9 = vld [vmem:[#allocation2 + $0x20] sm:$0xff]  ;;  %581 = vst.msk [vmem:[%s1086_s11] sm:$0xff] %vm545_vm3, %v573_v5  ;;  %v578_v16 = vadd.f32 %v757_v3, %v563_v13 }
 0x10b   : > { %v560_v7 = vld [vmem:[#allocation2 + $0x10] sm:$0xff]  ;;  %v576_v11 = vadd.f32 %v757_v3, %v561_v8  ;;  %v577_v12 = vadd.f32 %v757_v3, %v562_v9 }
 0x10c   : > { %v575_v10 = vadd.f32 %v757_v3, %v560_v7  ;;  %586 = vst.msk [vmem:[%s1086_s11 + $0x28] sm:$0xff] %vm545_vm3, %v578_v16 }
 0x10d   : > { %v565_v15 = vld [vmem:[#allocation2 + $0x38] sm:$0xff]  ;;  %584 = vst.msk [vmem:[%s1086_s11 + $0x18] sm:$0xff] %vm545_vm3, %v576_v11  ;;  %585 = vst.msk [vmem:[%s1086_s11 + $0x20] sm:$0xff] %vm545_vm3, %v577_v12 }
 0x10e   : > { %v564_v14 = vld [vmem:[#allocation2 + $0x30] sm:$0xff]  ;;  %v580_v18 = vadd.f32 %v757_v3, %v565_v15  ;;  %583 = vst.msk [vmem:[%s1086_s11 + $0x10] sm:$0xff] %vm545_vm3, %v575_v10 }
 0x10f   : > { %v579_v17 = vadd.f32 %v757_v3, %v564_v14 }
 0x110   : > { %588 = vst.msk [vmem:[%s1086_s11 + $0x38] sm:$0xff] %vm545_vm3, %v580_v18 }
 0x111   : > { %587 = vst.msk [vmem:[%s1086_s11 + $0x30] sm:$0xff] %vm545_vm3, %v579_v17 }
 0x112 PF: > { %s763_s21 = sshll.u32 %s945_s22, 10  ;;  %s603_s9 = sshll.u32 %s1086_s11, 4  ;;  %s1156_s9 = int_to_ptr.vmem [resolvable:$true] %s603_s9 }
 0x113   : > { %s1153_s29 = scalar_lea.hbm %s1217_s5, %s763_s21  ;;  %s1231_s10 = sand.u32 1, %s933_s19  }
 0x114   : > { %s1160_s12 = scalar_lea.sflag [#allocation4], %s1231_s10  ;;  %s863_s14 = scalar_lea.vmem %s1156_s9, 1024 }
 0x115   : > { %p864_p2 = scmp.ne.s32.totalorder %s1156_s9, %s863_s14  ;;  %s960_s22 = smov [#allocation3]  }
 0x116   : > { %s867_s15 = sshll.u32 %s960_s22, 4  ;;  %s868_s15 = int_to_ptr.vmem [resolvable:$false] %s867_s15 }
 0x117   : > { %p865_p4 = pnand %p864_p2, %p1042_p3  ;;  %s869_s16 = scalar_lea.vmem %s868_s15, 2048 }
 0x118   : > { %p870_p6 = scmp.lt.s32.totalorder %s1156_s9, %s868_s15  ;;  %p871_p7 = scmp.lt.s32.totalorder %s869_s16, %s863_s14 }
 0x119   : > { %p866_p5 = pneg %p865_p4 }
 0x11a   : > { %p872_p8 = por %p871_p7, %p870_p6 }
 0x11c   : > { %p873_p10 = pnand %p872_p8, %p866_p5 }
 0x11e   : > { %876 = shalt.err (!%p873_p10)
}
 0x11f   : > { %s877_s17 = scalar_lea.hbm %s1153_s29, 1024  ;;  %s881_s7 = scalar_lea.hbm %s1217_s5, 2048 }
 0x120   : > { %p878_p11 = scmp.ne.s32.totalorder %s1153_s29, %s877_s17  ;;  %p882_p0 = scmp.lt.u32.totalorder %s1153_s29, %s1217_s5 }
 0x121   : > { %p883_p1 = scmp.lt.u32.totalorder %s881_s7, %s877_s17  ;;  %p885_p4 = scmp.lt.u32.totalorder %s877_s17, %s1153_s29 }
 0x122   : > { %p879_p12 = pnand %p878_p11, %p1042_p3 }
 0x123   : > { %p884_p2 = por %p883_p1, %p882_p0 }
 0x124   : > { %p880_p13 = pneg %p879_p12 }
 0x125   : > { %p886_p5 = por %p885_p4, %p884_p2 }
 0x127   : > { %p887_p6 = pnand %p886_p5, %p880_p13 }
 0x129   : > { %890 = shalt.err (!%p887_p6)
}
 0x12a   : > { %s961_s11 = smov 128   ;;  %s962_s20 = smov 8  }
 0x12b   : > { %789 = dma.vmem_to_hbm [thread:$0]  (%p1042_p3), %s1156_s9, 1024, %s1153_s29, %s1160_s12, %s961_s11, %s961_s11, %s962_s20  }
 0x12c PF: > { %p795_p7 = scmp.ge.s32.totalorder %s957_s25, 2  ;;  %s618_s23 = sand.u32 1, %s929_s18  }
 0x12d   : > { %s619_s21 = scalar_lea.sflag [#allocation4], %s618_s23 }
 0x12e   : > { %p792_p8 = pnand %p795_p7, %p1052_p9 }
 0x130   : > { %924 = dma.done.wait (!%p792_p8), %s619_s21, 1024  }
 0x131   : > { %926 = vsyncadd (!%p792_p8), %s619_s21, 4294966272  ;;  %s18_s25 = sadd.s32 1, %s957_s25   ;;  %s1232_s24 = sld [smem:[#allocation6_spill]] }
 0x132   : > { %p15_p10 = scmp.ge.s32.totalorder %s18_s25, 10   ;;  %s1233_s20 = sld [smem:[#allocation11_spill]] }
 0x133   : > { %s1234_s21 = sld [smem:[#allocation7_spill]]  ;;  %s1235_s22 = sld [smem:[#allocation8_spill]] }
 0x134   : > { %s1236_s23 = sld [smem:[#allocation9_spill]]  ;;  %s1237_s30 = sld [smem:[#allocation10_spill]] }
 0x135   : > { %s1238_s18 = smov %s933_s19  ;;  %17 = sbr.rel (!%p15_p10) target bundleno = 5 (0x5), region = 92 }
 0x137   : > { %s1239_s19 = smov %s1232_s24 }
 0x13a   : > { %s1240_s24 = smov %s1237_s30 }
 0x13c   :  { %624 = vsyncpa [#allocation4], 1 }
 0x13d   :  { %626 = vsyncpa [#allocation4 + $0x1], 1 }

// kernel: self_attention_forward.12
= control target key start
LH: loop header
LB: loop body
LE: loop exit
PB: predicated region body
PF: predicated region fallthrough
CT: control target
= control target key end

     0   :  { %s13456_s6 = smov 0   ;;  %s13458_s7 = smov 0   ;;  %s15386_s0 = inlined_call_operand.vmem [shape: f32[3,4,32,4,6], index: 0, kind: input, shape index: {}]   ;;  %s15387_s1 = inlined_call_operand.vmem [shape: f32[4,32,4,6], index: 1, kind: output, shape index: {}]  }
   0x1   :  { %s13460_s8 = smov 0  }
   0x2 LB: > { %s11969_s9 = sadd.s32 4294967295, %s13442_s8   ;;  %s13473_s10 = sadd.s32 1, %s13442_s8   ;;  %s13442_s8 = sphi %s13460_s8, %s15469_s8   ;;  %s13438_s7 = sphi %s13458_s7, %s15468_s7   ;;  %s13434_s6 = sphi %s13456_s6, %s15467_s6  }
   0x3   : > { %s15_s11 = ssub.s32 %s13442_s8, %s13473_s10  ;;  %s18_s12 = sadd.s32 1, %s13438_s7 }
   0x4   : > { %p16_p0 = scmp.eq.s32.totalorder %s15_s11, 0  ;;  %p25_p1 = scmp.ne.s32.totalorder %s13438_s7, %s13434_s6 }
   0x5   : > { %p26_p2 = scmp.eq.s32.totalorder %s13442_s8, 0  ;;  %p55_p3 = scmp.eq.s32.totalorder %s11969_s9, 1 }
   0x6   : > { %s13484_s13 = scalar_select %p16_p0, %s13438_s7, %s18_s12  }
   0x7   : > { %p27_p4 = por %p26_p2, %p25_p1  ;;  %p13486_p5 = por %p55_p3, %p25_p1 }
   0x8   : > { %p11972_p6 = scmp.ge.s32.totalorder %s13442_s8, 2 }
   0xa   : > { %77 = sbr.rel (%p11972_p6) target bundleno = 70 (0x46), region = 16 }
  0x11   : > { %80 = sbr.rel (!%p27_p4) target bundleno = 70 (0x46), region = 20  ;;  %s82_s15 = sand.u32 (%p27_p4), 1, %s13438_s7  }
  0x12   : > { %s12238_s16 = sshll.u32 (%p27_p4), %s13442_s8, 6  ;;  %s13136_s17 = smul.u32 (%p27_p4), 768, %s82_s15 }
  0x13   : > { %s13496_s20 = scalar_lea.vmem (%p27_p4), %s15386_s0, %s12238_s16 }
  0x14   : > { %v103_v0 = vld [vmem:[%s13496_s20] sm:$0xff] (%p27_p4)   ;;  %v107_v1 = vld [vmem:[%s13496_s20 + $0x8] sm:$0xff] (%p27_p4)   ;;  %v111_v2 = vld [vmem:[%s13496_s20 + $0x10] sm:$0xff] (%p27_p4)   ;;  %s13504_s21 = scalar_lea.vmem (%p27_p4), [#allocation2], %s13136_s17 }
  0x15   : > { %v115_v3 = vld [vmem:[%s13496_s20 + $0x18] sm:$0xff] (%p27_p4)   ;;  %v119_v4 = vld [vmem:[%s13496_s20 + $0x20] sm:$0xff] (%p27_p4)   ;;  %v123_v5 = vld [vmem:[%s13496_s20 + $0x28] sm:$0xff] (%p27_p4)   ;;  %104 = vst [vmem:[%s13504_s21] sm:$0xff] (%p27_p4), %v103_v0  }
  0x16   : > { %108 = vst [vmem:[%s13504_s21 + $0x8] sm:$0xff] (%p27_p4), %v107_v1   ;;  %112 = vst [vmem:[%s13504_s21 + $0x10] sm:$0xff] (%p27_p4), %v111_v2   ;;  %v127_v6 = vld [vmem:[%s13496_s20 + $0x30] sm:$0xff] (%p27_p4)   ;;  %v131_v7 = vld [vmem:[%s13496_s20 + $0x38] sm:$0xff] (%p27_p4)  }
  0x17   : > { %116 = vst [vmem:[%s13504_s21 + $0x18] sm:$0xff] (%p27_p4), %v115_v3   ;;  %120 = vst [vmem:[%s13504_s21 + $0x20] sm:$0xff] (%p27_p4), %v119_v4   ;;  %v135_v8 = vld [vmem:[%s13496_s20 + $0x80] sm:$0xff] (%p27_p4)   ;;  %v139_v9 = vld [vmem:[%s13496_s20 + $0x88] sm:$0xff] (%p27_p4)  }
  0x18   : > { %124 = vst [vmem:[%s13504_s21 + $0x28] sm:$0xff] %v123_v5   ;;  %128 = vst [vmem:[%s13504_s21 + $0x30] sm:$0xff] %v127_v6   ;;  %v143_v10 = vld [vmem:[%s13496_s20 + $0x90] sm:$0xff]   ;;  %v147_v11 = vld [vmem:[%s13496_s20 + $0x98] sm:$0xff]  }
  0x19   : > { %132 = vst [vmem:[%s13504_s21 + $0x38] sm:$0xff] %v131_v7   ;;  %136 = vst [vmem:[%s13504_s21 + $0x40] sm:$0xff] %v135_v8   ;;  %v151_v12 = vld [vmem:[%s13496_s20 + $0xa0] sm:$0xff]   ;;  %v155_v13 = vld [vmem:[%s13496_s20 + $0xa8] sm:$0xff]  }
  0x1a   : > { %140 = vst [vmem:[%s13504_s21 + $0x48] sm:$0xff] %v139_v9   ;;  %144 = vst [vmem:[%s13504_s21 + $0x50] sm:$0xff] %v143_v10   ;;  %v159_v14 = vld [vmem:[%s13496_s20 + $0xb0] sm:$0xff]   ;;  %v163_v15 = vld [vmem:[%s13496_s20 + $0xb8] sm:$0xff]  }
  0x1b   : > { %148 = vst [vmem:[%s13504_s21 + $0x58] sm:$0xff] %v147_v11   ;;  %152 = vst [vmem:[%s13504_s21 + $0x60] sm:$0xff] %v151_v12   ;;  %v167_v16 = vld [vmem:[%s13496_s20 + $0x100] sm:$0xff]   ;;  %v171_v17 = vld [vmem:[%s13496_s20 + $0x108] sm:$0xff]  }
  0x1c   : > { %156 = vst [vmem:[%s13504_s21 + $0x68] sm:$0xff] %v155_v13   ;;  %160 = vst [vmem:[%s13504_s21 + $0x70] sm:$0xff] %v159_v14   ;;  %v175_v18 = vld [vmem:[%s13496_s20 + $0x110] sm:$0xff]   ;;  %v179_v19 = vld [vmem:[%s13496_s20 + $0x118] sm:$0xff]  }
  0x1d   : > { %164 = vst [vmem:[%s13504_s21 + $0x78] sm:$0xff] %v163_v15   ;;  %168 = vst [vmem:[%s13504_s21 + $0x80] sm:$0xff] %v167_v16   ;;  %v183_v20 = vld [vmem:[%s13496_s20 + $0x120] sm:$0xff]   ;;  %v187_v21 = vld [vmem:[%s13496_s20 + $0x128] sm:$0xff]  }
  0x1e   : > { %172 = vst [vmem:[%s13504_s21 + $0x88] sm:$0xff] %v171_v17   ;;  %176 = vst [vmem:[%s13504_s21 + $0x90] sm:$0xff] %v175_v18   ;;  %v191_v22 = vld [vmem:[%s13496_s20 + $0x130] sm:$0xff]   ;;  %v195_v23 = vld [vmem:[%s13496_s20 + $0x138] sm:$0xff]  }
  0x1f   : > { %180 = vst [vmem:[%s13504_s21 + $0x98] sm:$0xff] %v179_v19   ;;  %184 = vst [vmem:[%s13504_s21 + $0xa0] sm:$0xff] %v183_v20   ;;  %v199_v24 = vld [vmem:[%s13496_s20 + $0x180] sm:$0xff]   ;;  %v203_v25 = vld [vmem:[%s13496_s20 + $0x188] sm:$0xff]  }
  0x20   : > { %188 = vst [vmem:[%s13504_s21 + $0xa8] sm:$0xff] %v187_v21   ;;  %192 = vst [vmem:[%s13504_s21 + $0xb0] sm:$0xff] %v191_v22   ;;  %v207_v26 = vld [vmem:[%s13496_s20 + $0x190] sm:$0xff]   ;;  %v211_v27 = vld [vmem:[%s13496_s20 + $0x198] sm:$0xff]  }
  0x21   : > { %196 = vst [vmem:[%s13504_s21 + $0xb8] sm:$0xff] %v195_v23   ;;  %200 = vst [vmem:[%s13504_s21 + $0xc0] sm:$0xff] %v199_v24   ;;  %v215_v28 = vld [vmem:[%s13496_s20 + $0x1a0] sm:$0xff]   ;;  %v219_v29 = vld [vmem:[%s13496_s20 + $0x1a8] sm:$0xff]  }
  0x22   : > { %204 = vst [vmem:[%s13504_s21 + $0xc8] sm:$0xff] %v203_v25   ;;  %208 = vst [vmem:[%s13504_s21 + $0xd0] sm:$0xff] %v207_v26   ;;  %v223_v30 = vld [vmem:[%s13496_s20 + $0x1b0] sm:$0xff]   ;;  %v227_v31 = vld [vmem:[%s13496_s20 + $0x1b8] sm:$0xff]  }
  0x23   : > { %212 = vst [vmem:[%s13504_s21 + $0xd8] sm:$0xff] %v211_v27   ;;  %216 = vst [vmem:[%s13504_s21 + $0xe0] sm:$0xff] %v215_v28   ;;  %v231_v32 = vld [vmem:[%s13496_s20 + $0x200] sm:$0xff]   ;;  %v235_v33 = vld [vmem:[%s13496_s20 + $0x208] sm:$0xff]  }
  0x24   : > { %220 = vst [vmem:[%s13504_s21 + $0xe8] sm:$0xff] %v219_v29   ;;  %224 = vst [vmem:[%s13504_s21 + $0xf0] sm:$0xff] %v223_v30   ;;  %v239_v34 = vld [vmem:[%s13496_s20 + $0x210] sm:$0xff]   ;;  %v243_v35 = vld [vmem:[%s13496_s20 + $0x218] sm:$0xff]  }
  0x25   : > { %228 = vst [vmem:[%s13504_s21 + $0xf8] sm:$0xff] %v227_v31   ;;  %232 = vst [vmem:[%s13504_s21 + $0x100] sm:$0xff] %v231_v32   ;;  %v247_v36 = vld [vmem:[%s13496_s20 + $0x220] sm:$0xff]   ;;  %v251_v37 = vld [vmem:[%s13496_s20 + $0x228] sm:$0xff]  }
  0x26   : > { %236 = vst [vmem:[%s13504_s21 + $0x108] sm:$0xff] %v235_v33   ;;  %240 = vst [vmem:[%s13504_s21 + $0x110] sm:$0xff] %v239_v34   ;;  %v255_v38 = vld [vmem:[%s13496_s20 + $0x230] sm:$0xff]   ;;  %v259_v39 = vld [vmem:[%s13496_s20 + $0x238] sm:$0xff]  }
  0x27   : > { %244 = vst [vmem:[%s13504_s21 + $0x118] sm:$0xff] %v243_v35   ;;  %248 = vst [vmem:[%s13504_s21 + $0x120] sm:$0xff] %v247_v36   ;;  %v263_v40 = vld [vmem:[%s13496_s20 + $0x280] sm:$0xff]   ;;  %v267_v41 = vld [vmem:[%s13496_s20 + $0x288] sm:$0xff]  }
  0x28   : > { %252 = vst [vmem:[%s13504_s21 + $0x128] sm:$0xff] %v251_v37   ;;  %256 = vst [vmem:[%s13504_s21 + $0x130] sm:$0xff] %v255_v38   ;;  %v271_v42 = vld [vmem:[%s13496_s20 + $0x290] sm:$0xff]   ;;  %v275_v43 = vld [vmem:[%s13496_s20 + $0x298] sm:$0xff]  }
  0x29   : > { %260 = vst [vmem:[%s13504_s21 + $0x138] sm:$0xff] %v259_v39   ;;  %264 = vst [vmem:[%s13504_s21 + $0x140] sm:$0xff] %v263_v40   ;;  %v279_v44 = vld [vmem:[%s13496_s20 + $0x2a0] sm:$0xff]   ;;  %v283_v45 = vld [vmem:[%s13496_s20 + $0x2a8] sm:$0xff]  }
  0x2a   : > { %268 = vst [vmem:[%s13504_s21 + $0x148] sm:$0xff] %v267_v41   ;;  %272 = vst [vmem:[%s13504_s21 + $0x150] sm:$0xff] %v271_v42   ;;  %v287_v46 = vld [vmem:[%s13496_s20 + $0x2b0] sm:$0xff]   ;;  %v291_v47 = vld [vmem:[%s13496_s20 + $0x2b8] sm:$0xff]  }
  0x2b   : > { %276 = vst [vmem:[%s13504_s21 + $0x158] sm:$0xff] %v275_v43   ;;  %280 = vst [vmem:[%s13504_s21 + $0x160] sm:$0xff] %v279_v44   ;;  %v295_v48 = vld [vmem:[%s13496_s20 + $0x300] sm:$0xff]   ;;  %v299_v49 = vld [vmem:[%s13496_s20 + $0x308] sm:$0xff]  }
  0x2c   : > { %284 = vst [vmem:[%s13504_s21 + $0x168] sm:$0xff] %v283_v45   ;;  %288 = vst [vmem:[%s13504_s21 + $0x170] sm:$0xff] %v287_v46   ;;  %v303_v50 = vld [vmem:[%s13496_s20 + $0x310] sm:$0xff]   ;;  %v307_v51 = vld [vmem:[%s13496_s20 + $0x318] sm:$0xff]  }
  0x2d   : > { %292 = vst [vmem:[%s13504_s21 + $0x178] sm:$0xff] %v291_v47   ;;  %296 = vst [vmem:[%s13504_s21 + $0x180] sm:$0xff] %v295_v48   ;;  %v311_v52 = vld [vmem:[%s13496_s20 + $0x320] sm:$0xff]   ;;  %v315_v53 = vld [vmem:[%s13496_s20 + $0x328] sm:$0xff]  }
  0x2e   : > { %300 = vst [vmem:[%s13504_s21 + $0x188] sm:$0xff] %v299_v49   ;;  %304 = vst [vmem:[%s13504_s21 + $0x190] sm:$0xff] %v303_v50   ;;  %v319_v54 = vld [vmem:[%s13496_s20 + $0x330] sm:$0xff]   ;;  %v323_v55 = vld [vmem:[%s13496_s20 + $0x338] sm:$0xff]  }
  0x2f   : > { %308 = vst [vmem:[%s13504_s21 + $0x198] sm:$0xff] %v307_v51   ;;  %312 = vst [vmem:[%s13504_s21 + $0x1a0] sm:$0xff] %v311_v52   ;;  %v327_v56 = vld [vmem:[%s13496_s20 + $0x380] sm:$0xff]   ;;  %v331_v57 = vld [vmem:[%s13496_s20 + $0x388] sm:$0xff]  }
  0x30   : > { %316 = vst [vmem:[%s13504_s21 + $0x1a8] sm:$0xff] %v315_v53   ;;  %320 = vst [vmem:[%s13504_s21 + $0x1b0] sm:$0xff] %v319_v54   ;;  %v335_v58 = vld [vmem:[%s13496_s20 + $0x390] sm:$0xff]   ;;  %v339_v59 = vld [vmem:[%s13496_s20 + $0x398] sm:$0xff]  }
  0x31   : > { %324 = vst [vmem:[%s13504_s21 + $0x1b8] sm:$0xff] %v323_v55   ;;  %328 = vst [vmem:[%s13504_s21 + $0x1c0] sm:$0xff] %v327_v56   ;;  %v343_v60 = vld [vmem:[%s13496_s20 + $0x3a0] sm:$0xff]   ;;  %v347_v61 = vld [vmem:[%s13496_s20 + $0x3a8] sm:$0xff]  }
  0x32   : > { %332 = vst [vmem:[%s13504_s21 + $0x1c8] sm:$0xff] %v331_v57   ;;  %336 = vst [vmem:[%s13504_s21 + $0x1d0] sm:$0xff] %v335_v58   ;;  %v351_v62 = vld [vmem:[%s13496_s20 + $0x3b0] sm:$0xff]   ;;  %v355_v63 = vld [vmem:[%s13496_s20 + $0x3b8] sm:$0xff]  }
  0x33   : > { %340 = vst [vmem:[%s13504_s21 + $0x1d8] sm:$0xff] %v339_v59   ;;  %344 = vst [vmem:[%s13504_s21 + $0x1e0] sm:$0xff] %v343_v60   ;;  %v359_v0 = vld [vmem:[%s13496_s20 + $0x400] sm:$0xff]   ;;  %v363_v1 = vld [vmem:[%s13496_s20 + $0x408] sm:$0xff]  }
  0x34   : > { %348 = vst [vmem:[%s13504_s21 + $0x1e8] sm:$0xff] %v347_v61   ;;  %352 = vst [vmem:[%s13504_s21 + $0x1f0] sm:$0xff] %v351_v62   ;;  %v367_v2 = vld [vmem:[%s13496_s20 + $0x410] sm:$0xff]   ;;  %v371_v3 = vld [vmem:[%s13496_s20 + $0x418] sm:$0xff]  }
  0x35   : > { %356 = vst [vmem:[%s13504_s21 + $0x1f8] sm:$0xff] %v355_v63   ;;  %360 = vst [vmem:[%s13504_s21 + $0x200] sm:$0xff] %v359_v0   ;;  %v375_v4 = vld [vmem:[%s13496_s20 + $0x420] sm:$0xff]   ;;  %v379_v5 = vld [vmem:[%s13496_s20 + $0x428] sm:$0xff]  }
  0x36   : > { %364 = vst [vmem:[%s13504_s21 + $0x208] sm:$0xff] %v363_v1   ;;  %368 = vst [vmem:[%s13504_s21 + $0x210] sm:$0xff] %v367_v2   ;;  %v383_v6 = vld [vmem:[%s13496_s20 + $0x430] sm:$0xff]   ;;  %v387_v7 = vld [vmem:[%s13496_s20 + $0x438] sm:$0xff]  }
  0x37   : > { %372 = vst [vmem:[%s13504_s21 + $0x218] sm:$0xff] %v371_v3   ;;  %376 = vst [vmem:[%s13504_s21 + $0x220] sm:$0xff] %v375_v4   ;;  %v391_v8 = vld [vmem:[%s13496_s20 + $0x480] sm:$0xff]   ;;  %v395_v9 = vld [vmem:[%s13496_s20 + $0x488] sm:$0xff]  }
  0x38   : > { %380 = vst [vmem:[%s13504_s21 + $0x228] sm:$0xff] %v379_v5   ;;  %384 = vst [vmem:[%s13504_s21 + $0x230] sm:$0xff] %v383_v6   ;;  %v399_v10 = vld [vmem:[%s13496_s20 + $0x490] sm:$0xff]   ;;  %v403_v11 = vld [vmem:[%s13496_s20 + $0x498] sm:$0xff]  }
  0x39   : > { %388 = vst [vmem:[%s13504_s21 + $0x238] sm:$0xff] %v387_v7   ;;  %392 = vst [vmem:[%s13504_s21 + $0x240] sm:$0xff] %v391_v8   ;;  %v407_v12 = vld [vmem:[%s13496_s20 + $0x4a0] sm:$0xff]   ;;  %v411_v13 = vld [vmem:[%s13496_s20 + $0x4a8] sm:$0xff]  }
  0x3a   : > { %396 = vst [vmem:[%s13504_s21 + $0x248] sm:$0xff] %v395_v9   ;;  %400 = vst [vmem:[%s13504_s21 + $0x250] sm:$0xff] %v399_v10   ;;  %v415_v14 = vld [vmem:[%s13496_s20 + $0x4b0] sm:$0xff]   ;;  %v419_v15 = vld [vmem:[%s13496_s20 + $0x4b8] sm:$0xff]  }
  0x3b   : > { %404 = vst [vmem:[%s13504_s21 + $0x258] sm:$0xff] %v403_v11   ;;  %408 = vst [vmem:[%s13504_s21 + $0x260] sm:$0xff] %v407_v12   ;;  %v423_v16 = vld [vmem:[%s13496_s20 + $0x500] sm:$0xff]   ;;  %v427_v17 = vld [vmem:[%s13496_s20 + $0x508] sm:$0xff]  }
  0x3c   : > { %412 = vst [vmem:[%s13504_s21 + $0x268] sm:$0xff] %v411_v13   ;;  %416 = vst [vmem:[%s13504_s21 + $0x270] sm:$0xff] %v415_v14   ;;  %v431_v18 = vld [vmem:[%s13496_s20 + $0x510] sm:$0xff]   ;;  %v435_v19 = vld [vmem:[%s13496_s20 + $0x518] sm:$0xff]  }
  0x3d   : > { %420 = vst [vmem:[%s13504_s21 + $0x278] sm:$0xff] %v419_v15   ;;  %424 = vst [vmem:[%s13504_s21 + $0x280] sm:$0xff] %v423_v16   ;;  %v439_v20 = vld [vmem:[%s13496_s20 + $0x520] sm:$0xff]   ;;  %v443_v21 = vld [vmem:[%s13496_s20 + $0x528] sm:$0xff]  }
  0x3e   : > { %428 = vst [vmem:[%s13504_s21 + $0x288] sm:$0xff] %v427_v17   ;;  %432 = vst [vmem:[%s13504_s21 + $0x290] sm:$0xff] %v431_v18   ;;  %v447_v22 = vld [vmem:[%s13496_s20 + $0x530] sm:$0xff]   ;;  %v451_v23 = vld [vmem:[%s13496_s20 + $0x538] sm:$0xff]  }
  0x3f   : > { %436 = vst [vmem:[%s13504_s21 + $0x298] sm:$0xff] %v435_v19   ;;  %440 = vst [vmem:[%s13504_s21 + $0x2a0] sm:$0xff] %v439_v20   ;;  %v455_v24 = vld [vmem:[%s13496_s20 + $0x580] sm:$0xff]   ;;  %v459_v25 = vld [vmem:[%s13496_s20 + $0x588] sm:$0xff]  }
  0x40   : > { %444 = vst [vmem:[%s13504_s21 + $0x2a8] sm:$0xff] %v443_v21   ;;  %448 = vst [vmem:[%s13504_s21 + $0x2b0] sm:$0xff] %v447_v22   ;;  %v463_v26 = vld [vmem:[%s13496_s20 + $0x590] sm:$0xff]   ;;  %v467_v27 = vld [vmem:[%s13496_s20 + $0x598] sm:$0xff]  }
  0x41   : > { %452 = vst [vmem:[%s13504_s21 + $0x2b8] sm:$0xff] %v451_v23   ;;  %456 = vst [vmem:[%s13504_s21 + $0x2c0] sm:$0xff] %v455_v24   ;;  %v471_v28 = vld [vmem:[%s13496_s20 + $0x5a0] sm:$0xff]   ;;  %v475_v29 = vld [vmem:[%s13496_s20 + $0x5a8] sm:$0xff]  }
  0x42   : > { %460 = vst [vmem:[%s13504_s21 + $0x2c8] sm:$0xff] %v459_v25   ;;  %464 = vst [vmem:[%s13504_s21 + $0x2d0] sm:$0xff] %v463_v26   ;;  %v479_v30 = vld [vmem:[%s13496_s20 + $0x5b0] sm:$0xff]   ;;  %v483_v31 = vld [vmem:[%s13496_s20 + $0x5b8] sm:$0xff]  }
  0x43   : > { %468 = vst [vmem:[%s13504_s21 + $0x2d8] sm:$0xff] %v467_v27   ;;  %472 = vst [vmem:[%s13504_s21 + $0x2e0] sm:$0xff] %v471_v28  }
  0x44   : > { %476 = vst [vmem:[%s13504_s21 + $0x2e8] sm:$0xff] %v475_v29   ;;  %480 = vst [vmem:[%s13504_s21 + $0x2f0] sm:$0xff] %v479_v30  }
  0x45   : > { %484 = vst [vmem:[%s13504_s21 + $0x2f8] sm:$0xff] %v483_v31  }
  0x46 PF: > { %p11975_p7 = scmp.ge.s32.totalorder %s13442_s8, 1  ;;  %p892_p8 = scmp.lt.s32.totalorder %s13442_s8, 3 }
  0x48   : > { %p893_p9 = pnand %p11975_p7, %p892_p8 }
  0x4a   : > { %896 = sbr.rel (%p893_p9) target bundleno = 964 (0x3c4), region = 61 }
  0x51   : > { %s899_s22 = sand.u32 1, %s13434_s6   ;;  %v15388_v32 = vmov 0.0   ;;  %vm13445_vm0 = vmmov 0   ;;  %vm1111_vm1 = vcmask 48128   ;;  %vm5976_vm2 = vcmask 27648   ;;  %s12239_s27 = sshll.u32 (%p13486_p5), %s11969_s9, 6 }
  0x52   : > { %12496 = vmatprep.subr.mxu0 %v15388_v32  ;;  %s13137_s23 = smul.u32 768, %s899_s22  ;;  %12498 = vmatprep.mubr.msk.f32.mxu0 %vm13445_vm0, %v15388_v32  ;;  %vm6685_vm3 = vcmask 1043456   ;;  %vm6681_vm4 = vcmask 31744   ;;  %s11976_s25 = sshll.u32 %s899_s22, 8  ;;  %vm11547_vm5 = vcmask 44032  }
  0x53   : > { %12501 = vmatprep.subr.mxu1 %v15388_v32  ;;  %12503 = vmatprep.mubr.msk.f32.mxu1 %vm13445_vm0, %v15388_v32  ;;  %s15173_s26 = scalar_lea.vmem [#allocation3], %s11976_s25  ;;  %s15313_s30 = scalar_lea.vmem (%p13486_p5), %s15387_s1, %s12239_s27 }
  0x54   : > { %s13703_s24 = scalar_lea.vmem [#allocation2], %s13137_s23 }
  0x55   : > { %v983_v33 = vld [vmem:[%s13703_s24 + $0x100] sm:$0xf]  ;;  %v984_v34 = vld [vmem:[%s13703_s24 + $0x104] sm:$0xf]  ;;  %v985_v37 = vld [vmem:[%s13703_s24 + $0x108] sm:$0xf] }
  0x56   : > { %12497 = vmatpush3.xpose.msk.msra.mxu0 %vm1111_vm1, %v983_v33  ;;  %v919_v35 = vld [vmem:[%s13703_s24] sm:$0xf]  ;;  %12502 = vmatpush3.xpose.msk.msra.mxu1 %vm1111_vm1, %v984_v34  ;;  %v920_v36 = vld [vmem:[%s13703_s24 + $0x4] sm:$0xf]  ;;  %v986_v38 = vld [vmem:[%s13703_s24 + $0x10c] sm:$0xf] }
  0x57   : > { %12506 = vmatprep.subr.mxu0 %v15388_v32  ;;  %12511 = vmatprep.subr.mxu1 %v15388_v32  ;;  %v921_v39 = vld [vmem:[%s13703_s24 + $0x8] sm:$0xf]  ;;  %v987_v40 = vld [vmem:[%s13703_s24 + $0x110] sm:$0xf]  ;;  %v922_v41 = vld [vmem:[%s13703_s24 + $0xc] sm:$0xf] }
  0x58   : > { %v988_v42 = vld [vmem:[%s13703_s24 + $0x114] sm:$0xf]  ;;  %v923_v43 = vld [vmem:[%s13703_s24 + $0x10] sm:$0xf]  ;;  %v989_v44 = vld [vmem:[%s13703_s24 + $0x118] sm:$0xf] }
  0x59   : > { %12499 = vmatmul.mubr.msk.f32.vlgmr.msra.gmra.mrb[0].mxu0 %vm1111_vm1, %v919_v35  ;;  %12504 = vmatmul.mubr.msk.f32.vlgmr.msra.gmra.mrb[0].mxu1 %vm1111_vm1, %v920_v36  ;;  %v924_v45 = vld [vmem:[%s13703_s24 + $0x14] sm:$0xf]  ;;  %v990_v46 = vld [vmem:[%s13703_s24 + $0x11c] sm:$0xf]  ;;  %v925_v47 = vld [vmem:[%s13703_s24 + $0x18] sm:$0xf] }
  0x5a   : > { %12507 = vmatpush3.xpose.msk.msra.mxu0 %vm1111_vm1, %v985_v37  ;;  %12508 = vmatprep.mubr.msk.f32.mxu0 %vm13445_vm0, %v15388_v32  ;;  %v991_v48 = vld [vmem:[%s13703_s24 + $0x120] sm:$0xf]  ;;  %v926_v49 = vld [vmem:[%s13703_s24 + $0x1c] sm:$0xf]  ;;  %v992_v50 = vld [vmem:[%s13703_s24 + $0x124] sm:$0xf] }
  0x5b   : > { %12516 = vmatprep.subr.mxu0 %v15388_v32  ;;  %12512 = vmatpush3.xpose.msk.msra.mxu1 %vm1111_vm1, %v986_v38  ;;  %v927_v51 = vld [vmem:[%s13703_s24 + $0x20] sm:$0xf]  ;;  %v993_v52 = vld [vmem:[%s13703_s24 + $0x128] sm:$0xf]  ;;  %v928_v53 = vld [vmem:[%s13703_s24 + $0x24] sm:$0xf] }
  0x5c   : > { %12513 = vmatprep.mubr.msk.f32.mxu1 %vm13445_vm0, %v15388_v32  ;;  %12521 = vmatprep.subr.mxu1 %v15388_v32  ;;  %v994_v54 = vld [vmem:[%s13703_s24 + $0x12c] sm:$0xf]  ;;  %v929_v55 = vld [vmem:[%s13703_s24 + $0x28] sm:$0xf]  ;;  %v995_v56 = vld [vmem:[%s13703_s24 + $0x130] sm:$0xf] }
  0x5d   : > { %12509 = vmatmul.mubr.msk.f32.vlgmr.msra.gmra.mrb[2].mxu0 %vm1111_vm1, %v921_v39  ;;  %v930_v57 = vld [vmem:[%s13703_s24 + $0x2c] sm:$0xf]  ;;  %v996_v58 = vld [vmem:[%s13703_s24 + $0x134] sm:$0xf]  ;;  %v931_v59 = vld [vmem:[%s13703_s24 + $0x30] sm:$0xf] }
  0x5e   : > { %12517 = vmatpush3.xpose.msk.msra.mxu0 %vm1111_vm1, %v987_v40  ;;  %12518 = vmatprep.mubr.msk.f32.mxu0 %vm13445_vm0, %v15388_v32  ;;  %v997_v60 = vld [vmem:[%s13703_s24 + $0x138] sm:$0xf]  ;;  %v932_v61 = vld [vmem:[%s13703_s24 + $0x34] sm:$0xf]  ;;  %v998_v62 = vld [vmem:[%s13703_s24 + $0x13c] sm:$0xf] }
  0x5f   : > { %12514 = vmatmul.mubr.msk.f32.vlgmr.msra.gmra.mrb[2].mxu1 %vm1111_vm1, %v922_v41  ;;  %12526 = vmatprep.subr.mxu0 %v15388_v32  ;;  %v933_v63 = vld [vmem:[%s13703_s24 + $0x38] sm:$0xf]  ;;  %v999_v0 = vld [vmem:[%s13703_s24 + $0x140] sm:$0xf]  ;;  %v934_v1 = vld [vmem:[%s13703_s24 + $0x3c] sm:$0xf] }
  0x60   : > { %12522 = vmatpush3.xpose.msk.msra.mxu1 %vm1111_vm1, %v988_v42  ;;  %12523 = vmatprep.mubr.msk.f32.mxu1 %vm13445_vm0, %v15388_v32  ;;  %v1000_v2 = vld [vmem:[%s13703_s24 + $0x144] sm:$0xf]  ;;  %v935_v3 = vld [vmem:[%s13703_s24 + $0x40] sm:$0xf]  ;;  %v1001_v4 = vld [vmem:[%s13703_s24 + $0x148] sm:$0xf] }
  0x61   : > { %12519 = vmatmul.mubr.msk.f32.vlgmr.msra.gmra.mrb[4].mxu0 %vm1111_vm1, %v923_v43  ;;  %12531 = vmatprep.subr.mxu1 %v15388_v32  ;;  %v936_v5 = vld [vmem:[%s13703_s24 + $0x44] sm:$0xf]  ;;  %v1002_v6 = vld [vmem:[%s13703_s24 + $0x14c] sm:$0xf]  ;;  %v937_v7 = vld [vmem:[%s13703_s24 + $0x48] sm:$0xf] }
  0x62   : > { %12527 = vmatpush3.xpose.msk.msra.mxu0 %vm1111_vm1, %v989_v44  ;;  %12528 = vmatprep.mubr.msk.f32.mxu0 %vm13445_vm0, %v15388_v32  ;;  %v1003_v8 = vld [vmem:[%s13703_s24 + $0x150] sm:$0xf]  ;;  %v938_v9 = vld [vmem:[%s13703_s24 + $0x4c] sm:$0xf]  ;;  %v1004_v10 = vld [vmem:[%s13703_s24 + $0x154] sm:$0xf] }
  0x63   : > { %12524 = vmatmul.mubr.msk.f32.vlgmr.msra.gmra.mrb[4].mxu1 %vm1111_vm1, %v924_v45  ;;  %12536 = vmatprep.subr.mxu0 %v15388_v32  ;;  %v939_v11 = vld [vmem:[%s13703_s24 + $0x50] sm:$0xf]  ;;  %v1005_v12 = vld [vmem:[%s13703_s24 + $0x158] sm:$0xf]  ;;  %v940_v13 = vld [vmem:[%s13703_s24 + $0x54] sm:$0xf] }
  0x64   : > { %12532 = vmatpush3.xpose.msk.msra.mxu1 %vm1111_vm1, %v990_v46  ;;  %12533 = vmatprep.mubr.msk.f32.mxu1 %vm13445_vm0, %v15388_v32  ;;  %v1006_v14 = vld [vmem:[%s13703_s24 + $0x15c] sm:$0xf]  ;;  %v941_v15 = vld [vmem:[%s13703_s24 + $0x58] sm:$0xf]  ;;  %v1007_v16 = vld [vmem:[%s13703_s24 + $0x160] sm:$0xf] }
  0x65   : > { %12529 = vmatmul.mubr.msk.f32.vlgmr.msra.gmra.mrb[6].mxu0 %vm1111_vm1, %v925_v47  ;;  %12541 = vmatprep.subr.mxu1 %v15388_v32  ;;  %v942_v17 = vld [vmem:[%s13703_s24 + $0x5c] sm:$0xf]  ;;  %v1008_v18 = vld [vmem:[%s13703_s24 + $0x164] sm:$0xf]  ;;  %v943_v19 = vld [vmem:[%s13703_s24 + $0x60] sm:$0xf] }
  0x66   : > { %12537 = vmatpush3.xpose.msk.msra.mxu0 %vm1111_vm1, %v991_v48  ;;  %12538 = vmatprep.mubr.msk.f32.mxu0 %vm13445_vm0, %v15388_v32  ;;  %v1009_v20 = vld [vmem:[%s13703_s24 + $0x168] sm:$0xf]  ;;  %v944_v21 = vld [vmem:[%s13703_s24 + $0x64] sm:$0xf]  ;;  %v1010_v22 = vld [vmem:[%s13703_s24 + $0x16c] sm:$0xf] }
  0x67   : > { %12534 = vmatmul.mubr.msk.f32.vlgmr.msra.gmra.mrb[6].mxu1 %vm1111_vm1, %v926_v49  ;;  %12546 = vmatprep.subr.mxu0 %v15388_v32  ;;  %v945_v23 = vld [vmem:[%s13703_s24 + $0x68] sm:$0xf]  ;;  %v1011_v24 = vld [vmem:[%s13703_s24 + $0x170] sm:$0xf]  ;;  %v946_v25 = vld [vmem:[%s13703_s24 + $0x6c] sm:$0xf] }
  0x68   : > { %12542 = vmatpush3.xpose.msk.msra.mxu1 %vm1111_vm1, %v992_v50  ;;  %12543 = vmatprep.mubr.msk.f32.mxu1 %vm13445_vm0, %v15388_v32  ;;  %v1012_v26 = vld [vmem:[%s13703_s24 + $0x174] sm:$0xf]  ;;  %v947_v27 = vld [vmem:[%s13703_s24 + $0x70] sm:$0xf]  ;;  %v1013_v28 = vld [vmem:[%s13703_s24 + $0x178] sm:$0xf] }
  0x69   : > { %12539 = vmatmul.mubr.msk.f32.vlgmr.msra.gmra.mrb[8].mxu0 %vm1111_vm1, %v927_v51  ;;  %12551 = vmatprep.subr.mxu1 %v15388_v32  ;;  %v948_v29 = vld [vmem:[%s13703_s24 + $0x74] sm:$0xf]  ;;  %v1014_v30 = vld [vmem:[%s13703_s24 + $0x17c] sm:$0xf]  ;;  %v949_v31 = vld [vmem:[%s13703_s24 + $0x78] sm:$0xf] }
  0x6a   : > { %12547 = vmatpush3.xpose.msk.msra.mxu0 %vm1111_vm1, %v993_v52  ;;  %12548 = vmatprep.mubr.msk.f32.mxu0 %vm13445_vm0, %v15388_v32  ;;  %v1015_v33 = vld [vmem:[%s13703_s24 + $0x180] sm:$0xf]  ;;  %v950_v34 = vld [vmem:[%s13703_s24 + $0x7c] sm:$0xf]  ;;  %v1016_v35 = vld [vmem:[%s13703_s24 + $0x184] sm:$0xf] }
  0x6b   : > { %12544 = vmatmul.mubr.msk.f32.vlgmr.msra.gmra.mrb[8].mxu1 %vm1111_vm1, %v928_v53  ;;  %12556 = vmatprep.subr.mxu0 %v15388_v32  ;;  %v951_v36 = vld [vmem:[%s13703_s24 + $0x80] sm:$0xf]  ;;  %v1017_v37 = vld [vmem:[%s13703_s24 + $0x188] sm:$0xf]  ;;  %v952_v38 = vld [vmem:[%s13703_s24 + $0x84] sm:$0xf] }
  0x6c   : > { %12552 = vmatpush3.xpose.msk.msra.mxu1 %vm1111_vm1, %v994_v54  ;;  %12553 = vmatprep.mubr.msk.f32.mxu1 %vm13445_vm0, %v15388_v32  ;;  %v1018_v39 = vld [vmem:[%s13703_s24 + $0x18c] sm:$0xf]  ;;  %v953_v40 = vld [vmem:[%s13703_s24 + $0x88] sm:$0xf]  ;;  %v1019_v41 = vld [vmem:[%s13703_s24 + $0x190] sm:$0xf] }
  0x6d   : > { %12549 = vmatmul.mubr.msk.f32.vlgmr.msra.gmra.mrb[10].mxu0 %vm1111_vm1, %v929_v55  ;;  %12561 = vmatprep.subr.mxu1 %v15388_v32  ;;  %v954_v42 = vld [vmem:[%s13703_s24 + $0x8c] sm:$0xf]  ;;  %v1020_v43 = vld [vmem:[%s13703_s24 + $0x194] sm:$0xf]  ;;  %v955_v44 = vld [vmem:[%s13703_s24 + $0x90] sm:$0xf] }
  0x6e   : > { %12557 = vmatpush3.xpose.msk.msra.mxu0 %vm1111_vm1, %v995_v56  ;;  %12558 = vmatprep.mubr.msk.f32.mxu0 %vm13445_vm0, %v15388_v32  ;;  %v1021_v45 = vld [vmem:[%s13703_s24 + $0x198] sm:$0xf]  ;;  %v956_v46 = vld [vmem:[%s13703_s24 + $0x94] sm:$0xf]  ;;  %v1022_v47 = vld [vmem:[%s13703_s24 + $0x19c] sm:$0xf] }
  0x6f   : > { %12554 = vmatmul.mubr.msk.f32.vlgmr.msra.gmra.mrb[10].mxu1 %vm1111_vm1, %v930_v57  ;;  %12566 = vmatprep.subr.mxu0 %v15388_v32  ;;  %v957_v48 = vld [vmem:[%s13703_s24 + $0x98] sm:$0xf]  ;;  %v1023_v49 = vld [vmem:[%s13703_s24 + $0x1a0] sm:$0xf]  ;;  %v958_v50 = vld [vmem:[%s13703_s24 + $0x9c] sm:$0xf] }
  0x70   : > { %12562 = vmatpush3.xpose.msk.msra.mxu1 %vm1111_vm1, %v996_v58  ;;  %12563 = vmatprep.mubr.msk.f32.mxu1 %vm13445_vm0, %v15388_v32  ;;  %v1024_v51 = vld [vmem:[%s13703_s24 + $0x1a4] sm:$0xf]  ;;  %v959_v52 = vld [vmem:[%s13703_s24 + $0xa0] sm:$0xf]  ;;  %v1025_v53 = vld [vmem:[%s13703_s24 + $0x1a8] sm:$0xf] }
  0x71   : > { %12559 = vmatmul.mubr.msk.f32.vlgmr.msra.gmra.mrb[12].mxu0 %vm1111_vm1, %v931_v59  ;;  %12571 = vmatprep.subr.mxu1 %v15388_v32  ;;  %v960_v54 = vld [vmem:[%s13703_s24 + $0xa4] sm:$0xf]  ;;  %v1026_v55 = vld [vmem:[%s13703_s24 + $0x1ac] sm:$0xf]  ;;  %v961_v56 = vld [vmem:[%s13703_s24 + $0xa8] sm:$0xf] }
  0x72   : > { %12567 = vmatpush3.xpose.msk.msra.mxu0 %vm1111_vm1, %v997_v60  ;;  %12568 = vmatprep.mubr.msk.f32.mxu0 %vm13445_vm0, %v15388_v32  ;;  %v1027_v57 = vld [vmem:[%s13703_s24 + $0x1b0] sm:$0xf]  ;;  %v962_v58 = vld [vmem:[%s13703_s24 + $0xac] sm:$0xf]  ;;  %v1028_v59 = vld [vmem:[%s13703_s24 + $0x1b4] sm:$0xf] }
  0x73   : > { %12564 = vmatmul.mubr.msk.f32.vlgmr.msra.gmra.mrb[12].mxu1 %vm1111_vm1, %v932_v61  ;;  %12576 = vmatprep.subr.mxu0 %v15388_v32  ;;  %v963_v60 = vld [vmem:[%s13703_s24 + $0xb0] sm:$0xf]  ;;  %v1029_v61 = vld [vmem:[%s13703_s24 + $0x1b8] sm:$0xf] }
  0x74   : > { %12572 = vmatpush3.xpose.msk.msra.mxu1 %vm1111_vm1, %v998_v62  ;;  %12573 = vmatprep.mubr.msk.f32.mxu1 %vm13445_vm0, %v15388_v32  ;;  %v964_v62 = vld [vmem:[%s13703_s24 + $0xb4] sm:$0xf] }
  0x75   : > { %12569 = vmatmul.mubr.msk.f32.vlgmr.msra.gmra.mrb[14].mxu0 %vm1111_vm1, %v933_v63  ;;  %12581 = vmatprep.subr.mxu1 %v15388_v32  ;;  %v1030_v63 = vld [vmem:[%s13703_s24 + $0x1bc] sm:$0xf] }
  0x76   : > { %12577 = vmatpush3.xpose.msk.msra.mxu0 %vm1111_vm1, %v999_v0  ;;  %12578 = vmatprep.mubr.msk.f32.mxu0 %vm13445_vm0, %v15388_v32  ;;  %v965_v0 = vld [vmem:[%s13703_s24 + $0xb8] sm:$0xf] }
  0x77   : > { %12574 = vmatmul.mubr.msk.f32.vlgmr.msra.gmra.mrb[14].mxu1 %vm1111_vm1, %v934_v1  ;;  %12586 = vmatprep.subr.mxu0 %v15388_v32  ;;  %v1031_v1 = vld [vmem:[%s13703_s24 + $0x1c0] sm:$0xf] }
  0x78   : > { %12582 = vmatpush3.xpose.msk.msra.mxu1 %vm1111_vm1, %v1000_v2  ;;  %12583 = vmatprep.mubr.msk.f32.mxu1 %vm13445_vm0, %v15388_v32  ;;  %v966_v2 = vld [vmem:[%s13703_s24 + $0xbc] sm:$0xf] }
  0x79   : > { %12579 = vmatmul.mubr.msk.f32.vlgmr.msra.gmra.mrb[16].mxu0 %vm1111_vm1, %v935_v3  ;;  %12591 = vmatprep.subr.mxu1 %v15388_v32  ;;  %v1032_v3 = vld [vmem:[%s13703_s24 + $0x1c4] sm:$0xf] }
  0x7a   : > { %12587 = vmatpush3.xpose.msk.msra.mxu0 %vm1111_vm1, %v1001_v4  ;;  %12588 = vmatprep.mubr.msk.f32.mxu0 %vm13445_vm0, %v15388_v32  ;;  %v967_v4 = vld [vmem:[%s13703_s24 + $0xc0] sm:$0xf] }
  0x7b   : > { %12584 = vmatmul.mubr.msk.f32.vlgmr.msra.gmra.mrb[16].mxu1 %vm1111_vm1, %v936_v5  ;;  %12596 = vmatprep.subr.mxu0 %v15388_v32  ;;  %v1033_v5 = vld [vmem:[%s13703_s24 + $0x1c8] sm:$0xf] }
  0x7c   : > { %12592 = vmatpush3.xpose.msk.msra.mxu1 %vm1111_vm1, %v1002_v6  ;;  %12593 = vmatprep.mubr.msk.f32.mxu1 %vm13445_vm0, %v15388_v32  ;;  %v968_v6 = vld [vmem:[%s13703_s24 + $0xc4] sm:$0xf] }
  0x7d   : > { %12589 = vmatmul.mubr.msk.f32.vlgmr.msra.gmra.mrb[18].mxu0 %vm1111_vm1, %v937_v7  ;;  %12601 = vmatprep.subr.mxu1 %v15388_v32  ;;  %v1034_v7 = vld [vmem:[%s13703_s24 + $0x1cc] sm:$0xf] }
  0x7e   : > { %12597 = vmatpush3.xpose.msk.msra.mxu0 %vm1111_vm1, %v1003_v8  ;;  %12598 = vmatprep.mubr.msk.f32.mxu0 %vm13445_vm0, %v15388_v32  ;;  %v969_v8 = vld [vmem:[%s13703_s24 + $0xc8] sm:$0xf] }
  0x7f   : > { %12594 = vmatmul.mubr.msk.f32.vlgmr.msra.gmra.mrb[18].mxu1 %vm1111_vm1, %v938_v9  ;;  %12606 = vmatprep.subr.mxu0 %v15388_v32  ;;  %v1035_v9 = vld [vmem:[%s13703_s24 + $0x1d0] sm:$0xf] }
  0x80   : > { %12602 = vmatpush3.xpose.msk.msra.mxu1 %vm1111_vm1, %v1004_v10  ;;  %12603 = vmatprep.mubr.msk.f32.mxu1 %vm13445_vm0, %v15388_v32  ;;  %v970_v10 = vld [vmem:[%s13703_s24 + $0xcc] sm:$0xf] }
  0x81   : > { %12599 = vmatmul.mubr.msk.f32.vlgmr.msra.gmra.mrb[20].mxu0 %vm1111_vm1, %v939_v11  ;;  %12611 = vmatprep.subr.mxu1 %v15388_v32  ;;  %v1036_v11 = vld [vmem:[%s13703_s24 + $0x1d4] sm:$0xf] }
  0x82   : > { %12607 = vmatpush3.xpose.msk.msra.mxu0 %vm1111_vm1, %v1005_v12  ;;  %12608 = vmatprep.mubr.msk.f32.mxu0 %vm13445_vm0, %v15388_v32  ;;  %v971_v12 = vld [vmem:[%s13703_s24 + $0xd0] sm:$0xf] }
  0x83   : > { %12604 = vmatmul.mubr.msk.f32.vlgmr.msra.gmra.mrb[20].mxu1 %vm1111_vm1, %v940_v13  ;;  %12616 = vmatprep.subr.mxu0 %v15388_v32  ;;  %v1037_v13 = vld [vmem:[%s13703_s24 + $0x1d8] sm:$0xf] }
  0x84   : > { %12612 = vmatpush3.xpose.msk.msra.mxu1 %vm1111_vm1, %v1006_v14  ;;  %12613 = vmatprep.mubr.msk.f32.mxu1 %vm13445_vm0, %v15388_v32  ;;  %v972_v14 = vld [vmem:[%s13703_s24 + $0xd4] sm:$0xf] }
  0x85   : > { %12609 = vmatmul.mubr.msk.f32.vlgmr.msra.gmra.mrb[22].mxu0 %vm1111_vm1, %v941_v15  ;;  %12621 = vmatprep.subr.mxu1 %v15388_v32  ;;  %v1038_v15 = vld [vmem:[%s13703_s24 + $0x1dc] sm:$0xf] }
  0x86   : > { %12617 = vmatpush3.xpose.msk.msra.mxu0 %vm1111_vm1, %v1007_v16  ;;  %12618 = vmatprep.mubr.msk.f32.mxu0 %vm13445_vm0, %v15388_v32  ;;  %v973_v16 = vld [vmem:[%s13703_s24 + $0xd8] sm:$0xf] }
  0x87   : > { %12614 = vmatmul.mubr.msk.f32.vlgmr.msra.gmra.mrb[22].mxu1 %vm1111_vm1, %v942_v17  ;;  %12626 = vmatprep.subr.mxu0 %v15388_v32  ;;  %v1039_v17 = vld [vmem:[%s13703_s24 + $0x1e0] sm:$0xf] }
  0x88   : > { %12622 = vmatpush3.xpose.msk.msra.mxu1 %vm1111_vm1, %v1008_v18  ;;  %12623 = vmatprep.mubr.msk.f32.mxu1 %vm13445_vm0, %v15388_v32  ;;  %v974_v18 = vld [vmem:[%s13703_s24 + $0xdc] sm:$0xf] }
  0x89   : > { %12619 = vmatmul.mubr.msk.f32.vlgmr.msra.gmra.mrb[24].mxu0 %vm1111_vm1, %v943_v19  ;;  %12631 = vmatprep.subr.mxu1 %v15388_v32  ;;  %v1040_v19 = vld [vmem:[%s13703_s24 + $0x1e4] sm:$0xf] }
  0x8a   : > { %12627 = vmatpush3.xpose.msk.msra.mxu0 %vm1111_vm1, %v1009_v20  ;;  %12628 = vmatprep.mubr.msk.f32.mxu0 %vm13445_vm0, %v15388_v32  ;;  %v975_v20 = vld [vmem:[%s13703_s24 + $0xe0] sm:$0xf] }
  0x8b   : > { %12624 = vmatmul.mubr.msk.f32.vlgmr.msra.gmra.mrb[24].mxu1 %vm1111_vm1, %v944_v21  ;;  %12636 = vmatprep.subr.mxu0 %v15388_v32  ;;  %v1041_v21 = vld [vmem:[%s13703_s24 + $0x1e8] sm:$0xf] }
  0x8c   : > { %12632 = vmatpush3.xpose.msk.msra.mxu1 %vm1111_vm1, %v1010_v22  ;;  %12633 = vmatprep.mubr.msk.f32.mxu1 %vm13445_vm0, %v15388_v32  ;;  %v976_v22 = vld [vmem:[%s13703_s24 + $0xe4] sm:$0xf] }
  0x8d   : > { %12629 = vmatmul.mubr.msk.f32.vlgmr.msra.gmra.mrb[26].mxu0 %vm1111_vm1, %v945_v23  ;;  %12641 = vmatprep.subr.mxu1 %v15388_v32  ;;  %v1042_v23 = vld [vmem:[%s13703_s24 + $0x1ec] sm:$0xf] }
  0x8e   : > { %12637 = vmatpush3.xpose.msk.msra.mxu0 %vm1111_vm1, %v1011_v24  ;;  %12638 = vmatprep.mubr.msk.f32.mxu0 %vm13445_vm0, %v15388_v32  ;;  %v977_v24 = vld [vmem:[%s13703_s24 + $0xe8] sm:$0xf] }
  0x8f   : > { %12634 = vmatmul.mubr.msk.f32.vlgmr.msra.gmra.mrb[26].mxu1 %vm1111_vm1, %v946_v25  ;;  %12646 = vmatprep.subr.mxu0 %v15388_v32  ;;  %v1043_v25 = vld [vmem:[%s13703_s24 + $0x1f0] sm:$0xf] }
  0x90   : > { %12642 = vmatpush3.xpose.msk.msra.mxu1 %vm1111_vm1, %v1012_v26  ;;  %12643 = vmatprep.mubr.msk.f32.mxu1 %vm13445_vm0, %v15388_v32  ;;  %v978_v26 = vld [vmem:[%s13703_s24 + $0xec] sm:$0xf] }
  0x91   : > { %12639 = vmatmul.mubr.msk.f32.vlgmr.msra.gmra.mrb[28].mxu0 %vm1111_vm1, %v947_v27  ;;  %12651 = vmatprep.subr.mxu1 %v15388_v32  ;;  %v1044_v27 = vld [vmem:[%s13703_s24 + $0x1f4] sm:$0xf] }
  0x92   : > { %12647 = vmatpush3.xpose.msk.msra.mxu0 %vm1111_vm1, %v1013_v28  ;;  %12648 = vmatprep.mubr.msk.f32.mxu0 %vm13445_vm0, %v15388_v32  ;;  %v979_v28 = vld [vmem:[%s13703_s24 + $0xf0] sm:$0xf] }
  0x93   : > { %12644 = vmatmul.mubr.msk.f32.vlgmr.msra.gmra.mrb[28].mxu1 %vm1111_vm1, %v948_v29  ;;  %12656 = vmatprep.subr.mxu0 %v15388_v32  ;;  %v1045_v29 = vld [vmem:[%s13703_s24 + $0x1f8] sm:$0xf] }
  0x94   : > { %12652 = vmatpush3.xpose.msk.msra.mxu1 %vm1111_vm1, %v1014_v30  ;;  %12653 = vmatprep.mubr.msk.f32.mxu1 %vm13445_vm0, %v15388_v32  ;;  %v980_v30 = vld [vmem:[%s13703_s24 + $0xf4] sm:$0xf] }
  0x95   : > { %12649 = vmatmul.mubr.msk.f32.vlgmr.msra.gmra.mrb[30].mxu0 %vm1111_vm1, %v949_v31  ;;  %12661 = vmatprep.subr.mxu1 %v15388_v32  ;;  %v1046_v31 = vld [vmem:[%s13703_s24 + $0x1fc] sm:$0xf] }
  0x96   : > { %12657 = vmatpush3.xpose.msk.msra.mxu0 %vm1111_vm1, %v1015_v33  ;;  %12658 = vmatprep.mubr.msk.f32.mxu0 %vm13445_vm0, %v15388_v32  ;;  %v981_v33 = vld [vmem:[%s13703_s24 + $0xf8] sm:$0xf] }
  0x97   : > { %12654 = vmatmul.mubr.msk.f32.vlgmr.msra.gmra.mrb[30].mxu1 %vm1111_vm1, %v950_v34  ;;  %12666 = vmatprep.subr.mxu0 %v15388_v32  ;;  %v982_v34 = vld [vmem:[%s13703_s24 + $0xfc] sm:$0xf] }
  0x98   : > { %12662 = vmatpush3.xpose.msk.msra.mxu1 %vm1111_vm1, %v1016_v35  ;;  %12663 = vmatprep.mubr.msk.f32.mxu1 %vm13445_vm0, %v15388_v32 }
  0x99   : > { %12659 = vmatmul.mubr.msk.f32.vlgmr.msra.gmra.mrb[32].mxu0 %vm1111_vm1, %v951_v36  ;;  %12671 = vmatprep.subr.mxu1 %v15388_v32 }
  0x9a   : > { %12667 = vmatpush3.xpose.msk.msra.mxu0 %vm1111_vm1, %v1017_v37  ;;  %12668 = vmatprep.mubr.msk.f32.mxu0 %vm13445_vm0, %v15388_v32 }
  0x9b   : > { %12664 = vmatmul.mubr.msk.f32.vlgmr.msra.gmra.mrb[32].mxu1 %vm1111_vm1, %v952_v38  ;;  %12676 = vmatprep.subr.mxu0 %v15388_v32 }
  0x9c   : > { %12672 = vmatpush3.xpose.msk.msra.mxu1 %vm1111_vm1, %v1018_v39  ;;  %12673 = vmatprep.mubr.msk.f32.mxu1 %vm13445_vm0, %v15388_v32 }
  0x9d   : > { %12669 = vmatmul.mubr.msk.f32.vlgmr.msra.gmra.mrb[34].mxu0 %vm1111_vm1, %v953_v40  ;;  %12681 = vmatprep.subr.mxu1 %v15388_v32 }
  0x9e   : > { %12677 = vmatpush3.xpose.msk.msra.mxu0 %vm1111_vm1, %v1019_v41  ;;  %12678 = vmatprep.mubr.msk.f32.mxu0 %vm13445_vm0, %v15388_v32 }
  0x9f   : > { %12674 = vmatmul.mubr.msk.f32.vlgmr.msra.gmra.mrb[34].mxu1 %vm1111_vm1, %v954_v42  ;;  %12686 = vmatprep.subr.mxu0 %v15388_v32 }
  0xa0   : > { %12682 = vmatpush3.xpose.msk.msra.mxu1 %vm1111_vm1, %v1020_v43  ;;  %12683 = vmatprep.mubr.msk.f32.mxu1 %vm13445_vm0, %v15388_v32 }
  0xa1   : > { %12679 = vmatmul.mubr.msk.f32.vlgmr.msra.gmra.mrb[36].mxu0 %vm1111_vm1, %v955_v44  ;;  %12691 = vmatprep.subr.mxu1 %v15388_v32 }
  0xa2   : > { %12687 = vmatpush3.xpose.msk.msra.mxu0 %vm1111_vm1, %v1021_v45  ;;  %12688 = vmatprep.mubr.msk.f32.mxu0 %vm13445_vm0, %v15388_v32 }
  0xa3   : > { %12684 = vmatmul.mubr.msk.f32.vlgmr.msra.gmra.mrb[36].mxu1 %vm1111_vm1, %v956_v46  ;;  %12696 = vmatprep.subr.mxu0 %v15388_v32 }
  0xa4   : > { %12692 = vmatpush3.xpose.msk.msra.mxu1 %vm1111_vm1, %v1022_v47  ;;  %12693 = vmatprep.mubr.msk.f32.mxu1 %vm13445_vm0, %v15388_v32 }
  0xa5   : > { %12689 = vmatmul.mubr.msk.f32.vlgmr.msra.gmra.mrb[38].mxu0 %vm1111_vm1, %v957_v48  ;;  %12701 = vmatprep.subr.mxu1 %v15388_v32 }
  0xa6   : > { %12697 = vmatpush3.xpose.msk.msra.mxu0 %vm1111_vm1, %v1023_v49  ;;  %12698 = vmatprep.mubr.msk.f32.mxu0 %vm13445_vm0, %v15388_v32 }
  0xa7   : > { %12694 = vmatmul.mubr.msk.f32.vlgmr.msra.gmra.mrb[38].mxu1 %vm1111_vm1, %v958_v50  ;;  %12706 = vmatprep.subr.mxu0 %v15388_v32 }
  0xa8   : > { %12702 = vmatpush3.xpose.msk.msra.mxu1 %vm1111_vm1, %v1024_v51  ;;  %12703 = vmatprep.mubr.msk.f32.mxu1 %vm13445_vm0, %v15388_v32 }
  0xa9   : > { %12699 = vmatmul.mubr.msk.f32.vlgmr.msra.gmra.mrb[40].mxu0 %vm1111_vm1, %v959_v52  ;;  %12711 = vmatprep.subr.mxu1 %v15388_v32 }
  0xaa   : > { %12707 = vmatpush3.xpose.msk.msra.mxu0 %vm1111_vm1, %v1025_v53  ;;  %12708 = vmatprep.mubr.msk.f32.mxu0 %vm13445_vm0, %v15388_v32 }
  0xab   : > { %12704 = vmatmul.mubr.msk.f32.vlgmr.msra.gmra.mrb[40].mxu1 %vm1111_vm1, %v960_v54  ;;  %12716 = vmatprep.subr.mxu0 %v15388_v32 }
  0xac   : > { %12712 = vmatpush3.xpose.msk.msra.mxu1 %vm1111_vm1, %v1026_v55  ;;  %12713 = vmatprep.mubr.msk.f32.mxu1 %vm13445_vm0, %v15388_v32 }
  0xad   : > { %12709 = vmatmul.mubr.msk.f32.vlgmr.msra.gmra.mrb[42].mxu0 %vm1111_vm1, %v961_v56  ;;  %12721 = vmatprep.subr.mxu1 %v15388_v32 }
  0xae   : > { %12717 = vmatpush3.xpose.msk.msra.mxu0 %vm1111_vm1, %v1027_v57  ;;  %12718 = vmatprep.mubr.msk.f32.mxu0 %vm13445_vm0, %v15388_v32 }
  0xaf   : > { %12714 = vmatmul.mubr.msk.f32.vlgmr.msra.gmra.mrb[42].mxu1 %vm1111_vm1, %v962_v58  ;;  %12726 = vmatprep.subr.mxu0 %v15388_v32 }
  0xb0   : > { %12722 = vmatpush3.xpose.msk.msra.mxu1 %vm1111_vm1, %v1028_v59  ;;  %12723 = vmatprep.mubr.msk.f32.mxu1 %vm13445_vm0, %v15388_v32 }
  0xb1   : > { %12719 = vmatmul.mubr.msk.f32.vlgmr.msra.gmra.mrb[44].mxu0 %vm1111_vm1, %v963_v60  ;;  %12731 = vmatprep.subr.mxu1 %v15388_v32 }
  0xb2   : > { %12727 = vmatpush3.xpose.msk.msra.mxu0 %vm1111_vm1, %v1029_v61  ;;  %12728 = vmatprep.mubr.msk.f32.mxu0 %vm13445_vm0, %v15388_v32 }
  0xb3   : > { %12724 = vmatmul.mubr.msk.f32.vlgmr.msra.gmra.mrb[44].mxu1 %vm1111_vm1, %v964_v62  ;;  %12736 = vmatprep.subr.mxu0 %v15388_v32 }
  0xb4   : > { %12732 = vmatpush3.xpose.msk.msra.mxu1 %vm1111_vm1, %v1030_v63  ;;  %12733 = vmatprep.mubr.msk.f32.mxu1 %vm13445_vm0, %v15388_v32 }
  0xb5   : > { %12729 = vmatmul.mubr.msk.f32.vlgmr.msra.gmra.mrb[46].mxu0 %vm1111_vm1, %v965_v0  ;;  %12741 = vmatprep.subr.mxu1 %v15388_v32 }
  0xb6   : > { %12737 = vmatpush3.xpose.msk.msra.mxu0 %vm1111_vm1, %v1031_v1  ;;  %12738 = vmatprep.mubr.msk.f32.mxu0 %vm13445_vm0, %v15388_v32 }
  0xb7   : > { %12734 = vmatmul.mubr.msk.f32.vlgmr.msra.gmra.mrb[46].mxu1 %vm1111_vm1, %v966_v2  ;;  %12746 = vmatprep.subr.mxu0 %v15388_v32 }
  0xb8   : > { %12742 = vmatpush3.xpose.msk.msra.mxu1 %vm1111_vm1, %v1032_v3  ;;  %12743 = vmatprep.mubr.msk.f32.mxu1 %vm13445_vm0, %v15388_v32 }
  0xb9   : > { %12739 = vmatmul.mubr.msk.f32.vlgmr.msra.gmra.mrb[48].mxu0 %vm1111_vm1, %v967_v4  ;;  %12751 = vmatprep.subr.mxu1 %v15388_v32 }
  0xba   : > { %12747 = vmatpush3.xpose.msk.msra.mxu0 %vm1111_vm1, %v1033_v5  ;;  %12748 = vmatprep.mubr.msk.f32.mxu0 %vm13445_vm0, %v15388_v32 }
  0xbb   : > { %12744 = vmatmul.mubr.msk.f32.vlgmr.msra.gmra.mrb[48].mxu1 %vm1111_vm1, %v968_v6  ;;  %12756 = vmatprep.subr.mxu0 %v15388_v32 }
  0xbc   : > { %12752 = vmatpush3.xpose.msk.msra.mxu1 %vm1111_vm1, %v1034_v7  ;;  %12753 = vmatprep.mubr.msk.f32.mxu1 %vm13445_vm0, %v15388_v32 }
  0xbd   : > { %12749 = vmatmul.mubr.msk.f32.vlgmr.msra.gmra.mrb[50].mxu0 %vm1111_vm1, %v969_v8  ;;  %12761 = vmatprep.subr.mxu1 %v15388_v32 }
  0xbe   : > { %12757 = vmatpush3.xpose.msk.msra.mxu0 %vm1111_vm1, %v1035_v9  ;;  %12758 = vmatprep.mubr.msk.f32.mxu0 %vm13445_vm0, %v15388_v32 }
  0xbf   : > { %12754 = vmatmul.mubr.msk.f32.vlgmr.msra.gmra.mrb[50].mxu1 %vm1111_vm1, %v970_v10  ;;  %12766 = vmatprep.subr.mxu0 %v15388_v32 }
  0xc0   : > { %12762 = vmatpush3.xpose.msk.msra.mxu1 %vm1111_vm1, %v1036_v11  ;;  %12763 = vmatprep.mubr.msk.f32.mxu1 %vm13445_vm0, %v15388_v32 }
  0xc1   : > { %12759 = vmatmul.mubr.msk.f32.vlgmr.msra.gmra.mrb[52].mxu0 %vm1111_vm1, %v971_v12  ;;  %12771 = vmatprep.subr.mxu1 %v15388_v32 }
  0xc2   : > { %12767 = vmatpush3.xpose.msk.msra.mxu0 %vm1111_vm1, %v1037_v13  ;;  %12768 = vmatprep.mubr.msk.f32.mxu0 %vm13445_vm0, %v15388_v32 }
  0xc3   : > { %12764 = vmatmul.mubr.msk.f32.vlgmr.msra.gmra.mrb[52].mxu1 %vm1111_vm1, %v972_v14  ;;  %12776 = vmatprep.subr.mxu0 %v15388_v32 }
  0xc4   : > { %12772 = vmatpush3.xpose.msk.msra.mxu1 %vm1111_vm1, %v1038_v15  ;;  %12773 = vmatprep.mubr.msk.f32.mxu1 %vm13445_vm0, %v15388_v32 }
  0xc5   : > { %12769 = vmatmul.mubr.msk.f32.vlgmr.msra.gmra.mrb[54].mxu0 %vm1111_vm1, %v973_v16  ;;  %12781 = vmatprep.subr.mxu1 %v15388_v32 }
  0xc6   : > { %12777 = vmatpush3.xpose.msk.msra.mxu0 %vm1111_vm1, %v1039_v17  ;;  %12778 = vmatprep.mubr.msk.f32.mxu0 %vm13445_vm0, %v15388_v32 }
  0xc7   : > { %12774 = vmatmul.mubr.msk.f32.vlgmr.msra.gmra.mrb[54].mxu1 %vm1111_vm1, %v974_v18  ;;  %12786 = vmatprep.subr.mxu0 %v15388_v32 }
  0xc8   : > { %12782 = vmatpush3.xpose.msk.msra.mxu1 %vm1111_vm1, %v1040_v19  ;;  %12783 = vmatprep.mubr.msk.f32.mxu1 %vm13445_vm0, %v15388_v32 }
  0xc9   : > { %12779 = vmatmul.mubr.msk.f32.vlgmr.msra.gmra.mrb[56].mxu0 %vm1111_vm1, %v975_v20  ;;  %12791 = vmatprep.subr.mxu1 %v15388_v32 }
  0xca   : > { %12787 = vmatpush3.xpose.msk.msra.mxu0 %vm1111_vm1, %v1041_v21  ;;  %12788 = vmatprep.mubr.msk.f32.mxu0 %vm13445_vm0, %v15388_v32 }
  0xcb   : > { %12784 = vmatmul.mubr.msk.f32.vlgmr.msra.gmra.mrb[56].mxu1 %vm1111_vm1, %v976_v22  ;;  %12796 = vmatprep.subr.mxu0 %v15388_v32 }
  0xcc   : > { %12792 = vmatpush3.xpose.msk.msra.mxu1 %vm1111_vm1, %v1042_v23  ;;  %12793 = vmatprep.mubr.msk.f32.mxu1 %vm13445_vm0, %v15388_v32 }
  0xcd   : > { %12789 = vmatmul.mubr.msk.f32.vlgmr.msra.gmra.mrb[58].mxu0 %vm1111_vm1, %v977_v24  ;;  %12801 = vmatprep.subr.mxu1 %v15388_v32 }
  0xce   : > { %12797 = vmatpush3.xpose.msk.msra.mxu0 %vm1111_vm1, %v1043_v25  ;;  %12798 = vmatprep.mubr.msk.f32.mxu0 %vm13445_vm0, %v15388_v32 }
  0xcf   : > { %12794 = vmatmul.mubr.msk.f32.vlgmr.msra.gmra.mrb[58].mxu1 %vm1111_vm1, %v978_v26  ;;  %12806 = vmatprep.subr.mxu0 %v15388_v32 }
  0xd0   : > { %12802 = vmatpush3.xpose.msk.msra.mxu1 %vm1111_vm1, %v1044_v27  ;;  %12803 = vmatprep.mubr.msk.f32.mxu1 %vm13445_vm0, %v15388_v32 }
  0xd1   : > { %12799 = vmatmul.mubr.msk.f32.vlgmr.msra.gmra.mrb[60].mxu0 %vm1111_vm1, %v979_v28  ;;  %12811 = vmatprep.subr.mxu1 %v15388_v32 }
  0xd2   : > { %12807 = vmatpush3.xpose.msk.msra.mxu0 %vm1111_vm1, %v1045_v29  ;;  %12808 = vmatprep.mubr.msk.f32.mxu0 %vm13445_vm0, %v15388_v32 }
  0xd3   : > { %12804 = vmatmul.mubr.msk.f32.vlgmr.msra.gmra.mrb[60].mxu1 %vm1111_vm1, %v980_v30  ;;  %12816 = vmatprep.subr.mxu0 %v15388_v32 }
  0xd4   : > { %12812 = vmatpush3.xpose.msk.msra.mxu1 %vm1111_vm1, %v1046_v31  ;;  %12813 = vmatprep.mubr.msk.f32.mxu1 %vm13445_vm0, %v15388_v32 }
  0xd5   : > { %12809 = vmatmul.mubr.msk.f32.vlgmr.msra.gmra.mrb[62].mxu0 %vm1111_vm1, %v981_v33  ;;  %12821 = vmatprep.subr.mxu1 %v15388_v32 }
  0xd6   : > { %12818 = vmatprep.mubr.msk.f32.mxu0 %vm13445_vm0, %v15388_v32 }
  0xd7   : > { %12814 = vmatmul.mubr.msk.f32.vlgmr.msra.gmra.mrb[62].mxu1 %vm1111_vm1, %v982_v34 }
  0xd8   : > { %12823 = vmatprep.mubr.msk.f32.mxu1 %vm13445_vm0, %v15388_v32 }
 0x12c   : > { %v14153_v35 = vpop.f32.mrb[0].mxu0  ;;  %v14155_v36 = vpop.f32.mrb[0].mxu1 }
 0x12d   : > { %v12500_v37 = vpop.f32.mrb[1].mxu0  ;;  %v5977_v38 = vsel %vm5976_vm2, %v14153_v35, -inf  ;;  %v12505_v39 = vpop.f32.mrb[1].mxu1  ;;  %v5980_v40 = vsel %vm5976_vm2, %v14155_v36, -inf }
 0x12e   : > { %5978 = vmax.xlane.f32.xlu0 %v5977_v38 }
 0x130   : > { %v14161_v41 = vpop.f32.mrb[2].mxu0 }
 0x131   : > { %v12510_v42 = vpop.f32.mrb[3].mxu0  ;;  %v5983_v43 = vsel %vm5976_vm2, %v14161_v41, -inf }
 0x132   : > { %5981 = vmax.xlane.f32.xlu0 %v5980_v40  ;;  %5984 = vmax.xlane.f32.xlu1 %v5983_v43  ;;  %v14165_v44 = vpop.f32.mrb[2].mxu1 }
 0x133   : > { %v12515_v45 = vpop.f32.mrb[3].mxu1  ;;  %v5986_v46 = vsel %vm5976_vm2, %v14165_v44, -inf }
 0x134   : > { %v14169_v47 = vpop.f32.mrb[4].mxu0 }
 0x135   : > { %v5989_v48 = vsel %vm5976_vm2, %v14169_v47, -inf  ;;  %v12520_v49 = vpop.f32.mrb[5].mxu0 }
 0x136   : > { %5987 = vmax.xlane.f32.xlu1 %v5986_v46  ;;  %5990 = vmax.xlane.f32.xlu0 %v5989_v48  ;;  %v14173_v50 = vpop.f32.mrb[4].mxu1 }
 0x137   : > { %v12525_v51 = vpop.f32.mrb[5].mxu1  ;;  %v5992_v52 = vsel %vm5976_vm2, %v14173_v50, -inf }
 0x138   : > { %v14177_v53 = vpop.f32.mrb[6].mxu0 }
 0x139   : > { %v5995_v54 = vsel %vm5976_vm2, %v14177_v53, -inf  ;;  %v12530_v55 = vpop.f32.mrb[7].mxu0 }
 0x13a   : > { %5993 = vmax.xlane.f32.xlu1 %v5992_v52  ;;  %5996 = vmax.xlane.f32.xlu0 %v5995_v54  ;;  %v14181_v56 = vpop.f32.mrb[6].mxu1 }
 0x13b   : > { %v12535_v57 = vpop.f32.mrb[7].mxu1  ;;  %v5998_v58 = vsel %vm5976_vm2, %v14181_v56, -inf }
 0x13c   : > { %v14185_v59 = vpop.f32.mrb[8].mxu0 }
 0x13d   : > { %v6001_v60 = vsel %vm5976_vm2, %v14185_v59, -inf  ;;  %v12540_v61 = vpop.f32.mrb[9].mxu0 }
 0x13e   : > { %5999 = vmax.xlane.f32.xlu1 %v5998_v58  ;;  %6002 = vmax.xlane.f32.xlu0 %v6001_v60  ;;  %v14189_v62 = vpop.f32.mrb[8].mxu1 }
 0x13f   : > { %v12545_v63 = vpop.f32.mrb[9].mxu1  ;;  %v6004_v0 = vsel %vm5976_vm2, %v14189_v62, -inf }
 0x140   : > { %v14193_v1 = vpop.f32.mrb[10].mxu0 }
 0x141   : > { %v6007_v2 = vsel %vm5976_vm2, %v14193_v1, -inf  ;;  %v12550_v3 = vpop.f32.mrb[11].mxu0 }
 0x142   : > { %6005 = vmax.xlane.f32.xlu1 %v6004_v0  ;;  %6008 = vmax.xlane.f32.xlu0 %v6007_v2  ;;  %v14197_v4 = vpop.f32.mrb[10].mxu1 }
 0x143   : > { %v12555_v5 = vpop.f32.mrb[11].mxu1  ;;  %v6010_v6 = vsel %vm5976_vm2, %v14197_v4, -inf }
 0x144   : > { %v14201_v7 = vpop.f32.mrb[12].mxu0 }
 0x145   : > { %v6013_v8 = vsel %vm5976_vm2, %v14201_v7, -inf  ;;  %v12560_v9 = vpop.f32.mrb[13].mxu0 }
 0x146   : > { %6011 = vmax.xlane.f32.xlu1 %v6010_v6  ;;  %6014 = vmax.xlane.f32.xlu0 %v6013_v8  ;;  %v14205_v10 = vpop.f32.mrb[12].mxu1 }
 0x147   : > { %v12565_v11 = vpop.f32.mrb[13].mxu1  ;;  %v6016_v12 = vsel %vm5976_vm2, %v14205_v10, -inf }
 0x148   : > { %v14209_v13 = vpop.f32.mrb[14].mxu0 }
 0x149   : > { %v6019_v14 = vsel %vm5976_vm2, %v14209_v13, -inf  ;;  %v12570_v15 = vpop.f32.mrb[15].mxu0 }
 0x14a   : > { %6017 = vmax.xlane.f32.xlu1 %v6016_v12  ;;  %6020 = vmax.xlane.f32.xlu0 %v6019_v14  ;;  %v14213_v16 = vpop.f32.mrb[14].mxu1 }
 0x14b   : > { %v12575_v17 = vpop.f32.mrb[15].mxu1  ;;  %v6022_v18 = vsel %vm5976_vm2, %v14213_v16, -inf }
 0x14c   : > { %v14217_v19 = vpop.f32.mrb[16].mxu0 }
 0x14d   : > { %v6025_v20 = vsel %vm5976_vm2, %v14217_v19, -inf  ;;  %v12580_v21 = vpop.f32.mrb[17].mxu0 }
 0x14e   : > { %6023 = vmax.xlane.f32.xlu1 %v6022_v18  ;;  %6026 = vmax.xlane.f32.xlu0 %v6025_v20  ;;  %v14221_v22 = vpop.f32.mrb[16].mxu1 }
 0x14f   : > { %v12585_v23 = vpop.f32.mrb[17].mxu1  ;;  %v6028_v24 = vsel %vm5976_vm2, %v14221_v22, -inf }
 0x150   : > { %v14225_v25 = vpop.f32.mrb[18].mxu0 }
 0x151   : > { %v6031_v26 = vsel %vm5976_vm2, %v14225_v25, -inf  ;;  %v12590_v27 = vpop.f32.mrb[19].mxu0 }
 0x152   : > { %6029 = vmax.xlane.f32.xlu1 %v6028_v24  ;;  %6032 = vmax.xlane.f32.xlu0 %v6031_v26  ;;  %v14229_v28 = vpop.f32.mrb[18].mxu1 }
 0x153   : > { %v12595_v29 = vpop.f32.mrb[19].mxu1  ;;  %v6034_v30 = vsel %vm5976_vm2, %v14229_v28, -inf }
 0x154   : > { %v14233_v31 = vpop.f32.mrb[20].mxu0 }
 0x155   : > { %v6037_v33 = vsel %vm5976_vm2, %v14233_v31, -inf  ;;  %v12600_v34 = vpop.f32.mrb[21].mxu0 }
 0x156   : > { %6035 = vmax.xlane.f32.xlu1 %v6034_v30  ;;  %6038 = vmax.xlane.f32.xlu0 %v6037_v33  ;;  %v14237_v37 = vpop.f32.mrb[20].mxu1 }
 0x157   : > { %v12605_v38 = vpop.f32.mrb[21].mxu1  ;;  %v6040_v39 = vsel %vm5976_vm2, %v14237_v37, -inf }
 0x158   : > { %v14241_v40 = vpop.f32.mrb[22].mxu0 }
 0x159   : > { %v6043_v42 = vsel %vm5976_vm2, %v14241_v40, -inf  ;;  %v12610_v43 = vpop.f32.mrb[23].mxu0 }
 0x15a   : > { %6041 = vmax.xlane.f32.xlu1 %v6040_v39  ;;  %6044 = vmax.xlane.f32.xlu0 %v6043_v42  ;;  %v14245_v45 = vpop.f32.mrb[22].mxu1 }
 0x15b   : > { %v12615_v46 = vpop.f32.mrb[23].mxu1  ;;  %v6046_v48 = vsel %vm5976_vm2, %v14245_v45, -inf }
 0x15c   : > { %v14249_v49 = vpop.f32.mrb[24].mxu0 }
 0x15d   : > { %v6049_v51 = vsel %vm5976_vm2, %v14249_v49, -inf  ;;  %v12620_v52 = vpop.f32.mrb[25].mxu0 }
 0x15e   : > { %6047 = vmax.xlane.f32.xlu1 %v6046_v48  ;;  %6050 = vmax.xlane.f32.xlu0 %v6049_v51  ;;  %v14253_v54 = vpop.f32.mrb[24].mxu1 }
 0x15f   : > { %v12625_v55 = vpop.f32.mrb[25].mxu1  ;;  %v6052_v57 = vsel %vm5976_vm2, %v14253_v54, -inf }
 0x160   : > { %v14257_v58 = vpop.f32.mrb[26].mxu0 }
 0x161   : > { %v6055_v60 = vsel %vm5976_vm2, %v14257_v58, -inf  ;;  %v12630_v61 = vpop.f32.mrb[27].mxu0 }
 0x162   : > { %6053 = vmax.xlane.f32.xlu1 %v6052_v57  ;;  %6056 = vmax.xlane.f32.xlu0 %v6055_v60  ;;  %v14261_v63 = vpop.f32.mrb[26].mxu1 }
 0x163   : > { %v12635_v0 = vpop.f32.mrb[27].mxu1  ;;  %v6058_v2 = vsel %vm5976_vm2, %v14261_v63, -inf }
 0x164   : > { %v14265_v3 = vpop.f32.mrb[28].mxu0 }
 0x165   : > { %v6061_v5 = vsel %vm5976_vm2, %v14265_v3, -inf  ;;  %v12640_v6 = vpop.f32.mrb[29].mxu0 }
 0x166   : > { %6059 = vmax.xlane.f32.xlu1 %v6058_v2  ;;  %6062 = vmax.xlane.f32.xlu0 %v6061_v5  ;;  %v14269_v8 = vpop.f32.mrb[28].mxu1 }
 0x167   : > { %v12645_v9 = vpop.f32.mrb[29].mxu1  ;;  %v6064_v11 = vsel %vm5976_vm2, %v14269_v8, -inf }
 0x168   : > { %v14273_v12 = vpop.f32.mrb[30].mxu0 }
 0x169   : > { %v6067_v14 = vsel %vm5976_vm2, %v14273_v12, -inf  ;;  %v12650_v15 = vpop.f32.mrb[31].mxu0 }
 0x16a   : > { %6065 = vmax.xlane.f32.xlu1 %v6064_v11  ;;  %6068 = vmax.xlane.f32.xlu0 %v6067_v14  ;;  %v14277_v17 = vpop.f32.mrb[30].mxu1 }
 0x16b   : > { %v12655_v18 = vpop.f32.mrb[31].mxu1  ;;  %v6070_v20 = vsel %vm5976_vm2, %v14277_v17, -inf }
 0x16c   : > { %v14281_v21 = vpop.f32.mrb[32].mxu0 }
 0x16d   : > { %v6073_v23 = vsel %vm5976_vm2, %v14281_v21, -inf  ;;  %v12660_v24 = vpop.f32.mrb[33].mxu0 }
 0x16e   : > { %6071 = vmax.xlane.f32.xlu1 %v6070_v20  ;;  %6074 = vmax.xlane.f32.xlu0 %v6073_v23  ;;  %v14285_v26 = vpop.f32.mrb[32].mxu1 }
 0x16f   : > { %v12665_v27 = vpop.f32.mrb[33].mxu1  ;;  %v6076_v29 = vsel %vm5976_vm2, %v14285_v26, -inf }
 0x170   : > { %v14289_v30 = vpop.f32.mrb[34].mxu0 }
 0x171   : > { %v6079_v33 = vsel %vm5976_vm2, %v14289_v30, -inf  ;;  %v12670_v34 = vpop.f32.mrb[35].mxu0 }
 0x172   : > { %6077 = vmax.xlane.f32.xlu1 %v6076_v29  ;;  %6080 = vmax.xlane.f32.xlu0 %v6079_v33  ;;  %v14293_v38 = vpop.f32.mrb[34].mxu1 }
 0x173   : > { %v12675_v39 = vpop.f32.mrb[35].mxu1  ;;  %v6082_v42 = vsel %vm5976_vm2, %v14293_v38, -inf }
 0x174   : > { %v14297_v43 = vpop.f32.mrb[36].mxu0 }
 0x175   : > { %v6085_v46 = vsel %vm5976_vm2, %v14297_v43, -inf  ;;  %v12680_v48 = vpop.f32.mrb[37].mxu0 }
 0x176   : > { %6083 = vmax.xlane.f32.xlu1 %v6082_v42  ;;  %6086 = vmax.xlane.f32.xlu0 %v6085_v46  ;;  %v14301_v51 = vpop.f32.mrb[36].mxu1 }
 0x177   : > { %v12685_v52 = vpop.f32.mrb[37].mxu1  ;;  %v6088_v55 = vsel %vm5976_vm2, %v14301_v51, -inf }
 0x178   : > { %v14305_v57 = vpop.f32.mrb[38].mxu0 }
 0x179   : > { %v6091_v60 = vsel %vm5976_vm2, %v14305_v57, -inf  ;;  %v12690_v61 = vpop.f32.mrb[39].mxu0 }
 0x17a   : > { %6089 = vmax.xlane.f32.xlu1 %v6088_v55  ;;  %6092 = vmax.xlane.f32.xlu0 %v6091_v60  ;;  %v14309_v0 = vpop.f32.mrb[38].mxu1 }
 0x17b   : > { %v12695_v2 = vpop.f32.mrb[39].mxu1  ;;  %v6094_v5 = vsel %vm5976_vm2, %v14309_v0, -inf }
 0x17c   : > { %v14313_v6 = vpop.f32.mrb[40].mxu0 }
 0x17d   : > { %v6097_v9 = vsel %vm5976_vm2, %v14313_v6, -inf  ;;  %v12700_v11 = vpop.f32.mrb[41].mxu0 }
 0x17e   : > { %6095 = vmax.xlane.f32.xlu1 %v6094_v5  ;;  %6098 = vmax.xlane.f32.xlu0 %v6097_v9  ;;  %v14317_v14 = vpop.f32.mrb[40].mxu1 }
 0x17f   : > { %v12705_v15 = vpop.f32.mrb[41].mxu1  ;;  %v6100_v18 = vsel %vm5976_vm2, %v14317_v14, -inf }
 0x180   : > { %v14321_v20 = vpop.f32.mrb[42].mxu0 }
 0x181   : > { %v6103_v23 = vsel %vm5976_vm2, %v14321_v20, -inf  ;;  %v12710_v24 = vpop.f32.mrb[43].mxu0 }
 0x182   : > { %6101 = vmax.xlane.f32.xlu1 %v6100_v18  ;;  %6104 = vmax.xlane.f32.xlu0 %v6103_v23  ;;  %v14325_v27 = vpop.f32.mrb[42].mxu1 }
 0x183   : > { %v12715_v29 = vpop.f32.mrb[43].mxu1  ;;  %v6106_v33 = vsel %vm5976_vm2, %v14325_v27, -inf }
 0x184   : > { %v14329_v34 = vpop.f32.mrb[44].mxu0 }
 0x185   : > { %v6109_v39 = vsel %vm5976_vm2, %v14329_v34, -inf  ;;  %v12720_v42 = vpop.f32.mrb[45].mxu0 }
 0x186   : > { %6107 = vmax.xlane.f32.xlu1 %v6106_v33  ;;  %6110 = vmax.xlane.f32.xlu0 %v6109_v39  ;;  %v14333_v46 = vpop.f32.mrb[44].mxu1 }
 0x187   : > { %v12725_v48 = vpop.f32.mrb[45].mxu1  ;;  %v6112_v52 = vsel %vm5976_vm2, %v14333_v46, -inf }
 0x188   : > { %v14337_v55 = vpop.f32.mrb[46].mxu0 }
 0x189   : > { %v6115_v60 = vsel %vm5976_vm2, %v14337_v55, -inf  ;;  %v12730_v61 = vpop.f32.mrb[47].mxu0 }
 0x18a   : > { %6113 = vmax.xlane.f32.xlu1 %v6112_v52  ;;  %6116 = vmax.xlane.f32.xlu0 %v6115_v60  ;;  %v14341_v2 = vpop.f32.mrb[46].mxu1 }
 0x18b   : > { %v12735_v5 = vpop.f32.mrb[47].mxu1  ;;  %v6118_v9 = vsel %vm5976_vm2, %v14341_v2, -inf }
 0x18c   : > { %v14345_v11 = vpop.f32.mrb[48].mxu0 }
 0x18d   : > { %v6121_v15 = vsel %vm5976_vm2, %v14345_v11, -inf  ;;  %v12740_v18 = vpop.f32.mrb[49].mxu0 }
 0x18e   : > { %6119 = vmax.xlane.f32.xlu1 %v6118_v9  ;;  %6122 = vmax.xlane.f32.xlu0 %v6121_v15  ;;  %v14349_v23 = vpop.f32.mrb[48].mxu1 }
 0x18f   : > { %v12745_v24 = vpop.f32.mrb[49].mxu1  ;;  %v6124_v29 = vsel %vm5976_vm2, %v14349_v23, -inf }
 0x190   : > { %v14353_v33 = vpop.f32.mrb[50].mxu0 }
 0x191   : > { %15416 = vst [vmem:[#allocation4_spill] sm:$0xff] %v14353_v33  ;;  %v6127_v39 = vsel %vm5976_vm2, %v14353_v33, -inf  ;;  %v12750_v42 = vpop.f32.mrb[51].mxu0 }
 0x192   : > { %6125 = vmax.xlane.f32.xlu1 %v6124_v29  ;;  %6128 = vmax.xlane.f32.xlu0 %v6127_v39  ;;  %v14357_v48 = vpop.f32.mrb[50].mxu1 }
 0x193   : > { %15417 = vst [vmem:[#allocation5_spill] sm:$0xff] %v14357_v48  ;;  %v12755_v52 = vpop.f32.mrb[51].mxu1  ;;  %v6130_v60 = vsel %vm5976_vm2, %v14357_v48, -inf }
 0x194   : > { %v14361_v61 = vpop.f32.mrb[52].mxu0 }
 0x195   : > { %15418 = vst [vmem:[#allocation6_spill] sm:$0xff] %v14361_v61  ;;  %v6133_v5 = vsel %vm5976_vm2, %v14361_v61, -inf  ;;  %v12760_v9 = vpop.f32.mrb[53].mxu0 }
 0x196   : > { %6131 = vmax.xlane.f32.xlu1 %v6130_v60  ;;  %6134 = vmax.xlane.f32.xlu0 %v6133_v5  ;;  %v14365_v15 = vpop.f32.mrb[52].mxu1 }
 0x197   : > { %15419 = vst [vmem:[#allocation7_spill] sm:$0xff] %v14365_v15  ;;  %v12765_v18 = vpop.f32.mrb[53].mxu1  ;;  %v6136_v24 = vsel %vm5976_vm2, %v14365_v15, -inf }
 0x198   : > { %v14369_v29 = vpop.f32.mrb[54].mxu0 }
 0x199   : > { %15420 = vst [vmem:[#allocation8_spill] sm:$0xff] %v14369_v29  ;;  %v6139_v39 = vsel %vm5976_vm2, %v14369_v29, -inf  ;;  %v12770_v42 = vpop.f32.mrb[55].mxu0 }
 0x19a   : > { %6137 = vmax.xlane.f32.xlu1 %v6136_v24  ;;  %6140 = vmax.xlane.f32.xlu0 %v6139_v39  ;;  %v14373_v52 = vpop.f32.mrb[54].mxu1 }
 0x19b   : > { %15421 = vst [vmem:[#allocation9_spill] sm:$0xff] %v14373_v52  ;;  %v12775_v32 = vpop.f32.mrb[55].mxu1  ;;  %v6142_v60 = vsel %vm5976_vm2, %v14373_v52, -inf }
 0x19c   : > { %v14377_v5 = vpop.f32.mrb[56].mxu0 }
 0x19d   : > { %15422 = vst [vmem:[#allocation10_spill] sm:$0xff] %v14377_v5  ;;  %v6145_v9 = vsel %vm5976_vm2, %v14377_v5, -inf  ;;  %v12780_v18 = vpop.f32.mrb[57].mxu0 }
 0x19e   : > { %6143 = vmax.xlane.f32.xlu1 %v6142_v60  ;;  %6146 = vmax.xlane.f32.xlu0 %v6145_v9  ;;  %v14381_v15 = vpop.f32.mrb[56].mxu1 }
 0x19f   : > { %15423 = vst [vmem:[#allocation11_spill] sm:$0xff] %v14381_v15  ;;  %v12785_v29 = vpop.f32.mrb[57].mxu1  ;;  %v6148_v24 = vsel %vm5976_vm2, %v14381_v15, -inf }
 0x1a0   : > { %v14385_v39 = vpop.f32.mrb[58].mxu0 }
 0x1a1   : > { %15424 = vst [vmem:[#allocation12_spill] sm:$0xff] %v14385_v39  ;;  %v6151_v32 = vsel %vm5976_vm2, %v14385_v39, -inf  ;;  %v12790_v42 = vpop.f32.mrb[59].mxu0 }
 0x1a2   : > { %6149 = vmax.xlane.f32.xlu1 %v6148_v24  ;;  %6152 = vmax.xlane.f32.xlu0 %v6151_v32  ;;  %v14389_v52 = vpop.f32.mrb[58].mxu1 }
 0x1a3   : > { %15425 = vst [vmem:[#allocation13_spill] sm:$0xff] %v14389_v52  ;;  %v12795_v5 = vpop.f32.mrb[59].mxu1  ;;  %v6154_v60 = vsel %vm5976_vm2, %v14389_v52, -inf }
 0x1a4   : > { %v14393_v9 = vpop.f32.mrb[60].mxu0 }
 0x1a5   : > { %15426 = vst [vmem:[#allocation14_spill] sm:$0xff] %v14393_v9  ;;  %v6157_v29 = vsel %vm5976_vm2, %v14393_v9, -inf  ;;  %v12800_v18 = vpop.f32.mrb[61].mxu0 }
 0x1a6   : > { %6155 = vmax.xlane.f32.xlu1 %v6154_v60  ;;  %6158 = vmax.xlane.f32.xlu0 %v6157_v29  ;;  %v14397_v15 = vpop.f32.mrb[60].mxu1 }
 0x1a7   : > { %15427 = vst [vmem:[#allocation15_spill] sm:$0xff] %v14397_v15  ;;  %v12805_v39 = vpop.f32.mrb[61].mxu1  ;;  %v6160_v24 = vsel %vm5976_vm2, %v14397_v15, -inf }
 0x1a8   : > { %v14401_v32 = vpop.f32.mrb[62].mxu0 }
 0x1a9   : > { %15428 = vst [vmem:[#allocation16_spill] sm:$0xff] %v14401_v32  ;;  %v6163_v5 = vsel %vm5976_vm2, %v14401_v32, -inf  ;;  %v12810_v42 = vpop.f32.mrb[63].mxu0 }
 0x1aa   : > { %6161 = vmax.xlane.f32.xlu1 %v6160_v24  ;;  %6164 = vmax.xlane.f32.xlu0 %v6163_v5  ;;  %v14405_v52 = vpop.f32.mrb[62].mxu1 }
 0x1ab   : > { %15429 = vst [vmem:[#allocation17_spill] sm:$0xff] %v14405_v52  ;;  %v12815_v9 = vpop.f32.mrb[63].mxu1  ;;  %v6166_v60 = vsel %vm5976_vm2, %v14405_v52, -inf }
 0x1ae   : > { %6167 = vmax.xlane.f32.xlu1 %v6166_v60 }
 0x1bb   : > { %v5979_v29 = vpop.xlane.xlu0 %5978 }
 0x1bc   : > { %v6169_v39 = vsub.f32 %v14153_v35, %v5979_v29 }
 0x1be   : > { %v6233_v18 = vmul.f32 1.442695, %v6169_v39 }
 0x1bf   : > { %v5982_v15 = vpop.xlane.xlu0 %5981  ;;  %v5985_v61 = vpop.xlane.xlu1 %5984 }
 0x1c0   : > { %13164 = vpow2.f32 %v6233_v18  ;;  %v6170_v48 = vsub.f32 %v14155_v36, %v5982_v15  ;;  %v6171_v42 = vsub.f32 %v14161_v41, %v5985_v61 }
 0x1c2   : > { %v6235_v24 = vmul.f32 1.442695, %v6170_v48  ;;  %v6237_v5 = vmul.f32 1.442695, %v6171_v42 }
 0x1c3   : > { %v5988_v32 = vpop.xlane.xlu1 %5987  ;;  %v5991_v33 = vpop.xlane.xlu0 %5990 }
 0x1c4   : > { %13166 = vpow2.f32 %v6235_v24  ;;  %v6172_v9 = vsub.f32 %v14165_v44, %v5988_v32  ;;  %v6173_v60 = vsub.f32 %v14169_v47, %v5991_v33 }
 0x1c5   : > { %13168 = vpow2.f32 %v6237_v5 }
 0x1c6   : > { %v6239_v52 = vmul.f32 1.442695, %v6172_v9  ;;  %v6241_v35 = vmul.f32 1.442695, %v6173_v60 }
 0x1c7   : > { %v5994_v29 = vpop.xlane.xlu1 %5993  ;;  %v5997_v39 = vpop.xlane.xlu0 %5996 }
 0x1c8   : > { %13170 = vpow2.f32 %v6239_v52  ;;  %v6174_v18 = vsub.f32 %v14173_v50, %v5994_v29  ;;  %v6175_v36 = vsub.f32 %v14177_v53, %v5997_v39 }
 0x1c9   : > { %13172 = vpow2.f32 %v6241_v35 }
 0x1ca   : > { %v14416_v41 = vpop.eup %13164  ;;  %v6243_v48 = vmul.f32 1.442695, %v6174_v18  ;;  %v6245_v61 = vmul.f32 1.442695, %v6175_v36 }
 0x1cb   : > { %v6000_v15 = vpop.xlane.xlu1 %5999  ;;  %v6003_v42 = vpop.xlane.xlu0 %6002  ;;  %v6361_v44 = vsel %vm5976_vm2, %v14416_v41, 0.0 }
 0x1cc   : > { %13174 = vpow2.f32 %v6243_v48  ;;  %v6176_v47 = vsub.f32 %v14181_v56, %v6000_v15  ;;  %v6177_v33 = vsub.f32 %v14185_v59, %v6003_v42  ;;  %6362 = vadd.xlane.f32.xlu0 %v6361_v44 }
 0x1cd   : > { %13176 = vpow2.f32 %v6245_v61 }
 0x1ce   : > { %v14422_v50 = vpop.eup %13166  ;;  %v6247_v53 = vmul.f32 1.442695, %v6176_v47  ;;  %v6249_v52 = vmul.f32 1.442695, %v6177_v33 }
 0x1cf   : > { %v14424_v32 = vpop.eup %13168  ;;  %v6006_v24 = vpop.xlane.xlu1 %6005  ;;  %v6364_v9 = vsel %vm5976_vm2, %v14422_v50, 0.0 }
 0x1d0   : > { %v6009_v5 = vpop.xlane.xlu0 %6008  ;;  %13178 = vpow2.f32 %v6247_v53  ;;  %v6178_v60 = vsub.f32 %v14189_v62, %v6006_v24  ;;  %6365 = vadd.xlane.f32.xlu1 %v6364_v9  ;;  %v6367_v59 = vsel %vm5976_vm2, %v14424_v32, 0.0 }
 0x1d1   : > { %v6179_v56 = vsub.f32 %v14193_v1, %v6009_v5  ;;  %13180 = vpow2.f32 %v6249_v52  ;;  %6368 = vadd.xlane.f32.xlu0 %v6367_v59 }
 0x1d2   : > { %v14432_v35 = vpop.eup %13170  ;;  %v6251_v29 = vmul.f32 1.442695, %v6178_v60 }
 0x1d3   : > { %v6253_v39 = vmul.f32 1.442695, %v6179_v56  ;;  %v14434_v18 = vpop.eup %13172  ;;  %v6012_v36 = vpop.xlane.xlu1 %6011  ;;  %v6370_v61 = vsel %vm5976_vm2, %v14432_v35, 0.0 }
 0x1d4   : > { %v6015_v48 = vpop.xlane.xlu0 %6014  ;;  %13182 = vpow2.f32 %v6251_v29  ;;  %v6180_v62 = vsub.f32 %v14197_v4, %v6012_v36  ;;  %6371 = vadd.xlane.f32.xlu1 %v6370_v61  ;;  %v6373_v15 = vsel %vm5976_vm2, %v14434_v18, 0.0 }
 0x1d5   : > { %v6181_v1 = vsub.f32 %v14201_v7, %v6015_v48  ;;  %13184 = vpow2.f32 %v6253_v39  ;;  %6374 = vadd.xlane.f32.xlu0 %v6373_v15 }
 0x1d6   : > { %v14442_v42 = vpop.eup %13174  ;;  %v6255_v44 = vmul.f32 1.442695, %v6180_v62 }
 0x1d7   : > { %v6257_v47 = vmul.f32 1.442695, %v6181_v1  ;;  %v14444_v33 = vpop.eup %13176  ;;  %v6018_v53 = vpop.xlane.xlu1 %6017  ;;  %v6376_v24 = vsel %vm5976_vm2, %v14442_v42, 0.0 }
 0x1d8   : > { %v6021_v52 = vpop.xlane.xlu0 %6020  ;;  %13186 = vpow2.f32 %v6255_v44  ;;  %v6182_v4 = vsub.f32 %v14205_v10, %v6018_v53  ;;  %6377 = vadd.xlane.f32.xlu1 %v6376_v24  ;;  %v6379_v5 = vsel %vm5976_vm2, %v14444_v33, 0.0 }
 0x1d9   : > { %v6183_v7 = vsub.f32 %v14209_v13, %v6021_v52  ;;  %13188 = vpow2.f32 %v6257_v47  ;;  %6380 = vadd.xlane.f32.xlu0 %v6379_v5 }
 0x1da   : > { %v14452_v9 = vpop.eup %13178  ;;  %v6259_v60 = vmul.f32 1.442695, %v6182_v4 }
 0x1db   : > { %v6261_v56 = vmul.f32 1.442695, %v6183_v7  ;;  %v14454_v59 = vpop.eup %13180  ;;  %v6024_v29 = vpop.xlane.xlu1 %6023  ;;  %v6382_v36 = vsel %vm5976_vm2, %v14452_v9, 0.0 }
 0x1dc   : > { %v6027_v39 = vpop.xlane.xlu0 %6026  ;;  %13190 = vpow2.f32 %v6259_v60  ;;  %v6184_v10 = vsub.f32 %v14213_v16, %v6024_v29  ;;  %6383 = vadd.xlane.f32.xlu1 %v6382_v36  ;;  %v6385_v48 = vsel %vm5976_vm2, %v14454_v59, 0.0 }
 0x1dd   : > { %v6185_v13 = vsub.f32 %v14217_v19, %v6027_v39  ;;  %13192 = vpow2.f32 %v6261_v56  ;;  %6386 = vadd.xlane.f32.xlu0 %v6385_v48  ;;  %v1047_v48 = vld [vmem:[%s13703_s24 + $0x200] sm:$0xf] }
 0x1de   : > { %v14462_v61 = vpop.eup %13182  ;;  %v6263_v62 = vmul.f32 1.442695, %v6184_v10  ;;  %12817 = vmatpush3.msk.msra.mxu0 %vm6685_vm3, %v1047_v48 }
 0x1df   : > { %v6265_v1 = vmul.f32 1.442695, %v6185_v13  ;;  %v14464_v15 = vpop.eup %13184  ;;  %v6030_v44 = vpop.xlane.xlu1 %6029  ;;  %v6388_v53 = vsel %vm5976_vm2, %v14462_v61, 0.0 }
 0x1e0   : > { %v6033_v47 = vpop.xlane.xlu0 %6032  ;;  %13194 = vpow2.f32 %v6263_v62  ;;  %v6186_v16 = vsub.f32 %v14221_v22, %v6030_v44  ;;  %6389 = vadd.xlane.f32.xlu1 %v6388_v53  ;;  %v6391_v52 = vsel %vm5976_vm2, %v14464_v15, 0.0 }
 0x1e1   : > { %v6187_v19 = vsub.f32 %v14225_v25, %v6033_v47  ;;  %13196 = vpow2.f32 %v6265_v1  ;;  %6392 = vadd.xlane.f32.xlu0 %v6391_v52 }
 0x1e2   : > { %v14472_v24 = vpop.eup %13186  ;;  %v6267_v4 = vmul.f32 1.442695, %v6186_v16  ;;  %v15430_v16 = vmov 0.0  }
 0x1e3   : > { %v6269_v7 = vmul.f32 1.442695, %v6187_v19  ;;  %v14474_v5 = vpop.eup %13188  ;;  %v6036_v60 = vpop.xlane.xlu1 %6035  ;;  %v6394_v22 = vsel %vm5976_vm2, %v14472_v24, 0.0  ;;  %12826 = vmatprep.subr.mxu0 %v15430_v16 }
 0x1e4   : > { %v6039_v56 = vpop.xlane.xlu0 %6038  ;;  %13198 = vpow2.f32 %v6267_v4  ;;  %v6188_v25 = vsub.f32 %v14229_v28, %v6036_v60  ;;  %6395 = vadd.xlane.f32.xlu1 %v6394_v22  ;;  %v6397_v39 = vsel %vm5976_vm2, %v14474_v5, 0.0 }
 0x1e5   : > { %v6189_v29 = vsub.f32 %v14233_v31, %v6039_v56  ;;  %13200 = vpow2.f32 %v6269_v7  ;;  %6398 = vadd.xlane.f32.xlu0 %v6397_v39  ;;  %v1048_v7 = vld [vmem:[%s13703_s24 + $0x204] sm:$0xf] }
 0x1e6   : > { %v14482_v36 = vpop.eup %13190  ;;  %v6271_v10 = vmul.f32 1.442695, %v6188_v25  ;;  %12822 = vmatpush3.msk.msra.mxu1 %vm6685_vm3, %v1048_v7 }
 0x1e7   : > { %v6273_v13 = vmul.f32 1.442695, %v6189_v29  ;;  %v14485_v62 = vpop.eup %13192  ;;  %v6042_v1 = vpop.xlane.xlu1 %6041  ;;  %v6400_v28 = vsel %vm5976_vm2, %v14482_v36, 0.0  ;;  %12831 = vmatprep.subr.mxu1 %v15430_v16 }
 0x1e8   : > { %v6045_v44 = vpop.xlane.xlu0 %6044  ;;  %13202 = vpow2.f32 %v6271_v10  ;;  %v6190_v31 = vsub.f32 %v14237_v37, %v6042_v1  ;;  %6401 = vadd.xlane.f32.xlu1 %v6400_v28  ;;  %v6403_v53 = vsel %vm5976_vm2, %v14485_v62, 0.0 }
 0x1e9   : > { %v6191_v47 = vsub.f32 %v14241_v40, %v6045_v44  ;;  %13204 = vpow2.f32 %v6273_v13  ;;  %6404 = vadd.xlane.f32.xlu0 %v6403_v53 }
 0x1ea   : > { %v14495_v19 = vpop.eup %13194  ;;  %v6275_v52 = vmul.f32 1.442695, %v6190_v31 }
 0x1eb   : > { %v6277_v4 = vmul.f32 1.442695, %v6191_v47  ;;  %v14498_v60 = vpop.eup %13196  ;;  %v6048_v37 = vpop.xlane.xlu1 %6047  ;;  %v6406_v40 = vsel %vm5976_vm2, %v14495_v19, 0.0 }
 0x1ec   : > { %v6051_v56 = vpop.xlane.xlu0 %6050  ;;  %13206 = vpow2.f32 %v6275_v52  ;;  %v6192_v22 = vsub.f32 %v14245_v45, %v6048_v37  ;;  %6407 = vadd.xlane.f32.xlu1 %v6406_v40  ;;  %v6409_v29 = vsel %vm5976_vm2, %v14498_v60, 0.0 }
 0x1ed   : > { %v6193_v25 = vsub.f32 %v14249_v49, %v6051_v56  ;;  %13208 = vpow2.f32 %v6277_v4  ;;  %6410 = vadd.xlane.f32.xlu0 %v6409_v29 }
 0x1ee   : > { %v14508_v39 = vpop.eup %13198  ;;  %v6279_v10 = vmul.f32 1.442695, %v6192_v22 }
 0x1ef   : > { %v6281_v13 = vmul.f32 1.442695, %v6193_v25  ;;  %v14510_v48 = vpop.eup %13200  ;;  %v6054_v1 = vpop.xlane.xlu1 %6053  ;;  %v6412_v45 = vsel %vm5976_vm2, %v14508_v39, 0.0 }
 0x1f0   : > { %v6057_v44 = vpop.xlane.xlu0 %6056  ;;  %13210 = vpow2.f32 %v6279_v10  ;;  %v6194_v49 = vsub.f32 %v14253_v54, %v6054_v1  ;;  %6413 = vadd.xlane.f32.xlu1 %v6412_v45  ;;  %v6415_v31 = vsel %vm5976_vm2, %v14510_v48, 0.0 }
 0x1f1   : > { %v6195_v28 = vsub.f32 %v14257_v58, %v6057_v44  ;;  %13212 = vpow2.f32 %v6281_v13  ;;  %6416 = vadd.xlane.f32.xlu0 %v6415_v31 }
 0x1f2   : > { %v14518_v47 = vpop.eup %13202  ;;  %v6283_v53 = vmul.f32 1.442695, %v6194_v49 }
 0x1f3   : > { %v6285_v52 = vmul.f32 1.442695, %v6195_v28  ;;  %v14520_v4 = vpop.eup %13204  ;;  %v6060_v7 = vpop.xlane.xlu1 %6059  ;;  %v6418_v56 = vsel %vm5976_vm2, %v14518_v47, 0.0 }
 0x1f4   : > { %v6063_v37 = vpop.xlane.xlu0 %6062  ;;  %13214 = vpow2.f32 %v6283_v53  ;;  %v6196_v54 = vsub.f32 %v14261_v63, %v6060_v7  ;;  %6419 = vadd.xlane.f32.xlu1 %v6418_v56  ;;  %v6421_v40 = vsel %vm5976_vm2, %v14520_v4, 0.0 }
 0x1f5   : > { %v6197_v58 = vsub.f32 %v14265_v3, %v6063_v37  ;;  %13216 = vpow2.f32 %v6285_v52  ;;  %6422 = vadd.xlane.f32.xlu0 %v6421_v40 }
 0x1f6   : > { %v14528_v22 = vpop.eup %13206  ;;  %v6287_v25 = vmul.f32 1.442695, %v6196_v54 }
 0x1f7   : > { %v6289_v29 = vmul.f32 1.442695, %v6197_v58  ;;  %v14530_v10 = vpop.eup %13208  ;;  %v6066_v13 = vpop.xlane.xlu1 %6065  ;;  %v6424_v44 = vsel %vm5976_vm2, %v14528_v22, 0.0 }
 0x1f8   : > { %v6069_v1 = vpop.xlane.xlu0 %6068  ;;  %13218 = vpow2.f32 %v6287_v25  ;;  %v6198_v63 = vsub.f32 %v14269_v8, %v6066_v13  ;;  %6425 = vadd.xlane.f32.xlu1 %v6424_v44  ;;  %v6427_v45 = vsel %vm5976_vm2, %v14530_v10, 0.0 }
 0x1f9   : > { %v6199_v3 = vsub.f32 %v14273_v12, %v6069_v1  ;;  %13220 = vpow2.f32 %v6289_v29  ;;  %6428 = vadd.xlane.f32.xlu0 %v6427_v45 }
 0x1fa   : > { %v14538_v49 = vpop.eup %13210  ;;  %v6291_v28 = vmul.f32 1.442695, %v6198_v63 }
 0x1fb   : > { %v6293_v31 = vmul.f32 1.442695, %v6199_v3  ;;  %v14540_v53 = vpop.eup %13212  ;;  %v6072_v52 = vpop.xlane.xlu1 %6071  ;;  %v6430_v37 = vsel %vm5976_vm2, %v14538_v49, 0.0 }
 0x1fc   : > { %v6075_v7 = vpop.xlane.xlu0 %6074  ;;  %13222 = vpow2.f32 %v6291_v28  ;;  %v6200_v8 = vsub.f32 %v14277_v17, %v6072_v52  ;;  %6431 = vadd.xlane.f32.xlu1 %v6430_v37  ;;  %v6433_v56 = vsel %vm5976_vm2, %v14540_v53, 0.0 }
 0x1fd   : > { %v6201_v12 = vsub.f32 %v14281_v21, %v6075_v7  ;;  %13224 = vpow2.f32 %v6293_v31  ;;  %6434 = vadd.xlane.f32.xlu0 %v6433_v56 }
 0x1fe   : > { %v14548_v54 = vpop.eup %13214  ;;  %v6295_v58 = vmul.f32 1.442695, %v6200_v8 }
 0x1ff   : > { %v6297_v40 = vmul.f32 1.442695, %v6201_v12  ;;  %v14550_v25 = vpop.eup %13216  ;;  %v6078_v29 = vpop.xlane.xlu1 %6077  ;;  %v6436_v1 = vsel %vm5976_vm2, %v14548_v54, 0.0 }
 0x200   : > { %v6081_v13 = vpop.xlane.xlu0 %6080  ;;  %13226 = vpow2.f32 %v6295_v58  ;;  %v6202_v17 = vsub.f32 %v14285_v26, %v6078_v29  ;;  %6437 = vadd.xlane.f32.xlu1 %v6436_v1  ;;  %v6439_v44 = vsel %vm5976_vm2, %v14550_v25, 0.0 }
 0x201   : > { %v6203_v21 = vsub.f32 %v14289_v30, %v6081_v13  ;;  %13228 = vpow2.f32 %v6297_v40  ;;  %6440 = vadd.xlane.f32.xlu0 %v6439_v44 }
 0x202   : > { %v14558_v63 = vpop.eup %13218  ;;  %v6299_v3 = vmul.f32 1.442695, %v6202_v17 }
 0x203   : > { %v6301_v45 = vmul.f32 1.442695, %v6203_v21  ;;  %v14560_v28 = vpop.eup %13220  ;;  %v6084_v31 = vpop.xlane.xlu1 %6083  ;;  %v6442_v7 = vsel %vm5976_vm2, %v14558_v63, 0.0 }
 0x204   : > { %v6087_v52 = vpop.xlane.xlu0 %6086  ;;  %13230 = vpow2.f32 %v6299_v3  ;;  %v6204_v26 = vsub.f32 %v14293_v38, %v6084_v31  ;;  %6443 = vadd.xlane.f32.xlu1 %v6442_v7  ;;  %v6445_v37 = vsel %vm5976_vm2, %v14560_v28, 0.0 }
 0x205   : > { %v6205_v30 = vsub.f32 %v14297_v43, %v6087_v52  ;;  %13232 = vpow2.f32 %v6301_v45  ;;  %6446 = vadd.xlane.f32.xlu0 %v6445_v37 }
 0x206   : > { %v14568_v8 = vpop.eup %13222  ;;  %v6303_v12 = vmul.f32 1.442695, %v6204_v26 }
 0x207   : > { %v6305_v56 = vmul.f32 1.442695, %v6205_v30  ;;  %v14570_v58 = vpop.eup %13224  ;;  %v6090_v40 = vpop.xlane.xlu1 %6089  ;;  %v6448_v13 = vsel %vm5976_vm2, %v14568_v8, 0.0 }
 0x208   : > { %v6093_v29 = vpop.xlane.xlu0 %6092  ;;  %13234 = vpow2.f32 %v6303_v12  ;;  %v6206_v38 = vsub.f32 %v14301_v51, %v6090_v40  ;;  %6449 = vadd.xlane.f32.xlu1 %v6448_v13  ;;  %v6451_v1 = vsel %vm5976_vm2, %v14570_v58, 0.0 }
 0x209   : > { %v6207_v43 = vsub.f32 %v14305_v57, %v6093_v29  ;;  %13236 = vpow2.f32 %v6305_v56  ;;  %6452 = vadd.xlane.f32.xlu0 %v6451_v1 }
 0x20a   : > { %v14578_v17 = vpop.eup %13226  ;;  %v6307_v21 = vmul.f32 1.442695, %v6206_v38 }
 0x20b   : > { %v6309_v44 = vmul.f32 1.442695, %v6207_v43  ;;  %v14580_v3 = vpop.eup %13228  ;;  %v6096_v45 = vpop.xlane.xlu1 %6095  ;;  %v6454_v52 = vsel %vm5976_vm2, %v14578_v17, 0.0 }
 0x20c   : > { %v6099_v31 = vpop.xlane.xlu0 %6098  ;;  %13238 = vpow2.f32 %v6307_v21  ;;  %v6208_v51 = vsub.f32 %v14309_v0, %v6096_v45  ;;  %6455 = vadd.xlane.f32.xlu1 %v6454_v52  ;;  %v6457_v7 = vsel %vm5976_vm2, %v14580_v3, 0.0 }
 0x20d   : > { %v6209_v57 = vsub.f32 %v14313_v6, %v6099_v31  ;;  %13240 = vpow2.f32 %v6309_v44  ;;  %6458 = vadd.xlane.f32.xlu0 %v6457_v7 }
 0x20e   : > { %v14588_v26 = vpop.eup %13230  ;;  %v6311_v30 = vmul.f32 1.442695, %v6208_v51 }
 0x20f   : > { %v6313_v37 = vmul.f32 1.442695, %v6209_v57  ;;  %v14590_v12 = vpop.eup %13232  ;;  %v6102_v56 = vpop.xlane.xlu1 %6101  ;;  %v6460_v29 = vsel %vm5976_vm2, %v14588_v26, 0.0 }
 0x210   : > { %v6105_v40 = vpop.xlane.xlu0 %6104  ;;  %13242 = vpow2.f32 %v6311_v30  ;;  %v6210_v0 = vsub.f32 %v14317_v14, %v6102_v56  ;;  %6461 = vadd.xlane.f32.xlu1 %v6460_v29  ;;  %v6463_v13 = vsel %vm5976_vm2, %v14590_v12, 0.0 }
 0x211   : > { %v6211_v6 = vsub.f32 %v14321_v20, %v6105_v40  ;;  %13244 = vpow2.f32 %v6313_v37  ;;  %6464 = vadd.xlane.f32.xlu0 %v6463_v13 }
 0x212   : > { %v14598_v38 = vpop.eup %13234  ;;  %v6315_v43 = vmul.f32 1.442695, %v6210_v0 }
 0x213   : > { %v6317_v1 = vmul.f32 1.442695, %v6211_v6  ;;  %v14600_v21 = vpop.eup %13236  ;;  %v6108_v44 = vpop.xlane.xlu1 %6107  ;;  %v6466_v31 = vsel %vm5976_vm2, %v14598_v38, 0.0 }
 0x214   : > { %v6111_v45 = vpop.xlane.xlu0 %6110  ;;  %13246 = vpow2.f32 %v6315_v43  ;;  %v6212_v14 = vsub.f32 %v14325_v27, %v6108_v44  ;;  %6467 = vadd.xlane.f32.xlu1 %v6466_v31  ;;  %v6469_v52 = vsel %vm5976_vm2, %v14600_v21, 0.0 }
 0x215   : > { %v6213_v20 = vsub.f32 %v14329_v34, %v6111_v45  ;;  %13248 = vpow2.f32 %v6317_v1  ;;  %6470 = vadd.xlane.f32.xlu0 %v6469_v52 }
 0x216   : > { %v14608_v51 = vpop.eup %13238  ;;  %v6319_v57 = vmul.f32 1.442695, %v6212_v14 }
 0x217   : > { %v6321_v7 = vmul.f32 1.442695, %v6213_v20  ;;  %v14610_v30 = vpop.eup %13240  ;;  %v6114_v37 = vpop.xlane.xlu1 %6113  ;;  %v6472_v40 = vsel %vm5976_vm2, %v14608_v51, 0.0 }
 0x218   : > { %v6117_v56 = vpop.xlane.xlu0 %6116  ;;  %13250 = vpow2.f32 %v6319_v57  ;;  %v6214_v27 = vsub.f32 %v14333_v46, %v6114_v37  ;;  %6473 = vadd.xlane.f32.xlu1 %v6472_v40  ;;  %v6475_v29 = vsel %vm5976_vm2, %v14610_v30, 0.0 }
 0x219   : > { %v6215_v34 = vsub.f32 %v14337_v55, %v6117_v56  ;;  %13252 = vpow2.f32 %v6321_v7  ;;  %6476 = vadd.xlane.f32.xlu0 %v6475_v29 }
 0x21a   : > { %v14618_v0 = vpop.eup %13242  ;;  %v6323_v6 = vmul.f32 1.442695, %v6214_v27 }
 0x21b   : > { %v6325_v13 = vmul.f32 1.442695, %v6215_v34  ;;  %v14620_v43 = vpop.eup %13244  ;;  %v6120_v1 = vpop.xlane.xlu1 %6119  ;;  %v6478_v45 = vsel %vm5976_vm2, %v14618_v0, 0.0 }
 0x21c   : > { %v6123_v44 = vpop.xlane.xlu0 %6122  ;;  %13254 = vpow2.f32 %v6323_v6  ;;  %v6216_v46 = vsub.f32 %v14341_v2, %v6120_v1  ;;  %6479 = vadd.xlane.f32.xlu1 %v6478_v45  ;;  %v6481_v31 = vsel %vm5976_vm2, %v14620_v43, 0.0 }
 0x21d   : > { %v6217_v55 = vsub.f32 %v14345_v11, %v6123_v44  ;;  %13256 = vpow2.f32 %v6325_v13  ;;  %6482 = vadd.xlane.f32.xlu0 %v6481_v31  ;;  %v15431_v11 = vld [vmem:[#allocation4_spill] sm:$0xff] }
 0x21e   : > { %v14628_v14 = vpop.eup %13246  ;;  %v6327_v20 = vmul.f32 1.442695, %v6216_v46 }
 0x21f   : > { %v6329_v52 = vmul.f32 1.442695, %v6217_v55  ;;  %v14630_v57 = vpop.eup %13248  ;;  %v6126_v7 = vpop.xlane.xlu1 %6125  ;;  %v6484_v56 = vsel %vm5976_vm2, %v14628_v14, 0.0  ;;  %v15433_v55 = vld [vmem:[#allocation6_spill] sm:$0xff] }
 0x220   : > { %v6129_v37 = vpop.xlane.xlu0 %6128  ;;  %13258 = vpow2.f32 %v6327_v20  ;;  %v6218_v2 = vsub.f32 %v14349_v23, %v6126_v7  ;;  %6485 = vadd.xlane.f32.xlu1 %v6484_v56  ;;  %v6487_v27 = vsel %vm5976_vm2, %v14630_v57, 0.0  ;;  %v15432_v23 = vld [vmem:[#allocation5_spill] sm:$0xff] }
 0x221   : > { %v6219_v40 = vsub.f32 %v15431_v11, %v6129_v37  ;;  %13260 = vpow2.f32 %v6329_v52  ;;  %6488 = vadd.xlane.f32.xlu0 %v6487_v27  ;;  %v15436_v27 = vld [vmem:[#allocation7_spill] sm:$0xff] }
 0x222   : > { %v14638_v34 = vpop.eup %13250  ;;  %v6331_v29 = vmul.f32 1.442695, %v6218_v2 }
 0x223   : > { %v6333_v6 = vmul.f32 1.442695, %v6219_v40  ;;  %v14640_v13 = vpop.eup %13252  ;;  %v6132_v1 = vpop.xlane.xlu1 %6131  ;;  %v6490_v45 = vsel %vm5976_vm2, %v14638_v34, 0.0 }
 0x224   : > { %v6135_v44 = vpop.xlane.xlu0 %6134  ;;  %13262 = vpow2.f32 %v6331_v29  ;;  %v6220_v46 = vsub.f32 %v15432_v23, %v6132_v1  ;;  %6491 = vadd.xlane.f32.xlu1 %v6490_v45  ;;  %v6493_v20 = vsel %vm5976_vm2, %v14640_v13, 0.0  ;;  %v15437_v1 = vld [vmem:[#allocation8_spill] sm:$0xff] }
 0x225   : > { %v6221_v31 = vsub.f32 %v15433_v55, %v6135_v44  ;;  %13264 = vpow2.f32 %v6333_v6  ;;  %6494 = vadd.xlane.f32.xlu0 %v6493_v20 }
 0x226   : > { %v14648_v52 = vpop.eup %13254  ;;  %v6335_v7 = vmul.f32 1.442695, %v6220_v46 }
 0x227   : > { %15434 = vst [vmem:[#allocation4_spill] sm:$0xff] %v14648_v52  ;;  %v6337_v37 = vmul.f32 1.442695, %v6221_v31  ;;  %v14650_v56 = vpop.eup %13256  ;;  %v6138_v2 = vpop.xlane.xlu1 %6137  ;;  %v6496_v40 = vsel %vm5976_vm2, %v14648_v52, 0.0 }
 0x228   : > { %15435 = vst [vmem:[#allocation5_spill] sm:$0xff] %v14650_v56  ;;  %v6141_v11 = vpop.xlane.xlu0 %6140  ;;  %13266 = vpow2.f32 %v6335_v7  ;;  %v6222_v29 = vsub.f32 %v15436_v27, %v6138_v2  ;;  %6497 = vadd.xlane.f32.xlu1 %v6496_v40  ;;  %v6499_v6 = vsel %vm5976_vm2, %v14650_v56, 0.0  ;;  %v15440_v2 = vld [vmem:[#allocation9_spill] sm:$0xff]  ;;  %v15441_v40 = vld [vmem:[#allocation10_spill] sm:$0xff] }
 0x229   : > { %v6223_v44 = vsub.f32 %v15437_v1, %v6141_v11  ;;  %13268 = vpow2.f32 %v6337_v37  ;;  %6500 = vadd.xlane.f32.xlu0 %v6499_v6 }
 0x22a   : > { %v14658_v45 = vpop.eup %13258  ;;  %v6339_v23 = vmul.f32 1.442695, %v6222_v29 }
 0x22b   : > { %15438 = vst [vmem:[#allocation6_spill] sm:$0xff] %v14658_v45  ;;  %v6341_v46 = vmul.f32 1.442695, %v6223_v44  ;;  %v14660_v55 = vpop.eup %13260  ;;  %v6144_v31 = vpop.xlane.xlu1 %6143  ;;  %v6502_v7 = vsel %vm5976_vm2, %v14658_v45, 0.0 }
 0x22c   : > { %15439 = vst [vmem:[#allocation7_spill] sm:$0xff] %v14660_v55  ;;  %v6147_v20 = vpop.xlane.xlu0 %6146  ;;  %13270 = vpow2.f32 %v6339_v23  ;;  %v6224_v11 = vsub.f32 %v15440_v2, %v6144_v31  ;;  %6503 = vadd.xlane.f32.xlu1 %v6502_v7  ;;  %v6505_v37 = vsel %vm5976_vm2, %v14660_v55, 0.0  ;;  %v15444_v31 = vld [vmem:[#allocation11_spill] sm:$0xff]  ;;  %v15445_v7 = vld [vmem:[#allocation12_spill] sm:$0xff] }
 0x22d   : > { %v6225_v27 = vsub.f32 %v15441_v40, %v6147_v20  ;;  %13272 = vpow2.f32 %v6341_v46  ;;  %6506 = vadd.xlane.f32.xlu0 %v6505_v37 }
 0x22e   : > { %v14668_v29 = vpop.eup %13262  ;;  %v6343_v1 = vmul.f32 1.442695, %v6224_v11 }
 0x22f   : > { %15442 = vst [vmem:[#allocation8_spill] sm:$0xff] %v14668_v29  ;;  %v6345_v44 = vmul.f32 1.442695, %v6225_v27  ;;  %v14670_v6 = vpop.eup %13264  ;;  %v6150_v56 = vpop.xlane.xlu1 %6149  ;;  %v6508_v23 = vsel %vm5976_vm2, %v14668_v29, 0.0 }
 0x230   : > { %15443 = vst [vmem:[#allocation9_spill] sm:$0xff] %v14670_v6  ;;  %v6153_v52 = vpop.xlane.xlu0 %6152  ;;  %13274 = vpow2.f32 %v6343_v1  ;;  %v6226_v20 = vsub.f32 %v15444_v31, %v6150_v56  ;;  %6509 = vadd.xlane.f32.xlu1 %v6508_v23  ;;  %v6511_v46 = vsel %vm5976_vm2, %v14670_v6, 0.0  ;;  %v15447_v56 = vld [vmem:[#allocation13_spill] sm:$0xff]  ;;  %v15448_v23 = vld [vmem:[#allocation14_spill] sm:$0xff] }
 0x231   : > { %v6227_v2 = vsub.f32 %v15445_v7, %v6153_v52  ;;  %13276 = vpow2.f32 %v6345_v44  ;;  %6512 = vadd.xlane.f32.xlu0 %v6511_v46 }
 0x232   : > { %v14678_v11 = vpop.eup %13266  ;;  %v6347_v40 = vmul.f32 1.442695, %v6226_v20 }
 0x233   : > { %v6349_v27 = vmul.f32 1.442695, %v6227_v2  ;;  %v14680_v37 = vpop.eup %13268  ;;  %v6156_v55 = vpop.xlane.xlu1 %6155  ;;  %v6514_v1 = vsel %vm5976_vm2, %v14678_v11, 0.0 }
 0x234   : > { %15446 = vst [vmem:[#allocation10_spill] sm:$0xff] %v14680_v37  ;;  %v6159_v45 = vpop.xlane.xlu0 %6158  ;;  %13278 = vpow2.f32 %v6347_v40  ;;  %v6228_v52 = vsub.f32 %v15447_v56, %v6156_v55  ;;  %6515 = vadd.xlane.f32.xlu1 %v6514_v1  ;;  %v6517_v44 = vsel %vm5976_vm2, %v14680_v37, 0.0  ;;  %v15449_v55 = vld [vmem:[#allocation15_spill] sm:$0xff]  ;;  %v15450_v1 = vld [vmem:[#allocation16_spill] sm:$0xff] }
 0x235   : > { %v6229_v31 = vsub.f32 %v15448_v23, %v6159_v45  ;;  %13280 = vpow2.f32 %v6349_v27  ;;  %6518 = vadd.xlane.f32.xlu0 %v6517_v44 }
 0x236   : > { %v14688_v20 = vpop.eup %13270  ;;  %v6351_v7 = vmul.f32 1.442695, %v6228_v52 }
 0x237   : > { %v6353_v2 = vmul.f32 1.442695, %v6229_v31  ;;  %v14690_v46 = vpop.eup %13272  ;;  %v6162_v6 = vpop.xlane.xlu1 %6161  ;;  %v6520_v40 = vsel %vm5976_vm2, %v14688_v20, 0.0 }
 0x238   : > { %v6165_v29 = vpop.xlane.xlu0 %6164  ;;  %13282 = vpow2.f32 %v6351_v7  ;;  %v6230_v45 = vsub.f32 %v15449_v55, %v6162_v6  ;;  %6521 = vadd.xlane.f32.xlu1 %v6520_v40  ;;  %v6523_v27 = vsel %vm5976_vm2, %v14690_v46, 0.0  ;;  %v15451_v6 = vld [vmem:[#allocation17_spill] sm:$0xff] }
 0x239   : > { %v6231_v56 = vsub.f32 %v15450_v1, %v6165_v29  ;;  %13284 = vpow2.f32 %v6353_v2  ;;  %6524 = vadd.xlane.f32.xlu0 %v6523_v27 }
 0x23a   : > { %v14698_v52 = vpop.eup %13274  ;;  %v6355_v23 = vmul.f32 1.442695, %v6230_v45 }
 0x23b   : > { %v6357_v31 = vmul.f32 1.442695, %v6231_v56  ;;  %v14700_v44 = vpop.eup %13276  ;;  %v6168_v37 = vpop.xlane.xlu1 %6167  ;;  %v6526_v7 = vsel %vm5976_vm2, %v14698_v52, 0.0 }
 0x23c   : > { %13286 = vpow2.f32 %v6355_v23  ;;  %v6232_v55 = vsub.f32 %v15451_v6, %v6168_v37  ;;  %6527 = vadd.xlane.f32.xlu1 %v6526_v7  ;;  %v6529_v29 = vsel %vm5976_vm2, %v14700_v44, 0.0 }
 0x23d   : > { %13288 = vpow2.f32 %v6357_v31  ;;  %6530 = vadd.xlane.f32.xlu0 %v6529_v29 }
 0x23e   : > { %v14707_v2 = vpop.eup %13278  ;;  %v6359_v40 = vmul.f32 1.442695, %v6232_v55 }
 0x23f   : > { %v14709_v45 = vpop.eup %13280  ;;  %v6532_v1 = vsel %vm5976_vm2, %v14707_v2, 0.0 }
 0x240   : > { %13290 = vpow2.f32 %v6359_v40  ;;  %6533 = vadd.xlane.f32.xlu1 %v6532_v1  ;;  %v6535_v56 = vsel %vm5976_vm2, %v14709_v45, 0.0 }
 0x241   : > { %6536 = vadd.xlane.f32.xlu0 %v6535_v56 }
 0x242   : > { %v14715_v37 = vpop.eup %13282 }
 0x243   : > { %15452 = vst [vmem:[#allocation11_spill] sm:$0xff] %v14715_v37  ;;  %v14717_v27 = vpop.eup %13284  ;;  %v6538_v23 = vsel %vm5976_vm2, %v14715_v37, 0.0  ;;  %v1049_v37 = vld [vmem:[%s13703_s24 + $0x208] sm:$0xf] }
 0x244   : > { %15453 = vst [vmem:[#allocation12_spill] sm:$0xff] %v14717_v27  ;;  %6539 = vadd.xlane.f32.xlu1 %v6538_v23  ;;  %v6541_v31 = vsel %vm5976_vm2, %v14717_v27, 0.0 }
 0x245   : > { %6542 = vadd.xlane.f32.xlu0 %v6541_v31 }
 0x246   : > { %v14723_v7 = vpop.eup %13286 }
 0x247   : > { %15454 = vst [vmem:[#allocation13_spill] sm:$0xff] %v14723_v7  ;;  %v14725_v6 = vpop.eup %13288  ;;  %v6544_v55 = vsel %vm5976_vm2, %v14723_v7, 0.0 }
 0x248   : > { %15455 = vst [vmem:[#allocation14_spill] sm:$0xff] %v14725_v6  ;;  %6545 = vadd.xlane.f32.xlu1 %v6544_v55  ;;  %v6547_v29 = vsel %vm5976_vm2, %v14725_v6, 0.0 }
 0x249   : > { %6548 = vadd.xlane.f32.xlu0 %v6547_v29 }
 0x24a   : > { %v14731_v40 = vpop.eup %13290 }
 0x24b   : > { %v6550_v1 = vsel %vm5976_vm2, %v14731_v40, 0.0 }
 0x24c   : > { %6551 = vadd.xlane.f32.xlu1 %v6550_v1 }
 0x259   : > { %v6363_v56 = vpop.xlane.xlu0 %6362 }
 0x25a   : > { %13292 = vrcp.f32 %v6363_v56 }
 0x25d   : > { %v6366_v23 = vpop.xlane.xlu1 %6365 }
 0x25e   : > { %13294 = vrcp.f32 %v6366_v23  ;;  %v6369_v31 = vpop.xlane.xlu0 %6368 }
 0x25f   : > { %13296 = vrcp.f32 %v6369_v31 }
 0x261   : > { %v6372_v27 = vpop.xlane.xlu1 %6371 }
 0x262   : > { %13298 = vrcp.f32 %v6372_v27  ;;  %v6375_v55 = vpop.xlane.xlu0 %6374 }
 0x263   : > { %13300 = vrcp.f32 %v6375_v55  ;;  %v1050_v55 = vld [vmem:[%s13703_s24 + $0x20c] sm:$0xf] }
 0x264   : > { %v13293_v6 = vpop.eup %13292 }
 0x265   : > { %v6617_v29 = vmul.f32 %v13293_v6, %v14416_v41  ;;  %v6378_v7 = vpop.xlane.xlu1 %6377  ;;  %v1051_v6 = vld [vmem:[%s13703_s24 + $0x210] sm:$0xf] }
 0x266   : > { %13302 = vrcp.f32 %v6378_v7  ;;  %v6381_v1 = vpop.xlane.xlu0 %6380 }
 0x267   : > { %13304 = vrcp.f32 %v6381_v1  ;;  %12819 = vmatmul.mubr.msk.f32.vlgmr.msra.gmra.mrb[64].mxu0 %vm6681_vm4, %v6617_v29 }
 0x268   : > { %v13295_v56 = vpop.eup %13294  ;;  %12827 = vmatpush3.msk.msra.mxu0 %vm6685_vm3, %v1049_v37  ;;  %12828 = vmatprep.mubr.msk.f32.mxu0 %vm13445_vm0, %v15430_v16 }
 0x269   : > { %v13297_v27 = vpop.eup %13296  ;;  %v6618_v23 = vmul.f32 %v13295_v56, %v14422_v50  ;;  %v6384_v31 = vpop.xlane.xlu1 %6383  ;;  %12836 = vmatprep.subr.mxu0 %v15430_v16 }
 0x26a   : > { %v6619_v41 = vmul.f32 %v13297_v27, %v14424_v32  ;;  %13306 = vrcp.f32 %v6384_v31  ;;  %v6387_v7 = vpop.xlane.xlu0 %6386  ;;  %v1052_v32 = vld [vmem:[%s13703_s24 + $0x214] sm:$0xf] }
 0x26b   : > { %13308 = vrcp.f32 %v6387_v7  ;;  %12824 = vmatmul.mubr.msk.f32.vlgmr.msra.gmra.mrb[64].mxu1 %vm6681_vm4, %v6618_v23  ;;  %v1053_v23 = vld [vmem:[%s13703_s24 + $0x218] sm:$0xf] }
 0x26c   : > { %v13299_v37 = vpop.eup %13298  ;;  %12829 = vmatmul.mubr.msk.f32.vlgmr.msra.gmra.mrb[66].mxu0 %vm6681_vm4, %v6619_v41  ;;  %12832 = vmatpush3.msk.msra.mxu1 %vm6685_vm3, %v1050_v55  ;;  %v1054_v41 = vld [vmem:[%s13703_s24 + $0x21c] sm:$0xf] }
 0x26d   : > { %v13301_v50 = vpop.eup %13300  ;;  %v6620_v29 = vmul.f32 %v13299_v37, %v14432_v35  ;;  %v6390_v1 = vpop.xlane.xlu1 %6389  ;;  %12833 = vmatprep.mubr.msk.f32.mxu1 %vm13445_vm0, %v15430_v16  ;;  %12837 = vmatpush3.msk.msra.mxu0 %vm6685_vm3, %v1051_v6  ;;  %v1055_v37 = vld [vmem:[%s13703_s24 + $0x220] sm:$0xf] }
 0x26e   : > { %v6621_v56 = vmul.f32 %v13301_v50, %v14434_v18  ;;  %13310 = vrcp.f32 %v6390_v1  ;;  %v6393_v27 = vpop.xlane.xlu0 %6392  ;;  %12838 = vmatprep.mubr.msk.f32.mxu0 %vm13445_vm0, %v15430_v16  ;;  %12841 = vmatprep.subr.mxu1 %v15430_v16  ;;  %v1056_v1 = vld [vmem:[%s13703_s24 + $0x224] sm:$0xf] }
 0x26f   : > { %13312 = vrcp.f32 %v6393_v27  ;;  %12834 = vmatmul.mubr.msk.f32.vlgmr.msra.gmra.mrb[66].mxu1 %vm6681_vm4, %v6620_v29  ;;  %12846 = vmatprep.subr.mxu0 %v15430_v16  ;;  %v1057_v27 = vld [vmem:[%s13703_s24 + $0x228] sm:$0xf] }
 0x270   : > { %v13303_v35 = vpop.eup %13302  ;;  %12839 = vmatmul.mubr.msk.f32.vlgmr.msra.gmra.mrb[68].mxu0 %vm6681_vm4, %v6621_v56  ;;  %12842 = vmatpush3.msk.msra.mxu1 %vm6685_vm3, %v1052_v32 }
 0x271   : > { %v13305_v18 = vpop.eup %13304  ;;  %v6622_v31 = vmul.f32 %v13303_v35, %v14442_v42  ;;  %v6396_v55 = vpop.xlane.xlu1 %6395  ;;  %12843 = vmatprep.mubr.msk.f32.mxu1 %vm13445_vm0, %v15430_v16  ;;  %12847 = vmatpush3.msk.msra.mxu0 %vm6685_vm3, %v1053_v23 }
 0x272   : > { %v6623_v7 = vmul.f32 %v13305_v18, %v14444_v33  ;;  %13314 = vrcp.f32 %v6396_v55  ;;  %v6399_v6 = vpop.xlane.xlu0 %6398  ;;  %12848 = vmatprep.mubr.msk.f32.mxu0 %vm13445_vm0, %v15430_v16  ;;  %12851 = vmatprep.subr.mxu1 %v15430_v16  ;;  %v1058_v18 = vld [vmem:[%s13703_s24 + $0x22c] sm:$0xf] }
 0x273   : > { %13316 = vrcp.f32 %v6399_v6  ;;  %12844 = vmatmul.mubr.msk.f32.vlgmr.msra.gmra.mrb[68].mxu1 %vm6681_vm4, %v6622_v31  ;;  %12856 = vmatprep.subr.mxu0 %v15430_v16 }
 0x274   : > { %v13307_v42 = vpop.eup %13306  ;;  %12849 = vmatmul.mubr.msk.f32.vlgmr.msra.gmra.mrb[70].mxu0 %vm6681_vm4, %v6623_v7  ;;  %12852 = vmatpush3.msk.msra.mxu1 %vm6685_vm3, %v1054_v41  ;;  %v1059_v41 = vld [vmem:[%s13703_s24 + $0x230] sm:$0xf] }
 0x275   : > { %v13309_v33 = vpop.eup %13308  ;;  %v6624_v50 = vmul.f32 %v13307_v42, %v14452_v9  ;;  %v6402_v29 = vpop.xlane.xlu1 %6401  ;;  %12853 = vmatprep.mubr.msk.f32.mxu1 %vm13445_vm0, %v15430_v16  ;;  %12857 = vmatpush3.msk.msra.mxu0 %vm6685_vm3, %v1055_v37  ;;  %v1060_v37 = vld [vmem:[%s13703_s24 + $0x234] sm:$0xf] }
 0x276   : > { %v6625_v32 = vmul.f32 %v13309_v33, %v14454_v59  ;;  %13318 = vrcp.f32 %v6402_v29  ;;  %v6405_v56 = vpop.xlane.xlu0 %6404  ;;  %12858 = vmatprep.mubr.msk.f32.mxu0 %vm13445_vm0, %v15430_v16  ;;  %12861 = vmatprep.subr.mxu1 %v15430_v16 }
 0x277   : > { %13320 = vrcp.f32 %v6405_v56  ;;  %12854 = vmatmul.mubr.msk.f32.vlgmr.msra.gmra.mrb[70].mxu1 %vm6681_vm4, %v6624_v50  ;;  %12866 = vmatprep.subr.mxu0 %v15430_v16  ;;  %v1061_v50 = vld [vmem:[%s13703_s24 + $0x238] sm:$0xf] }
 0x278   : > { %v13311_v9 = vpop.eup %13310  ;;  %12859 = vmatmul.mubr.msk.f32.vlgmr.msra.gmra.mrb[72].mxu0 %vm6681_vm4, %v6625_v32  ;;  %12862 = vmatpush3.msk.msra.mxu1 %vm6685_vm3, %v1056_v1  ;;  %v1062_v32 = vld [vmem:[%s13703_s24 + $0x23c] sm:$0xf] }
 0x279   : > { %v13313_v59 = vpop.eup %13312  ;;  %v6626_v23 = vmul.f32 %v13311_v9, %v14462_v61  ;;  %v6408_v35 = vpop.xlane.xlu1 %6407  ;;  %12863 = vmatprep.mubr.msk.f32.mxu1 %vm13445_vm0, %v15430_v16  ;;  %12867 = vmatpush3.msk.msra.mxu0 %vm6685_vm3, %v1057_v27  ;;  %v1063_v9 = vld [vmem:[%s13703_s24 + $0x240] sm:$0xf] }
 0x27a   : > { %v6627_v31 = vmul.f32 %v13313_v59, %v14464_v15  ;;  %13322 = vrcp.f32 %v6408_v35  ;;  %v6411_v55 = vpop.xlane.xlu0 %6410  ;;  %12868 = vmatprep.mubr.msk.f32.mxu0 %vm13445_vm0, %v15430_v16  ;;  %12871 = vmatprep.subr.mxu1 %v15430_v16  ;;  %v1064_v35 = vld [vmem:[%s13703_s24 + $0x244] sm:$0xf] }
 0x27b   : > { %13324 = vrcp.f32 %v6411_v55  ;;  %12864 = vmatmul.mubr.msk.f32.vlgmr.msra.gmra.mrb[72].mxu1 %vm6681_vm4, %v6626_v23  ;;  %12876 = vmatprep.subr.mxu0 %v15430_v16  ;;  %v1065_v55 = vld [vmem:[%s13703_s24 + $0x248] sm:$0xf] }
 0x27c   : > { %v13315_v61 = vpop.eup %13314  ;;  %12869 = vmatmul.mubr.msk.f32.vlgmr.msra.gmra.mrb[74].mxu0 %vm6681_vm4, %v6627_v31  ;;  %12872 = vmatpush3.msk.msra.mxu1 %vm6685_vm3, %v1058_v18 }
 0x27d   : > { %v13317_v15 = vpop.eup %13316  ;;  %v6628_v7 = vmul.f32 %v13315_v61, %v14472_v24  ;;  %v6414_v6 = vpop.xlane.xlu1 %6413  ;;  %12873 = vmatprep.mubr.msk.f32.mxu1 %vm13445_vm0, %v15430_v16  ;;  %12877 = vmatpush3.msk.msra.mxu0 %vm6685_vm3, %v1059_v41 }
 0x27e   : > { %v6629_v42 = vmul.f32 %v13317_v15, %v14474_v5  ;;  %13326 = vrcp.f32 %v6414_v6  ;;  %v6417_v33 = vpop.xlane.xlu0 %6416  ;;  %12878 = vmatprep.mubr.msk.f32.mxu0 %vm13445_vm0, %v15430_v16  ;;  %12881 = vmatprep.subr.mxu1 %v15430_v16  ;;  %v1066_v15 = vld [vmem:[%s13703_s24 + $0x24c] sm:$0xf] }
 0x27f   : > { %13328 = vrcp.f32 %v6417_v33  ;;  %12874 = vmatmul.mubr.msk.f32.vlgmr.msra.gmra.mrb[74].mxu1 %vm6681_vm4, %v6628_v7  ;;  %12886 = vmatprep.subr.mxu0 %v15430_v16 }
 0x280   : > { %v13319_v24 = vpop.eup %13318  ;;  %12879 = vmatmul.mubr.msk.f32.vlgmr.msra.gmra.mrb[76].mxu0 %vm6681_vm4, %v6629_v42  ;;  %12882 = vmatpush3.msk.msra.mxu1 %vm6685_vm3, %v1060_v37  ;;  %v1067_v37 = vld [vmem:[%s13703_s24 + $0x250] sm:$0xf] }
 0x281   : > { %v13321_v5 = vpop.eup %13320  ;;  %v6630_v29 = vmul.f32 %v13319_v24, %v14482_v36  ;;  %v6420_v1 = vpop.xlane.xlu1 %6419  ;;  %12883 = vmatprep.mubr.msk.f32.mxu1 %vm13445_vm0, %v15430_v16  ;;  %12887 = vmatpush3.msk.msra.mxu0 %vm6685_vm3, %v1061_v50  ;;  %v1068_v50 = vld [vmem:[%s13703_s24 + $0x254] sm:$0xf] }
 0x282   : > { %v6631_v56 = vmul.f32 %v13321_v5, %v14485_v62  ;;  %13330 = vrcp.f32 %v6420_v1  ;;  %v6423_v27 = vpop.xlane.xlu0 %6422  ;;  %12888 = vmatprep.mubr.msk.f32.mxu0 %vm13445_vm0, %v15430_v16  ;;  %12891 = vmatprep.subr.mxu1 %v15430_v16 }
 0x283   : > { %13332 = vrcp.f32 %v6423_v27  ;;  %12884 = vmatmul.mubr.msk.f32.vlgmr.msra.gmra.mrb[76].mxu1 %vm6681_vm4, %v6630_v29  ;;  %12896 = vmatprep.subr.mxu0 %v15430_v16  ;;  %v1069_v29 = vld [vmem:[%s13703_s24 + $0x258] sm:$0xf] }
 0x284   : > { %v13323_v36 = vpop.eup %13322  ;;  %12889 = vmatmul.mubr.msk.f32.vlgmr.msra.gmra.mrb[78].mxu0 %vm6681_vm4, %v6631_v56  ;;  %12892 = vmatpush3.msk.msra.mxu1 %vm6685_vm3, %v1062_v32  ;;  %v1070_v56 = vld [vmem:[%s13703_s24 + $0x25c] sm:$0xf] }
 0x285   : > { %v13325_v62 = vpop.eup %13324  ;;  %v6632_v59 = vmul.f32 %v13323_v36, %v14495_v19  ;;  %v6426_v23 = vpop.xlane.xlu1 %6425  ;;  %12893 = vmatprep.mubr.msk.f32.mxu1 %vm13445_vm0, %v15430_v16  ;;  %12897 = vmatpush3.msk.msra.mxu0 %vm6685_vm3, %v1063_v9  ;;  %v1071_v36 = vld [vmem:[%s13703_s24 + $0x260] sm:$0xf] }
 0x286   : > { %v6633_v18 = vmul.f32 %v13325_v62, %v14498_v60  ;;  %13334 = vrcp.f32 %v6426_v23  ;;  %v6429_v31 = vpop.xlane.xlu0 %6428  ;;  %12898 = vmatprep.mubr.msk.f32.mxu0 %vm13445_vm0, %v15430_v16  ;;  %12901 = vmatprep.subr.mxu1 %v15430_v16  ;;  %v1072_v23 = vld [vmem:[%s13703_s24 + $0x264] sm:$0xf] }
 0x287   : > { %13336 = vrcp.f32 %v6429_v31  ;;  %12894 = vmatmul.mubr.msk.f32.vlgmr.msra.gmra.mrb[78].mxu1 %vm6681_vm4, %v6632_v59  ;;  %12906 = vmatprep.subr.mxu0 %v15430_v16  ;;  %v1073_v31 = vld [vmem:[%s13703_s24 + $0x268] sm:$0xf] }
 0x288   : > { %v13327_v19 = vpop.eup %13326  ;;  %12899 = vmatmul.mubr.msk.f32.vlgmr.msra.gmra.mrb[80].mxu0 %vm6681_vm4, %v6633_v18  ;;  %12902 = vmatpush3.msk.msra.mxu1 %vm6685_vm3, %v1064_v35 }
 0x289   : > { %v13329_v60 = vpop.eup %13328  ;;  %v6634_v41 = vmul.f32 %v13327_v19, %v14508_v39  ;;  %v6432_v61 = vpop.xlane.xlu1 %6431  ;;  %12903 = vmatprep.mubr.msk.f32.mxu1 %vm13445_vm0, %v15430_v16  ;;  %12907 = vmatpush3.msk.msra.mxu0 %vm6685_vm3, %v1065_v55 }
 0x28a   : > { %v6635_v7 = vmul.f32 %v13329_v60, %v14510_v48  ;;  %13338 = vrcp.f32 %v6432_v61  ;;  %v6435_v6 = vpop.xlane.xlu0 %6434  ;;  %12908 = vmatprep.mubr.msk.f32.mxu0 %vm13445_vm0, %v15430_v16  ;;  %12911 = vmatprep.subr.mxu1 %v15430_v16  ;;  %v1074_v60 = vld [vmem:[%s13703_s24 + $0x26c] sm:$0xf] }
 0x28b   : > { %13340 = vrcp.f32 %v6435_v6  ;;  %12904 = vmatmul.mubr.msk.f32.vlgmr.msra.gmra.mrb[80].mxu1 %vm6681_vm4, %v6634_v41  ;;  %12916 = vmatprep.subr.mxu0 %v15430_v16 }
 0x28c   : > { %v13331_v39 = vpop.eup %13330  ;;  %12909 = vmatmul.mubr.msk.f32.vlgmr.msra.gmra.mrb[82].mxu0 %vm6681_vm4, %v6635_v7  ;;  %12912 = vmatpush3.msk.msra.mxu1 %vm6685_vm3, %v1066_v15  ;;  %v1075_v15 = vld [vmem:[%s13703_s24 + $0x270] sm:$0xf] }
 0x28d   : > { %v13333_v48 = vpop.eup %13332  ;;  %v6636_v42 = vmul.f32 %v13331_v39, %v14518_v47  ;;  %v6438_v33 = vpop.xlane.xlu1 %6437  ;;  %12913 = vmatprep.mubr.msk.f32.mxu1 %vm13445_vm0, %v15430_v16  ;;  %12917 = vmatpush3.msk.msra.mxu0 %vm6685_vm3, %v1067_v37  ;;  %v1076_v37 = vld [vmem:[%s13703_s24 + $0x274] sm:$0xf] }
 0x28e   : > { %v6637_v24 = vmul.f32 %v13333_v48, %v14520_v4  ;;  %13342 = vrcp.f32 %v6438_v33  ;;  %v6441_v5 = vpop.xlane.xlu0 %6440  ;;  %12918 = vmatprep.mubr.msk.f32.mxu0 %vm13445_vm0, %v15430_v16  ;;  %12921 = vmatprep.subr.mxu1 %v15430_v16 }
 0x28f   : > { %13344 = vrcp.f32 %v6441_v5  ;;  %12914 = vmatmul.mubr.msk.f32.vlgmr.msra.gmra.mrb[82].mxu1 %vm6681_vm4, %v6636_v42  ;;  %12926 = vmatprep.subr.mxu0 %v15430_v16  ;;  %v1077_v42 = vld [vmem:[%s13703_s24 + $0x278] sm:$0xf] }
 0x290   : > { %v13335_v47 = vpop.eup %13334  ;;  %12919 = vmatmul.mubr.msk.f32.vlgmr.msra.gmra.mrb[84].mxu0 %vm6681_vm4, %v6637_v24  ;;  %12922 = vmatpush3.msk.msra.mxu1 %vm6685_vm3, %v1068_v50  ;;  %v1078_v24 = vld [vmem:[%s13703_s24 + $0x27c] sm:$0xf] }
 0x291   : > { %v13337_v4 = vpop.eup %13336  ;;  %v6638_v1 = vmul.f32 %v13335_v47, %v14528_v22  ;;  %v6444_v32 = vpop.xlane.xlu1 %6443  ;;  %12923 = vmatprep.mubr.msk.f32.mxu1 %vm13445_vm0, %v15430_v16  ;;  %12927 = vmatpush3.msk.msra.mxu0 %vm6685_vm3, %v1069_v29  ;;  %v1079_v47 = vld [vmem:[%s13703_s24 + $0x280] sm:$0xf] }
 0x292   : > { %v6639_v27 = vmul.f32 %v13337_v4, %v14530_v10  ;;  %13346 = vrcp.f32 %v6444_v32  ;;  %v6447_v9 = vpop.xlane.xlu0 %6446  ;;  %12928 = vmatprep.mubr.msk.f32.mxu0 %vm13445_vm0, %v15430_v16  ;;  %12931 = vmatprep.subr.mxu1 %v15430_v16  ;;  %v1080_v32 = vld [vmem:[%s13703_s24 + $0x284] sm:$0xf] }
 0x293   : > { %13348 = vrcp.f32 %v6447_v9  ;;  %12924 = vmatmul.mubr.msk.f32.vlgmr.msra.gmra.mrb[84].mxu1 %vm6681_vm4, %v6638_v1  ;;  %12936 = vmatprep.subr.mxu0 %v15430_v16  ;;  %v1081_v9 = vld [vmem:[%s13703_s24 + $0x288] sm:$0xf] }
 0x294   : > { %v13339_v22 = vpop.eup %13338  ;;  %12929 = vmatmul.mubr.msk.f32.vlgmr.msra.gmra.mrb[86].mxu0 %vm6681_vm4, %v6639_v27  ;;  %12932 = vmatpush3.msk.msra.mxu1 %vm6685_vm3, %v1070_v56 }
 0x295   : > { %v13341_v10 = vpop.eup %13340  ;;  %v6640_v62 = vmul.f32 %v13339_v22, %v14538_v49  ;;  %v6450_v59 = vpop.xlane.xlu1 %6449  ;;  %12933 = vmatprep.mubr.msk.f32.mxu1 %vm13445_vm0, %v15430_v16  ;;  %12937 = vmatpush3.msk.msra.mxu0 %vm6685_vm3, %v1071_v36 }
 0x296   : > { %v6641_v35 = vmul.f32 %v13341_v10, %v14540_v53  ;;  %13350 = vrcp.f32 %v6450_v59  ;;  %v6453_v18 = vpop.xlane.xlu0 %6452  ;;  %12938 = vmatprep.mubr.msk.f32.mxu0 %vm13445_vm0, %v15430_v16  ;;  %12941 = vmatprep.subr.mxu1 %v15430_v16  ;;  %v1082_v10 = vld [vmem:[%s13703_s24 + $0x28c] sm:$0xf] }
 0x297   : > { %13352 = vrcp.f32 %v6453_v18  ;;  %12934 = vmatmul.mubr.msk.f32.vlgmr.msra.gmra.mrb[86].mxu1 %vm6681_vm4, %v6640_v62  ;;  %12946 = vmatprep.subr.mxu0 %v15430_v16 }
 0x298   : > { %v13343_v49 = vpop.eup %13342  ;;  %12939 = vmatmul.mubr.msk.f32.vlgmr.msra.gmra.mrb[88].mxu0 %vm6681_vm4, %v6641_v35  ;;  %12942 = vmatpush3.msk.msra.mxu1 %vm6685_vm3, %v1072_v23  ;;  %v1083_v23 = vld [vmem:[%s13703_s24 + $0x290] sm:$0xf] }
 0x299   : > { %v13345_v53 = vpop.eup %13344  ;;  %v6642_v55 = vmul.f32 %v13343_v49, %v14548_v54  ;;  %v6456_v19 = vpop.xlane.xlu1 %6455  ;;  %12943 = vmatprep.mubr.msk.f32.mxu1 %vm13445_vm0, %v15430_v16  ;;  %12947 = vmatpush3.msk.msra.mxu0 %vm6685_vm3, %v1073_v31  ;;  %v1084_v31 = vld [vmem:[%s13703_s24 + $0x294] sm:$0xf] }
 0x29a   : > { %v6643_v41 = vmul.f32 %v13345_v53, %v14550_v25  ;;  %13354 = vrcp.f32 %v6456_v19  ;;  %v6459_v61 = vpop.xlane.xlu0 %6458  ;;  %12948 = vmatprep.mubr.msk.f32.mxu0 %vm13445_vm0, %v15430_v16  ;;  %12951 = vmatprep.subr.mxu1 %v15430_v16 }
 0x29b   : > { %13356 = vrcp.f32 %v6459_v61  ;;  %12944 = vmatmul.mubr.msk.f32.vlgmr.msra.gmra.mrb[88].mxu1 %vm6681_vm4, %v6642_v55  ;;  %12956 = vmatprep.subr.mxu0 %v15430_v16  ;;  %v1085_v55 = vld [vmem:[%s13703_s24 + $0x298] sm:$0xf] }
 0x29c   : > { %v13347_v54 = vpop.eup %13346  ;;  %12949 = vmatmul.mubr.msk.f32.vlgmr.msra.gmra.mrb[90].mxu0 %vm6681_vm4, %v6643_v41  ;;  %12952 = vmatpush3.msk.msra.mxu1 %vm6685_vm3, %v1074_v60  ;;  %v1086_v41 = vld [vmem:[%s13703_s24 + $0x29c] sm:$0xf] }
 0x29d   : > { %v13349_v25 = vpop.eup %13348  ;;  %v6644_v7 = vmul.f32 %v13347_v54, %v14558_v63  ;;  %v6462_v6 = vpop.xlane.xlu1 %6461  ;;  %12953 = vmatprep.mubr.msk.f32.mxu1 %vm13445_vm0, %v15430_v16  ;;  %12957 = vmatpush3.msk.msra.mxu0 %vm6685_vm3, %v1075_v15  ;;  %v1087_v54 = vld [vmem:[%s13703_s24 + $0x2a0] sm:$0xf] }
 0x29e   : > { %v6645_v39 = vmul.f32 %v13349_v25, %v14560_v28  ;;  %13358 = vrcp.f32 %v6462_v6  ;;  %v6465_v48 = vpop.xlane.xlu0 %6464  ;;  %12958 = vmatprep.mubr.msk.f32.mxu0 %vm13445_vm0, %v15430_v16  ;;  %12961 = vmatprep.subr.mxu1 %v15430_v16  ;;  %v1088_v6 = vld [vmem:[%s13703_s24 + $0x2a4] sm:$0xf] }
 0x29f   : > { %13360 = vrcp.f32 %v6465_v48  ;;  %12954 = vmatmul.mubr.msk.f32.vlgmr.msra.gmra.mrb[90].mxu1 %vm6681_vm4, %v6644_v7  ;;  %12966 = vmatprep.subr.mxu0 %v15430_v16  ;;  %v1089_v48 = vld [vmem:[%s13703_s24 + $0x2a8] sm:$0xf] }
 0x2a0   : > { %v13351_v63 = vpop.eup %13350  ;;  %12959 = vmatmul.mubr.msk.f32.vlgmr.msra.gmra.mrb[92].mxu0 %vm6681_vm4, %v6645_v39  ;;  %12962 = vmatpush3.msk.msra.mxu1 %vm6685_vm3, %v1076_v37 }
 0x2a1   : > { %v13353_v28 = vpop.eup %13352  ;;  %v6646_v33 = vmul.f32 %v13351_v63, %v14568_v8  ;;  %v6468_v50 = vpop.xlane.xlu1 %6467  ;;  %12963 = vmatprep.mubr.msk.f32.mxu1 %vm13445_vm0, %v15430_v16  ;;  %12967 = vmatpush3.msk.msra.mxu0 %vm6685_vm3, %v1077_v42 }
 0x2a2   : > { %v6647_v5 = vmul.f32 %v13353_v28, %v14570_v58  ;;  %13362 = vrcp.f32 %v6468_v50  ;;  %v6471_v29 = vpop.xlane.xlu0 %6470  ;;  %12968 = vmatprep.mubr.msk.f32.mxu0 %vm13445_vm0, %v15430_v16  ;;  %12971 = vmatprep.subr.mxu1 %v15430_v16  ;;  %v1090_v28 = vld [vmem:[%s13703_s24 + $0x2ac] sm:$0xf] }
 0x2a3   : > { %13364 = vrcp.f32 %v6471_v29  ;;  %12964 = vmatmul.mubr.msk.f32.vlgmr.msra.gmra.mrb[92].mxu1 %vm6681_vm4, %v6646_v33  ;;  %12976 = vmatprep.subr.mxu0 %v15430_v16 }
 0x2a4   : > { %v13355_v8 = vpop.eup %13354  ;;  %12969 = vmatmul.mubr.msk.f32.vlgmr.msra.gmra.mrb[94].mxu0 %vm6681_vm4, %v6647_v5  ;;  %12972 = vmatpush3.msk.msra.mxu1 %vm6685_vm3, %v1078_v24  ;;  %v1091_v24 = vld [vmem:[%s13703_s24 + $0x2b0] sm:$0xf] }
 0x2a5   : > { %v13357_v58 = vpop.eup %13356  ;;  %v6648_v4 = vmul.f32 %v13355_v8, %v14578_v17  ;;  %v6474_v1 = vpop.xlane.xlu1 %6473  ;;  %12973 = vmatprep.mubr.msk.f32.mxu1 %vm13445_vm0, %v15430_v16  ;;  %12977 = vmatpush3.msk.msra.mxu0 %vm6685_vm3, %v1079_v47  ;;  %v1092_v47 = vld [vmem:[%s13703_s24 + $0x2b4] sm:$0xf] }
 0x2a6   : > { %v6649_v56 = vmul.f32 %v13357_v58, %v14580_v3  ;;  %13366 = vrcp.f32 %v6474_v1  ;;  %v6477_v27 = vpop.xlane.xlu0 %6476  ;;  %12978 = vmatprep.mubr.msk.f32.mxu0 %vm13445_vm0, %v15430_v16  ;;  %12981 = vmatprep.subr.mxu1 %v15430_v16  ;;  %v15456_v1 = vld [vmem:[#allocation4_spill] sm:$0xff] }
 0x2a7   : > { %13368 = vrcp.f32 %v6477_v27  ;;  %12974 = vmatmul.mubr.msk.f32.vlgmr.msra.gmra.mrb[94].mxu1 %vm6681_vm4, %v6648_v4  ;;  %12986 = vmatprep.subr.mxu0 %v15430_v16  ;;  %v1093_v4 = vld [vmem:[%s13703_s24 + $0x2b8] sm:$0xf]  ;;  %v1094_v27 = vld [vmem:[%s13703_s24 + $0x2bc] sm:$0xf] }
 0x2a8   : > { %v13359_v17 = vpop.eup %13358  ;;  %12979 = vmatmul.mubr.msk.f32.vlgmr.msra.gmra.mrb[96].mxu0 %vm6681_vm4, %v6649_v56  ;;  %12982 = vmatpush3.msk.msra.mxu1 %vm6685_vm3, %v1080_v32 }
 0x2a9   : > { %v13361_v3 = vpop.eup %13360  ;;  %v6650_v36 = vmul.f32 %v13359_v17, %v14588_v26  ;;  %v6480_v22 = vpop.xlane.xlu1 %6479  ;;  %12983 = vmatprep.mubr.msk.f32.mxu1 %vm13445_vm0, %v15430_v16  ;;  %12987 = vmatpush3.msk.msra.mxu0 %vm6685_vm3, %v1081_v9  ;;  %v15457_v9 = vld [vmem:[#allocation5_spill] sm:$0xff] }
 0x2aa   : > { %v6651_v62 = vmul.f32 %v13361_v3, %v14590_v12  ;;  %13370 = vrcp.f32 %v6480_v22  ;;  %v6483_v59 = vpop.xlane.xlu0 %6482  ;;  %12988 = vmatprep.mubr.msk.f32.mxu0 %vm13445_vm0, %v15430_v16  ;;  %12991 = vmatprep.subr.mxu1 %v15430_v16 }
 0x2ab   : > { %13372 = vrcp.f32 %v6483_v59  ;;  %12984 = vmatmul.mubr.msk.f32.vlgmr.msra.gmra.mrb[96].mxu1 %vm6681_vm4, %v6650_v36  ;;  %12996 = vmatprep.subr.mxu0 %v15430_v16  ;;  %v1095_v36 = vld [vmem:[%s13703_s24 + $0x2c0] sm:$0xf] }
 0x2ac   : > { %v13363_v26 = vpop.eup %13362  ;;  %12989 = vmatmul.mubr.msk.f32.vlgmr.msra.gmra.mrb[98].mxu0 %vm6681_vm4, %v6651_v62  ;;  %12992 = vmatpush3.msk.msra.mxu1 %vm6685_vm3, %v1082_v10  ;;  %v15458_v62 = vld [vmem:[#allocation6_spill] sm:$0xff] }
 0x2ad   : > { %v13365_v12 = vpop.eup %13364  ;;  %v6652_v35 = vmul.f32 %v13363_v26, %v14598_v38  ;;  %v6486_v18 = vpop.xlane.xlu1 %6485  ;;  %12993 = vmatprep.mubr.msk.f32.mxu1 %vm13445_vm0, %v15430_v16  ;;  %12997 = vmatpush3.msk.msra.mxu0 %vm6685_vm3, %v1083_v23  ;;  %v1096_v26 = vld [vmem:[%s13703_s24 + $0x2c4] sm:$0xf] }
 0x2ae   : > { %v6653_v49 = vmul.f32 %v13365_v12, %v14600_v21  ;;  %13374 = vrcp.f32 %v6486_v18  ;;  %v6489_v53 = vpop.xlane.xlu0 %6488  ;;  %12998 = vmatprep.mubr.msk.f32.mxu0 %vm13445_vm0, %v15430_v16  ;;  %13001 = vmatprep.subr.mxu1 %v15430_v16  ;;  %v15459_v12 = vld [vmem:[#allocation7_spill] sm:$0xff] }
 0x2af   : > { %13376 = vrcp.f32 %v6489_v53  ;;  %12994 = vmatmul.mubr.msk.f32.vlgmr.msra.gmra.mrb[98].mxu1 %vm6681_vm4, %v6652_v35  ;;  %13006 = vmatprep.subr.mxu0 %v15430_v16 }
 0x2b0   : > { %v13367_v38 = vpop.eup %13366  ;;  %12999 = vmatmul.mubr.msk.f32.vlgmr.msra.gmra.mrb[100].mxu0 %vm6681_vm4, %v6653_v49  ;;  %13002 = vmatpush3.msk.msra.mxu1 %vm6685_vm3, %v1084_v31  ;;  %v1097_v31 = vld [vmem:[%s13703_s24 + $0x2c8] sm:$0xf] }
 0x2b1   : > { %v13369_v21 = vpop.eup %13368  ;;  %v6654_v19 = vmul.f32 %v13367_v38, %v14608_v51  ;;  %v6492_v60 = vpop.xlane.xlu1 %6491  ;;  %13003 = vmatprep.mubr.msk.f32.mxu1 %vm13445_vm0, %v15430_v16  ;;  %13007 = vmatpush3.msk.msra.mxu0 %vm6685_vm3, %v1085_v55  ;;  %v15460_v55 = vld [vmem:[#allocation8_spill] sm:$0xff] }
 0x2b2   : > { %v6655_v61 = vmul.f32 %v13369_v21, %v14610_v30  ;;  %13378 = vrcp.f32 %v6492_v60  ;;  %v6495_v15 = vpop.xlane.xlu0 %6494  ;;  %13008 = vmatprep.mubr.msk.f32.mxu0 %vm13445_vm0, %v15430_v16  ;;  %13011 = vmatprep.subr.mxu1 %v15430_v16  ;;  %v15461_v60 = vld [vmem:[#allocation9_spill] sm:$0xff] }
 0x2b3   : > { %13380 = vrcp.f32 %v6495_v15  ;;  %13004 = vmatmul.mubr.msk.f32.vlgmr.msra.gmra.mrb[100].mxu1 %vm6681_vm4, %v6654_v19  ;;  %13016 = vmatprep.subr.mxu0 %v15430_v16  ;;  %v1098_v19 = vld [vmem:[%s13703_s24 + $0x2cc] sm:$0xf]  ;;  %v1099_v15 = vld [vmem:[%s13703_s24 + $0x2d0] sm:$0xf] }
 0x2b4   : > { %v13371_v51 = vpop.eup %13370  ;;  %13009 = vmatmul.mubr.msk.f32.vlgmr.msra.gmra.mrb[102].mxu0 %vm6681_vm4, %v6655_v61  ;;  %13012 = vmatpush3.msk.msra.mxu1 %vm6685_vm3, %v1086_v41 }
 0x2b5   : > { %v13373_v30 = vpop.eup %13372  ;;  %v6656_v25 = vmul.f32 %v13371_v51, %v14618_v0  ;;  %v6498_v7 = vpop.xlane.xlu1 %6497  ;;  %13013 = vmatprep.mubr.msk.f32.mxu1 %vm13445_vm0, %v15430_v16  ;;  %13017 = vmatpush3.msk.msra.mxu0 %vm6685_vm3, %v1087_v54 }
 0x2b6   : > { %v6657_v37 = vmul.f32 %v13373_v30, %v14620_v43  ;;  %13382 = vrcp.f32 %v6498_v7  ;;  %v6501_v39 = vpop.xlane.xlu0 %6500  ;;  %13018 = vmatprep.mubr.msk.f32.mxu0 %vm13445_vm0, %v15430_v16  ;;  %13021 = vmatprep.subr.mxu1 %v15430_v16  ;;  %v1100_v7 = vld [vmem:[%s13703_s24 + $0x2d4] sm:$0xf] }
 0x2b7   : > { %13384 = vrcp.f32 %v6501_v39  ;;  %13014 = vmatmul.mubr.msk.f32.vlgmr.msra.gmra.mrb[102].mxu1 %vm6681_vm4, %v6656_v25  ;;  %13026 = vmatprep.subr.mxu0 %v15430_v16 }
 0x2b8   : > { %v13375_v0 = vpop.eup %13374  ;;  %13019 = vmatmul.mubr.msk.f32.vlgmr.msra.gmra.mrb[104].mxu0 %vm6681_vm4, %v6657_v37  ;;  %13022 = vmatpush3.msk.msra.mxu1 %vm6685_vm3, %v1088_v6  ;;  %v15462_v6 = vld [vmem:[#allocation10_spill] sm:$0xff] }
 0x2b9   : > { %v13377_v43 = vpop.eup %13376  ;;  %v6658_v42 = vmul.f32 %v13375_v0, %v14628_v14  ;;  %v6504_v63 = vpop.xlane.xlu1 %6503  ;;  %13023 = vmatprep.mubr.msk.f32.mxu1 %vm13445_vm0, %v15430_v16  ;;  %13027 = vmatpush3.msk.msra.mxu0 %vm6685_vm3, %v1089_v48  ;;  %v1101_v48 = vld [vmem:[%s13703_s24 + $0x2d8] sm:$0xf] }
 0x2ba   : > { %v6659_v33 = vmul.f32 %v13377_v43, %v14630_v57  ;;  %13386 = vrcp.f32 %v6504_v63  ;;  %v6507_v50 = vpop.xlane.xlu0 %6506  ;;  %13028 = vmatprep.mubr.msk.f32.mxu0 %vm13445_vm0, %v15430_v16  ;;  %13031 = vmatprep.subr.mxu1 %v15430_v16  ;;  %v1102_v63 = vld [vmem:[%s13703_s24 + $0x2dc] sm:$0xf] }
 0x2bb   : > { %13388 = vrcp.f32 %v6507_v50  ;;  %13024 = vmatmul.mubr.msk.f32.vlgmr.msra.gmra.mrb[104].mxu1 %vm6681_vm4, %v6658_v42  ;;  %13036 = vmatprep.subr.mxu0 %v15430_v16  ;;  %v1103_v50 = vld [vmem:[%s13703_s24 + $0x2e0] sm:$0xf] }
 0x2bc   : > { %v13379_v14 = vpop.eup %13378  ;;  %13029 = vmatmul.mubr.msk.f32.vlgmr.msra.gmra.mrb[106].mxu0 %vm6681_vm4, %v6659_v33  ;;  %13032 = vmatpush3.msk.msra.mxu1 %vm6685_vm3, %v1090_v28 }
 0x2bd   : > { %v13381_v57 = vpop.eup %13380  ;;  %v6660_v5 = vmul.f32 %v13379_v14, %v14638_v34  ;;  %v6510_v29 = vpop.xlane.xlu1 %6509  ;;  %13033 = vmatprep.mubr.msk.f32.mxu1 %vm13445_vm0, %v15430_v16  ;;  %13037 = vmatpush3.msk.msra.mxu0 %vm6685_vm3, %v1091_v24 }
 0x2be   : > { %v6661_v8 = vmul.f32 %v13381_v57, %v14640_v13  ;;  %13390 = vrcp.f32 %v6510_v29  ;;  %v6513_v58 = vpop.xlane.xlu0 %6512  ;;  %13038 = vmatprep.mubr.msk.f32.mxu0 %vm13445_vm0, %v15430_v16  ;;  %13041 = vmatprep.subr.mxu1 %v15430_v16  ;;  %v1104_v57 = vld [vmem:[%s13703_s24 + $0x2e4] sm:$0xf] }
 0x2bf   : > { %13392 = vrcp.f32 %v6513_v58  ;;  %13034 = vmatmul.mubr.msk.f32.vlgmr.msra.gmra.mrb[106].mxu1 %vm6681_vm4, %v6660_v5  ;;  %13046 = vmatprep.subr.mxu0 %v15430_v16 }
 0x2c0   : > { %v13383_v34 = vpop.eup %13382  ;;  %13039 = vmatmul.mubr.msk.f32.vlgmr.msra.gmra.mrb[108].mxu0 %vm6681_vm4, %v6661_v8  ;;  %13042 = vmatpush3.msk.msra.mxu1 %vm6685_vm3, %v1092_v47  ;;  %v1105_v47 = vld [vmem:[%s13703_s24 + $0x2e8] sm:$0xf] }
 0x2c1   : > { %v13385_v13 = vpop.eup %13384  ;;  %v6662_v32 = vmul.f32 %v13383_v34, %v15456_v1  ;;  %v6516_v56 = vpop.xlane.xlu1 %6515  ;;  %13043 = vmatprep.mubr.msk.f32.mxu1 %vm13445_vm0, %v15430_v16  ;;  %13047 = vmatpush3.msk.msra.mxu0 %vm6685_vm3, %v1093_v4  ;;  %v1106_v4 = vld [vmem:[%s13703_s24 + $0x2ec] sm:$0xf] }
 0x2c2   : > { %v6663_v17 = vmul.f32 %v13385_v13, %v15457_v9  ;;  %13394 = vrcp.f32 %v6516_v56  ;;  %v6519_v3 = vpop.xlane.xlu0 %6518  ;;  %13048 = vmatprep.mubr.msk.f32.mxu0 %vm13445_vm0, %v15430_v16  ;;  %13051 = vmatprep.subr.mxu1 %v15430_v16  ;;  %v1107_v13 = vld [vmem:[%s13703_s24 + $0x2f0] sm:$0xf]  ;;  %v1108_v56 = vld [vmem:[%s13703_s24 + $0x2f4] sm:$0xf] }
 0x2c3   : > { %13396 = vrcp.f32 %v6519_v3  ;;  %13044 = vmatmul.mubr.msk.f32.vlgmr.msra.gmra.mrb[108].mxu1 %vm6681_vm4, %v6662_v32  ;;  %13056 = vmatprep.subr.mxu0 %v15430_v16  ;;  %v15463_v32 = vld [vmem:[#allocation11_spill] sm:$0xff] }
 0x2c4   : > { %v13387_v22 = vpop.eup %13386  ;;  %13049 = vmatmul.mubr.msk.f32.vlgmr.msra.gmra.mrb[110].mxu0 %vm6681_vm4, %v6663_v17  ;;  %13052 = vmatpush3.msk.msra.mxu1 %vm6685_vm3, %v1094_v27  ;;  %v15464_v27 = vld [vmem:[#allocation12_spill] sm:$0xff]  ;;  %v1109_v17 = vld [vmem:[%s13703_s24 + $0x2f8] sm:$0xf] }
 0x2c5   : > { %v13389_v10 = vpop.eup %13388  ;;  %v6664_v59 = vmul.f32 %v13387_v22, %v15458_v62  ;;  %v6522_v23 = vpop.xlane.xlu1 %6521  ;;  %13053 = vmatprep.mubr.msk.f32.mxu1 %vm13445_vm0, %v15430_v16  ;;  %13057 = vmatpush3.msk.msra.mxu0 %vm6685_vm3, %v1095_v36  ;;  %v15465_v22 = vld [vmem:[#allocation13_spill] sm:$0xff]  ;;  %v1110_v62 = vld [vmem:[%s13703_s24 + $0x2fc] sm:$0xf] }
 0x2c6   : > { %v6665_v35 = vmul.f32 %v13389_v10, %v15459_v12  ;;  %13398 = vrcp.f32 %v6522_v23  ;;  %v6525_v18 = vpop.xlane.xlu0 %6524  ;;  %13058 = vmatprep.mubr.msk.f32.mxu0 %vm13445_vm0, %v15430_v16  ;;  %13061 = vmatprep.subr.mxu1 %v15430_v16 }
 0x2c7   : > { %13400 = vrcp.f32 %v6525_v18  ;;  %13054 = vmatmul.mubr.msk.f32.vlgmr.msra.gmra.mrb[110].mxu1 %vm6681_vm4, %v6664_v59  ;;  %13066 = vmatprep.subr.mxu0 %v15430_v16  ;;  %v15466_v59 = vld [vmem:[#allocation14_spill] sm:$0xff] }
 0x2c8   : > { %v13391_v49 = vpop.eup %13390  ;;  %13059 = vmatmul.mubr.msk.f32.vlgmr.msra.gmra.mrb[112].mxu0 %vm6681_vm4, %v6665_v35  ;;  %13062 = vmatpush3.msk.msra.mxu1 %vm6685_vm3, %v1096_v26 }
 0x2c9   : > { %v13393_v53 = vpop.eup %13392  ;;  %v6666_v38 = vmul.f32 %v13391_v49, %v15460_v55  ;;  %v6528_v21 = vpop.xlane.xlu1 %6527  ;;  %13063 = vmatprep.mubr.msk.f32.mxu1 %vm13445_vm0, %v15430_v16  ;;  %13067 = vmatpush3.msk.msra.mxu0 %vm6685_vm3, %v1097_v31 }
 0x2ca   : > { %v6667_v41 = vmul.f32 %v13393_v53, %v15461_v60  ;;  %13402 = vrcp.f32 %v6528_v21  ;;  %v6531_v61 = vpop.xlane.xlu0 %6530  ;;  %13068 = vmatprep.mubr.msk.f32.mxu0 %vm13445_vm0, %v15430_v16  ;;  %13071 = vmatprep.subr.mxu1 %v15430_v16 }
 0x2cb   : > { %13404 = vrcp.f32 %v6531_v61  ;;  %13064 = vmatmul.mubr.msk.f32.vlgmr.msra.gmra.mrb[112].mxu1 %vm6681_vm4, %v6666_v38  ;;  %13076 = vmatprep.subr.mxu0 %v15430_v16 }
 0x2cc   : > { %v13395_v54 = vpop.eup %13394  ;;  %13069 = vmatmul.mubr.msk.f32.vlgmr.msra.gmra.mrb[114].mxu0 %vm6681_vm4, %v6667_v41  ;;  %13072 = vmatpush3.msk.msra.mxu1 %vm6685_vm3, %v1098_v19 }
 0x2cd   : > { %v13397_v51 = vpop.eup %13396  ;;  %v6668_v30 = vmul.f32 %v13395_v54, %v14678_v11  ;;  %v6534_v25 = vpop.xlane.xlu1 %6533  ;;  %13073 = vmatprep.mubr.msk.f32.mxu1 %vm13445_vm0, %v15430_v16  ;;  %13077 = vmatpush3.msk.msra.mxu0 %vm6685_vm3, %v1099_v15 }
 0x2ce   : > { %v6669_v37 = vmul.f32 %v13397_v51, %v15462_v6  ;;  %13406 = vrcp.f32 %v6534_v25  ;;  %v6537_v39 = vpop.xlane.xlu0 %6536  ;;  %13078 = vmatprep.mubr.msk.f32.mxu0 %vm13445_vm0, %v15430_v16  ;;  %13081 = vmatprep.subr.mxu1 %v15430_v16 }
 0x2cf   : > { %13408 = vrcp.f32 %v6537_v39  ;;  %13074 = vmatmul.mubr.msk.f32.vlgmr.msra.gmra.mrb[114].mxu1 %vm6681_vm4, %v6668_v30  ;;  %13086 = vmatprep.subr.mxu0 %v15430_v16 }
 0x2d0   : > { %v13399_v11 = vpop.eup %13398  ;;  %13079 = vmatmul.mubr.msk.f32.vlgmr.msra.gmra.mrb[116].mxu0 %vm6681_vm4, %v6669_v37  ;;  %13082 = vmatpush3.msk.msra.mxu1 %vm6685_vm3, %v1100_v7 }
 0x2d1   : > { %v13401_v0 = vpop.eup %13400  ;;  %v6670_v43 = vmul.f32 %v13399_v11, %v14688_v20  ;;  %v6540_v42 = vpop.xlane.xlu1 %6539  ;;  %13083 = vmatprep.mubr.msk.f32.mxu1 %vm13445_vm0, %v15430_v16  ;;  %13087 = vmatpush3.msk.msra.mxu0 %vm6685_vm3, %v1101_v48 }
 0x2d2   : > { %v6671_v28 = vmul.f32 %v13401_v0, %v14690_v46  ;;  %13410 = vrcp.f32 %v6540_v42  ;;  %v6543_v33 = vpop.xlane.xlu0 %6542  ;;  %13088 = vmatprep.mubr.msk.f32.mxu0 %vm13445_vm0, %v15430_v16  ;;  %13091 = vmatprep.subr.mxu1 %v15430_v16 }
 0x2d3   : > { %13412 = vrcp.f32 %v6543_v33  ;;  %13084 = vmatmul.mubr.msk.f32.vlgmr.msra.gmra.mrb[116].mxu1 %vm6681_vm4, %v6670_v43  ;;  %13096 = vmatprep.subr.mxu0 %v15430_v16 }
 0x2d4   : > { %v13403_v20 = vpop.eup %13402  ;;  %13089 = vmatmul.mubr.msk.f32.vlgmr.msra.gmra.mrb[118].mxu0 %vm6681_vm4, %v6671_v28  ;;  %13092 = vmatpush3.msk.msra.mxu1 %vm6685_vm3, %v1102_v63 }
 0x2d5   : > { %v13405_v46 = vpop.eup %13404  ;;  %v6672_v24 = vmul.f32 %v13403_v20, %v14698_v52  ;;  %v6546_v14 = vpop.xlane.xlu1 %6545  ;;  %13093 = vmatprep.mubr.msk.f32.mxu1 %vm13445_vm0, %v15430_v16  ;;  %13097 = vmatpush3.msk.msra.mxu0 %vm6685_vm3, %v1103_v50 }
 0x2d6   : > { %v6673_v5 = vmul.f32 %v13405_v46, %v14700_v44  ;;  %13414 = vrcp.f32 %v6546_v14  ;;  %v6549_v29 = vpop.xlane.xlu0 %6548  ;;  %13098 = vmatprep.mubr.msk.f32.mxu0 %vm13445_vm0, %v15430_v16  ;;  %13101 = vmatprep.subr.mxu1 %v15430_v16 }
 0x2d7   : > { %13416 = vrcp.f32 %v6549_v29  ;;  %13094 = vmatmul.mubr.msk.f32.vlgmr.msra.gmra.mrb[118].mxu1 %vm6681_vm4, %v6672_v24  ;;  %13106 = vmatprep.subr.mxu0 %v15430_v16 }
 0x2d8   : > { %v13407_v52 = vpop.eup %13406  ;;  %13099 = vmatmul.mubr.msk.f32.vlgmr.msra.gmra.mrb[120].mxu0 %vm6681_vm4, %v6673_v5  ;;  %13102 = vmatpush3.msk.msra.mxu1 %vm6685_vm3, %v1104_v57 }
 0x2d9   : > { %v13409_v44 = vpop.eup %13408  ;;  %v6674_v8 = vmul.f32 %v13407_v52, %v14707_v2  ;;  %v6552_v58 = vpop.xlane.xlu1 %6551  ;;  %13103 = vmatprep.mubr.msk.f32.mxu1 %vm13445_vm0, %v15430_v16  ;;  %13107 = vmatpush3.msk.msra.mxu0 %vm6685_vm3, %v1105_v47 }
 0x2da   : > { %v6675_v34 = vmul.f32 %v13409_v44, %v14709_v45  ;;  %13418 = vrcp.f32 %v6552_v58  ;;  %13108 = vmatprep.mubr.msk.f32.mxu0 %vm13445_vm0, %v15430_v16  ;;  %13111 = vmatprep.subr.mxu1 %v15430_v16 }
 0x2db   : > { %13104 = vmatmul.mubr.msk.f32.vlgmr.msra.gmra.mrb[120].mxu1 %vm6681_vm4, %v6674_v8  ;;  %13116 = vmatprep.subr.mxu0 %v15430_v16 }
 0x2dc   : > { %v13411_v2 = vpop.eup %13410  ;;  %13109 = vmatmul.mubr.msk.f32.vlgmr.msra.gmra.mrb[122].mxu0 %vm6681_vm4, %v6675_v34  ;;  %13112 = vmatpush3.msk.msra.mxu1 %vm6685_vm3, %v1106_v4 }
 0x2dd   : > { %v13413_v1 = vpop.eup %13412  ;;  %v6676_v45 = vmul.f32 %v13411_v2, %v15463_v32  ;;  %13113 = vmatprep.mubr.msk.f32.mxu1 %vm13445_vm0, %v15430_v16  ;;  %13117 = vmatpush3.msk.msra.mxu0 %vm6685_vm3, %v1107_v13 }
 0x2de   : > { %v6677_v9 = vmul.f32 %v13413_v1, %v15464_v27  ;;  %13118 = vmatprep.mubr.msk.f32.mxu0 %vm13445_vm0, %v15430_v16  ;;  %13121 = vmatprep.subr.mxu1 %v15430_v16 }
 0x2df   : > { %13114 = vmatmul.mubr.msk.f32.vlgmr.msra.gmra.mrb[122].mxu1 %vm6681_vm4, %v6676_v45  ;;  %13126 = vmatprep.subr.mxu0 %v15430_v16 }
 0x2e0   : > { %v13415_v3 = vpop.eup %13414  ;;  %13119 = vmatmul.mubr.msk.f32.vlgmr.msra.gmra.mrb[124].mxu0 %vm6681_vm4, %v6677_v9  ;;  %13122 = vmatpush3.msk.msra.mxu1 %vm6685_vm3, %v1108_v56 }
 0x2e1   : > { %v13417_v36 = vpop.eup %13416  ;;  %v6678_v10 = vmul.f32 %v13415_v3, %v15465_v22  ;;  %13123 = vmatprep.mubr.msk.f32.mxu1 %vm13445_vm0, %v15430_v16  ;;  %13127 = vmatpush3.msk.msra.mxu0 %vm6685_vm3, %v1109_v17 }
 0x2e2   : > { %v6679_v23 = vmul.f32 %v13417_v36, %v15466_v59  ;;  %13128 = vmatprep.mubr.msk.f32.mxu0 %vm13445_vm0, %v15430_v16  ;;  %13131 = vmatprep.subr.mxu1 %v15430_v16 }
 0x2e3   : > { %13124 = vmatmul.mubr.msk.f32.vlgmr.msra.gmra.mrb[124].mxu1 %vm6681_vm4, %v6678_v10 }
 0x2e4   : > { %v13419_v26 = vpop.eup %13418  ;;  %13129 = vmatmul.mubr.msk.f32.vlgmr.msra.gmra.mrb[126].mxu0 %vm6681_vm4, %v6679_v23  ;;  %13132 = vmatpush3.msk.msra.mxu1 %vm6685_vm3, %v1110_v62 }
 0x2e5   : > { %v6680_v12 = vmul.f32 %v13419_v26, %v14731_v40  ;;  %13133 = vmatprep.mubr.msk.f32.mxu1 %vm13445_vm0, %v15430_v16 }
 0x2e7   : > { %13134 = vmatmul.mubr.msk.f32.vlgmr.msra.gmra.mrb[126].mxu1 %vm6681_vm4, %v6680_v12 }
 0x33a   : > { %v6755_v35 = vpop.f32.mrb[64].mxu0 }
 0x33b   : > { %11548 = vst.msk [vmem:[%s15173_s26] sm:$0xf] %vm11547_vm5, %v6755_v35  ;;  %v12820_v40 = vpop.f32.mrb[65].mxu0 }
 0x33e   : > { %v6831_v18 = vpop.f32.mrb[64].mxu1 }
 0x33f   : > { %11549 = vst.msk [vmem:[%s15173_s26 + $0x4] sm:$0xf] %vm11547_vm5, %v6831_v18  ;;  %v6907_v16 = vpop.f32.mrb[66].mxu0  ;;  %v12825_v31 = vpop.f32.mrb[65].mxu1 }
 0x340   : > { %11550 = vst.msk [vmem:[%s15173_s26 + $0x8] sm:$0xf] %vm11547_vm5, %v6907_v16  ;;  %v12830_v49 = vpop.f32.mrb[67].mxu0 }
 0x342   : > { %v6983_v53 = vpop.f32.mrb[66].mxu1 }
 0x343   : > { %11551 = vst.msk [vmem:[%s15173_s26 + $0xc] sm:$0xf] %vm11547_vm5, %v6983_v53  ;;  %v7059_v55 = vpop.f32.mrb[68].mxu0  ;;  %v12835_v38 = vpop.f32.mrb[67].mxu1 }
 0x344   : > { %11552 = vst.msk [vmem:[%s15173_s26 + $0x10] sm:$0xf] %vm11547_vm5, %v7059_v55  ;;  %v12840_v21 = vpop.f32.mrb[69].mxu0 }
 0x346   : > { %v7135_v19 = vpop.f32.mrb[68].mxu1 }
 0x347   : > { %11553 = vst.msk [vmem:[%s15173_s26 + $0x14] sm:$0xf] %vm11547_vm5, %v7135_v19  ;;  %v7211_v60 = vpop.f32.mrb[70].mxu0  ;;  %v12845_v41 = vpop.f32.mrb[69].mxu1 }
 0x348   : > { %11554 = vst.msk [vmem:[%s15173_s26 + $0x18] sm:$0xf] %vm11547_vm5, %v7211_v60  ;;  %v12850_v61 = vpop.f32.mrb[71].mxu0 }
 0x34a   : > { %v7287_v15 = vpop.f32.mrb[70].mxu1 }
 0x34b   : > { %11555 = vst.msk [vmem:[%s15173_s26 + $0x1c] sm:$0xf] %vm11547_vm5, %v7287_v15  ;;  %v7363_v54 = vpop.f32.mrb[72].mxu0  ;;  %v12855_v51 = vpop.f32.mrb[71].mxu1 }
 0x34c   : > { %11556 = vst.msk [vmem:[%s15173_s26 + $0x20] sm:$0xf] %vm11547_vm5, %v7363_v54  ;;  %v12860_v30 = vpop.f32.mrb[73].mxu0 }
 0x34e   : > { %v7439_v25 = vpop.f32.mrb[72].mxu1 }
 0x34f   : > { %11557 = vst.msk [vmem:[%s15173_s26 + $0x24] sm:$0xf] %vm11547_vm5, %v7439_v25  ;;  %v7515_v7 = vpop.f32.mrb[74].mxu0  ;;  %v12865_v6 = vpop.f32.mrb[73].mxu1 }
 0x350   : > { %11558 = vst.msk [vmem:[%s15173_s26 + $0x28] sm:$0xf] %vm11547_vm5, %v7515_v7  ;;  %v12870_v37 = vpop.f32.mrb[75].mxu0 }
 0x352   : > { %v7591_v39 = vpop.f32.mrb[74].mxu1 }
 0x353   : > { %11559 = vst.msk [vmem:[%s15173_s26 + $0x2c] sm:$0xf] %vm11547_vm5, %v7591_v39  ;;  %v7667_v48 = vpop.f32.mrb[76].mxu0  ;;  %v12875_v11 = vpop.f32.mrb[75].mxu1 }
 0x354   : > { %11560 = vst.msk [vmem:[%s15173_s26 + $0x30] sm:$0xf] %vm11547_vm5, %v7667_v48  ;;  %v12880_v0 = vpop.f32.mrb[77].mxu0 }
 0x356   : > { %v7743_v43 = vpop.f32.mrb[76].mxu1 }
 0x357   : > { %11561 = vst.msk [vmem:[%s15173_s26 + $0x34] sm:$0xf] %vm11547_vm5, %v7743_v43  ;;  %v7819_v42 = vpop.f32.mrb[78].mxu0  ;;  %v12885_v63 = vpop.f32.mrb[77].mxu1 }
 0x358   : > { %11562 = vst.msk [vmem:[%s15173_s26 + $0x38] sm:$0xf] %vm11547_vm5, %v7819_v42  ;;  %v12890_v28 = vpop.f32.mrb[79].mxu0 }
 0x35a   : > { %v7895_v33 = vpop.f32.mrb[78].mxu1 }
 0x35b   : > { %11563 = vst.msk [vmem:[%s15173_s26 + $0x3c] sm:$0xf] %vm11547_vm5, %v7895_v33  ;;  %v7971_v50 = vpop.f32.mrb[80].mxu0  ;;  %v12895_v20 = vpop.f32.mrb[79].mxu1 }
 0x35c   : > { %11564 = vst.msk [vmem:[%s15173_s26 + $0x40] sm:$0xf] %vm11547_vm5, %v7971_v50  ;;  %v12900_v46 = vpop.f32.mrb[81].mxu0 }
 0x35e   : > { %v8047_v24 = vpop.f32.mrb[80].mxu1 }
 0x35f   : > { %11565 = vst.msk [vmem:[%s15173_s26 + $0x44] sm:$0xf] %vm11547_vm5, %v8047_v24  ;;  %v8123_v14 = vpop.f32.mrb[82].mxu0  ;;  %v12905_v57 = vpop.f32.mrb[81].mxu1 }
 0x360   : > { %11566 = vst.msk [vmem:[%s15173_s26 + $0x48] sm:$0xf] %vm11547_vm5, %v8123_v14  ;;  %v12910_v5 = vpop.f32.mrb[83].mxu0 }
 0x362   : > { %v8199_v29 = vpop.f32.mrb[82].mxu1 }
 0x363   : > { %11567 = vst.msk [vmem:[%s15173_s26 + $0x4c] sm:$0xf] %vm11547_vm5, %v8199_v29  ;;  %v8275_v47 = vpop.f32.mrb[84].mxu0  ;;  %v12915_v52 = vpop.f32.mrb[83].mxu1 }
 0x364   : > { %11568 = vst.msk [vmem:[%s15173_s26 + $0x50] sm:$0xf] %vm11547_vm5, %v8275_v47  ;;  %v12920_v44 = vpop.f32.mrb[85].mxu0 }
 0x366   : > { %v8351_v8 = vpop.f32.mrb[84].mxu1 }
 0x367   : > { %11569 = vst.msk [vmem:[%s15173_s26 + $0x54] sm:$0xf] %vm11547_vm5, %v8351_v8  ;;  %v8427_v58 = vpop.f32.mrb[86].mxu0  ;;  %v12925_v4 = vpop.f32.mrb[85].mxu1 }
 0x368   : > { %11570 = vst.msk [vmem:[%s15173_s26 + $0x58] sm:$0xf] %vm11547_vm5, %v8427_v58  ;;  %v12930_v34 = vpop.f32.mrb[87].mxu0 }
 0x36a   : > { %v8503_v13 = vpop.f32.mrb[86].mxu1 }
 0x36b   : > { %11571 = vst.msk [vmem:[%s15173_s26 + $0x5c] sm:$0xf] %vm11547_vm5, %v8503_v13  ;;  %v8579_v2 = vpop.f32.mrb[88].mxu0  ;;  %v12935_v1 = vpop.f32.mrb[87].mxu1 }
 0x36c   : > { %11572 = vst.msk [vmem:[%s15173_s26 + $0x60] sm:$0xf] %vm11547_vm5, %v8579_v2  ;;  %v12940_v32 = vpop.f32.mrb[89].mxu0 }
 0x36e   : > { %v8655_v45 = vpop.f32.mrb[88].mxu1 }
 0x36f   : > { %11573 = vst.msk [vmem:[%s15173_s26 + $0x64] sm:$0xf] %vm11547_vm5, %v8655_v45  ;;  %v8731_v56 = vpop.f32.mrb[90].mxu0  ;;  %v12945_v27 = vpop.f32.mrb[89].mxu1 }
 0x370   : > { %11574 = vst.msk [vmem:[%s15173_s26 + $0x68] sm:$0xf] %vm11547_vm5, %v8731_v56  ;;  %v12950_v9 = vpop.f32.mrb[91].mxu0 }
 0x372   : > { %v8807_v17 = vpop.f32.mrb[90].mxu1 }
 0x373   : > { %11575 = vst.msk [vmem:[%s15173_s26 + $0x6c] sm:$0xf] %vm11547_vm5, %v8807_v17  ;;  %v8883_v3 = vpop.f32.mrb[92].mxu0  ;;  %v12955_v36 = vpop.f32.mrb[91].mxu1 }
 0x374   : > { %11576 = vst.msk [vmem:[%s15173_s26 + $0x70] sm:$0xf] %vm11547_vm5, %v8883_v3  ;;  %v12960_v22 = vpop.f32.mrb[93].mxu0 }
 0x376   : > { %v8959_v10 = vpop.f32.mrb[92].mxu1 }
 0x377   : > { %11577 = vst.msk [vmem:[%s15173_s26 + $0x74] sm:$0xf] %vm11547_vm5, %v8959_v10  ;;  %v9035_v62 = vpop.f32.mrb[94].mxu0  ;;  %v12965_v59 = vpop.f32.mrb[93].mxu1 }
 0x378   : > { %11578 = vst.msk [vmem:[%s15173_s26 + $0x78] sm:$0xf] %vm11547_vm5, %v9035_v62  ;;  %v12970_v23 = vpop.f32.mrb[95].mxu0 }
 0x37a   : > { %v9111_v26 = vpop.f32.mrb[94].mxu1 }
 0x37b   : > { %11579 = vst.msk [vmem:[%s15173_s26 + $0x7c] sm:$0xf] %vm11547_vm5, %v9111_v26  ;;  %v9187_v12 = vpop.f32.mrb[96].mxu0  ;;  %v12975_v35 = vpop.f32.mrb[95].mxu1 }
 0x37c   : > { %11580 = vst.msk [vmem:[%s15173_s26 + $0x80] sm:$0xf] %vm11547_vm5, %v9187_v12  ;;  %v12980_v40 = vpop.f32.mrb[97].mxu0  ;;  %v11637_v35 = vld [vmem:[%s15173_s26] sm:$0xff] (%p13486_p5)  }
 0x37d   : > { %v11641_v40 = vld [vmem:[%s15173_s26 + $0x8] sm:$0xff] (%p13486_p5)   ;;  %11638 = vst [vmem:[%s15313_s30] sm:$0xff] (%p13486_p5), %v11637_v35  }
 0x37e   : > { %v9263_v18 = vpop.f32.mrb[96].mxu1  ;;  %11642 = vst [vmem:[%s15313_s30 + $0x8] sm:$0xff] (%p13486_p5), %v11641_v40  }
 0x37f   : > { %11581 = vst.msk [vmem:[%s15173_s26 + $0x84] sm:$0xf] %vm11547_vm5, %v9263_v18  ;;  %v9339_v16 = vpop.f32.mrb[98].mxu0  ;;  %v12985_v31 = vpop.f32.mrb[97].mxu1  ;;  %v11645_v18 = vld [vmem:[%s15173_s26 + $0x10] sm:$0xff] (%p13486_p5)  }
 0x380   : > { %11582 = vst.msk [vmem:[%s15173_s26 + $0x88] sm:$0xf] %vm11547_vm5, %v9339_v16  ;;  %v12990_v49 = vpop.f32.mrb[99].mxu0  ;;  %v11649_v16 = vld [vmem:[%s15173_s26 + $0x18] sm:$0xff] (%p13486_p5)   ;;  %v11653_v31 = vld [vmem:[%s15173_s26 + $0x20] sm:$0xff] (%p13486_p5)   ;;  %11646 = vst [vmem:[%s15313_s30 + $0x10] sm:$0xff] (%p13486_p5), %v11645_v18  }
 0x381   : > { %v11657_v49 = vld [vmem:[%s15173_s26 + $0x28] sm:$0xff] (%p13486_p5)   ;;  %11650 = vst [vmem:[%s15313_s30 + $0x18] sm:$0xff] (%p13486_p5), %v11649_v16   ;;  %11654 = vst [vmem:[%s15313_s30 + $0x20] sm:$0xff] (%p13486_p5), %v11653_v31  }
 0x382   : > { %v9415_v53 = vpop.f32.mrb[98].mxu1  ;;  %11658 = vst [vmem:[%s15313_s30 + $0x28] sm:$0xff] (%p13486_p5), %v11657_v49  }
 0x383   : > { %11583 = vst.msk [vmem:[%s15173_s26 + $0x8c] sm:$0xf] %vm11547_vm5, %v9415_v53  ;;  %v9491_v55 = vpop.f32.mrb[100].mxu0  ;;  %v12995_v38 = vpop.f32.mrb[99].mxu1  ;;  %v11661_v53 = vld [vmem:[%s15173_s26 + $0x30] sm:$0xff] (%p13486_p5)  }
 0x384   : > { %11584 = vst.msk [vmem:[%s15173_s26 + $0x90] sm:$0xf] %vm11547_vm5, %v9491_v55  ;;  %v13000_v21 = vpop.f32.mrb[101].mxu0  ;;  %v11665_v55 = vld [vmem:[%s15173_s26 + $0x38] sm:$0xff] (%p13486_p5)   ;;  %v11669_v38 = vld [vmem:[%s15173_s26 + $0x40] sm:$0xff] (%p13486_p5)   ;;  %11662 = vst [vmem:[%s15313_s30 + $0x30] sm:$0xff] (%p13486_p5), %v11661_v53  }
 0x385   : > { %11666 = vst [vmem:[%s15313_s30 + $0x38] sm:$0xff] (%p13486_p5), %v11665_v55   ;;  %11670 = vst [vmem:[%s15313_s30 + $0x80] sm:$0xff] (%p13486_p5), %v11669_v38   ;;  %v11673_v21 = vld [vmem:[%s15173_s26 + $0x48] sm:$0xff] (%p13486_p5)  }
 0x386   : > { %v9567_v19 = vpop.f32.mrb[100].mxu1  ;;  %11674 = vst [vmem:[%s15313_s30 + $0x88] sm:$0xff] (%p13486_p5), %v11673_v21  }
 0x387   : > { %11585 = vst.msk [vmem:[%s15173_s26 + $0x94] sm:$0xf] %vm11547_vm5, %v9567_v19  ;;  %v9643_v60 = vpop.f32.mrb[102].mxu0  ;;  %v13005_v41 = vpop.f32.mrb[101].mxu1  ;;  %v11677_v19 = vld [vmem:[%s15173_s26 + $0x50] sm:$0xff] (%p13486_p5)  }
 0x388   : > { %11586 = vst.msk [vmem:[%s15173_s26 + $0x98] sm:$0xf] %vm11547_vm5, %v9643_v60  ;;  %v13010_v61 = vpop.f32.mrb[103].mxu0  ;;  %v11681_v60 = vld [vmem:[%s15173_s26 + $0x58] sm:$0xff] (%p13486_p5)   ;;  %11678 = vst [vmem:[%s15313_s30 + $0x90] sm:$0xff] (%p13486_p5), %v11677_v19   ;;  %v11685_v41 = vld [vmem:[%s15173_s26 + $0x60] sm:$0xff] (%p13486_p5)  }
 0x389   : > { %11682 = vst [vmem:[%s15313_s30 + $0x98] sm:$0xff] (%p13486_p5), %v11681_v60   ;;  %v11689_v61 = vld [vmem:[%s15173_s26 + $0x68] sm:$0xff] (%p13486_p5)   ;;  %11686 = vst [vmem:[%s15313_s30 + $0xa0] sm:$0xff] (%p13486_p5), %v11685_v41  }
 0x38a   : > { %v9719_v15 = vpop.f32.mrb[102].mxu1  ;;  %11690 = vst [vmem:[%s15313_s30 + $0xa8] sm:$0xff] (%p13486_p5), %v11689_v61  }
 0x38b   : > { %11587 = vst.msk [vmem:[%s15173_s26 + $0x9c] sm:$0xf] %vm11547_vm5, %v9719_v15  ;;  %v9795_v54 = vpop.f32.mrb[104].mxu0  ;;  %v13015_v51 = vpop.f32.mrb[103].mxu1  ;;  %v11693_v15 = vld [vmem:[%s15173_s26 + $0x70] sm:$0xff] (%p13486_p5)  }
 0x38c   : > { %11588 = vst.msk [vmem:[%s15173_s26 + $0xa0] sm:$0xf] %vm11547_vm5, %v9795_v54  ;;  %v13020_v30 = vpop.f32.mrb[105].mxu0  ;;  %11694 = vst [vmem:[%s15313_s30 + $0xb0] sm:$0xff] (%p13486_p5), %v11693_v15   ;;  %v11697_v54 = vld [vmem:[%s15173_s26 + $0x78] sm:$0xff] (%p13486_p5)   ;;  %v11701_v51 = vld [vmem:[%s15173_s26 + $0x80] sm:$0xff] (%p13486_p5)  }
 0x38d   : > { %v11705_v30 = vld [vmem:[%s15173_s26 + $0x88] sm:$0xff] (%p13486_p5)   ;;  %11698 = vst [vmem:[%s15313_s30 + $0xb8] sm:$0xff] (%p13486_p5), %v11697_v54   ;;  %11702 = vst [vmem:[%s15313_s30 + $0x100] sm:$0xff] (%p13486_p5), %v11701_v51  }
 0x38e   : > { %v9871_v25 = vpop.f32.mrb[104].mxu1  ;;  %11706 = vst [vmem:[%s15313_s30 + $0x108] sm:$0xff] (%p13486_p5), %v11705_v30  }
 0x38f   : > { %11589 = vst.msk [vmem:[%s15173_s26 + $0xa4] sm:$0xf] %vm11547_vm5, %v9871_v25  ;;  %v9947_v7 = vpop.f32.mrb[106].mxu0  ;;  %v13025_v6 = vpop.f32.mrb[105].mxu1  ;;  %v11709_v25 = vld [vmem:[%s15173_s26 + $0x90] sm:$0xff] (%p13486_p5)  }
 0x390   : > { %11590 = vst.msk [vmem:[%s15173_s26 + $0xa8] sm:$0xf] %vm11547_vm5, %v9947_v7  ;;  %v13030_v37 = vpop.f32.mrb[107].mxu0  ;;  %11710 = vst [vmem:[%s15313_s30 + $0x110] sm:$0xff] (%p13486_p5), %v11709_v25  }
 0x392   : > { %v10023_v39 = vpop.f32.mrb[106].mxu1  ;;  %v11713_v7 = vld [vmem:[%s15173_s26 + $0x98] sm:$0xff] (%p13486_p5)  }
 0x393   : > { %11591 = vst.msk [vmem:[%s15173_s26 + $0xac] sm:$0xf] %vm11547_vm5, %v10023_v39  ;;  %v10099_v48 = vpop.f32.mrb[108].mxu0  ;;  %v13035_v11 = vpop.f32.mrb[107].mxu1  ;;  %11714 = vst [vmem:[%s15313_s30 + $0x118] sm:$0xff] (%p13486_p5), %v11713_v7  }
 0x394   : > { %11592 = vst.msk [vmem:[%s15173_s26 + $0xb0] sm:$0xf] %vm11547_vm5, %v10099_v48  ;;  %v13040_v0 = vpop.f32.mrb[109].mxu0 }
 0x396   : > { %v10175_v43 = vpop.f32.mrb[108].mxu1  ;;  %v11717_v6 = vld [vmem:[%s15173_s26 + $0xa0] sm:$0xff] (%p13486_p5)  }
 0x397   : > { %11593 = vst.msk [vmem:[%s15173_s26 + $0xb4] sm:$0xf] %vm11547_vm5, %v10175_v43  ;;  %v10251_v42 = vpop.f32.mrb[110].mxu0  ;;  %v13045_v63 = vpop.f32.mrb[109].mxu1  ;;  %11718 = vst [vmem:[%s15313_s30 + $0x120] sm:$0xff] (%p13486_p5), %v11717_v6  }
 0x398   : > { %11594 = vst.msk [vmem:[%s15173_s26 + $0xb8] sm:$0xf] %vm11547_vm5, %v10251_v42  ;;  %v13050_v28 = vpop.f32.mrb[111].mxu0 }
 0x39a   : > { %v10327_v33 = vpop.f32.mrb[110].mxu1  ;;  %v11721_v37 = vld [vmem:[%s15173_s26 + $0xa8] sm:$0xff] (%p13486_p5)  }
 0x39b   : > { %11595 = vst.msk [vmem:[%s15173_s26 + $0xbc] sm:$0xf] %vm11547_vm5, %v10327_v33  ;;  %v10403_v50 = vpop.f32.mrb[112].mxu0  ;;  %v13055_v20 = vpop.f32.mrb[111].mxu1  ;;  %11722 = vst [vmem:[%s15313_s30 + $0x128] sm:$0xff] (%p13486_p5), %v11721_v37  }
 0x39c   : > { %11596 = vst.msk [vmem:[%s15173_s26 + $0xc0] sm:$0xf] %vm11547_vm5, %v10403_v50  ;;  %v13060_v46 = vpop.f32.mrb[113].mxu0 }
 0x39e   : > { %v10479_v24 = vpop.f32.mrb[112].mxu1  ;;  %v11725_v39 = vld [vmem:[%s15173_s26 + $0xb0] sm:$0xff] (%p13486_p5)  }
 0x39f   : > { %11597 = vst.msk [vmem:[%s15173_s26 + $0xc4] sm:$0xf] %vm11547_vm5, %v10479_v24  ;;  %v10555_v14 = vpop.f32.mrb[114].mxu0  ;;  %v13065_v57 = vpop.f32.mrb[113].mxu1  ;;  %11726 = vst [vmem:[%s15313_s30 + $0x130] sm:$0xff] (%p13486_p5), %v11725_v39  }
 0x3a0   : > { %11598 = vst.msk [vmem:[%s15173_s26 + $0xc8] sm:$0xf] %vm11547_vm5, %v10555_v14  ;;  %v13070_v5 = vpop.f32.mrb[115].mxu0 }
 0x3a2   : > { %v10631_v29 = vpop.f32.mrb[114].mxu1  ;;  %v11729_v48 = vld [vmem:[%s15173_s26 + $0xb8] sm:$0xff] (%p13486_p5)  }
 0x3a3   : > { %11599 = vst.msk [vmem:[%s15173_s26 + $0xcc] sm:$0xf] %vm11547_vm5, %v10631_v29  ;;  %v10707_v47 = vpop.f32.mrb[116].mxu0  ;;  %v13075_v52 = vpop.f32.mrb[115].mxu1  ;;  %11730 = vst [vmem:[%s15313_s30 + $0x138] sm:$0xff] (%p13486_p5), %v11729_v48  }
 0x3a4   : > { %11600 = vst.msk [vmem:[%s15173_s26 + $0xd0] sm:$0xf] %vm11547_vm5, %v10707_v47  ;;  %v13080_v44 = vpop.f32.mrb[117].mxu0 }
 0x3a6   : > { %v10783_v8 = vpop.f32.mrb[116].mxu1  ;;  %v11733_v11 = vld [vmem:[%s15173_s26 + $0xc0] sm:$0xff] (%p13486_p5)  }
 0x3a7   : > { %11601 = vst.msk [vmem:[%s15173_s26 + $0xd4] sm:$0xf] %vm11547_vm5, %v10783_v8  ;;  %v10859_v58 = vpop.f32.mrb[118].mxu0  ;;  %v13085_v4 = vpop.f32.mrb[117].mxu1  ;;  %11734 = vst [vmem:[%s15313_s30 + $0x180] sm:$0xff] (%p13486_p5), %v11733_v11  }
 0x3a8   : > { %11602 = vst.msk [vmem:[%s15173_s26 + $0xd8] sm:$0xf] %vm11547_vm5, %v10859_v58  ;;  %v13090_v34 = vpop.f32.mrb[119].mxu0 }
 0x3aa   : > { %v10935_v13 = vpop.f32.mrb[118].mxu1  ;;  %v11737_v0 = vld [vmem:[%s15173_s26 + $0xc8] sm:$0xff] (%p13486_p5)  }
 0x3ab   : > { %11603 = vst.msk [vmem:[%s15173_s26 + $0xdc] sm:$0xf] %vm11547_vm5, %v10935_v13  ;;  %v11011_v2 = vpop.f32.mrb[120].mxu0  ;;  %v13095_v1 = vpop.f32.mrb[119].mxu1  ;;  %11738 = vst [vmem:[%s15313_s30 + $0x188] sm:$0xff] (%p13486_p5), %v11737_v0  }
 0x3ac   : > { %11604 = vst.msk [vmem:[%s15173_s26 + $0xe0] sm:$0xf] %vm11547_vm5, %v11011_v2  ;;  %v13100_v32 = vpop.f32.mrb[121].mxu0 }
 0x3ae   : > { %v11087_v45 = vpop.f32.mrb[120].mxu1  ;;  %v11741_v43 = vld [vmem:[%s15173_s26 + $0xd0] sm:$0xff] (%p13486_p5)  }
 0x3af   : > { %11605 = vst.msk [vmem:[%s15173_s26 + $0xe4] sm:$0xf] %vm11547_vm5, %v11087_v45  ;;  %v11163_v56 = vpop.f32.mrb[122].mxu0  ;;  %v13105_v27 = vpop.f32.mrb[121].mxu1  ;;  %11742 = vst [vmem:[%s15313_s30 + $0x190] sm:$0xff] (%p13486_p5), %v11741_v43  }
 0x3b0   : > { %11606 = vst.msk [vmem:[%s15173_s26 + $0xe8] sm:$0xf] %vm11547_vm5, %v11163_v56  ;;  %v13110_v9 = vpop.f32.mrb[123].mxu0 }
 0x3b2   : > { %v11239_v17 = vpop.f32.mrb[122].mxu1  ;;  %v11745_v42 = vld [vmem:[%s15173_s26 + $0xd8] sm:$0xff] (%p13486_p5)  }
 0x3b3   : > { %11607 = vst.msk [vmem:[%s15173_s26 + $0xec] sm:$0xf] %vm11547_vm5, %v11239_v17  ;;  %v11315_v3 = vpop.f32.mrb[124].mxu0  ;;  %v13115_v36 = vpop.f32.mrb[123].mxu1  ;;  %11746 = vst [vmem:[%s15313_s30 + $0x198] sm:$0xff] (%p13486_p5), %v11745_v42  }
 0x3b4   : > { %11608 = vst.msk [vmem:[%s15173_s26 + $0xf0] sm:$0xf] %vm11547_vm5, %v11315_v3  ;;  %v13120_v22 = vpop.f32.mrb[125].mxu0 }
 0x3b5   : > { %11618 = sbr.rel (!%p13486_p5) target bundleno = 964 (0x3c4), region = 69 }
 0x3b6   : > { %v11391_v10 = vpop.f32.mrb[124].mxu1  ;;  %v11749_v63 = vld [vmem:[%s15173_s26 + $0xe0] sm:$0xff] (%p13486_p5)  }
 0x3b7   : > { %11609 = vst.msk [vmem:[%s15173_s26 + $0xf4] sm:$0xf] %vm11547_vm5, %v11391_v10  ;;  %v11467_v62 = vpop.f32.mrb[126].mxu0  ;;  %v13125_v59 = vpop.f32.mrb[125].mxu1  ;;  %11750 = vst [vmem:[%s15313_s30 + $0x1a0] sm:$0xff] (%p13486_p5), %v11749_v63  }
 0x3b8   : > { %11610 = vst.msk [vmem:[%s15173_s26 + $0xf8] sm:$0xf] %vm11547_vm5, %v11467_v62  ;;  %v13130_v23 = vpop.f32.mrb[127].mxu0 }
 0x3ba   : > { %v11543_v26 = vpop.f32.mrb[126].mxu1  ;;  %v11753_v28 = vld [vmem:[%s15173_s26 + $0xe8] sm:$0xff] (%p13486_p5)  }
 0x3bb   : > { %11611 = vst.msk [vmem:[%s15173_s26 + $0xfc] sm:$0xf] %vm11547_vm5, %v11543_v26  ;;  %v13135_v12 = vpop.f32.mrb[127].mxu1  ;;  %11754 = vst [vmem:[%s15313_s30 + $0x1a8] sm:$0xff] (%p13486_p5), %v11753_v28  }
 0x3be   : > { %v11757_v33 = vld [vmem:[%s15173_s26 + $0xf0] sm:$0xff]  }
 0x3bf   : > { %11758 = vst [vmem:[%s15313_s30 + $0x1b0] sm:$0xff] %v11757_v33  }
 0x3c2   : > { %v11761_v50 = vld [vmem:[%s15173_s26 + $0xf8] sm:$0xff]  }
 0x3c3   : > { %11762 = vst [vmem:[%s15313_s30 + $0x1b8] sm:$0xff] %v11761_v50  }
 0x3c4 PF: > { %p8_p10 = scmp.ge.s32.totalorder %s13473_s10, 4   ;;  %s15467_s6 = smov %s13438_s7 }
 0x3c5   : > { %s15468_s7 = smov %s13484_s13  ;;  %s15469_s8 = smov %s13473_s10 }
 0x3c6   :  { %10 = sbr.rel (!%p8_p10) target bundleno = 2 (0x2), region = 141 }

</bundles_post_ra>
